<compile_context>
chip_gen: v5e
topology: v5e:2x2
jax: 0.10.0
libtpu: 0.0.40
codegen_flags: <defaults>
</compile_context>

<pallas_src>
import math
from functools import partial

import jax
import jax.numpy as jnp
from jax import lax
from jax.experimental import pallas as pl
from jax.experimental.pallas import tpu as pltpu


# ----------------------------------------------------------------------------
# TPU-generation-aware knobs
# ----------------------------------------------------------------------------
def _vmem_capacity_bytes():
    try:
        return int(pltpu.get_tpu_info().vmem_capacity_bytes)
    except Exception:
        return 64 * 1024 * 1024  # conservative: v7x per-TensorCore VMEM


def _vmem_limit_bytes():
    # leave headroom below physical VMEM (64 MiB on v7x, 128 MiB on v5e/v6e)
    return (_vmem_capacity_bytes() * 3) // 4


def _pick_time_chunk(l_padded, requested):
    """Largest multiple of 128 that divides the padded length and fits budget."""
    if requested is None:
        requested = 2048 if _vmem_capacity_bytes() >= 96 * 1024 * 1024 else 1024
    t = max(128, min(int(requested), l_padded))
    t = (t // 128) * 128
    while l_padded % t:
        t -= 128
    return t


# ----------------------------------------------------------------------------
# Pallas kernel: one fused ResidualCouplingLayer (mean_only=True, g=None)
# ----------------------------------------------------------------------------
def _coupling_kernel(x0_ref, x1_ref, mask_ref,
                     w_pre_ref, b_pre_ref, w_in_ref, b_in_ref,
                     w_rs_ref, b_rs_ref, w_post_ref, b_post_ref,
                     out_ref, xp_ref, *,
                     n_layers, kernel_size, dilation_rate, pmax, halo,
                     reverse, mm_dtype):
    # x0_ref : (Hc, Ls)   haloed time slab of the pass-through half
    # x1_ref : (Hc, Lc)   center-only chunk of the transformed half
    # mask   : (1,  Ls)   haloed time slab of x_mask
    # out    : (Hc, Lc)   new x1 chunk
    # xp_ref : (H, Ls + 2*pmax) VMEM scratch used as a zero-padded conv buffer
    H = w_pre_ref.shape[0]
    Ls = x0_ref.shape[-1]
    Lc = out_ref.shape[-1]
    half = (kernel_size - 1) // 2

    mask = mask_ref[...].astype(jnp.float32)                       # (1, Ls)

    # ---- pre 1x1 conv:  h = pre(x0) * mask ----
    h = jnp.dot(w_pre_ref[...], x0_ref[...].astype(mm_dtype),
                preferred_element_type=jnp.float32)
    h = (h + b_pre_ref[...]) * mask                                # (H, Ls) f32

    # zero the conv-padding columns once; the center is rewritten every layer
    xp_ref[...] = jnp.zeros_like(xp_ref)

    # ---- WN stack ----
    x = h
    skip = jnp.zeros((H, Ls), jnp.float32)
    for i in range(n_layers):
        d = dilation_rate ** i
        xp_ref[:, pmax:pmax + Ls] = x.astype(mm_dtype)
        w_in_i = w_in_ref[i]                                       # (K, 2H, H)
        acc = jnp.zeros((2 * H, Ls), jnp.float32)
        for k in range(kernel_size):                               # K tap matmuls
            off = pmax + (k - half) * d
            acc = acc + jnp.dot(w_in_i[k], xp_ref[:, off:off + Ls],
                                preferred_element_type=jnp.float32)
        x_in = acc + b_in_ref[i]                                   # (2H, Ls)

        # fused_add_tanh_sigmoid_multiply (g = 0 since gin_channels = 0)
        t_act = jnp.tanh(x_in[:H, :])
        s_act = 1.0 / (1.0 + jnp.exp(-x_in[H:, :]))
        acts = (t_act * s_act).astype(mm_dtype)                    # (H, Ls)

        # res/skip 1x1 conv (last layer packed into the skip rows, res rows = 0)
        rs = jnp.dot(w_rs_ref[i], acts,
                     preferred_element_type=jnp.float32) + b_rs_ref[i]
        x = (x + rs[:H, :]) * mask
        skip = skip + rs[H:, :]
    out_wn = (skip * mask).astype(mm_dtype)                        # (H, Ls)

    # ---- post 1x1 conv (mean-only -> logs == 0) + affine coupling ----
    m = jnp.dot(w_post_ref[...], out_wn, preferred_element_type=jnp.float32)
    m = (m + b_post_ref[...]) * mask                               # (Hc, Ls)

    m_c = m[:, halo:halo + Lc]
    mask_c = mask[:, halo:halo + Lc]
    x1 = x1_ref[...].astype(jnp.float32)
    if reverse:
        y = (x1 - m_c) * mask_c
    else:
        y = m_c + x1 * mask_c
    out_ref[...] = y.astype(out_ref.dtype)


# ----------------------------------------------------------------------------
# Wrapper for one ResidualCouplingLayer
# ----------------------------------------------------------------------------
def _coupling_layer_pallas(lp, x0, x1, x_mask, *, hp, reverse, compute_dtype,
                           time_chunk):
    """x0/x1: (B, Hc, Lp) f32, x_mask: (B, 1, Lp).  Returns new x1 (B, Hc, Lp)."""
    B, Hc, Lp = x0.shape
    H = hp["hidden_channels"]
    K = hp["kernel_size"]
    dr = hp["dilation_rate"]
    nl = hp["n_layers"]
    half = (K - 1) // 2
    halo = half * sum(dr ** i for i in range(nl))   # WN receptive-field radius
    pmax = half * (dr ** (nl - 1))                  # max per-layer conv radius

    Lc = time_chunk
    n_chunks = Lp // Lc
    Ls = Lc + 2 * halo

    # overlapped (haloed) time slabs for the conv path; tight chunks for x1/out
    x0h = jnp.pad(x0, ((0, 0), (0, 0), (halo, halo)))
    mh = jnp.pad(x_mask, ((0, 0), (0, 0), (halo, halo)))
    x0s = jnp.stack([x0h[:, :, c * Lc:c * Lc + Ls] for c in range(n_chunks)], axis=1)
    ms = jnp.stack([mh[:, :, c * Lc:c * Lc + Ls] for c in range(n_chunks)], axis=1)
    x1c = x1.reshape(B, Hc, n_chunks, Lc).transpose(0, 2, 1, 3)

    # bf16 weights (halved HBM traffic, full-rate MXU); biases stay f32
    wdt = compute_dtype
    w_pre = lp["w_pre"].astype(wdt)
    w_in = lp["w_in"].astype(wdt)
    w_rs = lp["w_rs"].astype(wdt)
    w_post = lp["w_post"].astype(wdt)
    b_pre, b_in, b_rs, b_post = lp["b_pre"], lp["b_in"], lp["b_rs"], lp["b_post"]

    kernel = partial(_coupling_kernel,
                     n_layers=nl, kernel_size=K, dilation_rate=dr,
                     pmax=pmax, halo=halo, reverse=reverse, mm_dtype=wdt)

    def data_spec(ch, ln):
        return pl.BlockSpec((None, None, ch, ln), lambda b, c: (b, c, 0, 0))

    def w_spec(a):
        return pl.BlockSpec(a.shape, lambda b, c, _nd=a.ndim: (0,) * _nd)

    flops = 2 * B * n_chunks * Ls * (H * Hc + nl * (K + 1) * 2 * H * H + Hc * H)
    transc = 2 * B * n_chunks * nl * H * Ls
    w_bytes = sum(int(a.size) * a.dtype.itemsize
                  for a in (w_pre, w_in, w_rs, w_post, b_pre, b_in, b_rs, b_post))
    d_bytes = 4 * (int(x0s.size) + int(ms.size) + 2 * int(x1c.size))
    cost = pl.CostEstimate(flops=int(flops), transcendentals=int(transc),
                           bytes_accessed=int(w_bytes + d_bytes))

    out = pl.pallas_call(
        kernel,
        out_shape=jax.ShapeDtypeStruct((B, n_chunks, Hc, Lc), x1.dtype),
        grid=(B, n_chunks),
        in_specs=[
            data_spec(Hc, Ls),            # x0 slab (haloed)
            data_spec(Hc, Lc),            # x1 chunk (center only)
            data_spec(1, Ls),             # mask slab (haloed)
            w_spec(w_pre), w_spec(b_pre),
            w_spec(w_in), w_spec(b_in),
            w_spec(w_rs), w_spec(b_rs),
            w_spec(w_post), w_spec(b_post),
        ],
        out_specs=data_spec(Hc, Lc),
        scratch_shapes=[pltpu.VMEM((H, Ls + 2 * pmax), wdt)],
        compiler_params=pltpu.CompilerParams(
            dimension_semantics=("parallel", "parallel"),
            vmem_limit_bytes=_vmem_limit_bytes()),
        cost_estimate=cost,
    )(x0s, x1c, ms, w_pre, b_pre, w_in, b_in, w_rs, b_rs, w_post, b_post)

    return out.transpose(0, 2, 1, 3).reshape(B, Hc, Lp)


# ----------------------------------------------------------------------------
# ResidualCouplingBlock forward / inverse
# ----------------------------------------------------------------------------
def residual_coupling_block_forward(params, hp, x, x_mask, g=None, reverse=False,
                                    compute_dtype=jnp.bfloat16, time_chunk=None):
    # TODO(synk): global conditioning `g` (gin_channels > 0) is not implemented;
    # this block is constructed with gin_channels=0, so WN has no cond_layer.
    assert g is None, "gin_channels > 0 conditioning not implemented"
    B, C, L = x.shape
    Hc = C // 2
    Lp = ((L + 127) // 128) * 128          # lane-dense time axis
    pad = Lp - L
    if pad:
        x = jnp.pad(x, ((0, 0), (0, 0), (0, pad)))
        x_mask = jnp.pad(x_mask, ((0, 0), (0, 0), (0, pad)))
    Lc = _pick_time_chunk(Lp, time_chunk)

    flows = params["flows"]
    order = flows if not reverse else list(reversed(flows))
    for lp in order:
        if reverse:
            x = jnp.flip(x, axis=1)                    # modules.Flip
        x0, x1 = x[:, :Hc], x[:, Hc:]
        x1n = _coupling_layer_pallas(lp, x0, x1, x_mask, hp=hp, reverse=reverse,
                                     compute_dtype=compute_dtype, time_chunk=Lc)
        x = jnp.concatenate([x0, x1n], axis=1)
        if not reverse:
            x = jnp.flip(x, axis=1)                    # modules.Flip
    if pad:
        x = x[:, :, :L]
    return x


# ----------------------------------------------------------------------------
# Deterministic parameter init (weight_norm folded into effective weights).
# NOTE: VITS zero-inits the `post` conv; random init is used here so the test
# actually exercises the fused kernel math.
# ----------------------------------------------------------------------------
def init_block_params(key, channels, hidden_channels, kernel_size, dilation_rate,
                      n_layers, n_flows):
    del dilation_rate
    Hc = channels // 2
    H = hidden_channels
    K = kernel_size

    def u(k, shape, bound):
        return jax.random.uniform(k, shape, jnp.float32, -bound, bound)

    flows = []
    fkeys = jax.random.split(key, n_flows)
    for f in range(n_flows):
        ks = iter(jax.random.split(fkeys[f], 4 + 4 * n_layers))

        bd = 1.0 / math.sqrt(Hc)
        w_pre = u(next(ks), (H, Hc), bd)
        b_pre = u(next(ks), (H, 1), bd)

        bd_in = 1.0 / math.sqrt(H * K)
        w_in = jnp.stack([u(next(ks), (K, 2 * H, H), bd_in) for _ in range(n_layers)])
        b_in = jnp.stack([u(next(ks), (2 * H, 1), bd_in) for _ in range(n_layers)])

        bd_rs = 1.0 / math.sqrt(H)
        w_rs_l, b_rs_l = [], []
        for i in range(n_layers):
            if i < n_layers - 1:
                w_rs_l.append(u(next(ks), (2 * H, H), bd_rs))
                b_rs_l.append(u(next(ks), (2 * H, 1), bd_rs))
            else:
                # last WN layer has skip channels only: pack them in rows [H:2H]
                w_rs_l.append(jnp.concatenate(
                    [jnp.zeros((H, H), jnp.float32), u(next(ks), (H, H), bd_rs)], axis=0))
                b_rs_l.append(jnp.concatenate(
                    [jnp.zeros((H, 1), jnp.float32), u(next(ks), (H, 1), bd_rs)], axis=0))
        w_rs = jnp.stack(w_rs_l)
        b_rs = jnp.stack(b_rs_l)

        bd_po = 1.0 / math.sqrt(H)
        w_post = u(next(ks), (Hc, H), bd_po)
        b_post = u(next(ks), (Hc, 1), bd_po)

        flows.append(dict(w_pre=w_pre, b_pre=b_pre, w_in=w_in, b_in=b_in,
                          w_rs=w_rs, b_rs=b_rs, w_post=w_post, b_post=b_post))
    return {"flows": flows}


# ----------------------------------------------------------------------------
# Pure-JAX / XLA reference (independent of the Pallas lowering)
# ----------------------------------------------------------------------------
def _conv1d_ref(x, w, b, dilation):
    k = w.shape[-1]
    p = (k - 1) * dilation // 2
    y = lax.conv_general_dilated(
        x, w, window_strides=(1,), padding=[(p, p)], rhs_dilation=(dilation,),
        dimension_numbers=("NCH", "OIH", "NCH"), precision=lax.Precision.HIGHEST)
    return y + b[None, :, None]


def reference_block_forward(params, hp, x, x_mask, reverse=False):
    Hc = hp["channels"] // 2
    H = hp["hidden_channels"]
    dr = hp["dilation_rate"]
    nl = hp["n_layers"]
    prec = lax.Precision.HIGHEST

    def mm(w, a):  # 1x1 conv
        return jnp.einsum("oc,bcl->bol", w, a, precision=prec)

    def layer(lp, xc, rev):
        x0, x1 = xc[:, :Hc], xc[:, Hc:]
        h = (mm(lp["w_pre"], x0) + lp["b_pre"][None]) * x_mask
        xx = h
        out = jnp.zeros_like(h)
        for i in range(nl):
            d = dr ** i
            w_t = jnp.transpose(lp["w_in"][i], (1, 2, 0))       # (2H, H, K) torch layout
            x_in = _conv1d_ref(xx, w_t, lp["b_in"][i, :, 0], d)
            acts = jnp.tanh(x_in[:, :H]) * jax.nn.sigmoid(x_in[:, H:])
            if i < nl - 1:
                rs = mm(lp["w_rs"][i], acts) + lp["b_rs"][i][None]
                xx = (xx + rs[:, :H]) * x_mask
                out = out + rs[:, H:]
            else:
                rs = mm(lp["w_rs"][i, H:], acts) + lp["b_rs"][i, H:][None]
                out = out + rs
        out = out * x_mask
        m = (mm(lp["w_post"], out) + lp["b_post"][None]) * x_mask
        x1n = (m + x1 * x_mask) if not rev else ((x1 - m) * x_mask)
        return jnp.concatenate([x0, x1n], axis=1)

    flows = params["flows"]
    if not reverse:
        for lp in flows:
            x = layer(lp, x, False)
            x = jnp.flip(x, axis=1)
    else:
        for lp in reversed(flows):
            x = jnp.flip(x, axis=1)
            x = layer(lp, x, True)
    return x


# ----------------------------------------------------------------------------
if __name__ == "__main__":
    hp = dict(channels=8, hidden_channels=32, kernel_size=5, dilation_rate=1,
              n_layers=4, n_flows=4)

    key = jax.random.PRNGKey(0)
    k_par, k_x = jax.random.split(key)
    params = init_block_params(k_par, hp["channels"], hp["hidden_channels"],
                               hp["kernel_size"], hp["dilation_rate"],
                               hp["n_layers"], hp["n_flows"])

    B, L = 2, 200
    x = jax.random.normal(k_x, (B, hp["channels"], L), jnp.float32)
    lengths = jnp.array([200, 150], jnp.int32)
    x_mask = (jnp.arange(L)[None, None, :] < lengths[:, None, None]).astype(jnp.float32)

    # --- correctness: f32 compute, 2 time chunks (exercises the halo path) ---
    fwd_f32 = jax.jit(lambda p, a, m: residual_coupling_block_forward(
        p, hp, a, m, compute_dtype=jnp.float32, time_chunk=128))
    rev_f32 = jax.jit(lambda p, a, m: residual_coupling_block_forward(
        p, hp, a, m, reverse=True, compute_dtype=jnp.float32, time_chunk=128))

    y_f32 = fwd_f32(params, x, x_mask)
    y_ref = reference_block_forward(params, hp, x, x_mask)
    jax.block_until_ready((y_f32, y_ref))
    assert y_f32.shape == x.shape
    err_fwd = float(jnp.max(jnp.abs(y_f32 - y_ref)))
    assert math.isfinite(err_fwd) and err_fwd < 5e-2, f"forward mismatch: {err_fwd}"

    x_rec = rev_f32(params, y_f32, x_mask)
    err_inv = float(jnp.max(jnp.abs((x_rec - x) * x_mask)))
    assert math.isfinite(err_inv) and err_inv < 5e-3, f"inverse mismatch: {err_inv}"

    # --- performance path: bf16 matmuls, generation-aware auto time chunk ---
    fwd = jax.jit(lambda p, a, m: residual_coupling_block_forward(p, hp, a, m))
    y = fwd(params, x, x_mask)
    jax.block_until_ready(y)
    assert y.shape == x.shape and bool(jnp.all(jnp.isfinite(y)))

    print("KERNEL_OK")
</pallas_src>

<mosaic_0001>
module attributes {stable_mosaic.version = 11 : i64} {
  func.func @_coupling_kernel(%arg0: i32, %arg1: i32, %arg2: memref<1x1x4x144xf32, #tpu.memory_space<vmem>>, %arg3: memref<1x1x4x128xf32, #tpu.memory_space<vmem>>, %arg4: memref<1x1x1x144xf32, #tpu.memory_space<vmem>>, %arg5: memref<32x4xf32, #tpu.memory_space<vmem>>, %arg6: memref<32x1xf32, #tpu.memory_space<vmem>>, %arg7: memref<4x5x64x32xf32, #tpu.memory_space<vmem>>, %arg8: memref<4x64x1xf32, #tpu.memory_space<vmem>>, %arg9: memref<4x64x32xf32, #tpu.memory_space<vmem>>, %arg10: memref<4x64x1xf32, #tpu.memory_space<vmem>>, %arg11: memref<4x32xf32, #tpu.memory_space<vmem>>, %arg12: memref<4x1xf32, #tpu.memory_space<vmem>>, %arg13: memref<1x1x4x128xf32, #tpu.memory_space<vmem>>, %arg14: memref<32x148xf32, #tpu.memory_space<vmem>>) attributes {dimension_semantics = [#tpu.dimension_semantics<parallel>, #tpu.dimension_semantics<parallel>], iteration_bounds = array<i64: 2, 2>, scalar_prefetch = 0 : i64, scratch_operands = 1 : i64, tpu.core_type = #tpu.core_type<tc>, window_params = [{transform_indices = @transform_0, window_bounds = array<i64: 1, 1, 4, 144>}, {transform_indices = @transform_1, window_bounds = array<i64: 1, 1, 4, 128>}, {transform_indices = @transform_2, window_bounds = array<i64: 1, 1, 1, 144>}, {pipeline_mode = #tpu.pipeline_mode<synchronous>, transform_indices = @transform_3, window_bounds = array<i64: 32, 4>}, {pipeline_mode = #tpu.pipeline_mode<synchronous>, transform_indices = @transform_4, window_bounds = array<i64: 32, 1>}, {pipeline_mode = #tpu.pipeline_mode<synchronous>, transform_indices = @transform_5, window_bounds = array<i64: 4, 5, 64, 32>}, {pipeline_mode = #tpu.pipeline_mode<synchronous>, transform_indices = @transform_6, window_bounds = array<i64: 4, 64, 1>}, {pipeline_mode = #tpu.pipeline_mode<synchronous>, transform_indices = @transform_7, window_bounds = array<i64: 4, 64, 32>}, {pipeline_mode = #tpu.pipeline_mode<synchronous>, transform_indices = @transform_8, window_bounds = array<i64: 4, 64, 1>}, {pipeline_mode = #tpu.pipeline_mode<synchronous>, transform_indices = @transform_9, window_bounds = array<i64: 4, 32>}, {pipeline_mode = #tpu.pipeline_mode<synchronous>, transform_indices = @transform_10, window_bounds = array<i64: 4, 1>}, {transform_indices = @transform_11, window_bounds = array<i64: 1, 1, 4, 128>}]} {
    %c0 = arith.constant 0 : index
    %c0_0 = arith.constant 0 : index
    %c0_1 = arith.constant 0 : index
    %c0_2 = arith.constant 0 : index
    %0 = vector.load %arg4[%c0, %c0_0, %c0_1, %c0_2] : memref<1x1x1x144xf32, #tpu.memory_space<vmem>>, vector<1x1x1x144xf32>
    %1 = vector.shape_cast %0 : vector<1x1x1x144xf32> to vector<1x144xf32>
    %c0_3 = arith.constant 0 : index
    %c0_4 = arith.constant 0 : index
    %2 = vector.load %arg5[%c0_3, %c0_4] : memref<32x4xf32, #tpu.memory_space<vmem>>, vector<32x4xf32>
    %c0_5 = arith.constant 0 : index
    %c0_6 = arith.constant 0 : index
    %c0_7 = arith.constant 0 : index
    %c0_8 = arith.constant 0 : index
    %3 = vector.load %arg2[%c0_5, %c0_6, %c0_7, %c0_8] : memref<1x1x4x144xf32, #tpu.memory_space<vmem>>, vector<1x1x4x144xf32>
    %4 = vector.shape_cast %3 : vector<1x1x4x144xf32> to vector<4x144xf32>
    %cst = arith.constant dense<0.000000e+00> : vector<32x144xf32>
    %5 = tpu.matmul %2, %4, %cst {dimension_numbers = #tpu.dot_dimension_numbers<[1], [0], [0], [1], [0, 0, 1, 1], [], []>} : vector<32x4xf32>, vector<4x144xf32>, vector<32x144xf32> -> vector<32x144xf32>
    %c0_9 = arith.constant 0 : index
    %c0_10 = arith.constant 0 : index
    %6 = vector.load %arg6[%c0_9, %c0_10] : memref<32x1xf32, #tpu.memory_space<vmem>>, vector<32x1xf32>
    %7 = vector.broadcast %6 : vector<32x1xf32> to vector<32x144xf32>
    %8 = arith.addf %5, %7 : vector<32x144xf32>
    %9 = vector.broadcast %1 : vector<1x144xf32> to vector<32x144xf32>
    %10 = arith.mulf %8, %9 : vector<32x144xf32>
    %cst_11 = arith.constant 0.000000e+00 : f32
    %11 = vector.broadcast %cst_11 : f32 to vector<32x148xf32>
    %c0_12 = arith.constant 0 : index
    %c0_13 = arith.constant 0 : index
    %12 = vector.load %arg14[%c0_12, %c0_13] : memref<32x148xf32, #tpu.memory_space<vmem>>, vector<32x148xf32>
    tpu.vector_store %arg14[%c0_12, %c0_13], %11 {strides = array<i32>} : memref<32x148xf32, #tpu.memory_space<vmem>>, vector<32x148xf32>,
    %cst_14 = arith.constant 0.000000e+00 : f32
    %13 = vector.broadcast %cst_14 : f32 to vector<32x144xf32>
    %c0_15 = arith.constant 0 : index
    %c2 = arith.constant 2 : index
    %14 = vector.load %arg14[%c0_15, %c2] : memref<32x148xf32, #tpu.memory_space<vmem>>, vector<32x144xf32>
    tpu.vector_store %arg14[%c0_15, %c2], %10 {strides = array<i32>} : memref<32x148xf32, #tpu.memory_space<vmem>>, vector<32x144xf32>,
    %c0_16 = arith.constant 0 : index
    %c0_17 = arith.constant 0 : index
    %c0_18 = arith.constant 0 : index
    %c0_19 = arith.constant 0 : index
    %15 = vector.load %arg7[%c0_16, %c0_17, %c0_18, %c0_19] : memref<4x5x64x32xf32, #tpu.memory_space<vmem>>, vector<1x5x64x32xf32>
    %16 = vector.shape_cast %15 : vector<1x5x64x32xf32> to vector<5x64x32xf32>
    %cst_20 = arith.constant 0.000000e+00 : f32
    %17 = vector.broadcast %cst_20 : f32 to vector<64x144xf32>
    %18 = vector.extract_strided_slice %16 {offsets = [0, 0, 0], sizes = [1, 64, 32], strides = [1, 1, 1]} : vector<5x64x32xf32> to vector<1x64x32xf32>
    %19 = vector.shape_cast %18 : vector<1x64x32xf32> to vector<64x32xf32>
    %c0_21 = arith.constant 0 : index
    %c0_22 = arith.constant 0 : index
    %20 = vector.load %arg14[%c0_21, %c0_22] : memref<32x148xf32, #tpu.memory_space<vmem>>, vector<32x144xf32>
    %cst_23 = arith.constant dense<0.000000e+00> : vector<64x144xf32>
    %21 = tpu.matmul %19, %20, %cst_23 {dimension_numbers = #tpu.dot_dimension_numbers<[1], [0], [0], [1], [0, 0, 1, 1], [], []>} : vector<64x32xf32>, vector<32x144xf32>, vector<64x144xf32> -> vector<64x144xf32>
    %22 = arith.addf %17, %21 : vector<64x144xf32>
    %23 = vector.extract_strided_slice %16 {offsets = [1, 0, 0], sizes = [1, 64, 32], strides = [1, 1, 1]} : vector<5x64x32xf32> to vector<1x64x32xf32>
    %24 = vector.shape_cast %23 : vector<1x64x32xf32> to vector<64x32xf32>
    %c0_24 = arith.constant 0 : index
    %c1 = arith.constant 1 : index
    %25 = vector.load %arg14[%c0_24, %c1] : memref<32x148xf32, #tpu.memory_space<vmem>>, vector<32x144xf32>
    %cst_25 = arith.constant dense<0.000000e+00> : vector<64x144xf32>
    %26 = tpu.matmul %24, %25, %cst_25 {dimension_numbers = #tpu.dot_dimension_numbers<[1], [0], [0], [1], [0, 0, 1, 1], [], []>} : vector<64x32xf32>, vector<32x144xf32>, vector<64x144xf32> -> vector<64x144xf32>
    %27 = arith.addf %22, %26 : vector<64x144xf32>
    %28 = vector.extract_strided_slice %16 {offsets = [2, 0, 0], sizes = [1, 64, 32], strides = [1, 1, 1]} : vector<5x64x32xf32> to vector<1x64x32xf32>
    %29 = vector.shape_cast %28 : vector<1x64x32xf32> to vector<64x32xf32>
    %c0_26 = arith.constant 0 : index
    %c2_27 = arith.constant 2 : index
    %30 = vector.load %arg14[%c0_26, %c2_27] : memref<32x148xf32, #tpu.memory_space<vmem>>, vector<32x144xf32>
    %cst_28 = arith.constant dense<0.000000e+00> : vector<64x144xf32>
    %31 = tpu.matmul %29, %30, %cst_28 {dimension_numbers = #tpu.dot_dimension_numbers<[1], [0], [0], [1], [0, 0, 1, 1], [], []>} : vector<64x32xf32>, vector<32x144xf32>, vector<64x144xf32> -> vector<64x144xf32>
    %32 = arith.addf %27, %31 : vector<64x144xf32>
    %33 = vector.extract_strided_slice %16 {offsets = [3, 0, 0], sizes = [1, 64, 32], strides = [1, 1, 1]} : vector<5x64x32xf32> to vector<1x64x32xf32>
    %34 = vector.shape_cast %33 : vector<1x64x32xf32> to vector<64x32xf32>
    %c0_29 = arith.constant 0 : index
    %c3 = arith.constant 3 : index
    %35 = vector.load %arg14[%c0_29, %c3] : memref<32x148xf32, #tpu.memory_space<vmem>>, vector<32x144xf32>
    %cst_30 = arith.constant dense<0.000000e+00> : vector<64x144xf32>
    %36 = tpu.matmul %34, %35, %cst_30 {dimension_numbers = #tpu.dot_dimension_numbers<[1], [0], [0], [1], [0, 0, 1, 1], [], []>} : vector<64x32xf32>, vector<32x144xf32>, vector<64x144xf32> -> vector<64x144xf32>
    %37 = arith.addf %32, %36 : vector<64x144xf32>
    %38 = vector.extract_strided_slice %16 {offsets = [4, 0, 0], sizes = [1, 64, 32], strides = [1, 1, 1]} : vector<5x64x32xf32> to vector<1x64x32xf32>
    %39 = vector.shape_cast %38 : vector<1x64x32xf32> to vector<64x32xf32>
    %c0_31 = arith.constant 0 : index
    %c4 = arith.constant 4 : index
    %40 = vector.load %arg14[%c0_31, %c4] : memref<32x148xf32, #tpu.memory_space<vmem>>, vector<32x144xf32>
    %cst_32 = arith.constant dense<0.000000e+00> : vector<64x144xf32>
    %41 = tpu.matmul %39, %40, %cst_32 {dimension_numbers = #tpu.dot_dimension_numbers<[1], [0], [0], [1], [0, 0, 1, 1], [], []>} : vector<64x32xf32>, vector<32x144xf32>, vector<64x144xf32> -> vector<64x144xf32>
    %42 = arith.addf %37, %41 : vector<64x144xf32>
    %c0_33 = arith.constant 0 : index
    %c0_34 = arith.constant 0 : index
    %c0_35 = arith.constant 0 : index
    %43 = vector.load %arg8[%c0_33, %c0_34, %c0_35] : memref<4x64x1xf32, #tpu.memory_space<vmem>>, vector<1x64x1xf32>
    %44 = vector.shape_cast %43 : vector<1x64x1xf32> to vector<64x1xf32>
    %45 = vector.broadcast %44 : vector<64x1xf32> to vector<64x144xf32>
    %46 = arith.addf %42, %45 : vector<64x144xf32>
    %47 = vector.extract_strided_slice %46 {offsets = [0, 0], sizes = [32, 144], strides = [1, 1]} : vector<64x144xf32> to vector<32x144xf32>
    %48 = math.tanh %47 : vector<32x144xf32>
    %49 = vector.extract_strided_slice %46 {offsets = [32, 0], sizes = [32, 144], strides = [1, 1]} : vector<64x144xf32> to vector<32x144xf32>
    %cst_36 = arith.constant 0.000000e+00 : f32
    %50 = vector.broadcast %cst_36 : f32 to vector<32x144xf32>
    %51 = arith.subf %50, %49 : vector<32x144xf32>
    %52 = math.exp %51 : vector<32x144xf32>
    %cst_37 = arith.constant 1.000000e+00 : f32
    %53 = vector.broadcast %cst_37 : f32 to vector<32x144xf32>
    %54 = arith.addf %53, %52 : vector<32x144xf32>
    %cst_38 = arith.constant 1.000000e+00 : f32
    %55 = vector.broadcast %cst_38 : f32 to vector<32x144xf32>
    %56 = arith.divf %55, %54 : vector<32x144xf32>
    %57 = arith.mulf %48, %56 : vector<32x144xf32>
    %c0_39 = arith.constant 0 : index
    %c0_40 = arith.constant 0 : index
    %c0_41 = arith.constant 0 : index
    %58 = vector.load %arg9[%c0_39, %c0_40, %c0_41] : memref<4x64x32xf32, #tpu.memory_space<vmem>>, vector<1x64x32xf32>
    %59 = vector.shape_cast %58 : vector<1x64x32xf32> to vector<64x32xf32>
    %cst_42 = arith.constant dense<0.000000e+00> : vector<64x144xf32>
    %60 = tpu.matmul %59, %57, %cst_42 {dimension_numbers = #tpu.dot_dimension_numbers<[1], [0], [0], [1], [0, 0, 1, 1], [], []>} : vector<64x32xf32>, vector<32x144xf32>, vector<64x144xf32> -> vector<64x144xf32>
    %c0_43 = arith.constant 0 : index
    %c0_44 = arith.constant 0 : index
    %c0_45 = arith.constant 0 : index
    %61 = vector.load %arg10[%c0_43, %c0_44, %c0_45] : memref<4x64x1xf32, #tpu.memory_space<vmem>>, vector<1x64x1xf32>
    %62 = vector.shape_cast %61 : vector<1x64x1xf32> to vector<64x1xf32>
    %63 = vector.broadcast %62 : vector<64x1xf32> to vector<64x144xf32>
    %64 = arith.addf %60, %63 : vector<64x144xf32>
    %65 = vector.extract_strided_slice %64 {offsets = [0, 0], sizes = [32, 144], strides = [1, 1]} : vector<64x144xf32> to vector<32x144xf32>
    %66 = arith.addf %10, %65 : vector<32x144xf32>
    %67 = vector.broadcast %1 : vector<1x144xf32> to vector<32x144xf32>
    %68 = arith.mulf %66, %67 : vector<32x144xf32>
    %69 = vector.extract_strided_slice %64 {offsets = [32, 0], sizes = [32, 144], strides = [1, 1]} : vector<64x144xf32> to vector<32x144xf32>
    %70 = arith.addf %13, %69 : vector<32x144xf32>
    %c0_46 = arith.constant 0 : index
    %c2_47 = arith.constant 2 : index
    %71 = vector.load %arg14[%c0_46, %c2_47] : memref<32x148xf32, #tpu.memory_space<vmem>>, vector<32x144xf32>
    tpu.vector_store %arg14[%c0_46, %c2_47], %68 {strides = array<i32>} : memref<32x148xf32, #tpu.memory_space<vmem>>, vector<32x144xf32>,
    %c1_48 = arith.constant 1 : index
    %c0_49 = arith.constant 0 : index
    %c0_50 = arith.constant 0 : index
    %c0_51 = arith.constant 0 : index
    %72 = vector.load %arg7[%c1_48, %c0_49, %c0_50, %c0_51] : memref<4x5x64x32xf32, #tpu.memory_space<vmem>>, vector<1x5x64x32xf32>
    %73 = vector.shape_cast %72 : vector<1x5x64x32xf32> to vector<5x64x32xf32>
    %cst_52 = arith.constant 0.000000e+00 : f32
    %74 = vector.broadcast %cst_52 : f32 to vector<64x144xf32>
    %75 = vector.extract_strided_slice %73 {offsets = [0, 0, 0], sizes = [1, 64, 32], strides = [1, 1, 1]} : vector<5x64x32xf32> to vector<1x64x32xf32>
    %76 = vector.shape_cast %75 : vector<1x64x32xf32> to vector<64x32xf32>
    %c0_53 = arith.constant 0 : index
    %c0_54 = arith.constant 0 : index
    %77 = vector.load %arg14[%c0_53, %c0_54] : memref<32x148xf32, #tpu.memory_space<vmem>>, vector<32x144xf32>
    %cst_55 = arith.constant dense<0.000000e+00> : vector<64x144xf32>
    %78 = tpu.matmul %76, %77, %cst_55 {dimension_numbers = #tpu.dot_dimension_numbers<[1], [0], [0], [1], [0, 0, 1, 1], [], []>} : vector<64x32xf32>, vector<32x144xf32>, vector<64x144xf32> -> vector<64x144xf32>
    %79 = arith.addf %74, %78 : vector<64x144xf32>
    %80 = vector.extract_strided_slice %73 {offsets = [1, 0, 0], sizes = [1, 64, 32], strides = [1, 1, 1]} : vector<5x64x32xf32> to vector<1x64x32xf32>
    %81 = vector.shape_cast %80 : vector<1x64x32xf32> to vector<64x32xf32>
    %c0_56 = arith.constant 0 : index
    %c1_57 = arith.constant 1 : index
    %82 = vector.load %arg14[%c0_56, %c1_57] : memref<32x148xf32, #tpu.memory_space<vmem>>, vector<32x144xf32>
    %cst_58 = arith.constant dense<0.000000e+00> : vector<64x144xf32>
    %83 = tpu.matmul %81, %82, %cst_58 {dimension_numbers = #tpu.dot_dimension_numbers<[1], [0], [0], [1], [0, 0, 1, 1], [], []>} : vector<64x32xf32>, vector<32x144xf32>, vector<64x144xf32> -> vector<64x144xf32>
    %84 = arith.addf %79, %83 : vector<64x144xf32>
    %85 = vector.extract_strided_slice %73 {offsets = [2, 0, 0], sizes = [1, 64, 32], strides = [1, 1, 1]} : vector<5x64x32xf32> to vector<1x64x32xf32>
    %86 = vector.shape_cast %85 : vector<1x64x32xf32> to vector<64x32xf32>
    %c0_59 = arith.constant 0 : index
    %c2_60 = arith.constant 2 : index
    %87 = vector.load %arg14[%c0_59, %c2_60] : memref<32x148xf32, #tpu.memory_space<vmem>>, vector<32x144xf32>
    %cst_61 = arith.constant dense<0.000000e+00> : vector<64x144xf32>
    %88 = tpu.matmul %86, %87, %cst_61 {dimension_numbers = #tpu.dot_dimension_numbers<[1], [0], [0], [1], [0, 0, 1, 1], [], []>} : vector<64x32xf32>, vector<32x144xf32>, vector<64x144xf32> -> vector<64x144xf32>
    %89 = arith.addf %84, %88 : vector<64x144xf32>
    %90 = vector.extract_strided_slice %73 {offsets = [3, 0, 0], sizes = [1, 64, 32], strides = [1, 1, 1]} : vector<5x64x32xf32> to vector<1x64x32xf32>
    %91 = vector.shape_cast %90 : vector<1x64x32xf32> to vector<64x32xf32>
    %c0_62 = arith.constant 0 : index
    %c3_63 = arith.constant 3 : index
    %92 = vector.load %arg14[%c0_62, %c3_63] : memref<32x148xf32, #tpu.memory_space<vmem>>, vector<32x144xf32>
    %cst_64 = arith.constant dense<0.000000e+00> : vector<64x144xf32>
    %93 = tpu.matmul %91, %92, %cst_64 {dimension_numbers = #tpu.dot_dimension_numbers<[1], [0], [0], [1], [0, 0, 1, 1], [], []>} : vector<64x32xf32>, vector<32x144xf32>, vector<64x144xf32> -> vector<64x144xf32>
    %94 = arith.addf %89, %93 : vector<64x144xf32>
    %95 = vector.extract_strided_slice %73 {offsets = [4, 0, 0], sizes = [1, 64, 32], strides = [1, 1, 1]} : vector<5x64x32xf32> to vector<1x64x32xf32>
    %96 = vector.shape_cast %95 : vector<1x64x32xf32> to vector<64x32xf32>
    %c0_65 = arith.constant 0 : index
    %c4_66 = arith.constant 4 : index
    %97 = vector.load %arg14[%c0_65, %c4_66] : memref<32x148xf32, #tpu.memory_space<vmem>>, vector<32x144xf32>
    %cst_67 = arith.constant dense<0.000000e+00> : vector<64x144xf32>
    %98 = tpu.matmul %96, %97, %cst_67 {dimension_numbers = #tpu.dot_dimension_numbers<[1], [0], [0], [1], [0, 0, 1, 1], [], []>} : vector<64x32xf32>, vector<32x144xf32>, vector<64x144xf32> -> vector<64x144xf32>
    %99 = arith.addf %94, %98 : vector<64x144xf32>
    %c1_68 = arith.constant 1 : index
    %c0_69 = arith.constant 0 : index
    %c0_70 = arith.constant 0 : index
    %100 = vector.load %arg8[%c1_68, %c0_69, %c0_70] : memref<4x64x1xf32, #tpu.memory_space<vmem>>, vector<1x64x1xf32>
    %101 = vector.shape_cast %100 : vector<1x64x1xf32> to vector<64x1xf32>
    %102 = vector.broadcast %101 : vector<64x1xf32> to vector<64x144xf32>
    %103 = arith.addf %99, %102 : vector<64x144xf32>
    %104 = vector.extract_strided_slice %103 {offsets = [0, 0], sizes = [32, 144], strides = [1, 1]} : vector<64x144xf32> to vector<32x144xf32>
    %105 = math.tanh %104 : vector<32x144xf32>
    %106 = vector.extract_strided_slice %103 {offsets = [32, 0], sizes = [32, 144], strides = [1, 1]} : vector<64x144xf32> to vector<32x144xf32>
    %cst_71 = arith.constant 0.000000e+00 : f32
    %107 = vector.broadcast %cst_71 : f32 to vector<32x144xf32>
    %108 = arith.subf %107, %106 : vector<32x144xf32>
    %109 = math.exp %108 : vector<32x144xf32>
    %cst_72 = arith.constant 1.000000e+00 : f32
    %110 = vector.broadcast %cst_72 : f32 to vector<32x144xf32>
    %111 = arith.addf %110, %109 : vector<32x144xf32>
    %cst_73 = arith.constant 1.000000e+00 : f32
    %112 = vector.broadcast %cst_73 : f32 to vector<32x144xf32>
    %113 = arith.divf %112, %111 : vector<32x144xf32>
    %114 = arith.mulf %105, %113 : vector<32x144xf32>
    %c1_74 = arith.constant 1 : index
    %c0_75 = arith.constant 0 : index
    %c0_76 = arith.constant 0 : index
    %115 = vector.load %arg9[%c1_74, %c0_75, %c0_76] : memref<4x64x32xf32, #tpu.memory_space<vmem>>, vector<1x64x32xf32>
    %116 = vector.shape_cast %115 : vector<1x64x32xf32> to vector<64x32xf32>
    %cst_77 = arith.constant dense<0.000000e+00> : vector<64x144xf32>
    %117 = tpu.matmul %116, %114, %cst_77 {dimension_numbers = #tpu.dot_dimension_numbers<[1], [0], [0], [1], [0, 0, 1, 1], [], []>} : vector<64x32xf32>, vector<32x144xf32>, vector<64x144xf32> -> vector<64x144xf32>
    %c1_78 = arith.constant 1 : index
    %c0_79 = arith.constant 0 : index
    %c0_80 = arith.constant 0 : index
    %118 = vector.load %arg10[%c1_78, %c0_79, %c0_80] : memref<4x64x1xf32, #tpu.memory_space<vmem>>, vector<1x64x1xf32>
    %119 = vector.shape_cast %118 : vector<1x64x1xf32> to vector<64x1xf32>
    %120 = vector.broadcast %119 : vector<64x1xf32> to vector<64x144xf32>
    %121 = arith.addf %117, %120 : vector<64x144xf32>
    %122 = vector.extract_strided_slice %121 {offsets = [0, 0], sizes = [32, 144], strides = [1, 1]} : vector<64x144xf32> to vector<32x144xf32>
    %123 = arith.addf %68, %122 : vector<32x144xf32>
    %124 = vector.broadcast %1 : vector<1x144xf32> to vector<32x144xf32>
    %125 = arith.mulf %123, %124 : vector<32x144xf32>
    %126 = vector.extract_strided_slice %121 {offsets = [32, 0], sizes = [32, 144], strides = [1, 1]} : vector<64x144xf32> to vector<32x144xf32>
    %127 = arith.addf %70, %126 : vector<32x144xf32>
    %c0_81 = arith.constant 0 : index
    %c2_82 = arith.constant 2 : index
    %128 = vector.load %arg14[%c0_81, %c2_82] : memref<32x148xf32, #tpu.memory_space<vmem>>, vector<32x144xf32>
    tpu.vector_store %arg14[%c0_81, %c2_82], %125 {strides = array<i32>} : memref<32x148xf32, #tpu.memory_space<vmem>>, vector<32x144xf32>,
    %c2_83 = arith.constant 2 : index
    %c0_84 = arith.constant 0 : index
    %c0_85 = arith.constant 0 : index
    %c0_86 = arith.constant 0 : index
    %129 = vector.load %arg7[%c2_83, %c0_84, %c0_85, %c0_86] : memref<4x5x64x32xf32, #tpu.memory_space<vmem>>, vector<1x5x64x32xf32>
    %130 = vector.shape_cast %129 : vector<1x5x64x32xf32> to vector<5x64x32xf32>
    %cst_87 = arith.constant 0.000000e+00 : f32
    %131 = vector.broadcast %cst_87 : f32 to vector<64x144xf32>
    %132 = vector.extract_strided_slice %130 {offsets = [0, 0, 0], sizes = [1, 64, 32], strides = [1, 1, 1]} : vector<5x64x32xf32> to vector<1x64x32xf32>
    %133 = vector.shape_cast %132 : vector<1x64x32xf32> to vector<64x32xf32>
    %c0_88 = arith.constant 0 : index
    %c0_89 = arith.constant 0 : index
    %134 = vector.load %arg14[%c0_88, %c0_89] : memref<32x148xf32, #tpu.memory_space<vmem>>, vector<32x144xf32>
    %cst_90 = arith.constant dense<0.000000e+00> : vector<64x144xf32>
    %135 = tpu.matmul %133, %134, %cst_90 {dimension_numbers = #tpu.dot_dimension_numbers<[1], [0], [0], [1], [0, 0, 1, 1], [], []>} : vector<64x32xf32>, vector<32x144xf32>, vector<64x144xf32> -> vector<64x144xf32>
    %136 = arith.addf %131, %135 : vector<64x144xf32>
    %137 = vector.extract_strided_slice %130 {offsets = [1, 0, 0], sizes = [1, 64, 32], strides = [1, 1, 1]} : vector<5x64x32xf32> to vector<1x64x32xf32>
    %138 = vector.shape_cast %137 : vector<1x64x32xf32> to vector<64x32xf32>
    %c0_91 = arith.constant 0 : index
    %c1_92 = arith.constant 1 : index
    %139 = vector.load %arg14[%c0_91, %c1_92] : memref<32x148xf32, #tpu.memory_space<vmem>>, vector<32x144xf32>
    %cst_93 = arith.constant dense<0.000000e+00> : vector<64x144xf32>
    %140 = tpu.matmul %138, %139, %cst_93 {dimension_numbers = #tpu.dot_dimension_numbers<[1], [0], [0], [1], [0, 0, 1, 1], [], []>} : vector<64x32xf32>, vector<32x144xf32>, vector<64x144xf32> -> vector<64x144xf32>
    %141 = arith.addf %136, %140 : vector<64x144xf32>
    %142 = vector.extract_strided_slice %130 {offsets = [2, 0, 0], sizes = [1, 64, 32], strides = [1, 1, 1]} : vector<5x64x32xf32> to vector<1x64x32xf32>
    %143 = vector.shape_cast %142 : vector<1x64x32xf32> to vector<64x32xf32>
    %c0_94 = arith.constant 0 : index
    %c2_95 = arith.constant 2 : index
    %144 = vector.load %arg14[%c0_94, %c2_95] : memref<32x148xf32, #tpu.memory_space<vmem>>, vector<32x144xf32>
    %cst_96 = arith.constant dense<0.000000e+00> : vector<64x144xf32>
    %145 = tpu.matmul %143, %144, %cst_96 {dimension_numbers = #tpu.dot_dimension_numbers<[1], [0], [0], [1], [0, 0, 1, 1], [], []>} : vector<64x32xf32>, vector<32x144xf32>, vector<64x144xf32> -> vector<64x144xf32>
    %146 = arith.addf %141, %145 : vector<64x144xf32>
    %147 = vector.extract_strided_slice %130 {offsets = [3, 0, 0], sizes = [1, 64, 32], strides = [1, 1, 1]} : vector<5x64x32xf32> to vector<1x64x32xf32>
    %148 = vector.shape_cast %147 : vector<1x64x32xf32> to vector<64x32xf32>
    %c0_97 = arith.constant 0 : index
    %c3_98 = arith.constant 3 : index
    %149 = vector.load %arg14[%c0_97, %c3_98] : memref<32x148xf32, #tpu.memory_space<vmem>>, vector<32x144xf32>
    %cst_99 = arith.constant dense<0.000000e+00> : vector<64x144xf32>
    %150 = tpu.matmul %148, %149, %cst_99 {dimension_numbers = #tpu.dot_dimension_numbers<[1], [0], [0], [1], [0, 0, 1, 1], [], []>} : vector<64x32xf32>, vector<32x144xf32>, vector<64x144xf32> -> vector<64x144xf32>
    %151 = arith.addf %146, %150 : vector<64x144xf32>
    %152 = vector.extract_strided_slice %130 {offsets = [4, 0, 0], sizes = [1, 64, 32], strides = [1, 1, 1]} : vector<5x64x32xf32> to vector<1x64x32xf32>
    %153 = vector.shape_cast %152 : vector<1x64x32xf32> to vector<64x32xf32>
    %c0_100 = arith.constant 0 : index
    %c4_101 = arith.constant 4 : index
    %154 = vector.load %arg14[%c0_100, %c4_101] : memref<32x148xf32, #tpu.memory_space<vmem>>, vector<32x144xf32>
    %cst_102 = arith.constant dense<0.000000e+00> : vector<64x144xf32>
    %155 = tpu.matmul %153, %154, %cst_102 {dimension_numbers = #tpu.dot_dimension_numbers<[1], [0], [0], [1], [0, 0, 1, 1], [], []>} : vector<64x32xf32>, vector<32x144xf32>, vector<64x144xf32> -> vector<64x144xf32>
    %156 = arith.addf %151, %155 : vector<64x144xf32>
    %c2_103 = arith.constant 2 : index
    %c0_104 = arith.constant 0 : index
    %c0_105 = arith.constant 0 : index
    %157 = vector.load %arg8[%c2_103, %c0_104, %c0_105] : memref<4x64x1xf32, #tpu.memory_space<vmem>>, vector<1x64x1xf32>
    %158 = vector.shape_cast %157 : vector<1x64x1xf32> to vector<64x1xf32>
    %159 = vector.broadcast %158 : vector<64x1xf32> to vector<64x144xf32>
    %160 = arith.addf %156, %159 : vector<64x144xf32>
    %161 = vector.extract_strided_slice %160 {offsets = [0, 0], sizes = [32, 144], strides = [1, 1]} : vector<64x144xf32> to vector<32x144xf32>
    %162 = math.tanh %161 : vector<32x144xf32>
    %163 = vector.extract_strided_slice %160 {offsets = [32, 0], sizes = [32, 144], strides = [1, 1]} : vector<64x144xf32> to vector<32x144xf32>
    %cst_106 = arith.constant 0.000000e+00 : f32
    %164 = vector.broadcast %cst_106 : f32 to vector<32x144xf32>
    %165 = arith.subf %164, %163 : vector<32x144xf32>
    %166 = math.exp %165 : vector<32x144xf32>
    %cst_107 = arith.constant 1.000000e+00 : f32
    %167 = vector.broadcast %cst_107 : f32 to vector<32x144xf32>
    %168 = arith.addf %167, %166 : vector<32x144xf32>
    %cst_108 = arith.constant 1.000000e+00 : f32
    %169 = vector.broadcast %cst_108 : f32 to vector<32x144xf32>
    %170 = arith.divf %169, %168 : vector<32x144xf32>
    %171 = arith.mulf %162, %170 : vector<32x144xf32>
    %c2_109 = arith.constant 2 : index
    %c0_110 = arith.constant 0 : index
    %c0_111 = arith.constant 0 : index
    %172 = vector.load %arg9[%c2_109, %c0_110, %c0_111] : memref<4x64x32xf32, #tpu.memory_space<vmem>>, vector<1x64x32xf32>
    %173 = vector.shape_cast %172 : vector<1x64x32xf32> to vector<64x32xf32>
    %cst_112 = arith.constant dense<0.000000e+00> : vector<64x144xf32>
    %174 = tpu.matmul %173, %171, %cst_112 {dimension_numbers = #tpu.dot_dimension_numbers<[1], [0], [0], [1], [0, 0, 1, 1], [], []>} : vector<64x32xf32>, vector<32x144xf32>, vector<64x144xf32> -> vector<64x144xf32>
    %c2_113 = arith.constant 2 : index
    %c0_114 = arith.constant 0 : index
    %c0_115 = arith.constant 0 : index
    %175 = vector.load %arg10[%c2_113, %c0_114, %c0_115] : memref<4x64x1xf32, #tpu.memory_space<vmem>>, vector<1x64x1xf32>
    %176 = vector.shape_cast %175 : vector<1x64x1xf32> to vector<64x1xf32>
    %177 = vector.broadcast %176 : vector<64x1xf32> to vector<64x144xf32>
    %178 = arith.addf %174, %177 : vector<64x144xf32>
    %179 = vector.extract_strided_slice %178 {offsets = [0, 0], sizes = [32, 144], strides = [1, 1]} : vector<64x144xf32> to vector<32x144xf32>
    %180 = arith.addf %125, %179 : vector<32x144xf32>
    %181 = vector.broadcast %1 : vector<1x144xf32> to vector<32x144xf32>
    %182 = arith.mulf %180, %181 : vector<32x144xf32>
    %183 = vector.extract_strided_slice %178 {offsets = [32, 0], sizes = [32, 144], strides = [1, 1]} : vector<64x144xf32> to vector<32x144xf32>
    %184 = arith.addf %127, %183 : vector<32x144xf32>
    %c0_116 = arith.constant 0 : index
    %c2_117 = arith.constant 2 : index
    %185 = vector.load %arg14[%c0_116, %c2_117] : memref<32x148xf32, #tpu.memory_space<vmem>>, vector<32x144xf32>
    tpu.vector_store %arg14[%c0_116, %c2_117], %182 {strides = array<i32>} : memref<32x148xf32, #tpu.memory_space<vmem>>, vector<32x144xf32>,
    %c3_118 = arith.constant 3 : index
    %c0_119 = arith.constant 0 : index
    %c0_120 = arith.constant 0 : index
    %c0_121 = arith.constant 0 : index
    %186 = vector.load %arg7[%c3_118, %c0_119, %c0_120, %c0_121] : memref<4x5x64x32xf32, #tpu.memory_space<vmem>>, vector<1x5x64x32xf32>
    %187 = vector.shape_cast %186 : vector<1x5x64x32xf32> to vector<5x64x32xf32>
    %cst_122 = arith.constant 0.000000e+00 : f32
    %188 = vector.broadcast %cst_122 : f32 to vector<64x144xf32>
    %189 = vector.extract_strided_slice %187 {offsets = [0, 0, 0], sizes = [1, 64, 32], strides = [1, 1, 1]} : vector<5x64x32xf32> to vector<1x64x32xf32>
    %190 = vector.shape_cast %189 : vector<1x64x32xf32> to vector<64x32xf32>
    %c0_123 = arith.constant 0 : index
    %c0_124 = arith.constant 0 : index
    %191 = vector.load %arg14[%c0_123, %c0_124] : memref<32x148xf32, #tpu.memory_space<vmem>>, vector<32x144xf32>
    %cst_125 = arith.constant dense<0.000000e+00> : vector<64x144xf32>
    %192 = tpu.matmul %190, %191, %cst_125 {dimension_numbers = #tpu.dot_dimension_numbers<[1], [0], [0], [1], [0, 0, 1, 1], [], []>} : vector<64x32xf32>, vector<32x144xf32>, vector<64x144xf32> -> vector<64x144xf32>
    %193 = arith.addf %188, %192 : vector<64x144xf32>
    %194 = vector.extract_strided_slice %187 {offsets = [1, 0, 0], sizes = [1, 64, 32], strides = [1, 1, 1]} : vector<5x64x32xf32> to vector<1x64x32xf32>
    %195 = vector.shape_cast %194 : vector<1x64x32xf32> to vector<64x32xf32>
    %c0_126 = arith.constant 0 : index
    %c1_127 = arith.constant 1 : index
    %196 = vector.load %arg14[%c0_126, %c1_127] : memref<32x148xf32, #tpu.memory_space<vmem>>, vector<32x144xf32>
    %cst_128 = arith.constant dense<0.000000e+00> : vector<64x144xf32>
    %197 = tpu.matmul %195, %196, %cst_128 {dimension_numbers = #tpu.dot_dimension_numbers<[1], [0], [0], [1], [0, 0, 1, 1], [], []>} : vector<64x32xf32>, vector<32x144xf32>, vector<64x144xf32> -> vector<64x144xf32>
    %198 = arith.addf %193, %197 : vector<64x144xf32>
    %199 = vector.extract_strided_slice %187 {offsets = [2, 0, 0], sizes = [1, 64, 32], strides = [1, 1, 1]} : vector<5x64x32xf32> to vector<1x64x32xf32>
    %200 = vector.shape_cast %199 : vector<1x64x32xf32> to vector<64x32xf32>
    %c0_129 = arith.constant 0 : index
    %c2_130 = arith.constant 2 : index
    %201 = vector.load %arg14[%c0_129, %c2_130] : memref<32x148xf32, #tpu.memory_space<vmem>>, vector<32x144xf32>
    %cst_131 = arith.constant dense<0.000000e+00> : vector<64x144xf32>
    %202 = tpu.matmul %200, %201, %cst_131 {dimension_numbers = #tpu.dot_dimension_numbers<[1], [0], [0], [1], [0, 0, 1, 1], [], []>} : vector<64x32xf32>, vector<32x144xf32>, vector<64x144xf32> -> vector<64x144xf32>
    %203 = arith.addf %198, %202 : vector<64x144xf32>
    %204 = vector.extract_strided_slice %187 {offsets = [3, 0, 0], sizes = [1, 64, 32], strides = [1, 1, 1]} : vector<5x64x32xf32> to vector<1x64x32xf32>
    %205 = vector.shape_cast %204 : vector<1x64x32xf32> to vector<64x32xf32>
    %c0_132 = arith.constant 0 : index
    %c3_133 = arith.constant 3 : index
    %206 = vector.load %arg14[%c0_132, %c3_133] : memref<32x148xf32, #tpu.memory_space<vmem>>, vector<32x144xf32>
    %cst_134 = arith.constant dense<0.000000e+00> : vector<64x144xf32>
    %207 = tpu.matmul %205, %206, %cst_134 {dimension_numbers = #tpu.dot_dimension_numbers<[1], [0], [0], [1], [0, 0, 1, 1], [], []>} : vector<64x32xf32>, vector<32x144xf32>, vector<64x144xf32> -> vector<64x144xf32>
    %208 = arith.addf %203, %207 : vector<64x144xf32>
    %209 = vector.extract_strided_slice %187 {offsets = [4, 0, 0], sizes = [1, 64, 32], strides = [1, 1, 1]} : vector<5x64x32xf32> to vector<1x64x32xf32>
    %210 = vector.shape_cast %209 : vector<1x64x32xf32> to vector<64x32xf32>
    %c0_135 = arith.constant 0 : index
    %c4_136 = arith.constant 4 : index
    %211 = vector.load %arg14[%c0_135, %c4_136] : memref<32x148xf32, #tpu.memory_space<vmem>>, vector<32x144xf32>
    %cst_137 = arith.constant dense<0.000000e+00> : vector<64x144xf32>
    %212 = tpu.matmul %210, %211, %cst_137 {dimension_numbers = #tpu.dot_dimension_numbers<[1], [0], [0], [1], [0, 0, 1, 1], [], []>} : vector<64x32xf32>, vector<32x144xf32>, vector<64x144xf32> -> vector<64x144xf32>
    %213 = arith.addf %208, %212 : vector<64x144xf32>
    %c3_138 = arith.constant 3 : index
    %c0_139 = arith.constant 0 : index
    %c0_140 = arith.constant 0 : index
    %214 = vector.load %arg8[%c3_138, %c0_139, %c0_140] : memref<4x64x1xf32, #tpu.memory_space<vmem>>, vector<1x64x1xf32>
    %215 = vector.shape_cast %214 : vector<1x64x1xf32> to vector<64x1xf32>
    %216 = vector.broadcast %215 : vector<64x1xf32> to vector<64x144xf32>
    %217 = arith.addf %213, %216 : vector<64x144xf32>
    %218 = vector.extract_strided_slice %217 {offsets = [0, 0], sizes = [32, 144], strides = [1, 1]} : vector<64x144xf32> to vector<32x144xf32>
    %219 = math.tanh %218 : vector<32x144xf32>
    %220 = vector.extract_strided_slice %217 {offsets = [32, 0], sizes = [32, 144], strides = [1, 1]} : vector<64x144xf32> to vector<32x144xf32>
    %cst_141 = arith.constant 0.000000e+00 : f32
    %221 = vector.broadcast %cst_141 : f32 to vector<32x144xf32>
    %222 = arith.subf %221, %220 : vector<32x144xf32>
    %223 = math.exp %222 : vector<32x144xf32>
    %cst_142 = arith.constant 1.000000e+00 : f32
    %224 = vector.broadcast %cst_142 : f32 to vector<32x144xf32>
    %225 = arith.addf %224, %223 : vector<32x144xf32>
    %cst_143 = arith.constant 1.000000e+00 : f32
    %226 = vector.broadcast %cst_143 : f32 to vector<32x144xf32>
    %227 = arith.divf %226, %225 : vector<32x144xf32>
    %228 = arith.mulf %219, %227 : vector<32x144xf32>
    %c3_144 = arith.constant 3 : index
    %c0_145 = arith.constant 0 : index
    %c0_146 = arith.constant 0 : index
    %229 = vector.load %arg9[%c3_144, %c0_145, %c0_146] : memref<4x64x32xf32, #tpu.memory_space<vmem>>, vector<1x64x32xf32>
    %230 = vector.shape_cast %229 : vector<1x64x32xf32> to vector<64x32xf32>
    %cst_147 = arith.constant dense<0.000000e+00> : vector<64x144xf32>
    %231 = tpu.matmul %230, %228, %cst_147 {dimension_numbers = #tpu.dot_dimension_numbers<[1], [0], [0], [1], [0, 0, 1, 1], [], []>} : vector<64x32xf32>, vector<32x144xf32>, vector<64x144xf32> -> vector<64x144xf32>
    %c3_148 = arith.constant 3 : index
    %c0_149 = arith.constant 0 : index
    %c0_150 = arith.constant 0 : index
    %232 = vector.load %arg10[%c3_148, %c0_149, %c0_150] : memref<4x64x1xf32, #tpu.memory_space<vmem>>, vector<1x64x1xf32>
    %233 = vector.shape_cast %232 : vector<1x64x1xf32> to vector<64x1xf32>
    %234 = vector.broadcast %233 : vector<64x1xf32> to vector<64x144xf32>
    %235 = arith.addf %231, %234 : vector<64x144xf32>
    %236 = vector.extract_strided_slice %235 {offsets = [32, 0], sizes = [32, 144], strides = [1, 1]} : vector<64x144xf32> to vector<32x144xf32>
    %237 = arith.addf %184, %236 : vector<32x144xf32>
    %238 = vector.broadcast %1 : vector<1x144xf32> to vector<32x144xf32>
    %239 = arith.mulf %237, %238 : vector<32x144xf32>
    %c0_151 = arith.constant 0 : index
    %c0_152 = arith.constant 0 : index
    %240 = vector.load %arg11[%c0_151, %c0_152] : memref<4x32xf32, #tpu.memory_space<vmem>>, vector<4x32xf32>
    %cst_153 = arith.constant dense<0.000000e+00> : vector<4x144xf32>
    %241 = tpu.matmul %240, %239, %cst_153 {dimension_numbers = #tpu.dot_dimension_numbers<[1], [0], [0], [1], [0, 0, 1, 1], [], []>} : vector<4x32xf32>, vector<32x144xf32>, vector<4x144xf32> -> vector<4x144xf32>
    %c0_154 = arith.constant 0 : index
    %c0_155 = arith.constant 0 : index
    %242 = vector.load %arg12[%c0_154, %c0_155] : memref<4x1xf32, #tpu.memory_space<vmem>>, vector<4x1xf32>
    %243 = vector.broadcast %242 : vector<4x1xf32> to vector<4x144xf32>
    %244 = arith.addf %241, %243 : vector<4x144xf32>
    %245 = vector.broadcast %1 : vector<1x144xf32> to vector<4x144xf32>
    %246 = arith.mulf %244, %245 : vector<4x144xf32>
    %247 = vector.extract_strided_slice %246 {offsets = [0, 8], sizes = [4, 128], strides = [1, 1]} : vector<4x144xf32> to vector<4x128xf32>
    %248 = vector.extract_strided_slice %1 {offsets = [0, 8], sizes = [1, 128], strides = [1, 1]} : vector<1x144xf32> to vector<1x128xf32>
    %c0_156 = arith.constant 0 : index
    %c0_157 = arith.constant 0 : index
    %c0_158 = arith.constant 0 : index
    %c0_159 = arith.constant 0 : index
    %249 = vector.load %arg3[%c0_156, %c0_157, %c0_158, %c0_159] : memref<1x1x4x128xf32, #tpu.memory_space<vmem>>, vector<1x1x4x128xf32>
    %250 = vector.shape_cast %249 : vector<1x1x4x128xf32> to vector<4x128xf32>
    %251 = vector.broadcast %248 : vector<1x128xf32> to vector<4x128xf32>
    %252 = arith.mulf %250, %251 : vector<4x128xf32>
    %253 = arith.addf %247, %252 : vector<4x128xf32>
    %c0_160 = arith.constant 0 : index
    %c0_161 = arith.constant 0 : index
    %c0_162 = arith.constant 0 : index
    %c0_163 = arith.constant 0 : index
    %254 = vector.load %arg13[%c0_160, %c0_161, %c0_162, %c0_163] : memref<1x1x4x128xf32, #tpu.memory_space<vmem>>, vector<1x1x4x128xf32>
    %255 = vector.shape_cast %254 : vector<1x1x4x128xf32> to vector<4x128xf32>
    %256 = vector.shape_cast %253 : vector<4x128xf32> to vector<1x1x4x128xf32>
    tpu.vector_store %arg13[%c0_160, %c0_161, %c0_162, %c0_163], %256 {strides = array<i32>} : memref<1x1x4x128xf32, #tpu.memory_space<vmem>>, vector<1x1x4x128xf32>,
    return
  }
  func.func @transform_0(%arg0: i32, %arg1: i32) -> (i32, i32, i32, i32) {
    %c0_i32 = arith.constant 0 : i32
    %c0_i32_0 = arith.constant 0 : i32
    %c0_i32_1 = arith.constant 0 : i32
    return %arg0, %arg1, %c0_i32, %c0_i32_0 : i32, i32, i32, i32
  }
  func.func @transform_1(%arg0: i32, %arg1: i32) -> (i32, i32, i32, i32) {
    %c0_i32 = arith.constant 0 : i32
    %c0_i32_0 = arith.constant 0 : i32
    %c0_i32_1 = arith.constant 0 : i32
    return %arg0, %arg1, %c0_i32, %c0_i32_0 : i32, i32, i32, i32
  }
  func.func @transform_2(%arg0: i32, %arg1: i32) -> (i32, i32, i32, i32) {
    %c0_i32 = arith.constant 0 : i32
    %c0_i32_0 = arith.constant 0 : i32
    %c0_i32_1 = arith.constant 0 : i32
    return %arg0, %arg1, %c0_i32, %c0_i32_0 : i32, i32, i32, i32
  }
  func.func @transform_3(%arg0: i32, %arg1: i32) -> (i32, i32) {
    %c0_i32 = arith.constant 0 : i32
    %c0_i32_0 = arith.constant 0 : i32
    %c0_i32_1 = arith.constant 0 : i32
    return %c0_i32, %c0_i32_0 : i32, i32
  }
  func.func @transform_4(%arg0: i32, %arg1: i32) -> (i32, i32) {
    %c0_i32 = arith.constant 0 : i32
    %c0_i32_0 = arith.constant 0 : i32
    %c0_i32_1 = arith.constant 0 : i32
    return %c0_i32, %c0_i32_0 : i32, i32
  }
  func.func @transform_5(%arg0: i32, %arg1: i32) -> (i32, i32, i32, i32) {
    %c0_i32 = arith.constant 0 : i32
    %c0_i32_0 = arith.constant 0 : i32
    %c0_i32_1 = arith.constant 0 : i32
    %c0_i32_2 = arith.constant 0 : i32
    %c0_i32_3 = arith.constant 0 : i32
    return %c0_i32, %c0_i32_0, %c0_i32_1, %c0_i32_2 : i32, i32, i32, i32
  }
  func.func @transform_6(%arg0: i32, %arg1: i32) -> (i32, i32, i32) {
    %c0_i32 = arith.constant 0 : i32
    %c0_i32_0 = arith.constant 0 : i32
    %c0_i32_1 = arith.constant 0 : i32
    %c0_i32_2 = arith.constant 0 : i32
    return %c0_i32, %c0_i32_0, %c0_i32_1 : i32, i32, i32
  }
  func.func @transform_7(%arg0: i32, %arg1: i32) -> (i32, i32, i32) {
    %c0_i32 = arith.constant 0 : i32
    %c0_i32_0 = arith.constant 0 : i32
    %c0_i32_1 = arith.constant 0 : i32
    %c0_i32_2 = arith.constant 0 : i32
    return %c0_i32, %c0_i32_0, %c0_i32_1 : i32, i32, i32
  }
  func.func @transform_8(%arg0: i32, %arg1: i32) -> (i32, i32, i32) {
    %c0_i32 = arith.constant 0 : i32
    %c0_i32_0 = arith.constant 0 : i32
    %c0_i32_1 = arith.constant 0 : i32
    %c0_i32_2 = arith.constant 0 : i32
    return %c0_i32, %c0_i32_0, %c0_i32_1 : i32, i32, i32
  }
  func.func @transform_9(%arg0: i32, %arg1: i32) -> (i32, i32) {
    %c0_i32 = arith.constant 0 : i32
    %c0_i32_0 = arith.constant 0 : i32
    %c0_i32_1 = arith.constant 0 : i32
    return %c0_i32, %c0_i32_0 : i32, i32
  }
  func.func @transform_10(%arg0: i32, %arg1: i32) -> (i32, i32) {
    %c0_i32 = arith.constant 0 : i32
    %c0_i32_0 = arith.constant 0 : i32
    %c0_i32_1 = arith.constant 0 : i32
    return %c0_i32, %c0_i32_0 : i32, i32
  }
  func.func @transform_11(%arg0: i32, %arg1: i32) -> (i32, i32, i32, i32) {
    %c0_i32 = arith.constant 0 : i32
    %c0_i32_0 = arith.constant 0 : i32
    %c0_i32_1 = arith.constant 0 : i32
    return %arg0, %arg1, %c0_i32, %c0_i32_0 : i32, i32, i32, i32
  }
}

</mosaic_0001>

<bundles_post_ra>
// kernel: reverse
= control target key start
LH: loop header
LB: loop body
LE: loop exit
PB: predicated region body
PF: predicated region fallthrough
CT: control target
= control target key end

     0   :  { %s487_s6 = smov 0   ;;  %s489_s7 = smov 0   ;;  %s529_s0 = inlined_call_operand.vmem [shape: f32[2,4,256], index: 0, kind: input, shape index: {}]   ;;  %s530_s1 = inlined_call_operand.vmem [shape: f32[2,4,256], index: 1, kind: output, shape index: {}]  }
   0x1   :  { %s491_s8 = smov 0  }
   0x2 LB: > { %s353_s9 = sadd.s32 4294967295, %s467_s8   ;;  %s19_s10 = sadd.s32 1, %s463_s7  ;;  %s467_s8 = sphi %s491_s8, %s7_s8   ;;  %s463_s7 = sphi %s489_s7, %s532_s7   ;;  %s459_s6 = sphi %s487_s6, %s531_s6  }
   0x3   : > { %p20_p0 = scmp.ge.s32.totalorder %s19_s10, 2  ;;  %p355_p1 = scmp.ge.s32.totalorder %s467_s8, 2 }
   0x4   : > { %s42_s11 = sand.u32 (!%p355_p1), 1, %s467_s8   ;;  %s357_s12 = sshll.u32 (!%p355_p1), %s463_s7, 2 }
   0x5   : > { %s534_s10 = smov (%p20_p0, %s19_s10), 0  ;;  %40 = sbr.rel (%p355_p1) target bundleno = 18 (0x12), region = 16 }
   0x6   : > { %s356_s13 = sshll.u32 (!%p355_p1), %s42_s11, 4  ;;  %s58_s16 = scalar_lea.vmem (!%p355_p1), %s529_s0, %s357_s12  }
   0x7   : > { %s44_s17 = scalar_lea.vmem (!%p355_p1), [#allocation1], %s356_s13  ;;  %s473_s20 = smov (!%p355_p1), 0  }
   0x8   : > { %s60_s18 = scalar_lea.vmem (!%p355_p1), %s44_s17, 4 [#allocation1]  }
   0x9   : > { %s469_s19 = smov (!%p355_p1), %s60_s18  }
   0xa LB: >> { %v80_v0 = vld [vmem:[%s58_s16] sm:$0xf]  ;;  %v82_v1 = vld [vmem:[%s58_s16 + $0x8] sm:$0xf]  ;;  %s74_s20 = sadd.s32 1, %s475_s20   ;;  %s475_s20 = sphi %s473_s20, %s74_s20   ;;  %s471_s19 = sphi %s469_s19, %s470_s19  }
   0xb   : >> { %81 = vst [vmem:[%s471_s19] sm:$0xf] %v80_v0  ;;  %p73_p2 = scmp.ge.s32.totalorder %s74_s20, 1 }
   0xc   : >> { %83 = vst [vmem:[%s471_s19 + $0x8] sm:$0xf] %v82_v1  ;;  %s470_s19 = smov %s60_s18  }
   0xd   : > { %76 = sbr.rel (!%p73_p2) target bundleno = 10 (0xa), region = 143 }
  0x12 PF: > { %p362_p3 = scmp.ge.s32.totalorder %s467_s8, 1  ;;  %p133_p4 = scmp.lt.s32.totalorder %s467_s8, 3 }
  0x14   : > { %p134_p5 = pnand %p362_p3, %p133_p4 }
  0x15   : > { %s144_s21 = sand.u32 (!%p134_p5), 1, %s353_s9   ;;  %s370_s26 = sshll.u32 (!%p134_p5), %s459_s6, 2 }
  0x16   : > { %137 = sbr.rel (%p134_p5) target bundleno = 59 (0x3b), region = 57  ;;  %s363_s22 = sshll.u32 (!%p134_p5), %s144_s21, 4 }
  0x17   : > { %s146_s23 = scalar_lea.vmem (!%p134_p5), [#allocation1], %s363_s22  ;;  %s364_s24 = sshll.u32 (!%p134_p5), %s144_s21, 3 }
  0x18   : > { %s150_s25 = scalar_lea.vmem (!%p134_p5), [#allocation3], %s364_s24  ;;  %s221_s29 = scalar_lea.vmem (!%p134_p5), %s530_s1, %s370_s26 }
  0x1b   : > { %v365_v2 = vld [vmem:[%s146_s23 + $0xc] sm:$0xf]  ;;  %v366_v3 = vld [vmem:[%s146_s23 + $0x8] sm:$0xf]  ;;  %v367_v4 = vld [vmem:[%s146_s23 + $0x4] sm:$0xf]  ;;  %v181_v6 = vlaneseq }
  0x1c   : > { %156 = vst [vmem:[#allocation0 + $0x18] sm:$0xf] %v365_v2  ;;  %v165_v5 = vld [vmem:[%s146_s23] sm:$0xf] }
  0x1d   : > { %160 = vst [vmem:[#allocation0 + $0x10] sm:$0xf] %v366_v3  ;;  %v182_v7 = vshrl.u32 %v181_v6, 7 }
  0x1e   : > { %164 = vst [vmem:[#allocation0 + $0x8] sm:$0xf] %v367_v4 }
  0x1f   : > { %166 = vst [vmem:[#allocation0] sm:$0xf] %v165_v5  ;;  %vm183_vm0 = vcmp.lt.s32.totalorder %v182_v7, 4 }
  0x23   : > { %v193_v8 = vld [vmem:[#allocation0 + $0x1f] ss:$-1 sm:$0xff] }
  0x24   : > { %v188_v9 = vld [vmem:[#allocation0 + $0x17] ss:$-1 sm:$0xff]  ;;  %v194_v10 = vrot.slane %v193_v8, 4 }
  0x25   : > { %v179_v11 = vld [vmem:[#allocation0 + $0xf] ss:$-1 sm:$0xff]  ;;  %v189_v12 = vrot.slane %v188_v9, 4 }
  0x26   : > { %v174_v13 = vld [vmem:[#allocation0 + $0x7] ss:$-1 sm:$0xff]  ;;  %v180_v14 = vrot.slane %v179_v11, 4 }
  0x27   : > { %v175_v15 = vrot.slane %v174_v13, 4  ;;  %190 = vst [vmem:[#allocation2 + $0x8] sm:$0xff] %v189_v12 }
  0x28   : > { %198 = vst.msk [vmem:[#allocation2 + $0x8] sm:$0xff] %vm183_vm0, %v194_v10 }
  0x29   : > { %176 = vst [vmem:[#allocation2] sm:$0xff] %v175_v15 }
  0x2a   : > { %184 = vst.msk [vmem:[#allocation2] sm:$0xff] %vm183_vm0, %v180_v14 }
  0x2f   : > { %v206_v16 = vld [vmem:[#allocation2 + $0x8] sm:$0xf] }
  0x30   : > { %368 = vst [vmem:[%s150_s25 + $0x4] sm:$0xf] %v206_v16 }
  0x31   : > { %v201_v17 = vld [vmem:[#allocation2] sm:$0xf] }
  0x32   : > { %204 = vst [vmem:[%s150_s25] sm:$0xf] %v201_v17 }
  0x37   : > { %v240_v18 = vld [vmem:[%s150_s25 + $0x4] sm:$0xf] }
  0x38   : > { %241 = vst [vmem:[%s221_s29 + $0x8] sm:$0xf] %v240_v18 }
  0x39   : > { %v238_v19 = vld [vmem:[%s150_s25] sm:$0xf] }
  0x3a   : > { %239 = vst [vmem:[%s221_s29] sm:$0xf] %v238_v19 }
  0x3b PF: > { %s7_s8 = sadd.s32 1, %s467_s8   ;;  %s531_s6 = smov %s463_s7 }
  0x3c   : > { %p4_p6 = scmp.ge.s32.totalorder %s7_s8, 4   ;;  %s532_s7 = smov %s534_s10 }
  0x3e   :  { %6 = sbr.rel (!%p4_p6) target bundleno = 2 (0x2), region = 154 }

// kernel: reverse.6
= control target key start
LH: loop header
LB: loop body
LE: loop exit
PB: predicated region body
PF: predicated region fallthrough
CT: control target
= control target key end

     0   :  { %2 = vsyncpa [#allocation2], 0  ;;  %s381_s0 = inlined_call_operand.vmem [shape: f32[2,8,200], index: 0, kind: input, shape index: {}]   ;;  %s382_s1 = inlined_call_operand.hbm [shape: f32[2,8,200], index: 1, kind: output, shape index: {}]  }
   0x1   :  { %4 = vsyncpa [#allocation2 + $0x1], 0  ;;  %s322_s6 = smov 0   ;;  %s324_s7 = smov 0  }
   0x2   :  { %s326_s8 = smov 0  }
   0x3 LB: > { %s211_s9 = sadd.s32 4294967295, %s307_s8   ;;  %s212_s10 = sadd.s32 4294967294, %s307_s8   ;;  %s307_s8 = sphi %s326_s8, %s10_s8   ;;  %s303_s7 = sphi %s324_s7, %s384_s7   ;;  %s299_s6 = sphi %s322_s6, %s383_s6  }
   0x4   : > { %s22_s11 = sadd.s32 1, %s303_s7  ;;  %p214_p1 = scmp.ge.s32.totalorder %s307_s8, 2 }
   0x5   : > { %p23_p0 = scmp.ge.s32.totalorder %s22_s11, 2  ;;  %s45_s12 = sand.u32 (!%p214_p1), 1, %s307_s8  }
   0x6   : > { %43 = sbr.rel (%p214_p1) target bundleno = 14 (0xe), region = 16  ;;  %s216_s13 = sshll.u32 (!%p214_p1), %s303_s7, 3 }
   0x7   : > { %s386_s11 = smov (%p23_p0, %s22_s11), 0  ;;  %s215_s14 = sshll.u32 (!%p214_p1), %s45_s12, 4 }
   0x8   : > { %s55_s17 = scalar_lea.vmem (!%p214_p1), %s381_s0, %s216_s13  ;;  %s47_s18 = scalar_lea.vmem (!%p214_p1), [#allocation0], %s215_s14 }
   0xb   : > { %v86_v0 = vld [vmem:[%s55_s17] sm:$0xff]  ;;  %v88_v1 = vld [vmem:[%s55_s17 + $0x10] sm:$0xff] }
   0xc   : > { %87 = vst [vmem:[%s47_s18] sm:$0xff] %v86_v0 }
   0xd   : > { %89 = vst [vmem:[%s47_s18 + $0x8] sm:$0xff] %v88_v1 }
   0xe PF: > { %p217_p2 = scmp.ge.s32.totalorder %s307_s8, 1  ;;  %p94_p3 = scmp.lt.s32.totalorder %s307_s8, 3 }
  0x10   : > { %p95_p4 = pnand %p217_p2, %p94_p3 }
  0x11   : > { %s352_s19 = sand.u32 (!%p95_p4), 1, %s211_s9   ;;  %s224_s20 = sshll.u32 (!%p95_p4), %s299_s6, 3 }
  0x12   : > { %98 = sbr.rel (%p95_p4) target bundleno = 34 (0x22), region = 54  ;;  %s218_s21 = sshll.u32 (!%p95_p4), %s352_s19, 4 }
  0x13   : > { %s103_s22 = scalar_lea.vmem (!%p95_p4), [#allocation0], %s218_s21  ;;  %s137_s25 = scalar_lea.hbm (!%p95_p4), %s382_s1, %s224_s20 }
  0x14   : > { %s112_s26 = scalar_lea.vmem (!%p95_p4), [#allocation1], %s218_s21  ;;  %s140_s28 = sshll.u32 (!%p95_p4), %s137_s25, 4  ;;  %s141_s28 = int_to_ptr.hbm [resolvable:$true] %s140_s28 }
  0x15   : > { %s138_s27 = sshll.u32 (!%p95_p4), %s112_s26, 4  ;;  %s125_s29 = scalar_lea.sflag (!%p95_p4), [#allocation2], %s352_s19  ;;  %s139_s27 = int_to_ptr.vmem [resolvable:$true] %s138_s27 }
  0x16   : > { %s269_s30 = sshra.s32 (!%p95_p4), %s141_s28, 4  ;;  %s273_s5 = scalar_lea.hbm (!%p95_p4), %s382_s1, 32  ;;  %s270_s30 = int_to_ptr.hbm [resolvable:$true] %s269_s30 }
  0x17   : > { %v220_v2 = vld [vmem:[%s103_s22 + $0x7] ss:$-1 sm:$0xff]  ;;  %v221_v3 = vld [vmem:[%s103_s22 + $0xf] ss:$-1 sm:$0xff]  ;;  %s271_s2 = scalar_lea.hbm %s270_s30, 16  ;;  %p274_p6 = scmp.lt.s32.totalorder %s270_s30, %s382_s1 }
  0x18   : > { %118 = vst [vmem:[%s112_s26] sm:$0xff] %v220_v2  ;;  %p272_p5 = scmp.ne.s32.totalorder %s270_s30, %s271_s2  ;;  %p275_p7 = scmp.lt.s32.totalorder %s273_s5, %s271_s2 }
  0x19   : > { %222 = vst [vmem:[%s112_s26 + $0x8] sm:$0xff] %v221_v3 }
  0x1a   : > { %p276_p8 = por %p275_p7, %p274_p6 }
  0x1c   : > { %p277_p9 = pnand %p276_p8, %p272_p5 }
  0x1e   : > { %280 = shalt.err (!%p277_p9)
}
  0x1f   : > { %s309_s12 = smov 128   ;;  %s310_s13 = smov 256  }
  0x20   : > { %s311_s14 = smov 8  }
  0x21   : > { %146 = dma.vmem_to_hbm [thread:$0]  %s139_s27, 256, %s141_s28, %s125_s29, %s309_s12, %s310_s13, %s311_s14  }
  0x22 PF: > { %s152_s10 = sand.u32 1, %s212_s10  }
  0x23   : > { %s153_s15 = scalar_lea.sflag [#allocation2], %s152_s10 }
  0x24   : > { %294 = dma.done.wait (%p214_p1), %s153_s15, 256  }
  0x25   : > { %296 = vsyncadd (%p214_p1), %s153_s15, 4294967040  ;;  %s10_s8 = sadd.s32 1, %s307_s8   ;;  %s383_s6 = smov %s303_s7 }
  0x26   : > { %p7_p10 = scmp.ge.s32.totalorder %s10_s8, 4   ;;  %s384_s7 = smov %s386_s11 }
  0x28   :  { %9 = sbr.rel (!%p7_p10) target bundleno = 3 (0x3), region = 89 }
  0x2d   :  { %159 = vsyncpa [#allocation2], 1 }
  0x2e   :  { %161 = vsyncpa [#allocation2 + $0x1], 1 }

// kernel: _lambda_.4
= control target key start
LH: loop header
LB: loop body
LE: loop exit
PB: predicated region body
PF: predicated region fallthrough
CT: control target
= control target key end

     0   :  { %s6927_s17 = smov 0   ;;  %s6929_s18 = smov 0   ;;  %s10085_s0 = inlined_call_operand.vmem [shape: f32[2,2,4,144], index: 0, kind: input, shape index: {}]   ;;  %s10086_s1 = inlined_call_operand.vmem [shape: f32[2,2,4,128], index: 1, kind: input, shape index: {}]   ;;  %s10087_s2 = inlined_call_operand.vmem [shape: f32[2,2,1,144], index: 2, kind: input, shape index: {}]   ;;  %s10088_s3 = inlined_call_operand.vmem [shape: f32[32,4], index: 3, kind: input, shape index: {}]   ;;  %s10089_s4 = inlined_call_operand.vmem [shape: f32[32,1], index: 4, kind: input, shape index: {}]   ;;  %s10090_s5 = inlined_call_operand.vmem [shape: f32[4,5,64,32], index: 5, kind: input, shape index: {}]   ;;  %s10091_s6 = inlined_call_operand.vmem [shape: f32[4,64,1], index: 6, kind: input, shape index: {}]   ;;  %s10092_s7 = inlined_call_operand.vmem [shape: f32[4,64,32], index: 7, kind: input, shape index: {}]   ;;  %s10093_s8 = inlined_call_operand.vmem [shape: f32[4,64,1], index: 8, kind: input, shape index: {}]   ;;  %s10094_s9 = inlined_call_operand.vmem [shape: f32[4,32], index: 9, kind: input, shape index: {}]   ;;  %s10095_s10 = inlined_call_operand.vmem [shape: f32[4,1], index: 10, kind: input, shape index: {}]   ;;  %s10096_s11 = inlined_call_operand.vmem [shape: f32[2,2,4,128], index: 11, kind: output, shape index: {}]  }
   0x1   :  { %10150 = sst [smem:[#allocation48_spill]] %s10085_s0  ;;  %s6931_s19 = smov 0  }
   0x2   :  { %10151 = sst [smem:[#allocation49_spill]] %s10087_s2  ;;  %s6933_s20 = smov 0  }
   0x3   :  { %10152 = sst [smem:[#allocation50_spill]] %s10088_s3  ;;  %s6935_s21 = smov 0  }
   0x4 LB: > { %s30_s22 = sadd.s32 1, %s6848_s19  ;;  %s33_s23 = sadd.s32 1, %s6852_s20  ;;  %s6856_s21 = sphi %s6935_s21, %s21_s21   ;;  %s6852_s20 = sphi %s6933_s20, %s10818_s20   ;;  %s6848_s19 = sphi %s6931_s19, %s10817_s19   ;;  %s6844_s18 = sphi %s6929_s18, %s10816_s18   ;;  %s6840_s17 = sphi %s6927_s17, %s10815_s17  }
   0x5   : > { %p31_p0 = scmp.ge.s32.totalorder %s30_s22, 2  ;;  %p5652_p1 = scmp.ge.s32.totalorder %s6856_s21, 1 }
   0x6   : > { %p387_p2 = scmp.lt.s32.totalorder %s6856_s21, 5 }
   0x7   : > { %s10820_s22 = smov (%p31_p0, %s30_s22), 0  ;;  %s10822_s23 = smov (!%p31_p0, %s33_s23), %s6852_s20 }
   0x8   : > { %p388_p3 = pnand %p5652_p1, %p387_p2  ;;  %p35_p4 = scmp.ge.s32.totalorder %s10822_s23, 2 }
   0xa   : > { %s10824_s23 = smov (%p35_p4, %s10822_s23), 0  ;;  %391 = sbr.rel (%p388_p3) target bundleno = 3549 (0xddd), region = 64 }
   0xf   : > { %p450_p5 = scmp.lt.s32.totalorder %s6844_s18, 1  ;;  %p452_p6 = scmp.lt.s32.totalorder %s6840_s17, 1  ;;  %v490_v0 = vld [vmem:[%s10089_s4 + $0x8] sm:$0xff]  ;;  %v492_v1 = vld [vmem:[%s10089_s4 + $0x18] sm:$0xff]  ;;  %v6858_v2 = vmov 0   ;;  %v489_v3 = vld [vmem:[%s10089_s4] sm:$0xff] }
  0x10   : > { %6304 = vset.pattern.permute.xlu1 %v6858_v2  ;;  %6303 = vset.pattern.permute.xlu0 %v6858_v2  ;;  %s10153_s0 = sld [smem:[#allocation48_spill]]  ;;  %v491_v4 = vld [vmem:[%s10089_s4 + $0x10] sm:$0xff]  ;;  %vm530_vm0 = vcmask 1043456   ;;  %vm517_vm1 = vcmask 31744   ;;  %v6859_v14 = vmov 0.0   ;;  %s10126_s27 = smov 2  }
  0x11   : > { %s10826_s18 = smov (!%p450_p5, %s6844_s18), 1  ;;  %s10828_s17 = smov (!%p452_p6, %s6840_s17), 1  ;;  %500 = vperm.xlu1 %6304, %v490_v0   ;;  %510 = vperm.xlu0 %6303, %v492_v1   ;;  %613 = vst [vmem:[#allocation2 + $0x30] sm:$0xff] %v6859_v14  ;;  %vm607_vm2 = vcmask 162816   ;;  %vm10122_vm3 = vcmask 1047568   ;;  %vm10121_vm4 = vcmask 15360  }
  0x12   : > { %s5654_s28 = sshll.u32 %s10826_s18, 2  ;;  %6385 = vset.pattern.permute.xlu2 %v6858_v2  ;;  %s5653_s29 = sshll.u32 %s10828_s17, 1  ;;  %606 = vst [vmem:[#allocation2] sm:$0xff] %v6859_v14  ;;  %vm10120_vm5 = vcmask 146432   ;;  %vm10119_vm6 = vcmask 1039360   ;;  %vm10123_vm7 = vcmask 261120  }
  0x13   : > { %s6969_s30 = sadd.s32 %s5654_s28, %s5653_s29  ;;  %s10154_s3 = sld [smem:[#allocation50_spill]]  ;;  %609 = vst [vmem:[#allocation2 + $0x10] sm:$0xff] %v6859_v14  ;;  %vm10118_vm8 = vcmask 1031168   ;;  %vm10116_vm9 = vcmask 1014784   ;;  %vm10117_vm10 = vcmask 1022976  }
  0x14   : > { %s5655_s12 = sshll.u32 %s6969_s30, 2  ;;  %s10155_s2 = sld [smem:[#allocation49_spill]]  ;;  %611 = vst [vmem:[#allocation2 + $0x20] sm:$0xff] %v6859_v14 }
  0x15   : > { %614 = vst.msk [vmem:[#allocation2 + $0x38] sm:$0xff] %vm607_vm2, %v6859_v14  ;;  %s10101_s28 = smov 126   ;;  %s10097_s29 = smov 124  }
  0x16   : > { %s458_s15 = scalar_lea.vmem %s10153_s0, %s5655_s12  ;;  %608 = vst.msk [vmem:[#allocation2 + $0x8] sm:$0xff] %vm607_vm2, %v6859_v14  ;;  %s10099_s12 = smov 125  }
  0x17   : > { %v488_v5 = vld [vmem:[%s458_s15] sm:$0xff]  ;;  %610 = vst.msk [vmem:[#allocation2 + $0x18] sm:$0xff] %vm607_vm2, %v6859_v14  ;;  %s10263_s15 = smov 126   ;;  %s10264_s16 = smov 124  }
  0x18   : > { %514 = vst [vmem:[#allocation1] ss:$2 sm:$0xff] %v488_v5  ;;  %v1417_v5 = vld [vmem:[%s10091_s6 + $0x20] sm:$0xff]  ;;  %s10265_s24 = smov 125   ;;  %s6865_s13 = smov 120  }
  0x19   : > { %495 = vperm.xlu1 %6304, %v489_v3   ;;  %505 = vperm.xlu0 %6303, %v491_v4   ;;  %v484_v6 = vld [vmem:[%s10154_s3] sm:$0xff]  ;;  %v487_v7 = vld [vmem:[%s10154_s3 + $0x18] sm:$0xff]  ;;  %v485_v10 = vld [vmem:[%s10154_s3 + $0x8] sm:$0xff]  ;;  %612 = vst.msk [vmem:[#allocation2 + $0x28] sm:$0xff] %vm607_vm2, %v6859_v14 }
  0x1a   : > { %v486_v11 = vld [vmem:[%s10154_s3 + $0x10] sm:$0xff]  ;;  %s474_s26 = scalar_lea.vmem %s10155_s2, %s6969_s30  ;;  %s10124_s30 = smov 127   ;;  %v1420_v4 = vld [vmem:[%s10091_s6 + $0x38] sm:$0xff] }
  0x1b   : > { %v483_v16 = vld [vmem:[%s474_s26] sm:$0x3] }
  0x1c   : > { %v7005_v18 = vperm.slane %v483_v16, 0  ;;  %v7012_v26 = vperm.slane %v483_v16, 1  ;;  %v662_v16 = vld [vmem:[%s10090_s5] sm:$0xff] }
  0x1e   : > { %10156 = vst [vmem:[#allocation3_spill] sm:$0xff] %v7005_v18 }
  0x1f   : > { %v515_v8 = vld.sshfl [vmem:[#allocation1] sm:$0xff pattern:$0x75316420]  ;;  %v516_v9 = vld.sshfl [vmem:[#allocation1 + $0x8] sm:$0xff pattern:$0x75316420] }
  0x20   : > { %5662 = vmatpush.msk.msra.mxu0 %vm530_vm0, %v515_v8  ;;  %6252 = vmatpush.msk.msra.mxu2 %vm530_vm0, %v515_v8  ;;  %10158 = vst [vmem:[#allocation5_spill] sm:$0xff] %v7012_v26  ;;  %v1415_v8 = vld [vmem:[%s10091_s6 + $0x10] sm:$0xff] }
  0x21   : > { %5667 = vmatpush.msk.msra.mxu1 %vm530_vm0, %v516_v9  ;;  %5663 = vmatmul.msk.f32.vlgmr.msra.gmra.mxu0 %vm517_vm1, %v484_v6 }
  0x22   : > { %5666 = vmatmul.msk.f32.vlgmr.msra.gmra.mxu2 %vm517_vm1, %v487_v7  ;;  %5668 = vmatmul.msk.f32.vlgmr.msra.gmra.mxu1 %vm517_vm1, %v484_v6  ;;  %v1418_v6 = vld [vmem:[%s10091_s6 + $0x28] sm:$0xff] }
  0x23   : > { %6253 = vmatpush.msk.msra.mxu3 %vm530_vm0, %v516_v9  ;;  %v1655_v9 = vld [vmem:[%s10093_s8 + $0x10] sm:$0xff] }
  0x24   : > { %5671 = vmatmul.msk.f32.vlgmr.msra.gmra.mxu3 %vm517_vm1, %v487_v7  ;;  %v1414_v7 = vld [vmem:[%s10091_s6 + $0x8] sm:$0xff] }
  0x29   : > { %5664 = vmatmul.msk.f32.gmra.mxu0 %vm517_vm1, %v485_v10 }
  0x2a   : > { %5669 = vmatmul.msk.f32.gmra.mxu1 %vm517_vm1, %v485_v10  ;;  %v1656_v10 = vld [vmem:[%s10093_s8 + $0x18] sm:$0xff] }
  0x31   : > { %5665 = vmatmul.msk.f32.gmra.mxu0 %vm517_vm1, %v486_v11 }
  0x32   : > { %5670 = vmatmul.msk.f32.gmra.mxu1 %vm517_vm1, %v486_v11  ;;  %v1653_v11 = vld [vmem:[%s10093_s8] sm:$0xff] }
  0x83   : > { %v511_v15 = vpop.permute.xlu0 %510  ;;  %v501_v24 = vpop.permute.xlu1 %500 }
  0x8b   : > { %v506_v27 = vpop.permute.xlu0 %505  ;;  %v496_v36 = vpop.permute.xlu1 %495 }
  0x9e   : > { %v552_v12 = vpop.f32.mrf.mxu0 }
  0x9f   : > { %v581_v13 = vpop.f32.mrf.mxu1  ;;  %v553_v38 = vadd.f32 %v552_v12, %v496_v36 }
  0xa0   : > { %v582_v42 = vadd.f32 %v581_v13, %v496_v36 }
  0xa1   : > { %v7036_v41 = vmul.f32 %v7005_v18, %v553_v38 }
  0xa2   : > { %v7045_v43 = vmul.f32 %v7012_v26, %v582_v42 }
  0xa3   : > { %10164 = vst [vmem:[#allocation11_spill] sm:$0xff] %v7036_v41 }
  0xa4   : > { %10165 = vst [vmem:[#allocation12_spill] sm:$0xff] %v7045_v43 }
  0xa5   : > { %v561_v17 = vpop.f32.mrf.mxu2 }
  0xa6   : > { %v562_v19 = vadd.f32 %v561_v17, %v511_v15  ;;  %v555_v20 = vpop.f32.mrf.mxu0 }
  0xa7   : > { %v584_v21 = vpop.f32.mrf.mxu1  ;;  %v590_v23 = vpop.f32.mrf.mxu3  ;;  %v556_v35 = vadd.f32 %v555_v20, %v501_v24 }
  0xa8   : > { %v7008_v22 = vmul.f32 %v7005_v18, %v562_v19  ;;  %v591_v25 = vadd.f32 %v590_v23, %v511_v15  ;;  %v585_v37 = vadd.f32 %v584_v21, %v501_v24  ;;  %v663_v19 = vld [vmem:[%s10090_s5 + $0x8] sm:$0xff] }
  0xa9   : > { %v7030_v39 = vmul.f32 %v7005_v18, %v556_v35 }
  0xaa   : > { %10157 = vst [vmem:[#allocation4_spill] sm:$0xff] %v7008_v22  ;;  %635 = vrot.lane.b32.xlu2 %v7008_v22, %s10126_s27  ;;  %v7015_v31 = vmul.f32 %v7012_v26, %v591_v25  ;;  %v7033_v40 = vmul.f32 %v7012_v26, %v585_v37 }
  0xab   : > { %10162 = vst [vmem:[#allocation9_spill] sm:$0xff] %v7030_v39 }
  0xac   : > { %10159 = vst [vmem:[#allocation6_spill] sm:$0xff] %v7015_v31 }
  0xad   : > { %10163 = vst [vmem:[#allocation10_spill] sm:$0xff] %v7033_v40 }
  0xae   : > { %v558_v28 = vpop.f32.mrf.mxu0 }
  0xaf   : > { %v559_v29 = vadd.f32 %v558_v28, %v506_v27  ;;  %v587_v30 = vpop.f32.mrf.mxu1  ;;  %v664_v28 = vld [vmem:[%s10090_s5 + $0x10] sm:$0xff] }
  0xb0   : > { %v588_v32 = vadd.f32 %v587_v30, %v506_v27 }
  0xb1   : > { %v7018_v33 = vmul.f32 %v7005_v18, %v559_v29 }
  0xb2   : > { %v7021_v34 = vmul.f32 %v7012_v26, %v588_v32  ;;  %637 = vrot.lane.b32.xlu2 %v7015_v31, %s10126_s27 }
  0xb3   : > { %10160 = vst [vmem:[#allocation7_spill] sm:$0xff] %v7018_v33  ;;  %631 = vrot.lane.b32.xlu0 %v7018_v33, %s10126_s27 }
  0xb4   : > { %10161 = vst [vmem:[#allocation8_spill] sm:$0xff] %v7021_v34  ;;  %633 = vrot.lane.b32.xlu1 %v7021_v34, %s10126_s27 }
  0xba   : > { %627 = vrot.lane.b32.xlu2 %v7030_v39, %s10126_s27 }
  0xbb   : > { %629 = vrot.lane.b32.xlu0 %v7033_v40, %s10126_s27 }
  0xbc   : > { %623 = vrot.lane.b32.xlu1 %v7036_v41, %s10126_s27 }
  0xc2   : > { %625 = vrot.lane.b32.xlu2 %v7045_v43, %s10126_s27 }
 0x104   : > { %v636_v44 = vpop.permute.xlu2 %635 }
 0x105   : > { %660 = vst.msk [vmem:[#allocation2 + $0x30] sm:$0xff] %vm10122_vm3, %v636_v44 }
 0x10c   : > { %v638_v45 = vpop.permute.xlu2 %637  ;;  %v708_v46 = vld [vmem:[#allocation2 + $0x30] sm:$0xff] }
 0x10d   : > { %v643_v47 = vsel %vm10121_vm4, %v636_v44, %v638_v45  ;;  %890 = vmatpush.msrb.mxu0 %v708_v46  ;;  %v670_v44 = vld [vmem:[%s10090_s5 + $0x40] sm:$0xff]  ;;  %v665_v45 = vld [vmem:[%s10090_s5 + $0x18] sm:$0xff] }
 0x10e   : > { %661 = vst.msk [vmem:[#allocation2 + $0x38] sm:$0xff] %vm10120_vm5, %v643_v47 }
 0x114   : > { %v628_v48 = vpop.permute.xlu2 %627 }
 0x115   : > { %656 = vst.msk [vmem:[#allocation2 + $0x10] sm:$0xff] %vm10122_vm3, %v628_v48  ;;  %v709_v49 = vld [vmem:[#allocation2 + $0x38] sm:$0xff] }
 0x116   : > { %931 = vmatpush.msrb.mxu1 %v709_v49  ;;  %v6305_v50 = vpack.i.bf16 %v709_v49, %v708_v46 }
 0x118   : > { %6306 = vrot.lane.b32.xlu0 %v6305_v50, %s10124_s30 }
 0x11c   : > { %v626_v56 = vpop.permute.xlu2 %625  ;;  %v704_v61 = vld [vmem:[#allocation2 + $0x10] sm:$0xff] }
 0x125   : > { %v632_v51 = vpop.permute.xlu0 %631 }
 0x126   : > { %v634_v52 = vpop.permute.xlu1 %633  ;;  %658 = vst.msk [vmem:[#allocation2 + $0x20] sm:$0xff] %vm10122_vm3, %v632_v51 }
 0x127   : > { %v642_v53 = vsel %vm10121_vm4, %v632_v51, %v634_v52 }
 0x128   : > { %659 = vst.msk [vmem:[#allocation2 + $0x28] sm:$0xff] %vm10120_vm5, %v642_v53 }
 0x12d   : > { %v630_v54 = vpop.permute.xlu0 %629  ;;  %v706_v55 = vld [vmem:[#allocation2 + $0x20] sm:$0xff] }
 0x12e   : > { %v641_v57 = vsel %vm10121_vm4, %v628_v48, %v630_v54  ;;  %v624_v58 = vpop.permute.xlu1 %623  ;;  %891 = vmatpush.msrb.mxu0 %v706_v55  ;;  %v666_v54 = vld [vmem:[%s10090_s5 + $0x20] sm:$0xff] }
 0x12f   : > { %657 = vst.msk [vmem:[#allocation2 + $0x18] sm:$0xff] %vm10120_vm5, %v641_v57  ;;  %v640_v59 = vsel %vm10121_vm4, %v624_v58, %v626_v56  ;;  %v707_v60 = vld [vmem:[#allocation2 + $0x28] sm:$0xff] }
 0x130   : > { %653 = vst.msk [vmem:[#allocation2] sm:$0xff] %vm10122_vm3, %v624_v58  ;;  %932 = vmatpush.msrb.mxu1 %v707_v60  ;;  %892 = vmatpush.msrb.mxu0 %v704_v61  ;;  %v6310_v62 = vpack.i.bf16 %v707_v60, %v706_v55 }
 0x131   : > { %655 = vst.msk [vmem:[#allocation2 + $0x8] sm:$0xff] %vm10120_vm5, %v640_v59  ;;  %v671_v59 = vld [vmem:[%s10090_s5 + $0x48] sm:$0xff] }
 0x132   : > { %6311 = vrot.lane.b32.xlu1 %v6310_v62, %s10124_s30 }
 0x136   : > { %v705_v63 = vld [vmem:[#allocation2 + $0x18] sm:$0xff] }
 0x137   : > { %v702_v0 = vld [vmem:[#allocation2] sm:$0xff]  ;;  %933 = vmatpush.msrb.mxu1 %v705_v63  ;;  %v6315_v1 = vpack.i.bf16 %v705_v63, %v704_v61 }
 0x138   : > { %893 = vmatpush.msrb.mxu0 %v702_v0  ;;  %v703_v2 = vld [vmem:[#allocation2 + $0x8] sm:$0xff] }
 0x139   : > { %6316 = vrot.lane.b32.xlu2 %v6315_v1, %s10124_s30  ;;  %v6320_v3 = vpack.i.bf16 %v703_v2, %v702_v0  ;;  %934 = vmatpush.msrb.mxu1 %v703_v2 }
 0x13a   : > { %6326 = vrot.lane.b32.xlu1 %v6305_v50, %s10101_s28  ;;  %5688 = vmatmul.msk.f32.vlgmr.msrb.gmra.mxu0 %vm10123_vm7, %v662_v16 }
 0x13b   : > { %6321 = vrot.lane.b32.xlu0 %v6320_v3, %s10124_s30  ;;  %5696 = vmatmul.msk.f32.vlgmr.msrb.gmra.mxu1 %vm10123_vm7, %v662_v16 }
 0x141   : > { %6331 = vrot.lane.b32.xlu2 %v6310_v62, %s10101_s28 }
 0x142   : > { %6341 = vrot.lane.b32.xlu1 %v6320_v3, %s10101_s28  ;;  %5689 = vmatmul.msk.f32.gmra.mxu0 %vm10123_vm7, %v663_v19 }
 0x143   : > { %6336 = vrot.lane.b32.xlu0 %v6315_v1, %s10101_s28  ;;  %5697 = vmatmul.msk.f32.gmra.mxu1 %vm10123_vm7, %v663_v19  ;;  %s10467_s28 = smov 127  }
 0x149   : > { %6346 = vrot.lane.b32.xlu2 %v6305_v50, %s10097_s29 }
 0x14a   : > { %6351 = vrot.lane.b32.xlu1 %v6305_v50, %s10099_s12  ;;  %5690 = vmatmul.msk.f32.gmra.mxu0 %vm10123_vm7, %v664_v28 }
 0x14b   : > { %6371 = vrot.lane.b32.xlu0 %v6310_v62, %s10097_s29  ;;  %5698 = vmatmul.msk.f32.gmra.mxu1 %vm10123_vm7, %v664_v28  ;;  %v673_v28 = vld [vmem:[%s10090_s5 + $0x58] sm:$0xff] }
 0x151   : > { %6356 = vrot.lane.b32.xlu2 %v6315_v1, %s10097_s29 }
 0x152   : > { %6361 = vrot.lane.b32.xlu1 %v6320_v3, %s10097_s29  ;;  %5691 = vmatmul.msk.f32.gmra.mxu0 %vm10123_vm7, %v665_v45 }
 0x153   : > { %6376 = vrot.lane.b32.xlu0 %v6310_v62, %s10099_s12  ;;  %5699 = vmatmul.msk.f32.gmra.mxu1 %vm10123_vm7, %v665_v45  ;;  %v675_v45 = vld [vmem:[%s10090_s5 + $0x68] sm:$0xff] }
 0x159   : > { %6366 = vrot.lane.b32.xlu2 %v6315_v1, %s10099_s12 }
 0x15a   : > { %1458 = vperm.xlu1 %6304, %v1420_v4   ;;  %5692 = vmatmul.msk.f32.gmra.mxu0 %vm10123_vm7, %v666_v54 }
 0x15b   : > { %6381 = vrot.lane.b32.xlu0 %v6320_v3, %s10099_s12  ;;  %5700 = vmatmul.msk.f32.gmra.mxu1 %vm10123_vm7, %v666_v54  ;;  %v690_v54 = vld [vmem:[%s10090_s5 + $0xe0] sm:$0xff] }
 0x162   : > { %1443 = vperm.xlu1 %6304, %v1417_v5  }
 0x163   : > { %1448 = vperm.xlu0 %6303, %v1418_v6   ;;  %v667_v6 = vld [vmem:[%s10090_s5 + $0x28] sm:$0xff] }
 0x164   : > { %5693 = vmatmul.msk.f32.gmra.mxu0 %vm10123_vm7, %v667_v6  ;;  %5701 = vmatmul.msk.f32.gmra.mxu1 %vm10123_vm7, %v667_v6  ;;  %v1413_v6 = vld [vmem:[%s10091_s6] sm:$0xff] }
 0x16a   : > { %1428 = vperm.xlu1 %6304, %v1414_v7  }
 0x16b   : > { %1433 = vperm.xlu0 %6303, %v1415_v8  }
 0x172   : > { %1673 = vperm.xlu1 %6304, %v1655_v9  }
 0x173   : > { %1678 = vperm.xlu0 %6303, %v1656_v10  }
 0x17b   : > { %1663 = vperm.xlu0 %6303, %v1653_v11   ;;  %v672_v11 = vld [vmem:[%s10090_s5 + $0x50] sm:$0xff] }
 0x18a   : > { %v6307_v12 = vpop.permute.xlu0 %6306 }
 0x18b   : > { %v6308_v13 = vunpack.i.l.bf16 %v6307_v12  ;;  %v6309_v14 = vunpack.i.h.bf16 %v6307_v12 }
 0x18d   : > { %825 = vmatpush.msrb.mxu3 %v6309_v14  ;;  %v738_v15 = vsel %vm10119_vm6, %v6308_v13, %v6309_v14 }
 0x18e   : > { %784 = vmatpush.msrb.mxu2 %v738_v15 }
 0x193   : > { %v6317_v17 = vpop.permute.xlu2 %6316 }
 0x194   : > { %v6318_v21 = vunpack.i.l.bf16 %v6317_v17  ;;  %v6319_v27 = vunpack.i.h.bf16 %v6317_v17 }
 0x196   : > { %v736_v30 = vsel %vm10119_vm6, %v6318_v21, %v6319_v27  ;;  %v668_v21 = vld [vmem:[%s10090_s5 + $0x30] sm:$0xff] }
 0x197   : > { %5694 = vmatmul.msk.f32.gmra.mxu0 %vm10123_vm7, %v668_v21  ;;  %5702 = vmatmul.msk.f32.gmra.mxu1 %vm10123_vm7, %v668_v21  ;;  %v699_v21 = vld [vmem:[%s10090_s5 + $0x128] sm:$0xff] }
 0x19b   : > { %v6332_v23 = vpop.permute.xlu2 %6331 }
 0x19c   : > { %v6334_v47 = vunpack.i.h.bf16 %v6332_v23  ;;  %v6333_v48 = vunpack.i.l.bf16 %v6332_v23 }
 0x19e   : > { %v979_v51 = vsel %vm10118_vm8, %v6333_v48, %v6334_v47  ;;  %v687_v48 = vld [vmem:[%s10090_s5 + $0xc8] sm:$0xff] }
 0x1a3   : > { %v6347_v46 = vpop.permute.xlu2 %6346 }
 0x1a4   : > { %v6312_v20 = vpop.permute.xlu1 %6311  ;;  %v6349_v60 = vunpack.i.h.bf16 %v6347_v46  ;;  %v6348_v61 = vunpack.i.l.bf16 %v6347_v46  ;;  %v686_v46 = vld [vmem:[%s10090_s5 + $0xc0] sm:$0xff] }
 0x1a5   : > { %v6313_v24 = vunpack.i.l.bf16 %v6312_v20  ;;  %v6314_v25 = vunpack.i.h.bf16 %v6312_v20 }
 0x1a6   : > { %v1282_v1 = vsel %vm10116_vm9, %v6348_v61, %v6349_v60  ;;  %v683_v61 = vld [vmem:[%s10090_s5 + $0xa8] sm:$0xff] }
 0x1a7   : > { %826 = vmatpush.msrb.mxu3 %v6314_v25  ;;  %v737_v29 = vsel %vm10119_vm6, %v6313_v24, %v6314_v25 }
 0x1a8   : > { %785 = vmatpush.msrb.mxu2 %v737_v29 }
 0x1a9   : > { %827 = vmatpush.msrb.mxu3 %v6319_v27 }
 0x1aa   : > { %786 = vmatpush.msrb.mxu2 %v736_v30 }
 0x1ab   : > { %v6357_v63 = vpop.permute.xlu2 %6356 }
 0x1ac   : > { %v6327_v32 = vpop.permute.xlu1 %6326  ;;  %v6359_v7 = vunpack.i.h.bf16 %v6357_v63  ;;  %v6358_v8 = vunpack.i.l.bf16 %v6357_v63  ;;  %v685_v63 = vld [vmem:[%s10090_s5 + $0xb8] sm:$0xff] }
 0x1ad   : > { %v6322_v35 = vpop.permute.xlu0 %6321  ;;  %v6329_v36 = vunpack.i.h.bf16 %v6327_v32  ;;  %v6328_v37 = vunpack.i.l.bf16 %v6327_v32 }
 0x1ae   : > { %v6323_v38 = vunpack.i.l.bf16 %v6322_v35  ;;  %v6324_v42 = vunpack.i.h.bf16 %v6322_v35  ;;  %v1280_v14 = vsel %vm10116_vm9, %v6358_v8, %v6359_v7 }
 0x1af   : > { %v980_v50 = vsel %vm10118_vm8, %v6328_v37, %v6329_v36 }
 0x1b0   : > { %828 = vmatpush.msrb.mxu3 %v6324_v42  ;;  %v735_v49 = vsel %vm10119_vm6, %v6323_v38, %v6324_v42  ;;  %v674_v42 = vld [vmem:[%s10090_s5 + $0x60] sm:$0xff] }
 0x1b1   : > { %787 = vmatpush.msrb.mxu2 %v735_v49  ;;  %5680 = vmatmul.msk.f32.vlgmr.msrb.gmra.mxu3 %vm10123_vm7, %v670_v44  ;;  %v677_v49 = vld [vmem:[%s10090_s5 + $0x78] sm:$0xff] }
 0x1b2   : > { %1066 = vmatpush.msra.mxu3 %v6329_v36  ;;  %5672 = vmatmul.msk.f32.vlgmr.msrb.gmra.mxu2 %vm10123_vm7, %v670_v44  ;;  %v669_v36 = vld [vmem:[%s10090_s5 + $0x38] sm:$0xff] }
 0x1b3   : > { %1025 = vmatpush.msra.mxu2 %v980_v50  ;;  %v6367_v15 = vpop.permute.xlu2 %6366  ;;  %5695 = vmatmul.msk.f32.gmra.mxu0 %vm10123_vm7, %v669_v36  ;;  %v688_v50 = vld [vmem:[%s10090_s5 + $0xd0] sm:$0xff] }
 0x1b4   : > { %1067 = vmatpush.msra.mxu3 %v6334_v47  ;;  %v6342_v52 = vpop.permute.xlu1 %6341  ;;  %v6369_v23 = vunpack.i.h.bf16 %v6367_v15  ;;  %v6368_v24 = vunpack.i.l.bf16 %v6367_v15  ;;  %5703 = vmatmul.msk.f32.gmra.mxu1 %vm10123_vm7, %v669_v36  ;;  %v676_v47 = vld [vmem:[%s10090_s5 + $0x70] sm:$0xff]  ;;  %v698_v15 = vld [vmem:[%s10090_s5 + $0x120] sm:$0xff] }
 0x1b5   : > { %1026 = vmatpush.msra.mxu2 %v979_v51  ;;  %v6337_v53 = vpop.permute.xlu0 %6336  ;;  %v6344_v57 = vunpack.i.h.bf16 %v6342_v52  ;;  %v6343_v58 = vunpack.i.l.bf16 %v6342_v52  ;;  %v678_v51 = vld [vmem:[%s10090_s5 + $0x80] sm:$0xff]  ;;  %v689_v52 = vld [vmem:[%s10090_s5 + $0xd8] sm:$0xff] }
 0x1b6   : > { %v6339_v55 = vunpack.i.h.bf16 %v6337_v53  ;;  %v6338_v56 = vunpack.i.l.bf16 %v6337_v53  ;;  %v1129_v32 = vsel %vm10117_vm10, %v6368_v24, %v6369_v23  ;;  %v679_v53 = vld [vmem:[%s10090_s5 + $0x88] sm:$0xff] }
 0x1b7   : > { %v977_v0 = vsel %vm10118_vm8, %v6343_v58, %v6344_v57  ;;  %v692_v58 = vld [vmem:[%s10090_s5 + $0xf0] sm:$0xff] }
 0x1b8   : > { %1068 = vmatpush.msra.mxu3 %v6339_v55  ;;  %v978_v62 = vsel %vm10118_vm8, %v6338_v56, %v6339_v55  ;;  %v680_v55 = vld [vmem:[%s10090_s5 + $0x90] sm:$0xff]  ;;  %v691_v56 = vld [vmem:[%s10090_s5 + $0xe8] sm:$0xff] }
 0x1b9   : > { %5681 = vmatmul.msk.f32.gmra.mxu3 %vm10123_vm7, %v671_v59  ;;  %1027 = vmatpush.msra.mxu2 %v978_v62  ;;  %v684_v62 = vld [vmem:[%s10090_s5 + $0xb0] sm:$0xff] }
 0x1ba   : > { %5673 = vmatmul.msk.f32.gmra.mxu2 %vm10123_vm7, %v671_v59  ;;  %1069 = vmatpush.msra.mxu3 %v6344_v57  ;;  %v681_v57 = vld [vmem:[%s10090_s5 + $0x98] sm:$0xff]  ;;  %v682_v59 = vld [vmem:[%s10090_s5 + $0xa0] sm:$0xff] }
 0x1bb   : > { %1028 = vmatpush.msra.mxu2 %v977_v0  ;;  %v1419_v0 = vld [vmem:[%s10091_s6 + $0x30] sm:$0xff] }
 0x1bc   : > { %1368 = vmatpush.msrb.mxu3 %v6349_v60  ;;  %v6352_v2 = vpop.permute.xlu1 %6351  ;;  %v693_v60 = vld [vmem:[%s10090_s5 + $0xf8] sm:$0xff]  ;;  %1453 = vperm.xlu2 %6385, %v1419_v0  }
 0x1bd   : > { %1327 = vmatpush.msrb.mxu2 %v1282_v1  ;;  %v6372_v3 = vpop.permute.xlu0 %6371  ;;  %v6354_v4 = vunpack.i.h.bf16 %v6352_v2  ;;  %v6353_v5 = vunpack.i.l.bf16 %v6352_v2  ;;  %v694_v1 = vld [vmem:[%s10090_s5 + $0x100] sm:$0xff]  ;;  %v1416_v2 = vld [vmem:[%s10091_s6 + $0x18] sm:$0xff] }
 0x1be   : > { %v6374_v9 = vunpack.i.h.bf16 %v6372_v3  ;;  %v6373_v10 = vunpack.i.l.bf16 %v6372_v3 }
 0x1bf   : > { %1217 = vmatpush.msra.mxu1 %v6354_v4  ;;  %v1131_v12 = vsel %vm10117_vm10, %v6353_v5, %v6354_v4  ;;  %v695_v5 = vld [vmem:[%s10090_s5 + $0x108] sm:$0xff] }
 0x1c0   : > { %1369 = vmatpush.msrb.mxu3 %v6374_v9  ;;  %1176 = vmatpush.msra.mxu0 %v1131_v12  ;;  %v1281_v13 = vsel %vm10116_vm9, %v6373_v10, %v6374_v9  ;;  %v696_v9 = vld [vmem:[%s10090_s5 + $0x110] sm:$0xff]  ;;  %v697_v12 = vld [vmem:[%s10090_s5 + $0x118] sm:$0xff] }
 0x1c1   : > { %5682 = vmatmul.msk.f32.gmra.mxu3 %vm10123_vm7, %v672_v11  ;;  %1328 = vmatpush.msrb.mxu2 %v1281_v13 }
 0x1c2   : > { %5674 = vmatmul.msk.f32.gmra.mxu2 %vm10123_vm7, %v672_v11  ;;  %1370 = vmatpush.msrb.mxu3 %v6359_v7 }
 0x1c3   : > { %1329 = vmatpush.msrb.mxu2 %v1280_v14 }
 0x1c4   : > { %v6362_v16 = vpop.permute.xlu1 %6361  ;;  %1438 = vperm.xlu2 %6385, %v1416_v2  }
 0x1c5   : > { %v6377_v17 = vpop.permute.xlu0 %6376  ;;  %v6364_v19 = vunpack.i.h.bf16 %v6362_v16  ;;  %v6363_v20 = vunpack.i.l.bf16 %v6362_v16  ;;  %v7326_v16 = vpop.f32.mrf.mxu1 }
 0x1c6   : > { %v6379_v25 = vunpack.i.h.bf16 %v6377_v17  ;;  %v6378_v27 = vunpack.i.l.bf16 %v6377_v17 }
 0x1c7   : > { %1371 = vmatpush.msrb.mxu3 %v6364_v19  ;;  %v1279_v29 = vsel %vm10116_vm9, %v6363_v20, %v6364_v19  ;;  %v7331_v19 = vpop.f32.mrf.mxu0 }
 0x1c8   : > { %1218 = vmatpush.msra.mxu1 %v6379_v25  ;;  %v1130_v30 = vsel %vm10117_vm10, %v6378_v27, %v6379_v25  ;;  %1330 = vmatpush.msrb.mxu2 %v1279_v29  ;;  %v700_v27 = vld [vmem:[%s10090_s5 + $0x130] sm:$0xff] }
 0x1c9   : > { %5683 = vmatmul.msk.f32.gmra.mxu3 %vm10123_vm7, %v673_v28  ;;  %1177 = vmatpush.msra.mxu0 %v1130_v30 }
 0x1ca   : > { %5675 = vmatmul.msk.f32.gmra.mxu2 %vm10123_vm7, %v673_v28  ;;  %1219 = vmatpush.msra.mxu1 %v6369_v23 }
 0x1cb   : > { %1178 = vmatpush.msra.mxu0 %v1129_v32 }
 0x1cc   : > { %1423 = vperm.xlu2 %6385, %v1413_v6  }
 0x1cd   : > { %v6382_v35 = vpop.permute.xlu0 %6381  ;;  %v7340_v23 = vpop.f32.mrf.mxu1 }
 0x1ce   : > { %v6384_v37 = vunpack.i.h.bf16 %v6382_v35  ;;  %v6383_v38 = vunpack.i.l.bf16 %v6382_v35  ;;  %v701_v35 = vld [vmem:[%s10090_s5 + $0x138] sm:$0xff] }
 0x1cf   : > { %v7349_v28 = vpop.f32.mrf.mxu0 }
 0x1d0   : > { %1220 = vmatpush.msra.mxu1 %v6384_v37  ;;  %v1128_v44 = vsel %vm10117_vm10, %v6383_v38, %v6384_v37 }
 0x1d1   : > { %5684 = vmatmul.msk.f32.gmra.mxu3 %vm10123_vm7, %v674_v42  ;;  %1179 = vmatpush.msra.mxu0 %v1128_v44 }
 0x1d2   : > { %5676 = vmatmul.msk.f32.gmra.mxu2 %vm10123_vm7, %v674_v42  ;;  %5720 = vmatmul.msk.f32.vlgmr.msra.gmra.mxu0 %vm10123_vm7, %v686_v46 }
 0x1d3   : > { %5728 = vmatmul.msk.f32.vlgmr.msra.gmra.mxu1 %vm10123_vm7, %v686_v46 }
 0x1d5   : > { %v7357_v32 = vpop.f32.mrf.mxu1 }
 0x1d7   : > { %v7362_v36 = vpop.f32.mrf.mxu0 }
 0x1d9   : > { %5685 = vmatmul.msk.f32.gmra.mxu3 %vm10123_vm7, %v675_v45 }
 0x1da   : > { %5677 = vmatmul.msk.f32.gmra.mxu2 %vm10123_vm7, %v675_v45  ;;  %5721 = vmatmul.msk.f32.gmra.mxu0 %vm10123_vm7, %v687_v48 }
 0x1db   : > { %5729 = vmatmul.msk.f32.gmra.mxu1 %vm10123_vm7, %v687_v48 }
 0x1dd   : > { %v7370_v42 = vpop.f32.mrf.mxu1 }
 0x1de   : > { %10168 = vst [vmem:[#allocation15_spill] sm:$0xff] %v7370_v42 }
 0x1df   : > { %v7372_v44 = vpop.f32.mrf.mxu0 }
 0x1e0   : > { %10169 = vst [vmem:[#allocation16_spill] sm:$0xff] %v7372_v44 }
 0x1e1   : > { %5686 = vmatmul.msk.f32.gmra.mxu3 %vm10123_vm7, %v676_v47 }
 0x1e2   : > { %5678 = vmatmul.msk.f32.gmra.mxu2 %vm10123_vm7, %v676_v47  ;;  %5722 = vmatmul.msk.f32.gmra.mxu0 %vm10123_vm7, %v688_v50  ;;  %v1654_v47 = vld [vmem:[%s10093_s8 + $0x8] sm:$0xff] }
 0x1e3   : > { %5730 = vmatmul.msk.f32.gmra.mxu1 %vm10123_vm7, %v688_v50  ;;  %1668 = vperm.xlu2 %6385, %v1654_v47  }
 0x1e5   : > { %v948_v48 = vpop.f32.mrf.mxu1 }
 0x1e7   : > { %v907_v50 = vpop.f32.mrf.mxu0 }
 0x1e9   : > { %5687 = vmatmul.msk.f32.gmra.mxu3 %vm10123_vm7, %v677_v49 }
 0x1ea   : > { %5679 = vmatmul.msk.f32.gmra.mxu2 %vm10123_vm7, %v677_v49  ;;  %5723 = vmatmul.msk.f32.gmra.mxu0 %vm10123_vm7, %v689_v52 }
 0x1eb   : > { %5731 = vmatmul.msk.f32.gmra.mxu1 %vm10123_vm7, %v689_v52 }
 0x1ed   : > { %v951_v52 = vpop.f32.mrf.mxu1 }
 0x1f1   : > { %5712 = vmatmul.msk.f32.vlgmr.msra.gmra.mxu3 %vm10123_vm7, %v678_v51 }
 0x1f2   : > { %5704 = vmatmul.msk.f32.vlgmr.msra.gmra.mxu2 %vm10123_vm7, %v678_v51  ;;  %5724 = vmatmul.msk.f32.gmra.mxu0 %vm10123_vm7, %v690_v54 }
 0x1f3   : > { %5732 = vmatmul.msk.f32.gmra.mxu1 %vm10123_vm7, %v690_v54 }
 0x1f9   : > { %5713 = vmatmul.msk.f32.gmra.mxu3 %vm10123_vm7, %v679_v53 }
 0x1fa   : > { %5705 = vmatmul.msk.f32.gmra.mxu2 %vm10123_vm7, %v679_v53  ;;  %5725 = vmatmul.msk.f32.gmra.mxu0 %vm10123_vm7, %v691_v56 }
 0x1fb   : > { %5733 = vmatmul.msk.f32.gmra.mxu1 %vm10123_vm7, %v691_v56 }
 0x201   : > { %5714 = vmatmul.msk.f32.gmra.mxu3 %vm10123_vm7, %v680_v55 }
 0x202   : > { %5706 = vmatmul.msk.f32.gmra.mxu2 %vm10123_vm7, %v680_v55  ;;  %5726 = vmatmul.msk.f32.gmra.mxu0 %vm10123_vm7, %v692_v58  ;;  %v910_v55 = vpop.f32.mrf.mxu0 }
 0x203   : > { %5734 = vmatmul.msk.f32.gmra.mxu1 %vm10123_vm7, %v692_v58 }
 0x209   : > { %5715 = vmatmul.msk.f32.gmra.mxu3 %vm10123_vm7, %v681_v57 }
 0x20a   : > { %5707 = vmatmul.msk.f32.gmra.mxu2 %vm10123_vm7, %v681_v57  ;;  %5727 = vmatmul.msk.f32.gmra.mxu0 %vm10123_vm7, %v693_v60 }
 0x20b   : > { %5735 = vmatmul.msk.f32.gmra.mxu1 %vm10123_vm7, %v693_v60 }
 0x211   : > { %5716 = vmatmul.msk.f32.gmra.mxu3 %vm10123_vm7, %v682_v59 }
 0x212   : > { %5708 = vmatmul.msk.f32.gmra.mxu2 %vm10123_vm7, %v682_v59 }
 0x214   : > { %v954_v58 = vpop.f32.mrf.mxu1  ;;  %v7393_v59 = vpop.f32.mrf.mxu0 }
 0x219   : > { %5717 = vmatmul.msk.f32.gmra.mxu3 %vm10123_vm7, %v683_v61 }
 0x21a   : > { %5709 = vmatmul.msk.f32.gmra.mxu2 %vm10123_vm7, %v683_v61 }
 0x221   : > { %5718 = vmatmul.msk.f32.gmra.mxu3 %vm10123_vm7, %v684_v62 }
 0x222   : > { %5710 = vmatmul.msk.f32.gmra.mxu2 %vm10123_vm7, %v684_v62 }
 0x229   : > { %5719 = vmatmul.msk.f32.gmra.mxu3 %vm10123_vm7, %v685_v63 }
 0x22a   : > { %5711 = vmatmul.msk.f32.gmra.mxu2 %vm10123_vm7, %v685_v63 }
 0x230   : > { %v7397_v63 = vpop.f32.mrf.mxu0 }
 0x231   : > { %5744 = vmatmul.msk.f32.vlgmr.msrb.gmra.mxu3 %vm10123_vm7, %v694_v1  ;;  %v7395_v62 = vpop.f32.mrf.mxu1 }
 0x232   : > { %5736 = vmatmul.msk.f32.vlgmr.msrb.gmra.mxu2 %vm10123_vm7, %v694_v1 }
 0x234   : > { %v7288_v3 = vpop.f32.mrf.mxu3 }
 0x235   : > { %v7290_v4 = vpop.f32.mrf.mxu2 }
 0x239   : > { %5745 = vmatmul.msk.f32.gmra.mxu3 %vm10123_vm7, %v695_v5 }
 0x23a   : > { %5737 = vmatmul.msk.f32.gmra.mxu2 %vm10123_vm7, %v695_v5 }
 0x23c   : > { %v7300_v7 = vpop.f32.mrf.mxu3 }
 0x23d   : > { %v7302_v8 = vpop.f32.mrf.mxu2 }
 0x241   : > { %5746 = vmatmul.msk.f32.gmra.mxu3 %vm10123_vm7, %v696_v9 }
 0x242   : > { %5738 = vmatmul.msk.f32.gmra.mxu2 %vm10123_vm7, %v696_v9 }
 0x244   : > { %v7309_v10 = vpop.f32.mrf.mxu3 }
 0x245   : > { %v7311_v11 = vpop.f32.mrf.mxu2 }
 0x249   : > { %5747 = vmatmul.msk.f32.gmra.mxu3 %vm10123_vm7, %v697_v12 }
 0x24a   : > { %5739 = vmatmul.msk.f32.gmra.mxu2 %vm10123_vm7, %v697_v12 }
 0x24c   : > { %v7318_v13 = vpop.f32.mrf.mxu3 }
 0x24d   : > { %10166 = vst [vmem:[#allocation13_spill] sm:$0xff] %v7318_v13  ;;  %v7320_v14 = vpop.f32.mrf.mxu2 }
 0x24e   : > { %10167 = vst [vmem:[#allocation14_spill] sm:$0xff] %v7320_v14 }
 0x24f   : > { %v7401_v5 = vpop.f32.mrf.mxu0 }
 0x250   : > { %v7399_v2 = vpop.f32.mrf.mxu1 }
 0x251   : > { %5748 = vmatmul.msk.f32.gmra.mxu3 %vm10123_vm7, %v698_v15 }
 0x252   : > { %5740 = vmatmul.msk.f32.gmra.mxu2 %vm10123_vm7, %v698_v15 }
 0x254   : > { %v7329_v17 = vpop.f32.mrf.mxu3 }
 0x255   : > { %v7333_v20 = vpop.f32.mrf.mxu2 }
 0x256   : > { %v908_v42 = vadd.f32 %v907_v50, %v7333_v20 }
 0x258   : > { %v7407_v12 = vpop.f32.mrf.mxu1 }
 0x259   : > { %5749 = vmatmul.msk.f32.gmra.mxu3 %vm10123_vm7, %v699_v21 }
 0x25a   : > { %5741 = vmatmul.msk.f32.gmra.mxu2 %vm10123_vm7, %v699_v21  ;;  %v7411_v21 = vpop.f32.mrf.mxu0 }
 0x25c   : > { %v7342_v24 = vpop.f32.mrf.mxu3 }
 0x25d   : > { %v7344_v25 = vpop.f32.mrf.mxu2 }
 0x260   : > { %v7419_v41 = vpop.f32.mrf.mxu1 }
 0x261   : > { %5750 = vmatmul.msk.f32.gmra.mxu3 %vm10123_vm7, %v700_v27 }
 0x262   : > { %5742 = vmatmul.msk.f32.gmra.mxu2 %vm10123_vm7, %v700_v27  ;;  %v7421_v43 = vpop.f32.mrf.mxu0 }
 0x263   : > { %10175 = vst [vmem:[#allocation22_spill] sm:$0xff] %v7421_v43  ;;  %v949_v43 = vadd.f32 %v948_v48, %v7329_v17  ;;  %v911_v17 = vadd.f32 %v910_v55, %v7344_v25  ;;  %v1449_v55 = vpop.permute.xlu0 %1448 }
 0x264   : > { %v7353_v29 = vpop.f32.mrf.mxu3 }
 0x265   : > { %v7355_v30 = vpop.f32.mrf.mxu2 }
 0x268   : > { %v7427_v40 = vpop.f32.mrf.mxu1 }
 0x269   : > { %5751 = vmatmul.msk.f32.gmra.mxu3 %vm10123_vm7, %v701_v35  ;;  %10178 = vst [vmem:[#allocation25_spill] sm:$0xff] %v7427_v40  ;;  %v7443_v40 = vpop.permute.xlu2 %1453 }
 0x26a   : > { %5743 = vmatmul.msk.f32.gmra.mxu2 %vm10123_vm7, %v701_v35  ;;  %v7429_v26 = vpop.f32.mrf.mxu0 }
 0x26b   : > { %10179 = vst [vmem:[#allocation26_spill] sm:$0xff] %v7429_v26 }
 0x26c   : > { %v7366_v37 = vpop.f32.mrf.mxu3 }
 0x26d   : > { %v7368_v38 = vpop.f32.mrf.mxu2 }
 0x270   : > { %v1234_v18 = vpop.f32.mrf.mxu1 }
 0x272   : > { %v1193_v39 = vpop.f32.mrf.mxu0 }
 0x274   : > { %v7374_v45 = vpop.f32.mrf.mxu3 }
 0x275   : > { %v7376_v46 = vpop.f32.mrf.mxu2 }
 0x278   : > { %v1237_v14 = vpop.f32.mrf.mxu1 }
 0x27c   : > { %v7381_v49 = vpop.f32.mrf.mxu3 }
 0x27d   : > { %v7383_v51 = vpop.f32.mrf.mxu2 }
 0x284   : > { %v7385_v53 = vpop.f32.mrf.mxu3 }
 0x285   : > { %v7387_v54 = vpop.f32.mrf.mxu2 }
 0x286   : > { %10170 = vst [vmem:[#allocation17_spill] sm:$0xff] %v7387_v54 }
 0x28c   : > { %v7389_v56 = vpop.f32.mrf.mxu3 }
 0x28d   : > { %10171 = vst [vmem:[#allocation18_spill] sm:$0xff] %v7389_v56  ;;  %v7391_v57 = vpop.f32.mrf.mxu2 }
 0x28e   : > { %10172 = vst [vmem:[#allocation19_spill] sm:$0xff] %v7391_v57  ;;  %v7435_v57 = vpop.permute.xlu1 %1458 }
 0x28f   : > { %10182 = vst [vmem:[#allocation29_spill] sm:$0xff] %v7435_v57 }
 0x294   : > { %v1083_v60 = vpop.f32.mrf.mxu3 }
 0x295   : > { %v1042_v61 = vpop.f32.mrf.mxu2  ;;  %v1104_v13 = vadd.f32 %v1083_v60, %v949_v43  ;;  %v7447_v43 = vpop.permute.xlu2 %1438 }
 0x296   : > { %v1103_v26 = vadd.f32 %v1042_v61, %v908_v42  ;;  %v958_v61 = vadd.f32 %v7395_v62, %v7366_v37 }
 0x297   : > { %v1255_v44 = vadd.f32 %v1234_v18, %v1104_v13  ;;  %v937_v18 = vadd.f32 %v7326_v16, %v7288_v3  ;;  %v914_v3 = vadd.f32 %v7393_v59, %v7355_v30  ;;  %v1240_v16 = vpop.f32.mrf.mxu1 }
 0x299   : > { %v1096_v13 = vadd.f32 %v7374_v45, %v937_v18 }
 0x29c   : > { %v1086_v0 = vpop.f32.mrf.mxu3 }
 0x29d   : > { %v1045_v1 = vpop.f32.mrf.mxu2 }
 0x29e   : > { %v1105_v20 = vadd.f32 %v1045_v1, %v911_v17 }
 0x2a4   : > { %v7403_v6 = vpop.f32.mrf.mxu3 }
 0x2a5   : > { %v7405_v9 = vpop.f32.mrf.mxu2 }
 0x2a6   : > { %v1107_v30 = vadd.f32 %v7405_v9, %v914_v3  ;;  %v10194_v3 = vld [vmem:[#allocation17_spill] sm:$0xff] }
 0x2ac   : > { %v7409_v15 = vpop.f32.mrf.mxu3 }
 0x2ad   : > { %10173 = vst [vmem:[#allocation20_spill] sm:$0xff] %v7409_v15  ;;  %v7413_v27 = vpop.f32.mrf.mxu2 }
 0x2ae   : > { %10174 = vst [vmem:[#allocation21_spill] sm:$0xff] %v7413_v27  ;;  %v1196_v27 = vpop.f32.mrf.mxu0 }
 0x2b4   : > { %v7415_v35 = vpop.f32.mrf.mxu3  ;;  %v10186_v17 = vld [vmem:[#allocation20_spill] sm:$0xff] }
 0x2b5   : > { %v7417_v47 = vpop.f32.mrf.mxu2 }
 0x2bc   : > { %v7423_v22 = vpop.f32.mrf.mxu3 }
 0x2bd   : > { %10176 = vst [vmem:[#allocation23_spill] sm:$0xff] %v7423_v22  ;;  %v7425_v31 = vpop.f32.mrf.mxu2 }
 0x2be   : > { %10177 = vst [vmem:[#allocation24_spill] sm:$0xff] %v7425_v31  ;;  %v952_v31 = vadd.f32 %v951_v52, %v7342_v24  ;;  %v1256_v24 = vadd.f32 %v1196_v27, %v1105_v20 }
 0x2c4   : > { %v7431_v33 = vpop.f32.mrf.mxu3  ;;  %v10185_v37 = vld [vmem:[#allocation23_spill] sm:$0xff] }
 0x2c5   : > { %10180 = vst [vmem:[#allocation27_spill] sm:$0xff] %v7431_v33  ;;  %v7433_v34 = vpop.f32.mrf.mxu2  ;;  %v1254_v33 = vadd.f32 %v1193_v39, %v1103_v26  ;;  %v10188_v18 = vld [vmem:[#allocation24_spill] sm:$0xff] }
 0x2c6   : > { %10181 = vst [vmem:[#allocation28_spill] sm:$0xff] %v7433_v34 }
 0x2cc   : > { %v7437_v56 = vpop.f32.mrf.mxu3 }
 0x2cd   : > { %10183 = vst [vmem:[#allocation30_spill] sm:$0xff] %v7437_v56  ;;  %v7440_v54 = vpop.f32.mrf.mxu2  ;;  %v1444_v56 = vpop.permute.xlu1 %1443 }
 0x2ce   : > { %10184 = vst [vmem:[#allocation31_spill] sm:$0xff] %v7440_v54  ;;  %v1106_v54 = vadd.f32 %v1086_v0, %v952_v31  ;;  %v940_v31 = vadd.f32 %v7340_v23, %v7300_v7  ;;  %v943_v7 = vadd.f32 %v7357_v32, %v7309_v10  ;;  %v902_v10 = vadd.f32 %v7362_v36, %v7311_v11 }
 0x2d0   : > { %v1257_v26 = vadd.f32 %v1237_v14, %v1106_v54  ;;  %v1247_v54 = vadd.f32 %v7399_v2, %v1096_v13  ;;  %v10190_v13 = vld [vmem:[#allocation16_spill] sm:$0xff] }
 0x2d2   : > { %v1398_v32 = vadd.f32 %v7415_v35, %v1247_v54  ;;  %v1434_v54 = vpop.permute.xlu0 %1433 }
 0x2d4   : > { %v1385_v34 = vpop.f32.mrf.mxu3 }
 0x2d5   : > { %v1406_v57 = vadd.f32 %v1385_v34, %v1255_v44  ;;  %v1344_v15 = vpop.f32.mrf.mxu2  ;;  %v896_v34 = vadd.f32 %v7331_v19, %v7290_v4  ;;  %v899_v19 = vadd.f32 %v7349_v28, %v7302_v8 }
 0x2d6   : > { %v1405_v48 = vadd.f32 %v1344_v15, %v1254_v33  ;;  %v955_v33 = vadd.f32 %v954_v58, %v7353_v29  ;;  %v1199_v29 = vpop.f32.mrf.mxu0  ;;  %v1100_v58 = vadd.f32 %v7385_v53, %v943_v7  ;;  %v10195_v7 = vld [vmem:[#allocation18_spill] sm:$0xff] }
 0x2d7   : > { %v1470_v22 = vadd.f32 %v1444_v56, %v1406_v57  ;;  %v1095_v14 = vadd.f32 %v7376_v46, %v896_v34  ;;  %v1097_v57 = vadd.f32 %v7383_v51, %v899_v19  ;;  %v1424_v51 = vpop.permute.xlu2 %1423  ;;  %v10189_v34 = vld [vmem:[#allocation14_spill] sm:$0xff] }
 0x2d8   : > { %v1469_v42 = vadd.f32 %v1444_v56, %v1405_v48  ;;  %v1108_v23 = vadd.f32 %v7403_v6, %v955_v33  ;;  %v1098_v56 = vadd.f32 %v7381_v49, %v940_v31  ;;  %v917_v49 = vadd.f32 %v7397_v63, %v7368_v38  ;;  %v10192_v31 = vld [vmem:[#allocation15_spill] sm:$0xff] }
 0x2d9   : > { %v1486_v50 = vsub.f32 0.0, %v1470_v22  ;;  %v1246_v28 = vadd.f32 %v7401_v5, %v1095_v14  ;;  %v1258_v6 = vadd.f32 %v1199_v29, %v1107_v30  ;;  %v1248_v9 = vadd.f32 %v7411_v21, %v1097_v57 }
 0x2da   : > { %v1485_v44 = vsub.f32 0.0, %v1469_v42  ;;  %v1259_v0 = vadd.f32 %v1240_v16, %v1108_v23  ;;  %v1249_v2 = vadd.f32 %v7407_v12, %v1098_v56  ;;  %v1251_v15 = vadd.f32 %v7419_v41, %v1100_v58  ;;  %v10187_v12 = vld [vmem:[#allocation21_spill] sm:$0xff]  ;;  %v1243_v42 = vpop.f32.mrf.mxu1  ;;  %v10196_v58 = vld [vmem:[#allocation19_spill] sm:$0xff] }
 0x2db   : > { %v1495_v39 = vmul.f32 1.442695, %v1486_v50  ;;  %v1397_v11 = vadd.f32 %v7417_v47, %v1246_v28  ;;  %v1462_v27 = vadd.f32 %v1424_v51, %v1398_v32  ;;  %v1110_v48 = vadd.f32 %v10186_v17, %v958_v61  ;;  %v10197_v61 = vld [vmem:[#allocation22_spill] sm:$0xff] }
 0x2dc   : > { %v1388_v25 = vpop.f32.mrf.mxu3  ;;  %v1493_v59 = vmul.f32 1.442695, %v1485_v44  ;;  %v1400_v62 = vadd.f32 %v10185_v37, %v1249_v2  ;;  %v1109_v20 = vadd.f32 %v10187_v12, %v917_v49  ;;  %v1399_v41 = vadd.f32 %v10188_v18, %v1248_v9 }
 0x2dd   : > { %v1408_v22 = vadd.f32 %v1388_v25, %v1257_v26  ;;  %v1347_v52 = vpop.f32.mrf.mxu2  ;;  %6626 = vpow2.f32 %v1495_v39  ;;  %v1461_v21 = vadd.f32 %v1424_v51, %v1397_v11  ;;  %v1429_v39 = vpop.permute.xlu1 %1428  ;;  %v10191_v25 = vld [vmem:[#allocation13_spill] sm:$0xff]  ;;  %v1099_v14 = vadd.f32 %v10194_v3, %v902_v10 }
 0x2de   : > { %v1407_v4 = vadd.f32 %v1347_v52, %v1256_v24  ;;  %6628 = vpow2.f32 %v1493_v59  ;;  %v905_v24 = vadd.f32 %v10190_v13, %v10189_v34  ;;  %v946_v33 = vadd.f32 %v10192_v31, %v10191_v25  ;;  %v1202_v44 = vpop.f32.mrf.mxu0 }
 0x2df   : > { %v1472_v45 = vadd.f32 %v1449_v55, %v1408_v22  ;;  %v10193_v22 = vld [vmem:[#allocation27_spill] sm:$0xff]  ;;  %v1464_v16 = vadd.f32 %v1429_v39, %v1400_v62  ;;  %v1260_v56 = vadd.f32 %v1202_v44, %v1109_v20  ;;  %v1463_v30 = vadd.f32 %v1429_v39, %v1399_v41 }
 0x2e0   : > { %v1471_v46 = vadd.f32 %v1449_v55, %v1407_v4  ;;  %v1402_v52 = vadd.f32 %v10193_v22, %v1251_v15  ;;  %v1102_v23 = vadd.f32 %v10195_v7, %v946_v33  ;;  %v1101_v59 = vadd.f32 %v10196_v58, %v905_v24  ;;  %v10200_v15 = vld [vmem:[#allocation26_spill] sm:$0xff]  ;;  %v10203_v20 = vld [vmem:[#allocation31_spill] sm:$0xff] }
 0x2e1   : > { %v1488_v8 = vsub.f32 0.0, %v1472_v45 }
 0x2e2   : > { %v1487_v60 = vsub.f32 0.0, %v1471_v46 }
 0x2e3   : > { %v1499_v1 = vmul.f32 1.442695, %v1488_v8  ;;  %v6627_v53 = vpop.eup %6626  ;;  %v1466_v8 = vadd.f32 %v1434_v54, %v1402_v52 }
 0x2e4   : > { %v1497_v36 = vmul.f32 1.442695, %v1487_v60  ;;  %v1391_v5 = vpop.f32.mrf.mxu3  ;;  %v7485_v50 = vadd.f32 1.0, %v6627_v53  ;;  %v6629_v19 = vpop.eup %6628 }
 0x2e5   : > { %v1410_v38 = vadd.f32 %v1391_v5, %v1259_v0  ;;  %v1350_v63 = vpop.f32.mrf.mxu2  ;;  %6630 = vpow2.f32 %v1499_v1  ;;  %v7499_v60 = vadd.f32 1.0, %v6629_v19  ;;  %v1250_v0 = vadd.f32 %v10197_v61, %v1099_v14  ;;  %v10198_v1 = vld [vmem:[#allocation29_spill] sm:$0xff] }
 0x2e6   : > { %v1409_v35 = vadd.f32 %v1350_v63, %v1258_v6  ;;  %6632 = vpow2.f32 %v1497_v36  ;;  %v10199_v6 = vld [vmem:[#allocation25_spill] sm:$0xff]  ;;  %v10201_v63 = vld [vmem:[#allocation28_spill] sm:$0xff]  ;;  %v1543_v14 = vand.u32 2147483648, %v7485_v50  ;;  %vm1537_vm11 = vweird.f32 %v7485_v50 }
 0x2e7   : > { %v1474_v47 = vadd.f32 %v7443_v40, %v1410_v38  ;;  %6634 = vtanh.f32 %v1462_v27  ;;  %v1253_v11 = vadd.f32 %v10199_v6, %v1102_v23  ;;  %v1252_v38 = vadd.f32 %v10200_v15, %v1101_v59 }
 0x2e8   : > { %v1473_v26 = vadd.f32 %v7443_v40, %v1409_v35  ;;  %v1261_v40 = vadd.f32 %v1243_v42, %v1110_v48  ;;  %6636 = vrcp.f32 %v7485_v50  ;;  %v1401_v27 = vadd.f32 %v10201_v63, %v1250_v0  ;;  %v10202_v35 = vld [vmem:[#allocation30_spill] sm:$0xff] }
 0x2e9   : > { %v1490_v55 = vsub.f32 0.0, %v1474_v47  ;;  %6638 = vtanh.f32 %v1461_v21  ;;  %v1404_v17 = vadd.f32 %v10202_v35, %v1253_v11  ;;  %v1403_v47 = vadd.f32 %v10203_v20, %v1252_v38  ;;  %v10233_v35 = vld [vmem:[#allocation9_spill] sm:$0xff] }
 0x2ea   : > { %v1489_v4 = vsub.f32 0.0, %v1473_v26  ;;  %v1465_v34 = vadd.f32 %v1434_v54, %v1401_v27 }
 0x2eb   : > { %v1503_v29 = vmul.f32 1.442695, %v1490_v55  ;;  %v6631_v45 = vpop.eup %6630  ;;  %v1468_v24 = vadd.f32 %v7447_v43, %v1404_v17  ;;  %v1467_v33 = vadd.f32 %v7447_v43, %v1403_v47 }
 0x2ec   : > { %v1501_v46 = vmul.f32 1.442695, %v1489_v4  ;;  %v1394_v57 = vpop.f32.mrf.mxu3  ;;  %v6633_v32 = vpop.eup %6632  ;;  %v7502_v51 = vadd.f32 1.0, %v6631_v45  ;;  %v1526_v45 = vand.u32 2147483647, %v7499_v60 }
 0x2ed   : > { %6640 = vpow2.f32 %v1503_v29  ;;  %v1412_v10 = vadd.f32 %v1394_v57, %v1261_v40  ;;  %v1353_v28 = vpop.f32.mrf.mxu2  ;;  %v7505_v2 = vpop.eup %6634  ;;  %v7508_v36 = vadd.f32 1.0, %v6633_v32  ;;  %v1541_v29 = vand.u32 2147483647, %v7485_v50 }
 0x2ee   : > { %6642 = vtanh.f32 %v1464_v16  ;;  %v1411_v49 = vadd.f32 %v1353_v28, %v1260_v56  ;;  %v7511_v9 = vpop.eup %6636  ;;  %v1573_v40 = vand.u32 2147483648, %v7502_v51  ;;  %vm1567_vm13 = vweird.f32 %v7502_v51 }
 0x2ef   : > { %6644 = vpow2.f32 %v1501_v46  ;;  %v1476_v53 = vadd.f32 %v10198_v1, %v1412_v10  ;;  %v7515_v62 = vpop.eup %6638  ;;  %v1533_v26 = vmul.f32 %v7511_v9, %v7485_v50  ;;  %v1528_v10 = vand.u32 2147483648, %v7499_v60 }
 0x2f0   : > { %6646 = vtanh.f32 %v1463_v30  ;;  %v1475_v5 = vadd.f32 %v10198_v1, %v1411_v49  ;;  %vm1538_vm12 = vweird.f32 %v7511_v9  ;;  %v1571_v6 = vand.u32 2147483647, %v7502_v51 }
 0x2f1   : > { %6648 = vtanh.f32 %v1466_v8  ;;  %v1492_v37 = vsub.f32 0.0, %v1476_v53  ;;  %v1534_v22 = vsub.f32 1.0, %v1533_v26  ;;  %v7571_v8 = vor.u32 1.1754944e-38, %v1543_v14  ;;  %vm7595_vm14 = vmor %vm1537_vm11, %vm1538_vm12 }
 0x2f2   : > { %6650 = vrcp.f32 %v7499_v60  ;;  %v1491_v48 = vsub.f32 0.0, %v1475_v5  ;;  %v7587_v11 = vor.u32 1.1754944e-38, %v1573_v40  ;;  %v1556_v27 = vand.u32 2147483647, %v7508_v36 }
 0x2f3   : > { %v6641_v12 = vpop.eup %6640  ;;  %6652 = vrcp.f32 %v7502_v51  ;;  %v1507_v42 = vmul.f32 1.442695, %v1492_v37  ;;  %v1535_v19 = vmul.f32 %v7511_v9, %v1534_v22  ;;  %v1558_v37 = vand.u32 2147483648, %v7508_v36 }
 0x2f4   : > { %v7521_v21 = vpop.eup %6642  ;;  %6654 = vrcp.f32 %v7508_v36  ;;  %v7524_v18 = vadd.f32 1.0, %v6641_v12  ;;  %v1505_v41 = vmul.f32 1.442695, %v1491_v48  ;;  %vm7626_vm6 = vcmp.eq.f32.partialorder %v1571_v6, 8.507059e+37 }
 0x2f5   : > { %v6645_v39 = vpop.eup %6644  ;;  %6656 = vpow2.f32 %v1507_v42  ;;  %v7578_v49 = vadd.f32 %v7511_v9, %v1535_v19  ;;  %vm7646_vm5 = vcmp.eq.f32.partialorder %v1541_v29, 8.507059e+37  ;;  %v1559_v47 = vor.u32 1.1754944e-38, %v1558_v37 }
 0x2f6   : > { %v7528_v13 = vpop.eup %6646  ;;  %6658 = vrcp.f32 %v7524_v18  ;;  %v7532_v25 = vadd.f32 1.0, %v6645_v39  ;;  %v1601_v0 = vand.u32 2147483647, %v7524_v18  ;;  %v1603_v1 = vand.u32 2147483648, %v7524_v18 }
 0x2f7   : > { %v7534_v31 = vpop.eup %6648  ;;  %6660 = vpow2.f32 %v1505_v41  ;;  %vm1597_vm15 = vweird.f32 %v7524_v18  ;;  %v1540_v12 = vsel %vm7595_vm14, %v7511_v9, %v7578_v49 }
 0x2f8   : > { %v7537_v44 = vpop.eup %6650  ;;  %6662 = vrcp.f32 %v7532_v25  ;;  %v1586_v63 = vand.u32 2147483647, %v7532_v25  ;;  %vm7608_vm2 = vcmp.eq.f32.partialorder %v1601_v0, 8.507059e+37  ;;  %v1604_v42 = vor.u32 1.1754944e-38, %v1603_v1 }
 0x2f9   : > { %v7540_v52 = vpop.eup %6652  ;;  %6664 = vtanh.f32 %v1465_v34  ;;  %v1518_v46 = vmul.f32 %v7537_v44, %v7499_v60  ;;  %vm1582_vm11 = vweird.f32 %v7532_v25  ;;  %v1588_v39 = vand.u32 2147483648, %v7532_v25 }
 0x2fa   : > { %v7542_v55 = vpop.eup %6654  ;;  %6666 = vtanh.f32 %v1468_v24  ;;  %v1563_v43 = vmul.f32 %v7540_v52, %v7502_v51  ;;  %vm1568_vm0 = vweird.f32 %v7540_v52  ;;  %vm7622_vm8 = vcmp.eq.f32.partialorder %v1586_v63, 8.507059e+37 }
 0x2fb   : > { %v6657_v3 = vpop.eup %6656  ;;  %6668 = vtanh.f32 %v1467_v33  ;;  %v1548_v30 = vmul.f32 %v7542_v55, %v7508_v36  ;;  %v1519_v15 = vsub.f32 1.0, %v1518_v46  ;;  %vm1553_vm9 = vweird.f32 %v7542_v55  ;;  %vm7640_vm7 = vmor %vm1567_vm13, %vm1568_vm0 }
 0x2fc   : > { %v7545_v16 = vpop.eup %6658  ;;  %v7547_v4 = vadd.f32 1.0, %v6657_v3  ;;  %v1564_v32 = vsub.f32 1.0, %v1563_v43  ;;  %v1679_v43 = vpop.permute.xlu0 %1678 }
 0x2fd   : > { %v6661_v7 = vpop.eup %6660  ;;  %v1593_v23 = vmul.f32 %v7545_v16, %v7524_v18  ;;  %v1549_v5 = vsub.f32 1.0, %v1548_v30  ;;  %v1520_v24 = vmul.f32 %v7537_v44, %v1519_v15  ;;  %vm1598_vm10 = vweird.f32 %v7545_v16 }
 0x2fe   : > { %v7558_v54 = vpop.eup %6662  ;;  %6670 = vrcp.f32 %v7547_v4  ;;  %v7561_v56 = vadd.f32 1.0, %v6661_v7  ;;  %v1565_v48 = vmul.f32 %v7540_v52, %v1564_v32  ;;  %v1631_v19 = vand.u32 2147483647, %v7547_v4  ;;  %vm7657_vm13 = vmor %vm1597_vm15, %vm1598_vm10 }
 0x2ff   : > { %v7567_v57 = vpop.eup %6664  ;;  %v1594_v58 = vsub.f32 1.0, %v1593_v23  ;;  %v1578_v59 = vmul.f32 %v7558_v54, %v7532_v25  ;;  %v1550_v34 = vmul.f32 %v7542_v55, %v1549_v5  ;;  %v1633_v7 = vand.u32 2147483648, %v7547_v4 }
 0x300   : > { %v7574_v28 = vpop.eup %6666  ;;  %6672 = vrcp.f32 %v7561_v56  ;;  %vm1583_vm4 = vweird.f32 %v7558_v54  ;;  %v1566_v23 = vadd.f32 %v7540_v52, %v1565_v48  ;;  %vm1627_vm12 = vweird.f32 %v7547_v4 }
 0x301   : > { %v7581_v61 = vpop.eup %6668  ;;  %v1579_v53 = vsub.f32 1.0, %v1578_v59  ;;  %v1595_v38 = vmul.f32 %v7545_v16, %v1594_v58  ;;  %v1616_v32 = vand.u32 2147483647, %v7561_v56  ;;  %v1618_v0 = vand.u32 2147483648, %v7561_v56  ;;  %vm7669_vm1 = vmor %vm1582_vm11, %vm1583_vm4  ;;  %v10238_v58 = vld [vmem:[#allocation5_spill] sm:$0xff] }
 0x302   : > { %v1551_v50 = vadd.f32 %v7542_v55, %v1550_v34  ;;  %vm1632_vm15 = vcmp.eq.f32.partialorder %v1631_v19, 8.507059e+37  ;;  %v1634_v18 = vor.u32 1.1754944e-38, %v1633_v7  ;;  %v1570_v6 = vsel %vm7640_vm7, %v7540_v52, %v1566_v23  ;;  %v10236_v7 = vld [vmem:[#allocation8_spill] sm:$0xff] }
 0x303   : > { %v1580_v41 = vmul.f32 %v7558_v54, %v1579_v53  ;;  %v1596_v3 = vadd.f32 %v7545_v16, %v1595_v38  ;;  %v1521_v5 = vadd.f32 %v7537_v44, %v1520_v24  ;;  %v1619_v52 = vor.u32 1.1754944e-38, %v1618_v0  ;;  %v10242_v53 = vld [vmem:[#allocation6_spill] sm:$0xff] }
 0x304   : > { %v6671_v17 = vpop.eup %6670  ;;  %v1589_v48 = vor.u32 1.1754944e-38, %v1588_v39  ;;  %vm1617_vm11 = vcmp.eq.f32.partialorder %v1616_v32, 8.507059e+37  ;;  %v1575_v24 = vsel %vm7626_vm6, %v7587_v11, %v1570_v6  ;;  %v1545_v11 = vsel %vm7646_vm5, %v7571_v8, %v1540_v12  ;;  %v1645_v8 = vld [vmem:[%s10092_s7] sm:$0xff]  ;;  %v10234_v39 = vld [vmem:[#allocation3_spill] sm:$0xff] }
 0x305   : > { %v1623_v20 = vmul.f32 %v6671_v17, %v7547_v4  ;;  %vm1628_vm3 = vweird.f32 %v6671_v17  ;;  %v1581_v46 = vadd.f32 %v7558_v54, %v1580_v41  ;;  %v1600_v4 = vsel %vm7657_vm13, %v7545_v16, %v1596_v3 }
 0x306   : > { %v6673_v26 = vpop.eup %6672  ;;  %vm1629_vm10 = vmor %vm1627_vm12, %vm1628_vm3  ;;  %vm1612_vm13 = vweird.f32 %v7561_v56  ;;  %vm10220_vm3 = vweird.f32 %v7508_v36  ;;  %vm1527_vm6 = vcmp.eq.f32.partialorder %v1526_v45, 8.507059e+37  ;;  %v1638_v49 = vmul.f32 %v7505_v2, %v1545_v11  ;;  %v1647_v2 = vld [vmem:[%s10092_s7 + $0x10] sm:$0xff] }
 0x307   : > { %v1608_v33 = vmul.f32 %v6673_v26, %v7561_v56  ;;  %v1624_v22 = vsub.f32 1.0, %v1623_v20  ;;  %vm1613_vm0 = vweird.f32 %v6673_v26  ;;  %v1585_v25 = vsel %vm7669_vm1, %v7558_v54, %v1581_v46  ;;  %vm7686_vm4 = vmor %vm10220_vm3, %vm1553_vm9 }
 0x308   : > { %vm1614_vm7 = vmor %vm1612_vm13, %vm1613_vm0  ;;  %v1555_v54 = vsel %vm7686_vm4, %v7542_v55, %v1551_v50  ;;  %v1590_v34 = vsel %vm7622_vm8, %v1589_v48, %v1585_v25  ;;  %vm10223_vm9 = vweird.f32 %v7537_v44  ;;  %vm10224_vm1 = vweird.f32 %v7499_v60  ;;  %v1646_v60 = vld [vmem:[%s10092_s7 + $0x8] sm:$0xff]  ;;  %v10247_v48 = vld [vmem:[#allocation12_spill] sm:$0xff] }
 0x309   : > { %v1625_v40 = vmul.f32 %v6671_v17, %v1624_v22  ;;  %v1609_v30 = vsub.f32 1.0, %v1608_v33  ;;  %vm1557_vm8 = vcmp.eq.f32.partialorder %v1556_v27, 8.507059e+37  ;;  %v1641_v36 = vmul.f32 %v7567_v57, %v1590_v34  ;;  %v1674_v22 = vpop.permute.xlu1 %1673 }
 0x30a   : > { %vm10225_vm5 = vcmask 261120   ;;  %vm10251_vm4 = vcmask 1047568  }
 0x30b   : > { %v1626_v29 = vadd.f32 %v6671_v17, %v1625_v40  ;;  %v1610_v1 = vmul.f32 %v6673_v26, %v1609_v30  ;;  %vm10226_vm14 = vmmov %vm10225_vm5  ;;  %v10237_v30 = vld [vmem:[#allocation7_spill] sm:$0xff] }
 0x30c   : > { %vm10227_vm12 = vmmov %vm10225_vm5 }
 0x30d   : > { %v1630_v15 = vsel %vm1629_vm10, %v6671_v17, %v1626_v29  ;;  %v1611_v16 = vadd.f32 %v6673_v26, %v1610_v1  ;;  %v1605_v17 = vsel %vm7608_vm2, %v1604_v42, %v1600_v4  ;;  %vm1524_vm2 = vmor %vm10224_vm1, %vm10223_vm9  ;;  %v10241_v1 = vld [vmem:[#allocation10_spill] sm:$0xff]  ;;  %vm10254_vm9 = vcmask 146432  }
 0x30e   : > { %v1635_v63 = vsel %vm1632_vm15, %v1634_v18, %v1630_v15  ;;  %v1642_v55 = vmul.f32 %v7534_v31, %v1605_v17  ;;  %v1525_v42 = vsel %vm1524_vm2, %v7537_v44, %v1521_v5  ;;  %v1640_v31 = vmul.f32 %v7521_v21, %v1575_v24  ;;  %vm10228_vm0 = vmmov %vm10225_vm5  ;;  %v1664_v5 = vpop.permute.xlu0 %1663 }
 0x30f   : > { %v1644_v56 = vmul.f32 %v7574_v28, %v1635_v63  ;;  %v1615_v20 = vsel %vm1614_vm7, %v6673_v26, %v1611_v16  ;;  %v1560_v26 = vsel %vm1557_vm8, %v1559_v47, %v1555_v54  ;;  %vm10229_vm10 = vmmov %vm10228_vm0  ;;  %v10243_v16 = vld [vmem:[#allocation4_spill] sm:$0xff]  ;;  %vm10252_vm7 = vcmask 15360  }
 0x310   : > { %v1620_v41 = vsel %vm1617_vm11, %v1619_v52, %v1615_v20  ;;  %v1639_v9 = vmul.f32 %v7528_v13, %v1560_v26  ;;  %vm10230_vm15 = vmmov %vm10228_vm0  ;;  %v10248_v20 = vld [vmem:[#allocation11_spill] sm:$0xff] }
 0x311   : > { %1778 = vmatpush.msrb.mxu1 %v1644_v56  ;;  %v1643_v28 = vmul.f32 %v7581_v61, %v1620_v41  ;;  %v1529_v61 = vor.u32 1.1754944e-38, %v1528_v10  ;;  %vm10231_vm13 = vmmov %vm10228_vm0  ;;  %v1669_v10 = vpop.permute.xlu2 %1668 }
 0x312   : > { %vm10232_vm3 = vmmov %vm10228_vm0 }
 0x313   : > { %1737 = vmatpush.msrb.mxu0 %v1643_v28  ;;  %1779 = vmatpush.msrb.mxu1 %v1642_v55  ;;  %v1530_v44 = vsel %vm1527_vm6, %v1529_v61, %v1525_v42  ;;  %vm10253_vm11 = vmmov %vm10251_vm4 }
 0x314   : > { %v1637_v57 = vmul.f32 %v7515_v62, %v1530_v44  ;;  %v1648_v62 = vld [vmem:[%s10092_s7 + $0x18] sm:$0xff]  ;;  %vm10255_vm1 = vmmov %vm10252_vm7 }
 0x315   : > { %1738 = vmatpush.msrb.mxu0 %v1641_v36  ;;  %1780 = vmatpush.msrb.mxu1 %v1640_v31  ;;  %vm10256_vm2 = vmmov %vm10251_vm4 }
 0x316   : > { %vm10257_vm8 = vmmov %vm10255_vm1 }
 0x317   : > { %1739 = vmatpush.msrb.mxu0 %v1639_v9  ;;  %1781 = vmatpush.msrb.mxu1 %v1638_v49  ;;  %vm10258_vm6 = vmmov %vm10254_vm9 }
 0x318   : > { %5760 = vmatmul.msk.f32.vlgmr.msrb.gmra.mxu1 %vm10225_vm5, %v1645_v8  ;;  %vm10259_vm5 = vmmov %vm10258_vm6 }
 0x319   : > { %1740 = vmatpush.msrb.mxu0 %v1637_v57 }
 0x31a   : > { %5752 = vmatmul.msk.f32.vlgmr.msrb.gmra.mxu0 %vm10226_vm14, %v1645_v8  ;;  %vm10260_vm14 = vmmov %vm10255_vm1 }
 0x320   : > { %5761 = vmatmul.msk.f32.gmra.mxu1 %vm10227_vm12, %v1646_v60  ;;  %vm10261_vm12 = vmmov %vm10256_vm2 }
 0x322   : > { %5753 = vmatmul.msk.f32.gmra.mxu0 %vm10228_vm0, %v1646_v60  ;;  %vm10262_vm0 = vmmov %vm10259_vm5 }
 0x328   : > { %5762 = vmatmul.msk.f32.gmra.mxu1 %vm10229_vm10, %v1647_v2  ;;  %vm10266_vm10 = vmmov %vm10232_vm3 }
 0x32a   : > { %5754 = vmatmul.msk.f32.gmra.mxu0 %vm10230_vm15, %v1647_v2  ;;  %vm10267_vm15 = vmmov %vm10232_vm3 }
 0x330   : > { %5763 = vmatmul.msk.f32.gmra.mxu1 %vm10231_vm13, %v1648_v62  ;;  %vm10268_vm13 = vmmov %vm10232_vm3 }
 0x332   : > { %5755 = vmatmul.msk.f32.gmra.mxu0 %vm10232_vm3, %v1648_v62 }
 0x395   : > { %v1783_v21 = vpop.f32.mrf.mxu1 }
 0x396   : > { %v1784_v15 = vadd.f32 %v1783_v21, %v1664_v5 }
 0x397   : > { %v1742_v13 = vpop.f32.mrf.mxu0 }
 0x398   : > { %v1743_v63 = vadd.f32 %v1742_v13, %v1664_v5  ;;  %v1808_v56 = vadd.f32 %v1784_v15, %v10247_v48 }
 0x39a   : > { %v1807_v54 = vadd.f32 %v1743_v63, %v10248_v20  ;;  %v7788_v41 = vmul.f32 %v1808_v56, %v10238_v58  ;;  %v5770_v56 = vld [vmem:[%s10090_s5 + $0x150] sm:$0xff] }
 0x39c   : > { %10249 = vst [vmem:[#allocation13_spill] sm:$0xff] %v7788_v41  ;;  %v7793_v34 = vmul.f32 %v1807_v54, %v10234_v39 }
 0x39d   : > { %v1786_v45 = vpop.f32.mrf.mxu1 }
 0x39e   : > { %v1787_v32 = vadd.f32 %v1786_v45, %v1669_v10  ;;  %10250 = vst [vmem:[#allocation15_spill] sm:$0xff] %v7793_v34 }
 0x39f   : > { %v1745_v27 = vpop.f32.mrf.mxu0 }
 0x3a0   : > { %v1746_v37 = vadd.f32 %v1745_v27, %v1669_v10  ;;  %v1810_v4 = vadd.f32 %v1787_v32, %v10241_v1  ;;  %v5904_v32 = vld [vmem:[%s10093_s8 + $0x40] sm:$0xff] }
 0x3a2   : > { %v1809_v12 = vadd.f32 %v1746_v37, %v10233_v35  ;;  %v7779_v17 = vmul.f32 %v1810_v4, %v10238_v58  ;;  %v5895_v35 = vld [vmem:[%s10091_s6 + $0x78] sm:$0xff]  ;;  %v5768_v4 = vld [vmem:[%s10090_s5 + $0x140] sm:$0xff] }
 0x3a4   : > { %v7751_v33 = vmul.f32 %v1809_v12, %v10234_v39  ;;  %10246 = vst [vmem:[#allocation16_spill] sm:$0xff] %v7779_v17  ;;  %v5894_v12 = vld [vmem:[%s10091_s6 + $0x70] sm:$0xff] }
 0x3a5   : > { %v1789_v3 = vpop.f32.mrf.mxu1 }
 0x3a6   : > { %10235 = vst [vmem:[#allocation23_spill] sm:$0xff] %v7751_v33  ;;  %v1790_v14 = vadd.f32 %v1789_v3, %v1674_v22  ;;  %1843 = vrot.lane.b32.xlu2 %v7751_v33, %s10126_s27  ;;  %v5893_v3 = vld [vmem:[%s10091_s6 + $0x68] sm:$0xff] }
 0x3a7   : > { %v1748_v19 = vpop.f32.mrf.mxu0 }
 0x3a8   : > { %v1812_v23 = vadd.f32 %v1790_v14, %v10236_v7  ;;  %v1749_v40 = vadd.f32 %v1748_v19, %v1674_v22  ;;  %v5892_v22 = vld [vmem:[%s10091_s6 + $0x60] sm:$0xff]  ;;  %v5891_v14 = vld [vmem:[%s10091_s6 + $0x58] sm:$0xff]  ;;  %v5890_v19 = vld [vmem:[%s10091_s6 + $0x50] sm:$0xff] }
 0x3a9   : > { %v5888_v7 = vld [vmem:[%s10091_s6 + $0x40] sm:$0xff] }
 0x3aa   : > { %v1811_v46 = vadd.f32 %v1749_v40, %v10237_v30  ;;  %v7758_v59 = vmul.f32 %v1812_v23, %v10238_v58  ;;  %v5906_v23 = vld [vmem:[%s10093_s8 + $0x50] sm:$0xff]  ;;  %v5907_v40 = vld [vmem:[%s10093_s8 + $0x58] sm:$0xff]  ;;  %v5905_v30 = vld [vmem:[%s10093_s8 + $0x48] sm:$0xff] }
 0x3ac   : > { %10239 = vst [vmem:[#allocation20_spill] sm:$0xff] %v7758_v59  ;;  %1849 = vrot.lane.b32.xlu1 %v7758_v59, %s10126_s27  ;;  %v7763_v0 = vmul.f32 %v1811_v46, %v10234_v39  ;;  %v1649_v46 = vld [vmem:[%s10092_s7 + $0x20] sm:$0xff] }
 0x3ad   : > { %v1792_v51 = vpop.f32.mrf.mxu1  ;;  %5756 = vmatmul.msk.f32.gmra.mxu0 %vm10266_vm10, %v1649_v46  ;;  %5764 = vmatmul.msk.f32.gmra.mxu1 %vm10267_vm15, %v1649_v46 }
 0x3ae   : > { %10240 = vst [vmem:[#allocation21_spill] sm:$0xff] %v7763_v0  ;;  %v1793_v50 = vadd.f32 %v1792_v51, %v1679_v43  ;;  %1847 = vrot.lane.b32.xlu0 %v7763_v0, %s10126_s27  ;;  %v1650_v51 = vld [vmem:[%s10092_s7 + $0x28] sm:$0xff] }
 0x3af   : > { %v1751_v29 = vpop.f32.mrf.mxu0 }
 0x3b0   : > { %v1814_v18 = vadd.f32 %v1793_v50, %v10242_v53  ;;  %v1752_v6 = vadd.f32 %v1751_v29, %v1679_v43  ;;  %v5889_v43 = vld [vmem:[%s10091_s6 + $0x48] sm:$0xff]  ;;  %v1651_v50 = vld [vmem:[%s10092_s7 + $0x30] sm:$0xff]  ;;  %v1652_v29 = vld [vmem:[%s10092_s7 + $0x38] sm:$0xff] }
 0x3b2   : > { %v1813_v25 = vadd.f32 %v1752_v6, %v10243_v16  ;;  %v7771_v38 = vmul.f32 %v1814_v18, %v10238_v58  ;;  %v5769_v18 = vld [vmem:[%s10090_s5 + $0x148] sm:$0xff] }
 0x3b4   : > { %10244 = vst [vmem:[#allocation24_spill] sm:$0xff] %v7771_v38  ;;  %1853 = vrot.lane.b32.xlu2 %v7771_v38, %s10126_s27  ;;  %v7776_v52 = vmul.f32 %v1813_v25, %v10234_v39 }
 0x3b5   : > { %5757 = vmatmul.msk.f32.gmra.mxu0 %vm10268_vm13, %v1650_v51  ;;  %5765 = vmatmul.msk.f32.gmra.mxu1 %vm10232_vm3, %v1650_v51 }
 0x3b6   : > { %10245 = vst [vmem:[#allocation14_spill] sm:$0xff] %v7776_v52  ;;  %1851 = vrot.lane.b32.xlu1 %v7776_v52, %s10126_s27  ;;  %1845 = vrot.lane.b32.xlu0 %v7779_v17, %s10126_s27 }
 0x3bc   : > { %1841 = vrot.lane.b32.xlu2 %v7788_v41, %s10126_s27 }
 0x3be   : > { %1839 = vrot.lane.b32.xlu1 %v7793_v34, %s10126_s27 }
 0x400   : > { %v1844_v24 = vpop.permute.xlu2 %1843 }
 0x401   : > { %1869 = vst.msk [vmem:[#allocation2 + $0x10] sm:$0xff] %vm10251_vm4, %v1844_v24  ;;  %vm10269_vm4 = vmmov %vm10232_vm3 }
 0x402   : > { %5758 = vmatmul.msk.f32.gmra.mxu0 %vm10269_vm4, %v1651_v50 }
 0x408   : > { %v1918_v62 = vld [vmem:[#allocation2 + $0x10] sm:$0xff] }
 0x40e   : > { %v1854_v42 = vpop.permute.xlu2 %1853 }
 0x416   : > { %v1842_v49 = vpop.permute.xlu2 %1841 }
 0x41e   : > { %v1850_v47 = vpop.permute.xlu1 %1849 }
 0x420   : > { %v1848_v28 = vpop.permute.xlu0 %1847 }
 0x421   : > { %v1857_v55 = vsel %vm10252_vm7, %v1848_v28, %v1850_v47  ;;  %1871 = vst.msk [vmem:[#allocation2 + $0x20] sm:$0xff] %vm10253_vm11, %v1848_v28  ;;  %vm10270_vm7 = vmmov %vm10232_vm3 }
 0x422   : > { %1872 = vst.msk [vmem:[#allocation2 + $0x28] sm:$0xff] %vm10254_vm9, %v1857_v55  ;;  %5766 = vmatmul.msk.f32.gmra.mxu1 %vm10270_vm7, %v1651_v50  ;;  %vm10271_vm11 = vmmov %vm10232_vm3  ;;  %vm10286_vm7 = vcmask 1031168   ;;  %v5778_v50 = vld [vmem:[%s10090_s5 + $0x190] sm:$0xff] }
 0x423   : > { %5759 = vmatmul.msk.f32.gmra.mxu0 %vm10271_vm11, %v1652_v29  ;;  %vm10272_vm9 = vmmov %vm10232_vm3 }
 0x428   : > { %v1852_v26 = vpop.permute.xlu1 %1851  ;;  %v1846_v11 = vpop.permute.xlu0 %1845  ;;  %v1920_v61 = vld [vmem:[#allocation2 + $0x20] sm:$0xff] }
 0x429   : > { %v1858_v36 = vsel %vm10255_vm1, %v1852_v26, %v1854_v42  ;;  %1873 = vst.msk [vmem:[#allocation2 + $0x30] sm:$0xff] %vm10256_vm2, %v1852_v26  ;;  %v1856_v31 = vsel %vm10257_vm8, %v1844_v24, %v1846_v11  ;;  %v1921_v44 = vld [vmem:[#allocation2 + $0x28] sm:$0xff]  ;;  %vm10273_vm1 = vmmov %vm10232_vm3 }
 0x42a   : > { %1874 = vst.msk [vmem:[#allocation2 + $0x38] sm:$0xff] %vm10258_vm6, %v1858_v36  ;;  %v6386_v9 = vpack.i.bf16 %v1921_v44, %v1920_v61  ;;  %5767 = vmatmul.msk.f32.gmra.mxu1 %vm10272_vm9, %v1652_v29  ;;  %vm10274_vm2 = vmmov %vm10273_vm1  ;;  %v5773_v29 = vld [vmem:[%s10090_s5 + $0x168] sm:$0xff] }
 0x42b   : > { %1870 = vst.msk [vmem:[#allocation2 + $0x18] sm:$0xff] %vm10259_vm5, %v1856_v31  ;;  %vm10275_vm8 = vmmov %vm10273_vm1  ;;  %vm10277_vm5 = vcmask 1039360  }
 0x42c   : > { %6387 = vrot.lane.b32.xlu1 %v6386_v9, %s10124_s30  ;;  %vm10276_vm6 = vmmov %vm10273_vm1 }
 0x42d   : > { %vm10283_vm13 = vmmov %vm10273_vm1 }
 0x42e   : > { %vm10284_vm3 = vmmov %vm10273_vm1 }
 0x42f   : > { %vm10285_vm4 = vmmov %vm10273_vm1 }
 0x430   : > { %v1840_v8 = vpop.permute.xlu1 %1839  ;;  %v1922_v57 = vld [vmem:[#allocation2 + $0x30] sm:$0xff]  ;;  %vm10287_vm11 = vmmov %vm10273_vm1 }
 0x431   : > { %v1855_v60 = vsel %vm10260_vm14, %v1840_v8, %v1842_v49  ;;  %1867 = vst.msk [vmem:[#allocation2] sm:$0xff] %vm10261_vm12, %v1840_v8  ;;  %2102 = vmatpush.msra.mxu0 %v1922_v57  ;;  %v1923_v2 = vld [vmem:[#allocation2 + $0x38] sm:$0xff]  ;;  %vm10278_vm14 = vmmov %vm10273_vm1 }
 0x432   : > { %1868 = vst.msk [vmem:[#allocation2 + $0x8] sm:$0xff] %vm10262_vm0, %v1855_v60  ;;  %2143 = vmatpush.msra.mxu1 %v1923_v2  ;;  %v1919_v21 = vld [vmem:[#allocation2 + $0x18] sm:$0xff]  ;;  %v6396_v13 = vpack.i.bf16 %v1923_v2, %v1922_v57  ;;  %vm10279_vm12 = vmmov %vm10273_vm1 }
 0x433   : > { %2103 = vmatpush.msra.mxu0 %v1920_v61  ;;  %v6391_v45 = vpack.i.bf16 %v1919_v21, %v1918_v62  ;;  %vm10280_vm0 = vmmov %vm10277_vm5 }
 0x434   : > { %6397 = vrot.lane.b32.xlu0 %v6396_v13, %s10124_s30  ;;  %2144 = vmatpush.msra.mxu1 %v1921_v44  ;;  %vm10281_vm10 = vmmov %vm10280_vm0  ;;  %v5776_v44 = vld [vmem:[%s10090_s5 + $0x180] sm:$0xff] }
 0x435   : > { %6392 = vrot.lane.b32.xlu2 %v6391_v45, %s10124_s30  ;;  %6417 = vrot.lane.b32.xlu1 %v6396_v13, %s10263_s15  ;;  %vm10282_vm15 = vmmov %vm10280_vm0 }
 0x436   : > { %2104 = vmatpush.msra.mxu0 %v1918_v62  ;;  %2145 = vmatpush.msra.mxu1 %v1919_v21  ;;  %vm10288_vm9 = vmmov %vm10286_vm7 }
 0x438   : > { %v1916_v10 = vld [vmem:[#allocation2] sm:$0xff] }
 0x439   : > { %2105 = vmatpush.msra.mxu0 %v1916_v10  ;;  %v1917_v27 = vld [vmem:[#allocation2 + $0x8] sm:$0xff] }
 0x43a   : > { %2146 = vmatpush.msra.mxu1 %v1917_v27  ;;  %v6421_v37 = vpack.i.bf16 %v1917_v27, %v1916_v10  ;;  %5824 = vmatmul.msk.f32.vlgmr.msra.gmra.mxu0 %vm10273_vm1, %v5768_v4  ;;  %v5777_v27 = vld [vmem:[%s10090_s5 + $0x188] sm:$0xff]  ;;  %vm10289_vm1 = vmmov %vm10286_vm7 }
 0x43b   : > { %5832 = vmatmul.msk.f32.vlgmr.msra.gmra.mxu1 %vm10274_vm2, %v5768_v4 }
 0x43c   : > { %6402 = vrot.lane.b32.xlu0 %v6421_v37, %s10124_s30  ;;  %s10442_s30 = smov 2  }
 0x43d   : > { %6407 = vrot.lane.b32.xlu2 %v6386_v9, %s10263_s15  ;;  %6422 = vrot.lane.b32.xlu1 %v6421_v37, %s10263_s15 }
 0x442   : > { %5825 = vmatmul.msk.f32.gmra.mxu0 %vm10275_vm8, %v5769_v18  ;;  %vm10290_vm8 = vmmov %vm10274_vm2 }
 0x443   : > { %5833 = vmatmul.msk.f32.gmra.mxu1 %vm10276_vm6, %v5769_v18  ;;  %vm10291_vm6 = vcmask 1022976  }
 0x444   : > { %6412 = vrot.lane.b32.xlu0 %v6391_v45, %s10263_s15 }
 0x445   : > { %6432 = vrot.lane.b32.xlu2 %v6391_v45, %s10264_s16  ;;  %6447 = vrot.lane.b32.xlu1 %v6396_v13, %s10265_s24 }
 0x44a   : > { %5826 = vmatmul.msk.f32.gmra.mxu0 %vm10278_vm14, %v5770_v56  ;;  %vm10293_vm14 = vmmov %vm10289_vm1 }
 0x44b   : > { %5834 = vmatmul.msk.f32.gmra.mxu1 %vm10279_vm12, %v5770_v56  ;;  %vm10294_vm12 = vcmask 1014784  }
 0x44c   : > { %6427 = vrot.lane.b32.xlu0 %v6386_v9, %s10264_s16 }
 0x44d   : > { %6442 = vrot.lane.b32.xlu2 %v6396_v13, %s10264_s16  ;;  %6452 = vrot.lane.b32.xlu1 %v6421_v37, %s10264_s16 }
 0x454   : > { %6437 = vrot.lane.b32.xlu0 %v6386_v9, %s10265_s24  ;;  %v5771_v9 = vld [vmem:[%s10090_s5 + $0x158] sm:$0xff] }
 0x455   : > { %6457 = vrot.lane.b32.xlu2 %v6391_v45, %s10265_s24  ;;  %2668 = vperm.xlu1 %6304, %v5895_v35  }
 0x456   : > { %5827 = vmatmul.msk.f32.gmra.mxu0 %vm10283_vm13, %v5771_v9  ;;  %5835 = vmatmul.msk.f32.gmra.mxu1 %vm10287_vm11, %v5771_v9  ;;  %v5782_v9 = vld [vmem:[%s10090_s5 + $0x1b0] sm:$0xff] }
 0x45c   : > { %6462 = vrot.lane.b32.xlu0 %v6421_v37, %s10265_s24  ;;  %v5772_v37 = vld [vmem:[%s10090_s5 + $0x160] sm:$0xff] }
 0x45d   : > { %2663 = vperm.xlu2 %6385, %v5894_v12   ;;  %2653 = vperm.xlu1 %6304, %v5892_v22  }
 0x45e   : > { %5828 = vmatmul.msk.f32.gmra.mxu0 %vm10274_vm2, %v5772_v37 }
 0x464   : > { %2658 = vperm.xlu0 %6303, %v5893_v3  }
 0x465   : > { %2648 = vperm.xlu2 %6385, %v5891_v14   ;;  %2638 = vperm.xlu1 %6304, %v5889_v43  }
 0x46c   : > { %2643 = vperm.xlu0 %6303, %v5890_v19  }
 0x46d   : > { %2633 = vperm.xlu2 %6385, %v5888_v7   ;;  %2885 = vperm.xlu1 %6304, %v5906_v23  }
 0x474   : > { %2890 = vperm.xlu0 %6303, %v5907_v40  }
 0x475   : > { %2880 = vperm.xlu2 %6385, %v5905_v30  }
 0x47c   : > { %2875 = vperm.xlu0 %6303, %v5904_v32  }
 0x48f   : > { %v6393_v1 = vpop.permute.xlu2 %6392 }
 0x490   : > { %v6395_v20 = vunpack.i.h.bf16 %v6393_v1  ;;  %v6394_v54 = vunpack.i.l.bf16 %v6393_v1 }
 0x492   : > { %v1949_v55 = vsel %vm10281_vm10, %v6394_v54, %v6395_v20  ;;  %vm10296_vm10 = vmmov %vm10294_vm12 }
 0x497   : > { %v6408_v6 = vpop.permute.xlu2 %6407 }
 0x498   : > { %v6410_v49 = vunpack.i.h.bf16 %v6408_v6  ;;  %v6409_v8 = vunpack.i.l.bf16 %v6408_v6 }
 0x49a   : > { %v2190_v2 = vsel %vm10288_vm9, %v6409_v8, %v6410_v49  ;;  %vm10303_vm9 = vmmov %vm10291_vm6  ;;  %v5783_v8 = vld [vmem:[%s10090_s5 + $0x1b8] sm:$0xff] }
 0x49e   : > { %v6388_v53 = vpop.permute.xlu1 %6387 }
 0x49f   : > { %v6390_v15 = vunpack.i.h.bf16 %v6388_v53  ;;  %v6389_v16 = vunpack.i.l.bf16 %v6388_v53  ;;  %v7898_v28 = vpop.permute.xlu2 %6432 }
 0x4a0   : > { %v6435_v1 = vunpack.i.h.bf16 %v7898_v28  ;;  %v6434_v4 = vunpack.i.l.bf16 %v7898_v28 }
 0x4a1   : > { %v1950_v47 = vsel %vm10280_vm0, %v6389_v16, %v6390_v15  ;;  %vm10295_vm0 = vmmov %vm10274_vm2 }
 0x4a2   : > { %5836 = vmatmul.msk.f32.gmra.mxu1 %vm10295_vm0, %v5772_v37  ;;  %vm10298_vm13 = vmmov %vm10295_vm0  ;;  %v5788_v37 = vld [vmem:[%s10090_s5 + $0x1e0] sm:$0xff] }
 0x4a3   : > { %vm10302_vm11 = vmmov %vm10295_vm0 }
 0x4a6   : > { %v6398_v5 = vpop.permute.xlu0 %6397 }
 0x4a7   : > { %v6400_v25 = vunpack.i.h.bf16 %v6398_v5  ;;  %v6399_v63 = vunpack.i.l.bf16 %v6398_v5  ;;  %v6418_v48 = vpop.permute.xlu1 %6417  ;;  %v6443_v62 = vpop.permute.xlu2 %6442 }
 0x4a8   : > { %v6420_v26 = vunpack.i.h.bf16 %v6418_v48  ;;  %v6419_v11 = vunpack.i.l.bf16 %v6418_v48  ;;  %v6445_v14 = vunpack.i.h.bf16 %v6443_v62  ;;  %v6444_v43 = vunpack.i.l.bf16 %v6443_v62  ;;  %v5785_v62 = vld [vmem:[%s10090_s5 + $0x1c8] sm:$0xff] }
 0x4a9   : > { %2037 = vmatpush.msra.mxu3 %v6400_v25  ;;  %v1951_v24 = vsel %vm10277_vm5, %v6399_v63, %v6400_v25  ;;  %vm10292_vm5 = vmmov %vm10274_vm2  ;;  %v5774_v63 = vld [vmem:[%s10090_s5 + $0x170] sm:$0xff] }
 0x4aa   : > { %1996 = vmatpush.msra.mxu2 %v1951_v24  ;;  %v2191_v60 = vsel %vm10286_vm7, %v6419_v11, %v6420_v26  ;;  %v2491_v40 = vsel %vm10294_vm12, %v6444_v43, %v6445_v14  ;;  %5837 = vmatmul.msk.f32.gmra.mxu1 %vm10302_vm11, %v5773_v29  ;;  %v5779_v24 = vld [vmem:[%s10090_s5 + $0x198] sm:$0xff]  ;;  %vm10305_vm2 = vmmov %vm10295_vm0  ;;  %v8063_v43 = vpop.f32.mrf.mxu0 }
 0x4ab   : > { %2038 = vmatpush.msra.mxu3 %v6390_v15  ;;  %vm10310_vm12 = vmmov %vm10295_vm0  ;;  %10350 = vst [vmem:[#allocation17_spill] sm:$0xff] %v8063_v43 }
 0x4ac   : > { %1997 = vmatpush.msra.mxu2 %v1950_v47  ;;  %vm10317_vm11 = vmmov %vm10295_vm0 }
 0x4ad   : > { %2039 = vmatpush.msra.mxu3 %v6395_v20 }
 0x4ae   : > { %v6403_v42 = vpop.permute.xlu0 %6402  ;;  %1998 = vmatpush.msra.mxu2 %v1949_v55 }
 0x4af   : > { %v6405_v61 = vunpack.i.h.bf16 %v6403_v42  ;;  %v6404_v36 = vunpack.i.l.bf16 %v6403_v42  ;;  %v6423_v31 = vpop.permute.xlu1 %6422  ;;  %v6458_v5 = vpop.permute.xlu2 %6457  ;;  %v5775_v42 = vld [vmem:[%s10090_s5 + $0x178] sm:$0xff] }
 0x4b0   : > { %v6425_v35 = vunpack.i.h.bf16 %v6423_v31  ;;  %v6424_v12 = vunpack.i.l.bf16 %v6423_v31  ;;  %v6460_v48 = vunpack.i.h.bf16 %v6458_v5  ;;  %v6459_v56 = vunpack.i.l.bf16 %v6458_v5  ;;  %v5781_v31 = vld [vmem:[%s10090_s5 + $0x1a8] sm:$0xff] }
 0x4b1   : > { %2040 = vmatpush.msra.mxu3 %v6405_v61  ;;  %v1948_v57 = vsel %vm10282_vm15, %v6404_v36, %v6405_v61  ;;  %vm10297_vm15 = vmmov %vm10295_vm0  ;;  %v5780_v61 = vld [vmem:[%s10090_s5 + $0x1a0] sm:$0xff] }
 0x4b2   : > { %1999 = vmatpush.msra.mxu2 %v1948_v57  ;;  %5816 = vmatmul.msk.f32.vlgmr.msra.gmra.mxu3 %vm10284_vm3, %v5776_v44  ;;  %v2188_v23 = vsel %vm10293_vm14, %v6424_v12, %v6425_v35  ;;  %vm10299_vm3 = vmmov %vm10295_vm0  ;;  %v5794_v57 = vld [vmem:[%s10090_s5 + $0x210] sm:$0xff]  ;;  %v5789_v12 = vld [vmem:[%s10090_s5 + $0x1e8] sm:$0xff] }
 0x4b3   : > { %2277 = vmatpush.msrb.mxu3 %v6420_v26  ;;  %5808 = vmatmul.msk.f32.vlgmr.msra.gmra.mxu2 %vm10285_vm4, %v5776_v44  ;;  %vm10300_vm4 = vmmov %vm10296_vm10  ;;  %v5792_v44 = vld [vmem:[%s10090_s5 + $0x200] sm:$0xff] }
 0x4b4   : > { %2236 = vmatpush.msrb.mxu2 %v2191_v60  ;;  %5829 = vmatmul.msk.f32.gmra.mxu0 %vm10297_vm15, %v5773_v29  ;;  %v2489_v15 = vsel %vm10300_vm4, %v6434_v4, %v6435_v1  ;;  %vm10301_vm7 = vmmov %vm10300_vm4  ;;  %v5784_v60 = vld [vmem:[%s10090_s5 + $0x1c0] sm:$0xff]  ;;  %v5802_v29 = vld [vmem:[%s10090_s5 + $0x250] sm:$0xff] }
 0x4b5   : > { %2278 = vmatpush.msrb.mxu3 %v6410_v49  ;;  %vm10312_vm15 = vmmov %vm10295_vm0  ;;  %v5793_v49 = vld [vmem:[%s10090_s5 + $0x208] sm:$0xff] }
 0x4b6   : > { %2237 = vmatpush.msrb.mxu2 %v2190_v2  ;;  %v6413_v21 = vpop.permute.xlu0 %6412  ;;  %vm10315_vm4 = vmmov %vm10295_vm0  ;;  %v5795_v2 = vld [vmem:[%s10090_s5 + $0x218] sm:$0xff] }
 0x4b7   : > { %v6415_v13 = vunpack.i.h.bf16 %v6413_v21  ;;  %v6414_v45 = vunpack.i.l.bf16 %v6413_v21  ;;  %v6448_v10 = vpop.permute.xlu1 %6447  ;;  %v5796_v21 = vld [vmem:[%s10090_s5 + $0x220] sm:$0xff] }
 0x4b8   : > { %v6450_v22 = vunpack.i.h.bf16 %v6448_v10  ;;  %v6449_v3 = vunpack.i.l.bf16 %v6448_v10  ;;  %v5787_v10 = vld [vmem:[%s10090_s5 + $0x1d8] sm:$0xff] }
 0x4b9   : > { %2279 = vmatpush.msrb.mxu3 %v6415_v13  ;;  %v2189_v19 = vsel %vm10289_vm1, %v6414_v45, %v6415_v13  ;;  %vm10304_vm1 = vmmov %vm10295_vm0  ;;  %v5786_v13 = vld [vmem:[%s10090_s5 + $0x1d0] sm:$0xff]  ;;  %v5797_v45 = vld [vmem:[%s10090_s5 + $0x228] sm:$0xff] }
 0x4ba   : > { %2427 = vmatpush.msrb.mxu1 %v6450_v22  ;;  %5817 = vmatmul.msk.f32.gmra.mxu3 %vm10290_vm8, %v5777_v27  ;;  %v2341_v7 = vsel %vm10291_vm6, %v6449_v3, %v6450_v22  ;;  %vm10306_vm8 = vmmov %vm10291_vm6  ;;  %v5790_v22 = vld [vmem:[%s10090_s5 + $0x1f0] sm:$0xff]  ;;  %v5791_v3 = vld [vmem:[%s10090_s5 + $0x1f8] sm:$0xff] }
 0x4bb   : > { %2238 = vmatpush.msrb.mxu2 %v2189_v19  ;;  %2386 = vmatpush.msrb.mxu0 %v2341_v7  ;;  %v2339_v28 = vsel %vm10306_vm8, %v6459_v56, %v6460_v48  ;;  %vm10307_vm6 = vmmov %vm10295_vm0  ;;  %v5800_v19 = vld [vmem:[%s10090_s5 + $0x240] sm:$0xff] }
 0x4bc   : > { %5809 = vmatmul.msk.f32.gmra.mxu2 %vm10292_vm5, %v5777_v27  ;;  %2280 = vmatpush.msrb.mxu3 %v6425_v35  ;;  %vm10308_vm5 = vmmov %vm10295_vm0  ;;  %v5798_v27 = vld [vmem:[%s10090_s5 + $0x230] sm:$0xff]  ;;  %v5799_v35 = vld [vmem:[%s10090_s5 + $0x238] sm:$0xff] }
 0x4bd   : > { %2239 = vmatpush.msrb.mxu2 %v2188_v23  ;;  %5830 = vmatmul.msk.f32.gmra.mxu0 %vm10304_vm1, %v5774_v63  ;;  %vm10309_vm14 = vmmov %vm10306_vm8 }
 0x4be   : > { %2577 = vmatpush.msra.mxu3 %v6445_v14  ;;  %v6428_v30 = vpop.permute.xlu0 %6427  ;;  %5838 = vmatmul.msk.f32.gmra.mxu1 %vm10308_vm5, %v5774_v63  ;;  %vm10319_vm1 = vmmov %vm10295_vm0  ;;  %v8060_v14 = vpop.f32.mrf.mxu1 }
 0x4bf   : > { %2536 = vmatpush.msra.mxu2 %v2491_v40  ;;  %v6430_v46 = vunpack.i.h.bf16 %v6428_v30  ;;  %v6429_v32 = vunpack.i.l.bf16 %v6428_v30  ;;  %v6453_v51 = vpop.permute.xlu1 %6452  ;;  %vm10321_vm8 = vmmov %vm10295_vm0  ;;  %10348 = vst [vmem:[#allocation27_spill] sm:$0xff] %v8060_v14  ;;  %v5801_v30 = vld [vmem:[%s10090_s5 + $0x248] sm:$0xff] }
 0x4c0   : > { %v6455_v18 = vunpack.i.h.bf16 %v6453_v51  ;;  %v6454_v6 = vunpack.i.l.bf16 %v6453_v51  ;;  %vm10323_vm5 = vmmov %vm10295_vm0 }
 0x4c1   : > { %2578 = vmatpush.msra.mxu3 %v6430_v46  ;;  %v2490_v53 = vsel %vm10296_vm10, %v6429_v32, %v6430_v46  ;;  %vm10311_vm10 = vmmov %vm10295_vm0  ;;  %v8079_v46 = vpop.f32.mrf.mxu0 }
 0x4c2   : > { %5818 = vmatmul.msk.f32.gmra.mxu3 %vm10298_vm13, %v5778_v50  ;;  %2537 = vmatpush.msra.mxu2 %v2490_v53  ;;  %v2488_v25 = vsel %vm10301_vm7, %v6454_v6, %v6455_v18  ;;  %vm10313_vm13 = vmmov %vm10295_vm0  ;;  %10354 = vst [vmem:[#allocation19_spill] sm:$0xff] %v8079_v46 }
 0x4c3   : > { %2579 = vmatpush.msra.mxu3 %v6435_v1  ;;  %vm10316_vm7 = vmmov %vm10295_vm0 }
 0x4c4   : > { %5810 = vmatmul.msk.f32.gmra.mxu2 %vm10299_vm3, %v5778_v50  ;;  %vm10314_vm3 = vmmov %vm10295_vm0 }
 0x4c5   : > { %2538 = vmatpush.msra.mxu2 %v2489_v15  ;;  %2580 = vmatpush.msra.mxu3 %v6455_v18  ;;  %v5803_v18 = vld [vmem:[%s10090_s5 + $0x258] sm:$0xff] }
 0x4c6   : > { %v6438_v16 = vpop.permute.xlu0 %6437  ;;  %5831 = vmatmul.msk.f32.gmra.mxu0 %vm10310_vm12, %v5775_v42  ;;  %5839 = vmatmul.msk.f32.gmra.mxu1 %vm10312_vm15, %v5775_v42  ;;  %vm10325_vm12 = vmmov %vm10295_vm0  ;;  %v8070_v7 = vpop.f32.mrf.mxu1 }
 0x4c7   : > { %v6440_v20 = vunpack.i.h.bf16 %v6438_v16  ;;  %v6439_v54 = vunpack.i.l.bf16 %v6438_v16  ;;  %2539 = vmatpush.msra.mxu2 %v2488_v25  ;;  %vm10327_vm15 = vmmov %vm10295_vm0  ;;  %10353 = vst [vmem:[#allocation18_spill] sm:$0xff] %v8070_v7  ;;  %v5804_v25 = vld [vmem:[%s10090_s5 + $0x260] sm:$0xff] }
 0x4c9   : > { %2428 = vmatpush.msrb.mxu1 %v6440_v20  ;;  %v2340_v47 = vsel %vm10303_vm9, %v6439_v54, %v6440_v20  ;;  %vm10318_vm9 = vmmov %vm10295_vm0  ;;  %v8092_v1 = vpop.f32.mrf.mxu0  ;;  %v5805_v54 = vld [vmem:[%s10090_s5 + $0x268] sm:$0xff] }
 0x4ca   : > { %5819 = vmatmul.msk.f32.gmra.mxu3 %vm10305_vm2, %v5779_v24  ;;  %2387 = vmatpush.msrb.mxu0 %v2340_v47  ;;  %vm10320_vm2 = vmmov %vm10295_vm0  ;;  %10358 = vst [vmem:[#allocation29_spill] sm:$0xff] %v8092_v1 }
 0x4cb   : > { %2429 = vmatpush.msrb.mxu1 %v6460_v48 }
 0x4cc   : > { %5811 = vmatmul.msk.f32.gmra.mxu2 %vm10307_vm6, %v5779_v24  ;;  %2388 = vmatpush.msrb.mxu0 %v2339_v28  ;;  %vm10322_vm6 = vmmov %vm10295_vm0 }
 0x4ce   : > { %v6463_v55 = vpop.permute.xlu0 %6462  ;;  %v8085_v51 = vpop.f32.mrf.mxu1 }
 0x4cf   : > { %v6465_v26 = vunpack.i.h.bf16 %v6463_v55  ;;  %v6464_v11 = vunpack.i.l.bf16 %v6463_v55  ;;  %10357 = vst [vmem:[#allocation22_spill] sm:$0xff] %v8085_v51  ;;  %v5806_v55 = vld [vmem:[%s10090_s5 + $0x270] sm:$0xff] }
 0x4d1   : > { %2430 = vmatpush.msrb.mxu1 %v6465_v26  ;;  %v2338_v36 = vsel %vm10309_vm14, %v6464_v11, %v6465_v26  ;;  %vm10324_vm14 = vmmov %vm10295_vm0  ;;  %v8106_v5 = vpop.f32.mrf.mxu0 }
 0x4d2   : > { %5820 = vmatmul.msk.f32.gmra.mxu3 %vm10295_vm0, %v5780_v61  ;;  %2389 = vmatpush.msrb.mxu0 %v2338_v36  ;;  %10363 = vst [vmem:[#allocation26_spill] sm:$0xff] %v8106_v5  ;;  %v5807_v36 = vld [vmem:[%s10090_s5 + $0x278] sm:$0xff] }
 0x4d3   : > { %5856 = vmatmul.msk.f32.vlgmr.msrb.gmra.mxu0 %vm10314_vm3, %v5792_v44  ;;  %5864 = vmatmul.msk.f32.vlgmr.msrb.gmra.mxu1 %vm10316_vm7, %v5792_v44  ;;  %vm10329_vm3 = vmmov %vm10295_vm0 }
 0x4d4   : > { %5812 = vmatmul.msk.f32.gmra.mxu2 %vm10311_vm10, %v5780_v61  ;;  %vm10326_vm10 = vmmov %vm10295_vm0 }
 0x4d5   : > { %vm10331_vm7 = vmmov %vm10295_vm0 }
 0x4d6   : > { %v8103_v6 = vpop.f32.mrf.mxu1 }
 0x4d7   : > { %10361 = vst [vmem:[#allocation25_spill] sm:$0xff] %v8103_v6 }
 0x4d9   : > { %v8122_v56 = vpop.f32.mrf.mxu0 }
 0x4da   : > { %5821 = vmatmul.msk.f32.gmra.mxu3 %vm10313_vm13, %v5781_v31  ;;  %vm10328_vm13 = vmmov %vm10295_vm0 }
 0x4db   : > { %5857 = vmatmul.msk.f32.gmra.mxu0 %vm10318_vm9, %v5793_v49  ;;  %5865 = vmatmul.msk.f32.gmra.mxu1 %vm10320_vm2, %v5793_v49  ;;  %vm10333_vm9 = vmmov %vm10295_vm0 }
 0x4dc   : > { %5813 = vmatmul.msk.f32.gmra.mxu2 %vm10315_vm4, %v5781_v31  ;;  %vm10330_vm4 = vmmov %vm10295_vm0 }
 0x4dd   : > { %vm10335_vm2 = vmmov %vm10295_vm0 }
 0x4de   : > { %v8117_v63 = vpop.f32.mrf.mxu1 }
 0x4e1   : > { %v8140_v42 = vpop.f32.mrf.mxu0 }
 0x4e2   : > { %5822 = vmatmul.msk.f32.gmra.mxu3 %vm10317_vm11, %v5782_v9  ;;  %vm10332_vm11 = vmmov %vm10295_vm0 }
 0x4e3   : > { %5858 = vmatmul.msk.f32.gmra.mxu0 %vm10322_vm6, %v5794_v57  ;;  %5866 = vmatmul.msk.f32.gmra.mxu1 %vm10324_vm14, %v5794_v57  ;;  %vm10337_vm6 = vmmov %vm10295_vm0 }
 0x4e4   : > { %5814 = vmatmul.msk.f32.gmra.mxu2 %vm10319_vm1, %v5782_v9  ;;  %vm10334_vm1 = vmmov %vm10295_vm0 }
 0x4e5   : > { %vm10339_vm14 = vmmov %vm10295_vm0 }
 0x4e6   : > { %v8131_v24 = vpop.f32.mrf.mxu1 }
 0x4e9   : > { %v8153_v31 = vpop.f32.mrf.mxu0 }
 0x4ea   : > { %5823 = vmatmul.msk.f32.gmra.mxu3 %vm10321_vm8, %v5783_v8  ;;  %vm10336_vm8 = vmmov %vm10295_vm0 }
 0x4eb   : > { %5859 = vmatmul.msk.f32.gmra.mxu0 %vm10295_vm0, %v5795_v2  ;;  %5867 = vmatmul.msk.f32.gmra.mxu1 %vm10327_vm15, %v5795_v2  ;;  %vm10342_vm15 = vmmov %vm10295_vm0 }
 0x4ec   : > { %5815 = vmatmul.msk.f32.gmra.mxu2 %vm10323_vm5, %v5783_v8  ;;  %vm10338_vm5 = vmmov %vm10295_vm0 }
 0x4ee   : > { %v8146_v11 = vpop.f32.mrf.mxu1 }
 0x4f1   : > { %v8163_v8 = vpop.f32.mrf.mxu0 }
 0x4f2   : > { %5848 = vmatmul.msk.f32.vlgmr.msrb.gmra.mxu3 %vm10325_vm12, %v5784_v60  ;;  %vm10340_vm12 = vmmov %vm10295_vm0  ;;  %10375 = vst [vmem:[#allocation9_spill] sm:$0xff] %v8163_v8  ;;  %v8229_v8 = vpop.permute.xlu2 %2663 }
 0x4f3   : > { %5860 = vmatmul.msk.f32.gmra.mxu0 %vm10329_vm3, %v5796_v21  ;;  %5868 = vmatmul.msk.f32.gmra.mxu1 %vm10331_vm7, %v5796_v21  ;;  %vm10344_vm3 = vmmov %vm10295_vm0 }
 0x4f4   : > { %5840 = vmatmul.msk.f32.vlgmr.msrb.gmra.mxu2 %vm10326_vm10, %v5784_v60  ;;  %vm10341_vm10 = vmmov %vm10295_vm0 }
 0x4f5   : > { %vm10346_vm7 = vmmov %vm10295_vm0 }
 0x4f6   : > { %v8161_v49 = vpop.f32.mrf.mxu1 }
 0x4f7   : > { %10374 = vst [vmem:[#allocation31_spill] sm:$0xff] %v8161_v49 }
 0x4f9   : > { %v2119_v21 = vpop.f32.mrf.mxu0 }
 0x4fa   : > { %5849 = vmatmul.msk.f32.gmra.mxu3 %vm10328_vm13, %v5785_v62  ;;  %vm10343_vm13 = vmmov %vm10295_vm0 }
 0x4fb   : > { %5861 = vmatmul.msk.f32.gmra.mxu0 %vm10333_vm9, %v5797_v45  ;;  %5869 = vmatmul.msk.f32.gmra.mxu1 %vm10335_vm2, %v5797_v45  ;;  %vm10349_vm9 = vmmov %vm10295_vm0 }
 0x4fc   : > { %5841 = vmatmul.msk.f32.gmra.mxu2 %vm10330_vm4, %v5785_v62  ;;  %vm10345_vm4 = vmmov %vm10295_vm0 }
 0x4fd   : > { %vm10352_vm2 = vmmov %vm10295_vm0 }
 0x502   : > { %5850 = vmatmul.msk.f32.gmra.mxu3 %vm10332_vm11, %v5786_v13  ;;  %vm10347_vm11 = vmmov %vm10295_vm0 }
 0x503   : > { %5862 = vmatmul.msk.f32.gmra.mxu0 %vm10337_vm6, %v5798_v27  ;;  %5870 = vmatmul.msk.f32.gmra.mxu1 %vm10339_vm14, %v5798_v27  ;;  %vm10356_vm6 = vmmov %vm10295_vm0 }
 0x504   : > { %5842 = vmatmul.msk.f32.gmra.mxu2 %vm10334_vm1, %v5786_v13  ;;  %vm10351_vm1 = vmmov %vm10295_vm0 }
 0x505   : > { %vm10360_vm14 = vmmov %vm10295_vm0 }
 0x50a   : > { %5851 = vmatmul.msk.f32.gmra.mxu3 %vm10336_vm8, %v5787_v10  ;;  %vm10355_vm8 = vmmov %vm10295_vm0 }
 0x50b   : > { %5863 = vmatmul.msk.f32.gmra.mxu0 %vm10295_vm0, %v5799_v35  ;;  %5871 = vmatmul.msk.f32.gmra.mxu1 %vm10342_vm15, %v5799_v35  ;;  %vm10367_vm15 = vmmov %vm10295_vm0 }
 0x50c   : > { %5843 = vmatmul.msk.f32.gmra.mxu2 %vm10338_vm5, %v5787_v10  ;;  %vm10359_vm5 = vmmov %vm10295_vm0 }
 0x512   : > { %5852 = vmatmul.msk.f32.gmra.mxu3 %vm10340_vm12, %v5788_v37  ;;  %vm10362_vm12 = vmmov %vm10295_vm0 }
 0x514   : > { %5844 = vmatmul.msk.f32.gmra.mxu2 %vm10341_vm10, %v5788_v37  ;;  %vm10366_vm10 = vmmov %vm10295_vm0 }
 0x51a   : > { %5853 = vmatmul.msk.f32.gmra.mxu3 %vm10343_vm13, %v5789_v12  ;;  %vm10368_vm13 = vmmov %vm10295_vm0 }
 0x51c   : > { %5845 = vmatmul.msk.f32.gmra.mxu2 %vm10344_vm3, %v5789_v12  ;;  %vm10369_vm3 = vmmov %vm10295_vm0 }
 0x51f   : > { %v2160_v2 = vpop.f32.mrf.mxu1 }
 0x522   : > { %5854 = vmatmul.msk.f32.gmra.mxu3 %vm10345_vm4, %v5790_v22  ;;  %vm10370_vm4 = vmmov %vm10295_vm0 }
 0x524   : > { %5846 = vmatmul.msk.f32.gmra.mxu2 %vm10346_vm7, %v5790_v22  ;;  %vm10371_vm7 = vmmov %vm10295_vm0 }
 0x527   : > { %v2163_v45 = vpop.f32.mrf.mxu1 }
 0x52a   : > { %5855 = vmatmul.msk.f32.gmra.mxu3 %vm10347_vm11, %v5791_v3  ;;  %vm10372_vm11 = vmmov %vm10295_vm0 }
 0x52c   : > { %5847 = vmatmul.msk.f32.gmra.mxu2 %vm10349_vm9, %v5791_v3  ;;  %vm10373_vm9 = vmmov %vm10295_vm0 }
 0x531   : > { %v2122_v37 = vpop.f32.mrf.mxu0 }
 0x532   : > { %5880 = vmatmul.msk.f32.vlgmr.msra.gmra.mxu3 %vm10351_vm1, %v5800_v19 }
 0x534   : > { %5872 = vmatmul.msk.f32.vlgmr.msra.gmra.mxu2 %vm10352_vm2, %v5800_v19 }
 0x535   : > { %v8072_v23 = vpop.f32.mrf.mxu3 }
 0x536   : > { %v8074_v40 = vpop.f32.mrf.mxu2 }
 0x53a   : > { %5881 = vmatmul.msk.f32.gmra.mxu3 %vm10355_vm8, %v5801_v30  ;;  %v8181_v3 = vpop.f32.mrf.mxu0 }
 0x53b   : > { %v2166_v12 = vpop.f32.mrf.mxu1 }
 0x53c   : > { %5873 = vmatmul.msk.f32.gmra.mxu2 %vm10356_vm6, %v5801_v30 }
 0x53d   : > { %v8083_v32 = vpop.f32.mrf.mxu3 }
 0x53f   : > { %v8087_v50 = vpop.f32.mrf.mxu2 }
 0x542   : > { %5882 = vmatmul.msk.f32.gmra.mxu3 %vm10359_vm5, %v5802_v29 }
 0x544   : > { %5874 = vmatmul.msk.f32.gmra.mxu2 %vm10360_vm14, %v5802_v29  ;;  %v8183_v29 = vpop.f32.mrf.mxu1 }
 0x545   : > { %v8096_v4 = vpop.f32.mrf.mxu3 }
 0x547   : > { %v8098_v53 = vpop.f32.mrf.mxu2 }
 0x54a   : > { %5883 = vmatmul.msk.f32.gmra.mxu3 %vm10362_vm12, %v5803_v18 }
 0x54c   : > { %5875 = vmatmul.msk.f32.gmra.mxu2 %vm10295_vm0, %v5803_v18  ;;  %v8185_v18 = vpop.f32.mrf.mxu0 }
 0x54d   : > { %v8109_v15 = vpop.f32.mrf.mxu3 }
 0x54e   : > { %10364 = vst [vmem:[#allocation28_spill] sm:$0xff] %v8109_v15 }
 0x54f   : > { %v8111_v16 = vpop.f32.mrf.mxu2 }
 0x550   : > { %10365 = vst [vmem:[#allocation30_spill] sm:$0xff] %v8111_v16 }
 0x552   : > { %5884 = vmatmul.msk.f32.gmra.mxu3 %vm10366_vm10, %v5804_v25 }
 0x554   : > { %5876 = vmatmul.msk.f32.gmra.mxu2 %vm10367_vm15, %v5804_v25 }
 0x555   : > { %v8120_v48 = vpop.f32.mrf.mxu3 }
 0x557   : > { %v8124_v20 = vpop.f32.mrf.mxu2 }
 0x55a   : > { %5885 = vmatmul.msk.f32.gmra.mxu3 %vm10368_vm13, %v5805_v54 }
 0x55c   : > { %5877 = vmatmul.msk.f32.gmra.mxu2 %vm10369_vm3, %v5805_v54 }
 0x55d   : > { %v8133_v47 = vpop.f32.mrf.mxu3 }
 0x55f   : > { %v8135_v28 = vpop.f32.mrf.mxu2 }
 0x562   : > { %5886 = vmatmul.msk.f32.gmra.mxu3 %vm10370_vm4, %v5806_v55 }
 0x564   : > { %5878 = vmatmul.msk.f32.gmra.mxu2 %vm10371_vm7, %v5806_v55  ;;  %v8187_v55 = vpop.f32.mrf.mxu1 }
 0x565   : > { %v8144_v26 = vpop.f32.mrf.mxu3 }
 0x567   : > { %v8148_v61 = vpop.f32.mrf.mxu2 }
 0x56a   : > { %5887 = vmatmul.msk.f32.gmra.mxu3 %vm10372_vm11, %v5807_v36 }
 0x56c   : > { %5879 = vmatmul.msk.f32.gmra.mxu2 %vm10373_vm9, %v5807_v36  ;;  %v8189_v36 = vpop.f32.mrf.mxu0  ;;  %v8193_v7 = vpop.f32.mrf.mxu1 }
 0x56d   : > { %v8157_v44 = vpop.f32.mrf.mxu3 }
 0x56f   : > { %v8159_v9 = vpop.f32.mrf.mxu2 }
 0x574   : > { %v8197_v51 = vpop.f32.mrf.mxu0  ;;  %v8203_v5 = vpop.f32.mrf.mxu1 }
 0x575   : > { %v8165_v57 = vpop.f32.mrf.mxu3  ;;  %10381 = vst [vmem:[#allocation12_spill] sm:$0xff] %v8203_v5 }
 0x577   : > { %v8167_v60 = vpop.f32.mrf.mxu2 }
 0x57c   : > { %v8207_v41 = vpop.f32.mrf.mxu0  ;;  %v8213_v17 = vpop.f32.mrf.mxu1 }
 0x57d   : > { %v8169_v62 = vpop.f32.mrf.mxu3  ;;  %10382 = vst [vmem:[#allocation11_spill] sm:$0xff] %v8207_v41  ;;  %v2161_v41 = vadd.f32 %v2160_v2, %v8120_v48  ;;  %v2123_v48 = vadd.f32 %v2122_v37, %v8135_v28 }
 0x57e   : > { %10384 = vst [vmem:[#allocation33_spill] sm:$0xff] %v8213_v17 }
 0x57f   : > { %v8171_v13 = vpop.f32.mrf.mxu2 }
 0x584   : > { %v8215_v58 = vpop.f32.mrf.mxu0  ;;  %v2444_v39 = vpop.f32.mrf.mxu1 }
 0x585   : > { %v8173_v10 = vpop.f32.mrf.mxu3  ;;  %10385 = vst [vmem:[#allocation34_spill] sm:$0xff] %v8215_v58 }
 0x586   : > { %10376 = vst [vmem:[#allocation8_spill] sm:$0xff] %v8173_v10 }
 0x587   : > { %v8175_v27 = vpop.f32.mrf.mxu2 }
 0x588   : > { %10377 = vst [vmem:[#allocation7_spill] sm:$0xff] %v8175_v27  ;;  %v2120_v27 = vadd.f32 %v2119_v21, %v8124_v20  ;;  %v2149_v21 = vadd.f32 %v8117_v63, %v8072_v23 }
 0x58c   : > { %v2403_v33 = vpop.f32.mrf.mxu0 }
 0x58d   : > { %v8177_v35 = vpop.f32.mrf.mxu3 }
 0x58e   : > { %10378 = vst [vmem:[#allocation10_spill] sm:$0xff] %v8177_v35 }
 0x58f   : > { %v8179_v22 = vpop.f32.mrf.mxu2 }
 0x590   : > { %10379 = vst [vmem:[#allocation6_spill] sm:$0xff] %v8179_v22  ;;  %v8221_v22 = vpop.permute.xlu1 %2668 }
 0x591   : > { %10388 = vst [vmem:[#allocation37_spill] sm:$0xff] %v8221_v22 }
 0x594   : > { %v2406_v49 = vpop.f32.mrf.mxu0 }
 0x595   : > { %v2294_v19 = vpop.f32.mrf.mxu3 }
 0x596   : > { %v2315_v10 = vadd.f32 %v2294_v19, %v2161_v41 }
 0x597   : > { %v2253_v30 = vpop.f32.mrf.mxu2 }
 0x598   : > { %v2314_v17 = vadd.f32 %v2253_v30, %v2120_v27  ;;  %v2465_v58 = vadd.f32 %v2444_v39, %v2315_v10  ;;  %v2654_v15 = vpop.permute.xlu1 %2653  ;;  %v8235_v27 = vpop.permute.xlu2 %2648 }
 0x59d   : > { %v2297_v25 = vpop.f32.mrf.mxu3 }
 0x59f   : > { %v2256_v54 = vpop.f32.mrf.mxu2 }
 0x5a0   : > { %v2316_v20 = vadd.f32 %v2256_v54, %v2123_v48 }
 0x5a5   : > { %v2300_v43 = vpop.f32.mrf.mxu3 }
 0x5a7   : > { %v8191_v14 = vpop.f32.mrf.mxu2 }
 0x5ad   : > { %v8195_v46 = vpop.f32.mrf.mxu3 }
 0x5af   : > { %v8199_v1 = vpop.f32.mrf.mxu2 }
 0x5b0   : > { %10380 = vst [vmem:[#allocation4_spill] sm:$0xff] %v8199_v1 }
 0x5b5   : > { %v8201_v6 = vpop.f32.mrf.mxu3 }
 0x5b7   : > { %v8205_v34 = vpop.f32.mrf.mxu2 }
 0x5bd   : > { %v8209_v52 = vpop.f32.mrf.mxu3 }
 0x5bf   : > { %v8211_v38 = vpop.f32.mrf.mxu2 }
 0x5c0   : > { %10383 = vst [vmem:[#allocation32_spill] sm:$0xff] %v8211_v38  ;;  %v2464_v38 = vadd.f32 %v2403_v33, %v2314_v17  ;;  %v2108_v33 = vadd.f32 %v8122_v56, %v8074_v40  ;;  %v2307_v17 = vadd.f32 %v8165_v57, %v2149_v21  ;;  %v2126_v40 = vadd.f32 %v8181_v3, %v8148_v61  ;;  %v2409_v56 = vpop.f32.mrf.mxu0  ;;  %v2639_v21 = vpop.permute.xlu1 %2638 }
 0x5c5   : > { %v8217_v0 = vpop.f32.mrf.mxu3 }
 0x5c6   : > { %10386 = vst [vmem:[#allocation35_spill] sm:$0xff] %v8217_v0  ;;  %v2447_v0 = vpop.f32.mrf.mxu1 }
 0x5c7   : > { %v8219_v59 = vpop.f32.mrf.mxu2 }
 0x5c8   : > { %10387 = vst [vmem:[#allocation36_spill] sm:$0xff] %v8219_v59  ;;  %v2164_v59 = vadd.f32 %v2163_v45, %v8133_v47  ;;  %v2466_v47 = vadd.f32 %v2406_v49, %v2316_v20  ;;  %v2111_v49 = vadd.f32 %v8140_v42, %v8087_v50  ;;  %v2457_v45 = vadd.f32 %v8187_v55, %v2307_v17  ;;  %v2634_v55 = vpop.permute.xlu2 %2633 }
 0x5c9   : > { %v2129_v50 = vadd.f32 %v8185_v18, %v8159_v9  ;;  %v2170_v42 = vadd.f32 %v8183_v29, %v8157_v44  ;;  %v2155_v29 = vadd.f32 %v8146_v11, %v8096_v4  ;;  %v10398_v11 = vld [vmem:[#allocation7_spill] sm:$0xff] }
 0x5ca   : > { %v2317_v2 = vadd.f32 %v2297_v25, %v2164_v59  ;;  %v2659_v59 = vpop.permute.xlu0 %2658  ;;  %v2308_v61 = vadd.f32 %v8171_v13, %v2111_v49 }
 0x5cc   : > { %v2467_v39 = vadd.f32 %v2447_v0, %v2317_v2  ;;  %v2306_v0 = vadd.f32 %v8167_v60, %v2108_v33  ;;  %v10391_v2 = vld [vmem:[#allocation4_spill] sm:$0xff]  ;;  %v2412_v33 = vpop.f32.mrf.mxu0 }
 0x5cd   : > { %v8223_v5 = vpop.f32.mrf.mxu3  ;;  %v2320_v20 = vadd.f32 %v10391_v2, %v2129_v50 }
 0x5ce   : > { %10389 = vst [vmem:[#allocation38_spill] sm:$0xff] %v8223_v5 }
 0x5cf   : > { %v8226_v35 = vpop.f32.mrf.mxu2 }
 0x5d0   : > { %10390 = vst [vmem:[#allocation39_spill] sm:$0xff] %v8226_v35 }
 0x5d5   : > { %v2594_v16 = vpop.f32.mrf.mxu3 }
 0x5d6   : > { %v2615_v22 = vadd.f32 %v2594_v16, %v2465_v58  ;;  %v2167_v58 = vadd.f32 %v2166_v12, %v8144_v26 }
 0x5d7   : > { %v2553_v5 = vpop.f32.mrf.mxu2 }
 0x5d8   : > { %v2680_v35 = vadd.f32 %v2654_v15, %v2615_v22  ;;  %v2614_v1 = vadd.f32 %v2553_v5, %v2464_v38  ;;  %v2319_v23 = vadd.f32 %v2300_v43, %v2167_v58  ;;  %v2607_v22 = vadd.f32 %v8201_v6, %v2457_v45  ;;  %v10394_v58 = vld [vmem:[#allocation32_spill] sm:$0xff] }
 0x5d9   : > { %v2458_v6 = vadd.f32 %v8197_v51, %v2308_v61 }
 0x5da   : > { %v2679_v41 = vadd.f32 %v2654_v15, %v2614_v1  ;;  %v2696_v10 = vsub.f32 0.0, %v2680_v35  ;;  %v2152_v1 = vadd.f32 %v8131_v24, %v8083_v32  ;;  %v2450_v15 = vpop.f32.mrf.mxu1  ;;  %v2318_v32 = vadd.f32 %v8191_v14, %v2126_v40 }
 0x5db   : > { %v2456_v35 = vadd.f32 %v8189_v36, %v2306_v0  ;;  %v2469_v12 = vadd.f32 %v2450_v15, %v2319_v23  ;;  %v2321_v36 = vadd.f32 %v8195_v46, %v2170_v42  ;;  %v2672_v18 = vadd.f32 %v2634_v55, %v2607_v22  ;;  %v10403_v42 = vld [vmem:[#allocation11_spill] sm:$0xff] }
 0x5dc   : > { %v2695_v38 = vsub.f32 0.0, %v2679_v41  ;;  %v2705_v28 = vmul.f32 1.442695, %v2696_v10  ;;  %v2309_v37 = vadd.f32 %v8169_v62, %v2152_v1  ;;  %v2468_v25 = vadd.f32 %v2409_v56, %v2318_v32  ;;  %v10399_v56 = vld [vmem:[#allocation10_spill] sm:$0xff] }
 0x5dd   : > { %v2597_v16 = vpop.f32.mrf.mxu3  ;;  %v2606_v62 = vadd.f32 %v8205_v34, %v2456_v35  ;;  %v2114_v34 = vadd.f32 %v8153_v31, %v8098_v53  ;;  %v2608_v17 = vadd.f32 %v10394_v58, %v2458_v6  ;;  %v10396_v53 = vld [vmem:[#allocation9_spill] sm:$0xff] }
 0x5de   : > { %v2617_v5 = vadd.f32 %v2597_v16, %v2467_v39  ;;  %v2703_v24 = vmul.f32 1.442695, %v2695_v38  ;;  %6674 = vpow2.f32 %v2705_v28  ;;  %v2459_v14 = vadd.f32 %v8193_v7, %v2309_v37  ;;  %v10393_v39 = vld [vmem:[#allocation31_spill] sm:$0xff]  ;;  %v10397_v38 = vld [vmem:[#allocation8_spill] sm:$0xff] }
 0x5df   : > { %v2556_v63 = vpop.f32.mrf.mxu2  ;;  %v2671_v41 = vadd.f32 %v2634_v55, %v2606_v62  ;;  %v2311_v4 = vadd.f32 %v10397_v38, %v2155_v29  ;;  %v2673_v45 = vadd.f32 %v2639_v21, %v2608_v17  ;;  %v10404_v62 = vld [vmem:[#allocation33_spill] sm:$0xff]  ;;  %v10408_v29 = vld [vmem:[#allocation38_spill] sm:$0xff] }
 0x5e0   : > { %v2682_v26 = vadd.f32 %v2659_v59, %v2617_v5  ;;  %v2616_v57 = vadd.f32 %v2556_v63, %v2466_v47  ;;  %6676 = vpow2.f32 %v2703_v24  ;;  %v2609_v48 = vadd.f32 %v8209_v52, %v2459_v14  ;;  %v10392_v52 = vld [vmem:[#allocation28_spill] sm:$0xff]  ;;  %v10395_v47 = vld [vmem:[#allocation30_spill] sm:$0xff] }
 0x5e1   : > { %v2158_v10 = vadd.f32 %v10393_v39, %v10392_v52  ;;  %v2117_v31 = vadd.f32 %v10396_v53, %v10395_v47  ;;  %v2310_v5 = vadd.f32 %v10398_v11, %v2114_v34  ;;  %v10400_v24 = vld [vmem:[#allocation12_spill] sm:$0xff] }
 0x5e2   : > { %v2698_v43 = vsub.f32 0.0, %v2682_v26  ;;  %v2681_v60 = vadd.f32 %v2659_v59, %v2616_v57  ;;  %v2453_v51 = vpop.f32.mrf.mxu1  ;;  %v2674_v1 = vadd.f32 %v2639_v21, %v2609_v48  ;;  %v2470_v26 = vadd.f32 %v2412_v33, %v2320_v20  ;;  %v10409_v21 = vld [vmem:[#allocation39_spill] sm:$0xff] }
 0x5e3   : > { %v2471_v23 = vadd.f32 %v2453_v51, %v2321_v36  ;;  %v2313_v28 = vadd.f32 %v10399_v56, %v2158_v10  ;;  %v2460_v14 = vadd.f32 %v10403_v42, %v2310_v5 }
 0x5e4   : > { %v2709_v3 = vmul.f32 1.442695, %v2698_v43  ;;  %v2697_v19 = vsub.f32 0.0, %v2681_v60  ;;  %v6675_v46 = vpop.eup %6674  ;;  %v2461_v43 = vadd.f32 %v10400_v24, %v2311_v4  ;;  %v10401_v60 = vld [vmem:[#allocation6_spill] sm:$0xff] }
 0x5e5   : > { %v2600_v30 = vpop.f32.mrf.mxu3  ;;  %v8278_v57 = vadd.f32 1.0, %v6675_v46  ;;  %v2312_v35 = vadd.f32 %v10401_v60, %v2117_v31  ;;  %v2644_v46 = vpop.permute.xlu0 %2643 }
 0x5e6   : > { %v2707_v13 = vmul.f32 1.442695, %v2697_v19  ;;  %v2619_v54 = vadd.f32 %v2600_v30, %v2469_v12  ;;  %6678 = vpow2.f32 %v2709_v3  ;;  %v6677_v0 = vpop.eup %6676  ;;  %v10402_v3 = vld [vmem:[#allocation37_spill] sm:$0xff]  ;;  %v2463_v30 = vadd.f32 %v10404_v62, %v2313_v28 }
 0x5e7   : > { %v2559_v9 = vpop.f32.mrf.mxu2  ;;  %v8282_v61 = vadd.f32 1.0, %v6677_v0  ;;  %v2753_v0 = vand.u32 2147483648, %v8278_v57  ;;  %vm2747_vm1 = vweird.f32 %v8278_v57 }
 0x5e8   : > { %6680 = vpow2.f32 %v2707_v13  ;;  %v2684_v7 = vadd.f32 %v8229_v8, %v2619_v54  ;;  %v2618_v44 = vadd.f32 %v2559_v9, %v2468_v25  ;;  %v10405_v54 = vld [vmem:[#allocation35_spill] sm:$0xff]  ;;  %v10406_v9 = vld [vmem:[#allocation34_spill] sm:$0xff]  ;;  %v2613_v2 = vadd.f32 %v10408_v29, %v2463_v30 }
 0x5e9   : > { %6682 = vtanh.f32 %v2672_v18  ;;  %v2611_v55 = vadd.f32 %v10405_v54, %v2461_v43  ;;  %v2462_v18 = vadd.f32 %v10406_v9, %v2312_v35  ;;  %v8353_v35 = vor.u32 1.1754944e-38, %v2753_v0 }
 0x5ea   : > { %v2700_v16 = vsub.f32 0.0, %v2684_v7  ;;  %v2683_v59 = vadd.f32 %v8229_v8, %v2618_v44  ;;  %6684 = vtanh.f32 %v2671_v41  ;;  %v10407_v7 = vld [vmem:[#allocation36_spill] sm:$0xff]  ;;  %v2678_v53 = vadd.f32 %v8235_v27, %v2613_v2 }
 0x5eb   : > { %v2610_v44 = vadd.f32 %v10407_v7, %v2460_v14  ;;  %v2612_v52 = vadd.f32 %v10409_v21, %v2462_v18  ;;  %v2676_v33 = vadd.f32 %v2644_v46, %v2611_v55 }
 0x5ec   : > { %v2713_v15 = vmul.f32 1.442695, %v2700_v16  ;;  %v2699_v63 = vsub.f32 0.0, %v2683_v59  ;;  %v6679_v40 = vpop.eup %6678 }
 0x5ed   : > { %v2603_v8 = vpop.f32.mrf.mxu3  ;;  %v8284_v22 = vadd.f32 1.0, %v6679_v40  ;;  %v2675_v16 = vadd.f32 %v2644_v46, %v2610_v44  ;;  %v2677_v38 = vadd.f32 %v8235_v27, %v2612_v52 }
 0x5ee   : > { %v6681_v49 = vpop.eup %6680  ;;  %6686 = vpow2.f32 %v2713_v15  ;;  %v2711_v37 = vmul.f32 1.442695, %v2699_v63  ;;  %v2621_v32 = vadd.f32 %v2603_v8, %v2471_v23  ;;  %v2751_v63 = vand.u32 2147483647, %v8278_v57 }
 0x5ef   : > { %6688 = vtanh.f32 %v2674_v1  ;;  %v2562_v12 = vpop.f32.mrf.mxu2  ;;  %v8290_v25 = vadd.f32 1.0, %v6681_v49  ;;  %v8292_v13 = vpop.eup %6682  ;;  %v2783_v28 = vand.u32 2147483648, %v8284_v22  ;;  %v2736_v8 = vand.u32 2147483647, %v8282_v61 }
 0x5f0   : > { %6690 = vpow2.f32 %v2711_v37  ;;  %v2686_v19 = vadd.f32 %v10402_v3, %v2621_v32  ;;  %v2620_v50 = vadd.f32 %v2562_v12, %v2470_v26  ;;  %v8296_v48 = vpop.eup %6684  ;;  %v2738_v12 = vand.u32 2147483648, %v8282_v61 }
 0x5f1   : > { %6692 = vrcp.f32 %v8278_v57  ;;  %vm2777_vm2 = vweird.f32 %v8284_v22  ;;  %v2766_v42 = vand.u32 2147483647, %v8290_v25  ;;  %v8366_v55 = vor.u32 1.1754944e-38, %v2783_v28 }
 0x5f2   : > { %6694 = vtanh.f32 %v2673_v45  ;;  %v2702_v6 = vsub.f32 0.0, %v2686_v19  ;;  %v2685_v36 = vadd.f32 %v10402_v3, %v2620_v50  ;;  %v2781_v50 = vand.u32 2147483647, %v8284_v22 }
 0x5f3   : > { %6696 = vrcp.f32 %v8282_v61  ;;  %v2768_v29 = vand.u32 2147483648, %v8290_v25  ;;  %vm8427_vm12 = vcmp.eq.f32.partialorder %v2751_v63, 8.507059e+37 }
 0x5f4   : > { %v6687_v34 = vpop.eup %6686  ;;  %6698 = vrcp.f32 %v8284_v22  ;;  %v2717_v20 = vmul.f32 1.442695, %v2702_v6  ;;  %v2701_v51 = vsub.f32 0.0, %v2685_v36  ;;  %vm8399_vm4 = vcmp.eq.f32.partialorder %v2781_v50, 8.507059e+37 }
 0x5f5   : > { %v8303_v41 = vpop.eup %6688  ;;  %6700 = vrcp.f32 %v8290_v25  ;;  %v8307_v39 = vadd.f32 1.0, %v6687_v34 }
 0x5f6   : > { %v6691_v10 = vpop.eup %6690  ;;  %6702 = vpow2.f32 %v2717_v20  ;;  %v2715_v58 = vmul.f32 1.442695, %v2701_v51 }
 0x5f7   : > { %v8309_v17 = vpop.eup %6692  ;;  %6704 = vrcp.f32 %v8307_v39  ;;  %v8312_v59 = vadd.f32 1.0, %v6691_v10  ;;  %v2811_v62 = vand.u32 2147483647, %v8307_v39  ;;  %v2813_v30 = vand.u32 2147483648, %v8307_v39 }
 0x5f8   : > { %v8314_v47 = vpop.eup %6694  ;;  %6706 = vpow2.f32 %v2715_v58  ;;  %v2743_v11 = vmul.f32 %v8309_v17, %v8278_v57  ;;  %vm2748_vm8 = vweird.f32 %v8309_v17  ;;  %vm2807_vm6 = vweird.f32 %v8307_v39 }
 0x5f9   : > { %v8317_v31 = vpop.eup %6696  ;;  %6708 = vrcp.f32 %v8312_v59  ;;  %v2798_v36 = vand.u32 2147483648, %v8312_v59  ;;  %v2796_v34 = vand.u32 2147483647, %v8312_v59  ;;  %vm2792_vm5 = vweird.f32 %v8312_v59  ;;  %vm8412_vm9 = vmor %vm2747_vm1, %vm2748_vm8 }
 0x5fa   : > { %v8321_v4 = vpop.eup %6698  ;;  %6710 = vtanh.f32 %v2676_v33  ;;  %v2744_v26 = vsub.f32 1.0, %v2743_v11  ;;  %v2728_v32 = vmul.f32 %v8317_v31, %v8282_v61  ;;  %vm8382_vm0 = vcmp.eq.f32.partialorder %v2811_v62, 8.507059e+37 }
 0x5fb   : > { %v8325_v5 = vpop.eup %6700  ;;  %6712 = vtanh.f32 %v2675_v16  ;;  %v2773_v27 = vmul.f32 %v8321_v4, %v8284_v22  ;;  %vm2778_vm14 = vweird.f32 %v8321_v4  ;;  %v2814_v21 = vor.u32 1.1754944e-38, %v2813_v30 }
 0x5fc   : > { %v6703_v1 = vpop.eup %6702  ;;  %6714 = vtanh.f32 %v2678_v53  ;;  %v2758_v37 = vmul.f32 %v8325_v5, %v8290_v25  ;;  %v2745_v18 = vmul.f32 %v8309_v17, %v2744_v26  ;;  %v2729_v7 = vsub.f32 1.0, %v2728_v32  ;;  %vm8421_vm7 = vmor %vm2777_vm2, %vm2778_vm14 }
 0x5fd   : > { %v8328_v23 = vpop.eup %6704  ;;  %6716 = vtanh.f32 %v2677_v38  ;;  %v8330_v15 = vadd.f32 1.0, %v6703_v1  ;;  %v2774_v19 = vsub.f32 1.0, %v2773_v27  ;;  %vm2763_vm10 = vweird.f32 %v8325_v5 }
 0x5fe   : > { %v6707_v40 = vpop.eup %6706  ;;  %v2803_v56 = vmul.f32 %v8328_v23, %v8307_v39  ;;  %v2759_v9 = vsub.f32 1.0, %v2758_v37  ;;  %v2799_v33 = vor.u32 1.1754944e-38, %v2798_v36  ;;  %v2746_v16 = vadd.f32 %v8309_v17, %v2745_v18 }
 0x5ff   : > { %v8339_v49 = vpop.eup %6708  ;;  %6718 = vrcp.f32 %v8330_v15  ;;  %v8342_v45 = vadd.f32 1.0, %v6707_v40  ;;  %v2775_v20 = vmul.f32 %v8321_v4, %v2774_v19  ;;  %v2730_v53 = vmul.f32 %v8317_v31, %v2729_v7 }
 0x600   : > { %v8348_v24 = vpop.eup %6710  ;;  %v2804_v43 = vsub.f32 1.0, %v2803_v56  ;;  %v2788_v60 = vmul.f32 %v8339_v49, %v8312_v59  ;;  %v2760_v58 = vmul.f32 %v8325_v5, %v2759_v9  ;;  %vm2808_vm13 = vweird.f32 %v8328_v23 }
 0x601   : > { %v8356_v3 = vpop.eup %6712  ;;  %6720 = vrcp.f32 %v8342_v45  ;;  %vm8395_vm3 = vcmp.eq.f32.partialorder %v2796_v34, 8.507059e+37  ;;  %v2841_v40 = vand.u32 2147483647, %v8330_v15  ;;  %v2843_v56 = vand.u32 2147483648, %v8330_v15  ;;  %vm8438_vm2 = vmor %vm2807_vm6, %vm2808_vm13 }
 0x602   : > { %v8362_v14 = vpop.eup %6714  ;;  %v2789_v54 = vsub.f32 1.0, %v2788_v60  ;;  %v2805_v44 = vmul.f32 %v8328_v23, %v2804_v43  ;;  %vm2793_vm11 = vweird.f32 %v8339_v49  ;;  %v2776_v28 = vadd.f32 %v8321_v4, %v2775_v20  ;;  %v10445_v60 = vld [vmem:[#allocation5_spill] sm:$0xff] }
 0x603   : > { %v8368_v6 = vpop.eup %6716  ;;  %vm2837_vm1 = vweird.f32 %v8330_v15  ;;  %v2826_v50 = vand.u32 2147483647, %v8342_v45  ;;  %v2828_v62 = vand.u32 2147483648, %v8342_v45  ;;  %v2761_v57 = vadd.f32 %v8325_v5, %v2760_v58  ;;  %vm8450_vm14 = vmor %vm2792_vm5, %vm2793_vm11 }
 0x604   : > { %v2790_v52 = vmul.f32 %v8339_v49, %v2789_v54  ;;  %v2806_v1 = vadd.f32 %v8328_v23, %v2805_v44  ;;  %vm2842_vm13 = vcmp.eq.f32.partialorder %v2841_v40, 8.507059e+37  ;;  %v2844_v39 = vor.u32 1.1754944e-38, %v2843_v56  ;;  %v2891_v40 = vpop.permute.xlu0 %2890  ;;  %v10449_v54 = vld [vmem:[#allocation24_spill] sm:$0xff] }
 0x605   : > { %v6719_v2 = vpop.eup %6718  ;;  %v2780_v36 = vsel %vm8421_vm7, %v8321_v4, %v2776_v28  ;;  %v2731_v9 = vadd.f32 %v8317_v31, %v2730_v53  ;;  %vm10426_vm5 = vweird.f32 %v8290_v25  ;;  %v2829_v4 = vor.u32 1.1754944e-38, %v2828_v62  ;;  %v10443_v28 = vld [vmem:[#allocation20_spill] sm:$0xff] }
 0x606   : > { %v2833_v51 = vmul.f32 %v6719_v2, %v8330_v15  ;;  %vm2838_vm15 = vweird.f32 %v6719_v2  ;;  %v2791_v43 = vadd.f32 %v8339_v49, %v2790_v52  ;;  %v2810_v15 = vsel %vm8438_vm2, %v8328_v23, %v2806_v1  ;;  %v2886_v1 = vpop.permute.xlu1 %2885 }
 0x607   : > { %v6721_v10 = vpop.eup %6720  ;;  %vm2839_vm6 = vmor %vm2837_vm1, %vm2838_vm15  ;;  %vm2822_vm2 = vweird.f32 %v8342_v45  ;;  %v2815_v34 = vsel %vm8382_vm0, %v2814_v21, %v2810_v15  ;;  %vm2827_vm11 = vcmp.eq.f32.partialorder %v2826_v50, 8.507059e+37  ;;  %v2785_v46 = vsel %vm8399_vm4, %v8366_v55, %v2780_v36 }
 0x608   : > { %v2818_v38 = vmul.f32 %v6721_v10, %v8342_v45  ;;  %v2834_v11 = vsub.f32 1.0, %v2833_v51  ;;  %vm2823_vm8 = vweird.f32 %v6721_v10  ;;  %v2795_v59 = vsel %vm8450_vm14, %v8339_v49, %v2791_v43  ;;  %vm8467_vm15 = vmor %vm10426_vm5, %vm2763_vm10 }
 0x609   : > { %vm2824_vm7 = vmor %vm2822_vm2, %vm2823_vm8  ;;  %v2750_v45 = vsel %vm8412_vm9, %v8309_v17, %v2746_v16  ;;  %v2765_v20 = vsel %vm8467_vm15, %v8325_v5, %v2761_v57  ;;  %v2800_v52 = vsel %vm8395_vm3, %v2799_v33, %v2795_v59  ;;  %v2769_v21 = vor.u32 1.1754944e-38, %v2768_v29  ;;  %v10439_v16 = vld [vmem:[#allocation23_spill] sm:$0xff] }
 0x60a   : > { %v2835_v37 = vmul.f32 %v6719_v2, %v2834_v11  ;;  %v2819_v32 = vsub.f32 1.0, %v2818_v38  ;;  %vm10429_vm0 = vweird.f32 %v8317_v31  ;;  %vm10430_vm10 = vweird.f32 %v8282_v61  ;;  %v5897_v61 = vld [vmem:[%s10092_s7 + $0x48] sm:$0xff] }
 0x60b   : > { %vm2734_vm9 = vmor %vm10430_vm10, %vm10429_vm0  ;;  %v2852_v5 = vmul.f32 %v8348_v24, %v2815_v34  ;;  %vm2767_vm3 = vcmp.eq.f32.partialorder %v2766_v42, 8.507059e+37  ;;  %v2755_v55 = vsel %vm8427_vm12, %v8353_v35, %v2750_v45  ;;  %v2739_v29 = vor.u32 1.1754944e-38, %v2738_v12  ;;  %v5896_v35 = vld [vmem:[%s10092_s7 + $0x40] sm:$0xff]  ;;  %v10440_v38 = vld [vmem:[#allocation3_spill] sm:$0xff] }
 0x60c   : > { %v2836_v63 = vadd.f32 %v6719_v2, %v2835_v37  ;;  %v2820_v30 = vmul.f32 %v6721_v10, %v2819_v32  ;;  %v2851_v33 = vmul.f32 %v8356_v3, %v2800_v52  ;;  %vm2737_vm4 = vcmp.eq.f32.partialorder %v2736_v8, 8.507059e+37  ;;  %v2881_v3 = vpop.permute.xlu2 %2880  ;;  %v10444_v32 = vld [vmem:[#allocation21_spill] sm:$0xff] }
 0x60d   : > { %v2848_v24 = vmul.f32 %v8292_v13, %v2755_v55  ;;  %vm10431_vm12 = vcmask 261120   ;;  %v5898_v13 = vld [vmem:[%s10092_s7 + $0x50] sm:$0xff]  ;;  %v10454_v45 = vld [vmem:[#allocation13_spill] sm:$0xff]  ;;  %vm10458_vm15 = vcmask 1047568   ;;  %vm10461_vm0 = vcmask 146432  }
 0x60e   : > { %v2840_v18 = vsel %vm2839_vm6, %v6719_v2, %v2836_v63  ;;  %v2821_v23 = vadd.f32 %v6721_v10, %v2820_v30  ;;  %vm10432_vm1 = vmmov %vm10431_vm12  ;;  %v10448_v30 = vld [vmem:[#allocation16_spill] sm:$0xff] }
 0x60f   : > { %v2845_v44 = vsel %vm2842_vm13, %v2844_v39, %v2840_v18  ;;  %vm10433_vm8 = vmmov %vm10432_vm1 }
 0x610   : > { %v2854_v49 = vmul.f32 %v8362_v14, %v2845_v44  ;;  %v2825_v2 = vsel %vm2824_vm7, %v6721_v10, %v2821_v23  ;;  %v2735_v14 = vsel %vm2734_vm9, %v8317_v31, %v2731_v9  ;;  %v2770_v10 = vsel %vm2767_vm3, %v2769_v21, %v2765_v20  ;;  %vm10434_vm14 = vmmov %vm10432_vm1  ;;  %v2876_v9 = vpop.permute.xlu0 %2875  ;;  %v10450_v23 = vld [vmem:[#allocation14_spill] sm:$0xff] }
 0x611   : > { %v2830_v51 = vsel %vm2827_vm11, %v2829_v4, %v2825_v2  ;;  %v2740_v25 = vsel %vm2737_vm4, %v2739_v29, %v2735_v14  ;;  %v2849_v31 = vmul.f32 %v8314_v47, %v2770_v10  ;;  %vm10435_vm6 = vmmov %vm10432_vm1  ;;  %v10455_v2 = vld [vmem:[#allocation15_spill] sm:$0xff]  ;;  %vm10459_vm7 = vcmask 15360  }
 0x612   : > { %2990 = vmatpush.msra.mxu1 %v2854_v49  ;;  %v2853_v17 = vmul.f32 %v8368_v6, %v2830_v51  ;;  %v2850_v6 = vmul.f32 %v8303_v41, %v2785_v46  ;;  %v2847_v12 = vmul.f32 %v8296_v48, %v2740_v25  ;;  %vm10436_vm13 = vmmov %vm10432_vm1  ;;  %v5899_v48 = vld [vmem:[%s10092_s7 + $0x58] sm:$0xff] }
 0x613   : > { %vm10437_vm2 = vmmov %vm10432_vm1 }
 0x614   : > { %2949 = vmatpush.msra.mxu0 %v2853_v17  ;;  %2991 = vmatpush.msra.mxu1 %v2852_v5  ;;  %vm10438_vm5 = vmmov %vm10432_vm1 }
 0x615   : > { %vm10460_vm11 = vmmov %vm10458_vm15 }
 0x616   : > { %2950 = vmatpush.msra.mxu0 %v2851_v33  ;;  %2992 = vmatpush.msra.mxu1 %v2850_v6  ;;  %vm10462_vm10 = vmmov %vm10459_vm7 }
 0x617   : > { %vm10463_vm9 = vmmov %vm10460_vm11 }
 0x618   : > { %2951 = vmatpush.msra.mxu0 %v2849_v31  ;;  %2993 = vmatpush.msra.mxu1 %v2848_v24  ;;  %vm10464_vm3 = vmmov %vm10459_vm7 }
 0x619   : > { %5920 = vmatmul.msk.f32.vlgmr.msra.gmra.mxu1 %vm10431_vm12, %v5896_v35  ;;  %vm10465_vm4 = vmmov %vm10461_vm0 }
 0x61a   : > { %2952 = vmatpush.msra.mxu0 %v2847_v12  ;;  %vm10466_vm12 = vmmov %vm10461_vm0 }
 0x61b   : > { %5912 = vmatmul.msk.f32.vlgmr.msra.gmra.mxu0 %vm10432_vm1, %v5896_v35  ;;  %vm10468_vm1 = vmmov %vm10464_vm3 }
 0x621   : > { %5921 = vmatmul.msk.f32.gmra.mxu1 %vm10433_vm8, %v5897_v61  ;;  %vm10469_vm8 = vmmov %vm10463_vm9 }
 0x623   : > { %5913 = vmatmul.msk.f32.gmra.mxu0 %vm10434_vm14, %v5897_v61  ;;  %vm10470_vm14 = vmmov %vm10461_vm0 }
 0x629   : > { %5922 = vmatmul.msk.f32.gmra.mxu1 %vm10435_vm6, %v5898_v13  ;;  %vm10471_vm6 = vmmov %vm10437_vm2 }
 0x62b   : > { %5914 = vmatmul.msk.f32.gmra.mxu0 %vm10436_vm13, %v5898_v13  ;;  %vm10472_vm13 = vmmov %vm10437_vm2 }
 0x631   : > { %5923 = vmatmul.msk.f32.gmra.mxu1 %vm10437_vm2, %v5899_v48 }
 0x633   : > { %5915 = vmatmul.msk.f32.gmra.mxu0 %vm10438_vm5, %v5899_v48  ;;  %vm10473_vm5 = vmmov %vm10437_vm2 }
 0x696   : > { %v2995_v41 = vpop.f32.mrf.mxu1 }
 0x697   : > { %v2996_v18 = vadd.f32 %v2995_v41, %v2876_v9 }
 0x698   : > { %v2954_v47 = vpop.f32.mrf.mxu0 }
 0x699   : > { %v2955_v44 = vadd.f32 %v2954_v47, %v2876_v9  ;;  %v3020_v49 = vadd.f32 %v2996_v18, %v10454_v45 }
 0x69b   : > { %v3019_v20 = vadd.f32 %v2955_v44, %v10455_v2  ;;  %v8567_v51 = vmul.f32 %v3020_v49, %v10445_v60  ;;  %v5930_v49 = vld [vmem:[%s10090_s5 + $0x290] sm:$0xff] }
 0x69d   : > { %10456 = vst [vmem:[#allocation8_spill] sm:$0xff] %v8567_v51  ;;  %v8572_v52 = vmul.f32 %v3019_v20, %v10440_v38 }
 0x69e   : > { %v2998_v8 = vpop.f32.mrf.mxu1 }
 0x69f   : > { %v2999_v50 = vadd.f32 %v2998_v8, %v2881_v3  ;;  %10457 = vst [vmem:[#allocation7_spill] sm:$0xff] %v8572_v52 }
 0x6a0   : > { %v2957_v42 = vpop.f32.mrf.mxu0 }
 0x6a1   : > { %v2958_v58 = vadd.f32 %v2957_v42, %v2881_v3  ;;  %v3022_v15 = vadd.f32 %v2999_v50, %v10448_v30  ;;  %v6064_v50 = vld [vmem:[%s10093_s8 + $0x80] sm:$0xff] }
 0x6a3   : > { %v3021_v53 = vadd.f32 %v2958_v58, %v10439_v16  ;;  %v8558_v34 = vmul.f32 %v3022_v15, %v10445_v60  ;;  %v6055_v16 = vld [vmem:[%s10091_s6 + $0xb8] sm:$0xff]  ;;  %v5928_v15 = vld [vmem:[%s10090_s5 + $0x280] sm:$0xff] }
 0x6a5   : > { %v8530_v11 = vmul.f32 %v3021_v53, %v10440_v38  ;;  %10453 = vst [vmem:[#allocation9_spill] sm:$0xff] %v8558_v34  ;;  %v6054_v53 = vld [vmem:[%s10091_s6 + $0xb0] sm:$0xff] }
 0x6a6   : > { %v3001_v0 = vpop.f32.mrf.mxu1 }
 0x6a7   : > { %10441 = vst [vmem:[#allocation4_spill] sm:$0xff] %v8530_v11  ;;  %v3002_v27 = vadd.f32 %v3001_v0, %v2886_v1  ;;  %3055 = vrot.lane.b32.xlu2 %v8530_v11, %s10442_s30  ;;  %v6053_v0 = vld [vmem:[%s10091_s6 + $0xa8] sm:$0xff] }
 0x6a8   : > { %v2960_v56 = vpop.f32.mrf.mxu0 }
 0x6a9   : > { %v3024_v26 = vadd.f32 %v3002_v27, %v10443_v28  ;;  %v2961_v37 = vadd.f32 %v2960_v56, %v2886_v1  ;;  %v6052_v1 = vld [vmem:[%s10091_s6 + $0xa0] sm:$0xff]  ;;  %v6051_v27 = vld [vmem:[%s10091_s6 + $0x98] sm:$0xff]  ;;  %v6050_v56 = vld [vmem:[%s10091_s6 + $0x90] sm:$0xff] }
 0x6aa   : > { %v6048_v28 = vld [vmem:[%s10091_s6 + $0x80] sm:$0xff] }
 0x6ab   : > { %v3023_v43 = vadd.f32 %v2961_v37, %v10444_v32  ;;  %v8537_v19 = vmul.f32 %v3024_v26, %v10445_v60  ;;  %v6066_v26 = vld [vmem:[%s10093_s8 + $0x90] sm:$0xff]  ;;  %v6067_v37 = vld [vmem:[%s10093_s8 + $0x98] sm:$0xff]  ;;  %v6065_v32 = vld [vmem:[%s10093_s8 + $0x88] sm:$0xff] }
 0x6ad   : > { %10446 = vst [vmem:[#allocation28_spill] sm:$0xff] %v8537_v19  ;;  %3061 = vrot.lane.b32.xlu1 %v8537_v19, %s10442_s30  ;;  %v8542_v62 = vmul.f32 %v3023_v43, %v10440_v38  ;;  %v5900_v43 = vld [vmem:[%s10092_s7 + $0x60] sm:$0xff] }
 0x6ae   : > { %v3004_v22 = vpop.f32.mrf.mxu1  ;;  %5916 = vmatmul.msk.f32.gmra.mxu0 %vm10471_vm6, %v5900_v43  ;;  %5924 = vmatmul.msk.f32.gmra.mxu1 %vm10472_vm13, %v5900_v43 }
 0x6af   : > { %10447 = vst [vmem:[#allocation31_spill] sm:$0xff] %v8542_v62  ;;  %v3005_v57 = vadd.f32 %v3004_v22, %v2891_v40  ;;  %3059 = vrot.lane.b32.xlu0 %v8542_v62, %s10442_s30  ;;  %v5901_v22 = vld [vmem:[%s10092_s7 + $0x68] sm:$0xff] }
 0x6b0   : > { %v2963_v63 = vpop.f32.mrf.mxu0 }
 0x6b1   : > { %v3026_v39 = vadd.f32 %v3005_v57, %v10449_v54  ;;  %v2964_v36 = vadd.f32 %v2963_v63, %v2891_v40  ;;  %v6049_v40 = vld [vmem:[%s10091_s6 + $0x88] sm:$0xff]  ;;  %v5902_v57 = vld [vmem:[%s10092_s7 + $0x70] sm:$0xff]  ;;  %v5903_v63 = vld [vmem:[%s10092_s7 + $0x78] sm:$0xff] }
 0x6b3   : > { %v3025_v59 = vadd.f32 %v2964_v36, %v10450_v23  ;;  %v8550_v7 = vmul.f32 %v3026_v39, %v10445_v60  ;;  %v5929_v39 = vld [vmem:[%s10090_s5 + $0x288] sm:$0xff] }
 0x6b5   : > { %10451 = vst [vmem:[#allocation32_spill] sm:$0xff] %v8550_v7  ;;  %3065 = vrot.lane.b32.xlu2 %v8550_v7, %s10442_s30  ;;  %v8555_v4 = vmul.f32 %v3025_v59, %v10440_v38 }
 0x6b6   : > { %5917 = vmatmul.msk.f32.gmra.mxu0 %vm10437_vm2, %v5901_v22  ;;  %5925 = vmatmul.msk.f32.gmra.mxu1 %vm10473_vm5, %v5901_v22 }
 0x6b7   : > { %10452 = vst [vmem:[#allocation30_spill] sm:$0xff] %v8555_v4  ;;  %3063 = vrot.lane.b32.xlu1 %v8555_v4, %s10442_s30  ;;  %3057 = vrot.lane.b32.xlu0 %v8558_v34, %s10442_s30 }
 0x6bd   : > { %3053 = vrot.lane.b32.xlu2 %v8567_v51, %s10442_s30 }
 0x6bf   : > { %3051 = vrot.lane.b32.xlu1 %v8572_v52, %s10442_s30 }
 0x701   : > { %v3056_v46 = vpop.permute.xlu2 %3055 }
 0x702   : > { %3081 = vst.msk [vmem:[#allocation2 + $0x10] sm:$0xff] %vm10458_vm15, %v3056_v46  ;;  %vm10474_vm15 = vmmov %vm10437_vm2 }
 0x703   : > { %5918 = vmatmul.msk.f32.gmra.mxu0 %vm10474_vm15, %v5902_v57 }
 0x709   : > { %v3130_v48 = vld [vmem:[#allocation2 + $0x10] sm:$0xff] }
 0x70f   : > { %v3066_v14 = vpop.permute.xlu2 %3065 }
 0x717   : > { %v3054_v24 = vpop.permute.xlu2 %3053 }
 0x71f   : > { %v3062_v21 = vpop.permute.xlu1 %3061 }
 0x721   : > { %v3060_v17 = vpop.permute.xlu0 %3059 }
 0x722   : > { %v3069_v5 = vsel %vm10459_vm7, %v3060_v17, %v3062_v21  ;;  %3083 = vst.msk [vmem:[#allocation2 + $0x20] sm:$0xff] %vm10460_vm11, %v3060_v17  ;;  %vm10475_vm7 = vmmov %vm10437_vm2 }
 0x723   : > { %3084 = vst.msk [vmem:[#allocation2 + $0x28] sm:$0xff] %vm10461_vm0, %v3069_v5  ;;  %5926 = vmatmul.msk.f32.gmra.mxu1 %vm10475_vm7, %v5902_v57  ;;  %vm10476_vm11 = vmmov %vm10437_vm2  ;;  %vm10491_vm7 = vcmask 1031168   ;;  %v5938_v57 = vld [vmem:[%s10090_s5 + $0x2d0] sm:$0xff] }
 0x724   : > { %5919 = vmatmul.msk.f32.gmra.mxu0 %vm10476_vm11, %v5903_v63  ;;  %vm10477_vm0 = vmmov %vm10437_vm2 }
 0x725   : > { %vm10488_vm2 = vmmov %vm10477_vm0 }
 0x726   : > { %vm10489_vm5 = vmmov %vm10477_vm0 }
 0x727   : > { %vm10490_vm15 = vmmov %vm10477_vm0 }
 0x728   : > { %vm10492_vm11 = vmmov %vm10477_vm0 }
 0x729   : > { %v3064_v10 = vpop.permute.xlu1 %3063  ;;  %v3058_v55 = vpop.permute.xlu0 %3057  ;;  %v3132_v29 = vld [vmem:[#allocation2 + $0x20] sm:$0xff] }
 0x72a   : > { %v3070_v33 = vsel %vm10462_vm10, %v3064_v10, %v3066_v14  ;;  %3085 = vst.msk [vmem:[#allocation2 + $0x30] sm:$0xff] %vm10463_vm9, %v3064_v10  ;;  %v3068_v6 = vsel %vm10464_vm3, %v3056_v46, %v3058_v55  ;;  %v3133_v25 = vld [vmem:[#allocation2 + $0x28] sm:$0xff]  ;;  %vm10478_vm10 = vmmov %vm10477_vm0 }
 0x72b   : > { %3086 = vst.msk [vmem:[#allocation2 + $0x38] sm:$0xff] %vm10465_vm4, %v3070_v33  ;;  %v6466_v31 = vpack.i.bf16 %v3133_v25, %v3132_v29  ;;  %5927 = vmatmul.msk.f32.gmra.mxu1 %vm10477_vm0, %v5903_v63  ;;  %vm10479_vm9 = vmmov %vm10477_vm0  ;;  %v5933_v63 = vld [vmem:[%s10090_s5 + $0x2a8] sm:$0xff] }
 0x72c   : > { %3082 = vst.msk [vmem:[#allocation2 + $0x18] sm:$0xff] %vm10466_vm12, %v3068_v6  ;;  %vm10480_vm3 = vmmov %vm10477_vm0  ;;  %vm10482_vm12 = vcmask 1039360  }
 0x72d   : > { %6467 = vrot.lane.b32.xlu1 %v6466_v31, %s10467_s28  ;;  %vm10481_vm4 = vmmov %vm10477_vm0 }
 0x72e   : > { %vm10486_vm6 = vmmov %vm10482_vm12 }
 0x72f   : > { %vm10487_vm13 = vmmov %vm10486_vm6 }
 0x731   : > { %v3052_v35 = vpop.permute.xlu1 %3051  ;;  %v3134_v12 = vld [vmem:[#allocation2 + $0x30] sm:$0xff] }
 0x732   : > { %v3067_v61 = vsel %vm10468_vm1, %v3052_v35, %v3054_v24  ;;  %3079 = vst.msk [vmem:[#allocation2] sm:$0xff] %vm10469_vm8, %v3052_v35  ;;  %3314 = vmatpush.msrb.mxu0 %v3134_v12  ;;  %v3135_v13 = vld [vmem:[#allocation2 + $0x38] sm:$0xff]  ;;  %vm10483_vm1 = vmmov %vm10477_vm0 }
 0x733   : > { %3080 = vst.msk [vmem:[#allocation2 + $0x8] sm:$0xff] %vm10470_vm14, %v3067_v61  ;;  %3355 = vmatpush.msrb.mxu1 %v3135_v13  ;;  %v3131_v41 = vld [vmem:[#allocation2 + $0x18] sm:$0xff]  ;;  %v6476_v47 = vpack.i.bf16 %v3135_v13, %v3134_v12  ;;  %vm10484_vm8 = vmmov %vm10477_vm0 }
 0x734   : > { %3315 = vmatpush.msrb.mxu0 %v3132_v29  ;;  %v6471_v8 = vpack.i.bf16 %v3131_v41, %v3130_v48  ;;  %vm10485_vm14 = vmmov %vm10482_vm12 }
 0x735   : > { %6477 = vrot.lane.b32.xlu0 %v6476_v47, %s10467_s28  ;;  %3356 = vmatpush.msrb.mxu1 %v3133_v25  ;;  %v5936_v25 = vld [vmem:[%s10090_s5 + $0x2c0] sm:$0xff]  ;;  %vm10493_vm0 = vmmov %vm10491_vm7 }
 0x736   : > { %6472 = vrot.lane.b32.xlu2 %v6471_v8, %s10467_s28  ;;  %6497 = vrot.lane.b32.xlu1 %v6476_v47, %s10263_s15 }
 0x737   : > { %3316 = vmatpush.msrb.mxu0 %v3130_v48  ;;  %3357 = vmatpush.msrb.mxu1 %v3131_v41 }
 0x739   : > { %v3128_v3 = vld [vmem:[#allocation2] sm:$0xff] }
 0x73a   : > { %3317 = vmatpush.msrb.mxu0 %v3128_v3  ;;  %v3129_v42 = vld [vmem:[#allocation2 + $0x8] sm:$0xff] }
 0x73b   : > { %3358 = vmatpush.msrb.mxu1 %v3129_v42  ;;  %v6501_v58 = vpack.i.bf16 %v3129_v42, %v3128_v3  ;;  %5984 = vmatmul.msk.f32.vlgmr.msrb.gmra.mxu0 %vm10478_vm10, %v5928_v15  ;;  %v5937_v42 = vld [vmem:[%s10090_s5 + $0x2c8] sm:$0xff]  ;;  %vm10494_vm10 = vmmov %vm10493_vm0 }
 0x73c   : > { %5992 = vmatmul.msk.f32.vlgmr.msrb.gmra.mxu1 %vm10479_vm9, %v5928_v15  ;;  %vm10495_vm9 = vmmov %vm10483_vm1 }
 0x73d   : > { %6482 = vrot.lane.b32.xlu0 %v6501_v58, %s10467_s28 }
 0x73e   : > { %6487 = vrot.lane.b32.xlu2 %v6466_v31, %s10263_s15  ;;  %6502 = vrot.lane.b32.xlu1 %v6501_v58, %s10263_s15 }
 0x743   : > { %5985 = vmatmul.msk.f32.gmra.mxu0 %vm10480_vm3, %v5929_v39  ;;  %vm10496_vm3 = vmmov %vm10483_vm1 }
 0x744   : > { %5993 = vmatmul.msk.f32.gmra.mxu1 %vm10481_vm4, %v5929_v39  ;;  %vm10497_vm4 = vcmask 1022976  }
 0x745   : > { %6492 = vrot.lane.b32.xlu0 %v6471_v8, %s10263_s15 }
 0x746   : > { %6512 = vrot.lane.b32.xlu2 %v6471_v8, %s10264_s16  ;;  %6527 = vrot.lane.b32.xlu1 %v6476_v47, %s10265_s24 }
 0x74b   : > { %5986 = vmatmul.msk.f32.gmra.mxu0 %vm10483_vm1, %v5930_v49 }
 0x74c   : > { %5994 = vmatmul.msk.f32.gmra.mxu1 %vm10484_vm8, %v5930_v49  ;;  %vm10500_vm8 = vcmask 1014784  }
 0x74d   : > { %6507 = vrot.lane.b32.xlu0 %v6466_v31, %s10264_s16 }
 0x74e   : > { %6522 = vrot.lane.b32.xlu2 %v6476_v47, %s10264_s16  ;;  %6532 = vrot.lane.b32.xlu1 %v6501_v58, %s10264_s16 }
 0x755   : > { %6517 = vrot.lane.b32.xlu0 %v6466_v31, %s10265_s24  ;;  %v5931_v31 = vld [vmem:[%s10090_s5 + $0x298] sm:$0xff] }
 0x756   : > { %6537 = vrot.lane.b32.xlu2 %v6471_v8, %s10265_s24  ;;  %3880 = vperm.xlu1 %6304, %v6055_v16  }
 0x757   : > { %5987 = vmatmul.msk.f32.gmra.mxu0 %vm10488_vm2, %v5931_v31  ;;  %5995 = vmatmul.msk.f32.gmra.mxu1 %vm10492_vm11, %v5931_v31  ;;  %vm10507_vm11 = vmmov %vm10488_vm2  ;;  %v5942_v31 = vld [vmem:[%s10090_s5 + $0x2f0] sm:$0xff] }
 0x75d   : > { %6542 = vrot.lane.b32.xlu0 %v6501_v58, %s10265_s24  ;;  %v5932_v58 = vld [vmem:[%s10090_s5 + $0x2a0] sm:$0xff] }
 0x75e   : > { %3875 = vperm.xlu2 %6385, %v6054_v53   ;;  %3865 = vperm.xlu1 %6304, %v6052_v1  }
 0x75f   : > { %5988 = vmatmul.msk.f32.gmra.mxu0 %vm10495_vm9, %v5932_v58  ;;  %vm10510_vm9 = vmmov %vm10488_vm2 }
 0x765   : > { %3870 = vperm.xlu0 %6303, %v6053_v0  }
 0x766   : > { %3860 = vperm.xlu2 %6385, %v6051_v27   ;;  %3850 = vperm.xlu1 %6304, %v6049_v40  }
 0x76d   : > { %3855 = vperm.xlu0 %6303, %v6050_v56  }
 0x76e   : > { %3845 = vperm.xlu2 %6385, %v6048_v28   ;;  %4097 = vperm.xlu1 %6304, %v6066_v26  }
 0x775   : > { %4102 = vperm.xlu0 %6303, %v6067_v37  }
 0x776   : > { %4092 = vperm.xlu2 %6385, %v6065_v32  }
 0x77d   : > { %4087 = vperm.xlu0 %6303, %v6064_v50  }
 0x790   : > { %v6473_v30 = vpop.permute.xlu2 %6472 }
 0x791   : > { %v6475_v2 = vunpack.i.h.bf16 %v6473_v30  ;;  %v6474_v20 = vunpack.i.l.bf16 %v6473_v30 }
 0x793   : > { %v3161_v5 = vsel %vm10486_vm6, %v6474_v20, %v6475_v2  ;;  %vm10502_vm6 = vmmov %vm10500_vm8 }
 0x798   : > { %v6488_v36 = vpop.permute.xlu2 %6487 }
 0x799   : > { %v6490_v24 = vunpack.i.h.bf16 %v6488_v36  ;;  %v6489_v35 = vunpack.i.l.bf16 %v6488_v36 }
 0x79b   : > { %v3402_v13 = vsel %vm10493_vm0, %v6489_v35, %v6490_v24  ;;  %v5943_v35 = vld [vmem:[%s10090_s5 + $0x2f8] sm:$0xff] }
 0x79f   : > { %v6468_v54 = vpop.permute.xlu1 %6467 }
 0x7a0   : > { %v6470_v18 = vunpack.i.h.bf16 %v6468_v54  ;;  %v6469_v23 = vunpack.i.l.bf16 %v6468_v54  ;;  %v8677_v17 = vpop.permute.xlu2 %6512 }
 0x7a1   : > { %v6515_v30 = vunpack.i.h.bf16 %v8677_v17  ;;  %v6514_v15 = vunpack.i.l.bf16 %v8677_v17 }
 0x7a2   : > { %v3162_v21 = vsel %vm10485_vm14, %v6469_v23, %v6470_v18  ;;  %vm10501_vm14 = vmmov %vm10488_vm2 }
 0x7a3   : > { %5996 = vmatmul.msk.f32.gmra.mxu1 %vm10501_vm14, %v5932_v58  ;;  %vm10516_vm14 = vmmov %vm10488_vm2  ;;  %v5948_v58 = vld [vmem:[%s10090_s5 + $0x320] sm:$0xff] }
 0x7a7   : > { %v6478_v9 = vpop.permute.xlu0 %6477 }
 0x7a8   : > { %v6480_v59 = vunpack.i.h.bf16 %v6478_v9  ;;  %v6479_v44 = vunpack.i.l.bf16 %v6478_v9  ;;  %v6498_v45 = vpop.permute.xlu1 %6497  ;;  %v6523_v48 = vpop.permute.xlu2 %6522 }
 0x7a9   : > { %v6500_v10 = vunpack.i.h.bf16 %v6498_v45  ;;  %v6499_v55 = vunpack.i.l.bf16 %v6498_v45  ;;  %v6525_v27 = vunpack.i.h.bf16 %v6523_v48  ;;  %v6524_v40 = vunpack.i.l.bf16 %v6523_v48  ;;  %v5945_v48 = vld [vmem:[%s10090_s5 + $0x308] sm:$0xff] }
 0x7aa   : > { %3249 = vmatpush.msrb.mxu3 %v6480_v59  ;;  %v3163_v46 = vsel %vm10482_vm12, %v6479_v44, %v6480_v59  ;;  %vm10498_vm12 = vmmov %vm10483_vm1  ;;  %v5934_v44 = vld [vmem:[%s10090_s5 + $0x2b0] sm:$0xff] }
 0x7ab   : > { %3208 = vmatpush.msrb.mxu2 %v3163_v46  ;;  %v3403_v61 = vsel %vm10491_vm7, %v6499_v55, %v6500_v10  ;;  %vm10499_vm1 = vmmov %vm10493_vm0  ;;  %v3703_v37 = vsel %vm10500_vm8, %v6524_v40, %v6525_v27  ;;  %5997 = vmatmul.msk.f32.gmra.mxu1 %vm10507_vm11, %v5933_v63  ;;  %v5939_v46 = vld [vmem:[%s10090_s5 + $0x2d8] sm:$0xff]  ;;  %v8842_v40 = vpop.f32.mrf.mxu0 }
 0x7ac   : > { %3250 = vmatpush.msrb.mxu3 %v6470_v18  ;;  %vm10506_vm7 = vmmov %vm10502_vm6  ;;  %10555 = vst [vmem:[#allocation12_spill] sm:$0xff] %v8842_v40 }
 0x7ad   : > { %3209 = vmatpush.msrb.mxu2 %v3162_v21  ;;  %vm10508_vm0 = vmmov %vm10497_vm4 }
 0x7ae   : > { %3251 = vmatpush.msrb.mxu3 %v6475_v2  ;;  %vm10515_vm8 = vmmov %vm10488_vm2 }
 0x7af   : > { %v6483_v14 = vpop.permute.xlu0 %6482  ;;  %3210 = vmatpush.msrb.mxu2 %v3161_v5  ;;  %vm10522_vm11 = vmmov %vm10488_vm2 }
 0x7b0   : > { %v6485_v29 = vunpack.i.h.bf16 %v6483_v14  ;;  %v6484_v33 = vunpack.i.l.bf16 %v6483_v14  ;;  %v6503_v6 = vpop.permute.xlu1 %6502  ;;  %v6538_v9 = vpop.permute.xlu2 %6537  ;;  %v5935_v14 = vld [vmem:[%s10090_s5 + $0x2b8] sm:$0xff] }
 0x7b1   : > { %v6505_v16 = vunpack.i.h.bf16 %v6503_v6  ;;  %v6504_v53 = vunpack.i.l.bf16 %v6503_v6  ;;  %v6540_v45 = vunpack.i.h.bf16 %v6538_v9  ;;  %v6539_v49 = vunpack.i.l.bf16 %v6538_v9  ;;  %v5941_v6 = vld [vmem:[%s10090_s5 + $0x2e8] sm:$0xff] }
 0x7b2   : > { %3252 = vmatpush.msrb.mxu3 %v6485_v29  ;;  %v3160_v12 = vsel %vm10487_vm13, %v6484_v33, %v6485_v29  ;;  %vm10503_vm13 = vmmov %vm10488_vm2  ;;  %v5940_v29 = vld [vmem:[%s10090_s5 + $0x2e0] sm:$0xff] }
 0x7b3   : > { %3211 = vmatpush.msrb.mxu2 %v3160_v12  ;;  %5976 = vmatmul.msk.f32.vlgmr.msrb.gmra.mxu3 %vm10489_vm5, %v5936_v25  ;;  %v3400_v26 = vsel %vm10499_vm1, %v6504_v53, %v6505_v16  ;;  %vm10504_vm5 = vmmov %vm10488_vm2  ;;  %v5954_v12 = vld [vmem:[%s10090_s5 + $0x350] sm:$0xff]  ;;  %v5949_v53 = vld [vmem:[%s10090_s5 + $0x328] sm:$0xff] }
 0x7b4   : > { %3489 = vmatpush.msra.mxu3 %v6500_v10  ;;  %5968 = vmatmul.msk.f32.vlgmr.msrb.gmra.mxu2 %vm10490_vm15, %v5936_v25  ;;  %vm10505_vm15 = vmmov %vm10502_vm6  ;;  %v5952_v25 = vld [vmem:[%s10090_s5 + $0x340] sm:$0xff] }
 0x7b5   : > { %3448 = vmatpush.msra.mxu2 %v3403_v61  ;;  %5989 = vmatmul.msk.f32.gmra.mxu0 %vm10503_vm13, %v5933_v63  ;;  %v3701_v18 = vsel %vm10505_vm15, %v6514_v15, %v6515_v30  ;;  %vm10514_vm1 = vmmov %vm10508_vm0  ;;  %v5944_v61 = vld [vmem:[%s10090_s5 + $0x300] sm:$0xff]  ;;  %v5962_v63 = vld [vmem:[%s10090_s5 + $0x390] sm:$0xff] }
 0x7b6   : > { %3490 = vmatpush.msra.mxu3 %v6490_v24  ;;  %vm10518_vm13 = vmmov %vm10488_vm2  ;;  %v5953_v24 = vld [vmem:[%s10090_s5 + $0x348] sm:$0xff] }
 0x7b7   : > { %3449 = vmatpush.msra.mxu2 %v3402_v13  ;;  %v6493_v41 = vpop.permute.xlu0 %6492  ;;  %vm10520_vm15 = vmmov %vm10488_vm2  ;;  %v5955_v13 = vld [vmem:[%s10090_s5 + $0x358] sm:$0xff] }
 0x7b8   : > { %v6495_v47 = vunpack.i.h.bf16 %v6493_v41  ;;  %v6494_v8 = vunpack.i.l.bf16 %v6493_v41  ;;  %v6528_v3 = vpop.permute.xlu1 %6527  ;;  %v5956_v41 = vld [vmem:[%s10090_s5 + $0x360] sm:$0xff] }
 0x7b9   : > { %v6530_v1 = vunpack.i.h.bf16 %v6528_v3  ;;  %v6529_v0 = vunpack.i.l.bf16 %v6528_v3  ;;  %v5947_v3 = vld [vmem:[%s10090_s5 + $0x318] sm:$0xff] }
 0x7ba   : > { %3491 = vmatpush.msra.mxu3 %v6495_v47  ;;  %v3401_v56 = vsel %vm10494_vm10, %v6494_v8, %v6495_v47  ;;  %vm10509_vm10 = vmmov %vm10488_vm2  ;;  %v5946_v47 = vld [vmem:[%s10090_s5 + $0x310] sm:$0xff]  ;;  %v5957_v8 = vld [vmem:[%s10090_s5 + $0x368] sm:$0xff] }
 0x7bb   : > { %3639 = vmatpush.msra.mxu1 %v6530_v1  ;;  %5977 = vmatmul.msk.f32.gmra.mxu3 %vm10496_vm3, %v5937_v42  ;;  %v3553_v28 = vsel %vm10497_vm4, %v6529_v0, %v6530_v1  ;;  %vm10511_vm3 = vmmov %vm10508_vm0  ;;  %v5950_v1 = vld [vmem:[%s10090_s5 + $0x330] sm:$0xff]  ;;  %v5951_v0 = vld [vmem:[%s10090_s5 + $0x338] sm:$0xff] }
 0x7bc   : > { %3450 = vmatpush.msra.mxu2 %v3401_v56  ;;  %3598 = vmatpush.msra.mxu0 %v3553_v28  ;;  %v3551_v17 = vsel %vm10511_vm3, %v6539_v49, %v6540_v45  ;;  %vm10512_vm4 = vmmov %vm10488_vm2  ;;  %v5960_v56 = vld [vmem:[%s10090_s5 + $0x380] sm:$0xff] }
 0x7bd   : > { %5969 = vmatmul.msk.f32.gmra.mxu2 %vm10498_vm12, %v5937_v42  ;;  %3492 = vmatpush.msra.mxu3 %v6505_v16  ;;  %vm10513_vm12 = vmmov %vm10488_vm2  ;;  %v5958_v42 = vld [vmem:[%s10090_s5 + $0x370] sm:$0xff]  ;;  %v5959_v16 = vld [vmem:[%s10090_s5 + $0x378] sm:$0xff] }
 0x7be   : > { %3451 = vmatpush.msra.mxu2 %v3400_v26  ;;  %5990 = vmatmul.msk.f32.gmra.mxu0 %vm10509_vm10, %v5934_v44 }
 0x7bf   : > { %3789 = vmatpush.msrb.mxu3 %v6525_v27  ;;  %v6508_v32 = vpop.permute.xlu0 %6507  ;;  %5998 = vmatmul.msk.f32.gmra.mxu1 %vm10513_vm12, %v5934_v44  ;;  %v8839_v27 = vpop.f32.mrf.mxu1 }
 0x7c0   : > { %3748 = vmatpush.msrb.mxu2 %v3703_v37  ;;  %v6510_v43 = vunpack.i.h.bf16 %v6508_v32  ;;  %v6509_v50 = vunpack.i.l.bf16 %v6508_v32  ;;  %v6533_v22 = vpop.permute.xlu1 %6532  ;;  %10554 = vst [vmem:[#allocation10_spill] sm:$0xff] %v8839_v27  ;;  %v5961_v32 = vld [vmem:[%s10090_s5 + $0x388] sm:$0xff] }
 0x7c1   : > { %v6535_v39 = vunpack.i.h.bf16 %v6533_v22  ;;  %v6534_v36 = vunpack.i.l.bf16 %v6533_v22 }
 0x7c2   : > { %3790 = vmatpush.msrb.mxu3 %v6510_v43  ;;  %v3702_v54 = vsel %vm10502_vm6, %v6509_v50, %v6510_v43  ;;  %vm10517_vm6 = vmmov %vm10488_vm2  ;;  %v8858_v43 = vpop.f32.mrf.mxu0 }
 0x7c3   : > { %5978 = vmatmul.msk.f32.gmra.mxu3 %vm10488_vm2, %v5938_v57  ;;  %3749 = vmatpush.msrb.mxu2 %v3702_v54  ;;  %v3700_v59 = vsel %vm10506_vm7, %v6534_v36, %v6535_v39  ;;  %vm10521_vm7 = vmmov %vm10488_vm2  ;;  %10559 = vst [vmem:[#allocation37_spill] sm:$0xff] %v8858_v43 }
 0x7c4   : > { %3791 = vmatpush.msrb.mxu3 %v6515_v30 }
 0x7c5   : > { %5970 = vmatmul.msk.f32.gmra.mxu2 %vm10504_vm5, %v5938_v57  ;;  %vm10519_vm5 = vmmov %vm10488_vm2 }
 0x7c6   : > { %3750 = vmatpush.msrb.mxu2 %v3701_v18  ;;  %3792 = vmatpush.msrb.mxu3 %v6535_v39  ;;  %v5963_v39 = vld [vmem:[%s10090_s5 + $0x398] sm:$0xff] }
 0x7c7   : > { %v6518_v23 = vpop.permute.xlu0 %6517  ;;  %5991 = vmatmul.msk.f32.gmra.mxu0 %vm10515_vm8, %v5935_v14  ;;  %5999 = vmatmul.msk.f32.gmra.mxu1 %vm10518_vm13, %v5935_v14  ;;  %v8849_v28 = vpop.f32.mrf.mxu1 }
 0x7c8   : > { %v6520_v2 = vunpack.i.h.bf16 %v6518_v23  ;;  %v6519_v20 = vunpack.i.l.bf16 %v6518_v23  ;;  %3751 = vmatpush.msrb.mxu2 %v3700_v59  ;;  %10558 = vst [vmem:[#allocation6_spill] sm:$0xff] %v8849_v28  ;;  %v5964_v59 = vld [vmem:[%s10090_s5 + $0x3a0] sm:$0xff] }
 0x7ca   : > { %3640 = vmatpush.msra.mxu1 %v6520_v2  ;;  %v3552_v21 = vsel %vm10508_vm0, %v6519_v20, %v6520_v2  ;;  %vm10523_vm0 = vmmov %vm10488_vm2  ;;  %v8871_v30 = vpop.f32.mrf.mxu0  ;;  %v5965_v20 = vld [vmem:[%s10090_s5 + $0x3a8] sm:$0xff] }
 0x7cb   : > { %5979 = vmatmul.msk.f32.gmra.mxu3 %vm10510_vm9, %v5939_v46  ;;  %3599 = vmatpush.msra.mxu0 %v3552_v21  ;;  %vm10524_vm10 = vmmov %vm10523_vm0  ;;  %10563 = vst [vmem:[#allocation33_spill] sm:$0xff] %v8871_v30 }
 0x7cc   : > { %3641 = vmatpush.msra.mxu1 %v6540_v45  ;;  %vm10525_vm9 = vmmov %vm10523_vm0 }
 0x7cd   : > { %5971 = vmatmul.msk.f32.gmra.mxu2 %vm10512_vm4, %v5939_v46  ;;  %3600 = vmatpush.msra.mxu0 %v3551_v17  ;;  %vm10526_vm3 = vmmov %vm10523_vm0 }
 0x7ce   : > { %vm10527_vm4 = vmmov %vm10523_vm0 }
 0x7cf   : > { %v6543_v5 = vpop.permute.xlu0 %6542  ;;  %vm10528_vm12 = vmmov %vm10523_vm0  ;;  %v8864_v22 = vpop.f32.mrf.mxu1 }
 0x7d0   : > { %v6545_v10 = vunpack.i.h.bf16 %v6543_v5  ;;  %v6544_v55 = vunpack.i.l.bf16 %v6543_v5  ;;  %vm10530_vm8 = vmmov %vm10523_vm0  ;;  %10562 = vst [vmem:[#allocation11_spill] sm:$0xff] %v8864_v22  ;;  %v5966_v5 = vld [vmem:[%s10090_s5 + $0x3b0] sm:$0xff] }
 0x7d1   : > { %vm10533_vm13 = vmmov %vm10523_vm0 }
 0x7d2   : > { %3642 = vmatpush.msra.mxu1 %v6545_v10  ;;  %v3550_v33 = vsel %vm10514_vm1, %v6544_v55, %v6545_v10  ;;  %vm10529_vm1 = vmmov %vm10523_vm0  ;;  %v8885_v9 = vpop.f32.mrf.mxu0 }
 0x7d3   : > { %5980 = vmatmul.msk.f32.gmra.mxu3 %vm10516_vm14, %v5940_v29  ;;  %3601 = vmatpush.msra.mxu0 %v3550_v33  ;;  %vm10531_vm14 = vmmov %vm10523_vm0  ;;  %10568 = vst [vmem:[#allocation34_spill] sm:$0xff] %v8885_v9  ;;  %v5967_v33 = vld [vmem:[%s10090_s5 + $0x3b8] sm:$0xff] }
 0x7d4   : > { %6016 = vmatmul.msk.f32.vlgmr.msra.gmra.mxu0 %vm10519_vm5, %v5952_v25  ;;  %6024 = vmatmul.msk.f32.vlgmr.msra.gmra.mxu1 %vm10521_vm7, %v5952_v25  ;;  %vm10535_vm5 = vmmov %vm10523_vm0 }
 0x7d5   : > { %5972 = vmatmul.msk.f32.gmra.mxu2 %vm10517_vm6, %v5940_v29  ;;  %vm10532_vm6 = vmmov %vm10523_vm0 }
 0x7d6   : > { %vm10537_vm7 = vmmov %vm10523_vm0 }
 0x7d7   : > { %v8882_v36 = vpop.f32.mrf.mxu1 }
 0x7d8   : > { %10566 = vst [vmem:[#allocation35_spill] sm:$0xff] %v8882_v36 }
 0x7da   : > { %v8901_v49 = vpop.f32.mrf.mxu0 }
 0x7db   : > { %5981 = vmatmul.msk.f32.gmra.mxu3 %vm10488_vm2, %v5941_v6  ;;  %vm10534_vm2 = vmmov %vm10523_vm0 }
 0x7dc   : > { %6017 = vmatmul.msk.f32.gmra.mxu0 %vm10523_vm0, %v5953_v24  ;;  %6025 = vmatmul.msk.f32.gmra.mxu1 %vm10525_vm9, %v5953_v24  ;;  %vm10540_vm9 = vmmov %vm10523_vm0 }
 0x7dd   : > { %5973 = vmatmul.msk.f32.gmra.mxu2 %vm10520_vm15, %v5941_v6  ;;  %vm10536_vm15 = vmmov %vm10523_vm0 }
 0x7df   : > { %v8896_v44 = vpop.f32.mrf.mxu1 }
 0x7e2   : > { %v8919_v14 = vpop.f32.mrf.mxu0 }
 0x7e3   : > { %5982 = vmatmul.msk.f32.gmra.mxu3 %vm10522_vm11, %v5942_v31  ;;  %vm10538_vm11 = vmmov %vm10523_vm0 }
 0x7e4   : > { %6018 = vmatmul.msk.f32.gmra.mxu0 %vm10527_vm4, %v5954_v12  ;;  %6026 = vmatmul.msk.f32.gmra.mxu1 %vm10529_vm1, %v5954_v12  ;;  %vm10542_vm4 = vmmov %vm10523_vm0 }
 0x7e5   : > { %5974 = vmatmul.msk.f32.gmra.mxu2 %vm10524_vm10, %v5942_v31  ;;  %vm10539_vm10 = vmmov %vm10523_vm0 }
 0x7e6   : > { %vm10544_vm1 = vmmov %vm10523_vm0 }
 0x7e7   : > { %v8910_v46 = vpop.f32.mrf.mxu1 }
 0x7ea   : > { %v8932_v6 = vpop.f32.mrf.mxu0 }
 0x7eb   : > { %5983 = vmatmul.msk.f32.gmra.mxu3 %vm10526_vm3, %v5943_v35  ;;  %vm10541_vm3 = vmmov %vm10523_vm0 }
 0x7ec   : > { %6019 = vmatmul.msk.f32.gmra.mxu0 %vm10531_vm14, %v5955_v13  ;;  %6027 = vmatmul.msk.f32.gmra.mxu1 %vm10533_vm13, %v5955_v13  ;;  %vm10546_vm14 = vmmov %vm10523_vm0 }
 0x7ed   : > { %5975 = vmatmul.msk.f32.gmra.mxu2 %vm10528_vm12, %v5943_v35  ;;  %vm10543_vm12 = vmmov %vm10523_vm0 }
 0x7ee   : > { %vm10548_vm13 = vmmov %vm10523_vm0 }
 0x7ef   : > { %v8925_v55 = vpop.f32.mrf.mxu1 }
 0x7f2   : > { %v8942_v35 = vpop.f32.mrf.mxu0 }
 0x7f3   : > { %6008 = vmatmul.msk.f32.vlgmr.msra.gmra.mxu3 %vm10530_vm8, %v5944_v61  ;;  %vm10545_vm8 = vmmov %vm10523_vm0  ;;  %10580 = vst [vmem:[#allocation23_spill] sm:$0xff] %v8942_v35  ;;  %v9008_v35 = vpop.permute.xlu2 %3875 }
 0x7f4   : > { %6020 = vmatmul.msk.f32.gmra.mxu0 %vm10535_vm5, %v5956_v41  ;;  %6028 = vmatmul.msk.f32.gmra.mxu1 %vm10537_vm7, %v5956_v41  ;;  %vm10550_vm5 = vmmov %vm10523_vm0 }
 0x7f5   : > { %6000 = vmatmul.msk.f32.vlgmr.msra.gmra.mxu2 %vm10532_vm6, %v5944_v61  ;;  %vm10547_vm6 = vmmov %vm10523_vm0 }
 0x7f6   : > { %vm10552_vm7 = vmmov %vm10523_vm0 }
 0x7f7   : > { %v8940_v24 = vpop.f32.mrf.mxu1 }
 0x7f8   : > { %10579 = vst [vmem:[#allocation39_spill] sm:$0xff] %v8940_v24 }
 0x7fa   : > { %v3331_v41 = vpop.f32.mrf.mxu0 }
 0x7fb   : > { %6009 = vmatmul.msk.f32.gmra.mxu3 %vm10534_vm2, %v5945_v48  ;;  %vm10549_vm2 = vmmov %vm10523_vm0 }
 0x7fc   : > { %6021 = vmatmul.msk.f32.gmra.mxu0 %vm10523_vm0, %v5957_v8  ;;  %6029 = vmatmul.msk.f32.gmra.mxu1 %vm10540_vm9, %v5957_v8  ;;  %vm10557_vm9 = vmmov %vm10523_vm0 }
 0x7fd   : > { %6001 = vmatmul.msk.f32.gmra.mxu2 %vm10536_vm15, %v5945_v48  ;;  %vm10551_vm15 = vmmov %vm10523_vm0 }
 0x803   : > { %6010 = vmatmul.msk.f32.gmra.mxu3 %vm10538_vm11, %v5946_v47  ;;  %vm10553_vm11 = vmmov %vm10523_vm0 }
 0x804   : > { %6022 = vmatmul.msk.f32.gmra.mxu0 %vm10542_vm4, %v5958_v42  ;;  %6030 = vmatmul.msk.f32.gmra.mxu1 %vm10544_vm1, %v5958_v42  ;;  %vm10561_vm4 = vmmov %vm10523_vm0 }
 0x805   : > { %6002 = vmatmul.msk.f32.gmra.mxu2 %vm10539_vm10, %v5946_v47  ;;  %vm10556_vm10 = vmmov %vm10523_vm0 }
 0x806   : > { %vm10565_vm1 = vmmov %vm10523_vm0 }
 0x80b   : > { %6011 = vmatmul.msk.f32.gmra.mxu3 %vm10541_vm3, %v5947_v3  ;;  %vm10560_vm3 = vmmov %vm10523_vm0 }
 0x80c   : > { %6023 = vmatmul.msk.f32.gmra.mxu0 %vm10546_vm14, %v5959_v16  ;;  %6031 = vmatmul.msk.f32.gmra.mxu1 %vm10548_vm13, %v5959_v16  ;;  %vm10569_vm14 = vmmov %vm10523_vm0 }
 0x80d   : > { %6003 = vmatmul.msk.f32.gmra.mxu2 %vm10543_vm12, %v5947_v3  ;;  %vm10564_vm12 = vmmov %vm10523_vm0 }
 0x80e   : > { %vm10573_vm13 = vmmov %vm10523_vm0 }
 0x813   : > { %6012 = vmatmul.msk.f32.gmra.mxu3 %vm10545_vm8, %v5948_v58  ;;  %vm10567_vm8 = vmmov %vm10523_vm0 }
 0x815   : > { %6004 = vmatmul.msk.f32.gmra.mxu2 %vm10547_vm6, %v5948_v58  ;;  %vm10572_vm6 = vmmov %vm10523_vm0 }
 0x81b   : > { %6013 = vmatmul.msk.f32.gmra.mxu3 %vm10549_vm2, %v5949_v53  ;;  %vm10574_vm2 = vmmov %vm10523_vm0 }
 0x81d   : > { %6005 = vmatmul.msk.f32.gmra.mxu2 %vm10550_vm5, %v5949_v53  ;;  %vm10575_vm5 = vmmov %vm10523_vm0 }
 0x820   : > { %v3372_v13 = vpop.f32.mrf.mxu1 }
 0x823   : > { %6014 = vmatmul.msk.f32.gmra.mxu3 %vm10551_vm15, %v5950_v1  ;;  %vm10576_vm15 = vmmov %vm10523_vm0 }
 0x825   : > { %6006 = vmatmul.msk.f32.gmra.mxu2 %vm10552_vm7, %v5950_v1  ;;  %vm10577_vm7 = vmmov %vm10523_vm0 }
 0x828   : > { %v3375_v8 = vpop.f32.mrf.mxu1 }
 0x82b   : > { %6015 = vmatmul.msk.f32.gmra.mxu3 %vm10553_vm11, %v5951_v0  ;;  %vm10578_vm11 = vmmov %vm10523_vm0 }
 0x82d   : > { %6007 = vmatmul.msk.f32.gmra.mxu2 %vm10523_vm0, %v5951_v0 }
 0x832   : > { %v3334_v58 = vpop.f32.mrf.mxu0 }
 0x833   : > { %6040 = vmatmul.msk.f32.vlgmr.msrb.gmra.mxu3 %vm10556_vm10, %v5960_v56 }
 0x835   : > { %6032 = vmatmul.msk.f32.vlgmr.msrb.gmra.mxu2 %vm10557_vm9, %v5960_v56 }
 0x836   : > { %v8851_v26 = vpop.f32.mrf.mxu3 }
 0x837   : > { %v8853_v37 = vpop.f32.mrf.mxu2 }
 0x83b   : > { %6041 = vmatmul.msk.f32.gmra.mxu3 %vm10560_vm3, %v5961_v32  ;;  %v8960_v0 = vpop.f32.mrf.mxu0 }
 0x83c   : > { %v3378_v53 = vpop.f32.mrf.mxu1 }
 0x83d   : > { %6033 = vmatmul.msk.f32.gmra.mxu2 %vm10561_vm4, %v5961_v32 }
 0x83e   : > { %v8862_v50 = vpop.f32.mrf.mxu3 }
 0x840   : > { %v8866_v57 = vpop.f32.mrf.mxu2 }
 0x843   : > { %6042 = vmatmul.msk.f32.gmra.mxu3 %vm10564_vm12, %v5962_v63 }
 0x845   : > { %6034 = vmatmul.msk.f32.gmra.mxu2 %vm10565_vm1, %v5962_v63  ;;  %v8962_v63 = vpop.f32.mrf.mxu1 }
 0x846   : > { %v8875_v15 = vpop.f32.mrf.mxu3 }
 0x848   : > { %v8877_v54 = vpop.f32.mrf.mxu2 }
 0x84b   : > { %6043 = vmatmul.msk.f32.gmra.mxu3 %vm10567_vm8, %v5963_v39 }
 0x84d   : > { %6035 = vmatmul.msk.f32.gmra.mxu2 %vm10569_vm14, %v5963_v39  ;;  %v8964_v39 = vpop.f32.mrf.mxu0 }
 0x84e   : > { %v8888_v18 = vpop.f32.mrf.mxu3 }
 0x84f   : > { %10570 = vst [vmem:[#allocation36_spill] sm:$0xff] %v8888_v18 }
 0x850   : > { %v8890_v23 = vpop.f32.mrf.mxu2 }
 0x851   : > { %10571 = vst [vmem:[#allocation38_spill] sm:$0xff] %v8890_v23 }
 0x853   : > { %6044 = vmatmul.msk.f32.gmra.mxu3 %vm10572_vm6, %v5964_v59 }
 0x855   : > { %6036 = vmatmul.msk.f32.gmra.mxu2 %vm10573_vm13, %v5964_v59 }
 0x856   : > { %v8899_v45 = vpop.f32.mrf.mxu3 }
 0x858   : > { %v8903_v2 = vpop.f32.mrf.mxu2 }
 0x85b   : > { %6045 = vmatmul.msk.f32.gmra.mxu3 %vm10574_vm2, %v5965_v20 }
 0x85d   : > { %6037 = vmatmul.msk.f32.gmra.mxu2 %vm10575_vm5, %v5965_v20 }
 0x85e   : > { %v8912_v21 = vpop.f32.mrf.mxu3 }
 0x860   : > { %v8914_v17 = vpop.f32.mrf.mxu2 }
 0x863   : > { %6046 = vmatmul.msk.f32.gmra.mxu3 %vm10576_vm15, %v5966_v5 }
 0x865   : > { %6038 = vmatmul.msk.f32.gmra.mxu2 %vm10577_vm7, %v5966_v5  ;;  %v8966_v5 = vpop.f32.mrf.mxu1 }
 0x866   : > { %v8923_v10 = vpop.f32.mrf.mxu3 }
 0x868   : > { %v8927_v29 = vpop.f32.mrf.mxu2 }
 0x86b   : > { %6047 = vmatmul.msk.f32.gmra.mxu3 %vm10578_vm11, %v5967_v33 }
 0x86d   : > { %6039 = vmatmul.msk.f32.gmra.mxu2 %vm10523_vm0, %v5967_v33  ;;  %v8968_v33 = vpop.f32.mrf.mxu0  ;;  %v8972_v43 = vpop.f32.mrf.mxu1 }
 0x86e   : > { %v8936_v25 = vpop.f32.mrf.mxu3 }
 0x870   : > { %v8938_v31 = vpop.f32.mrf.mxu2 }
 0x875   : > { %v8976_v22 = vpop.f32.mrf.mxu0  ;;  %v8982_v30 = vpop.f32.mrf.mxu1 }
 0x876   : > { %v8944_v12 = vpop.f32.mrf.mxu3  ;;  %10586 = vst [vmem:[#allocation13_spill] sm:$0xff] %v8982_v30 }
 0x878   : > { %v8946_v61 = vpop.f32.mrf.mxu2 }
 0x87d   : > { %v8986_v51 = vpop.f32.mrf.mxu0  ;;  %v8992_v34 = vpop.f32.mrf.mxu1 }
 0x87e   : > { %v8948_v48 = vpop.f32.mrf.mxu3  ;;  %10587 = vst [vmem:[#allocation15_spill] sm:$0xff] %v8986_v51  ;;  %v3373_v51 = vadd.f32 %v3372_v13, %v8899_v45  ;;  %v3335_v45 = vadd.f32 %v3334_v58, %v8914_v17 }
 0x87f   : > { %10589 = vst [vmem:[#allocation41_spill] sm:$0xff] %v8992_v34 }
 0x880   : > { %v8950_v47 = vpop.f32.mrf.mxu2 }
 0x885   : > { %v8994_v60 = vpop.f32.mrf.mxu0  ;;  %v3656_v38 = vpop.f32.mrf.mxu1 }
 0x886   : > { %v8952_v3 = vpop.f32.mrf.mxu3  ;;  %10590 = vst [vmem:[#allocation42_spill] sm:$0xff] %v8994_v60 }
 0x887   : > { %10581 = vst [vmem:[#allocation20_spill] sm:$0xff] %v8952_v3 }
 0x888   : > { %v8954_v42 = vpop.f32.mrf.mxu2 }
 0x889   : > { %10582 = vst [vmem:[#allocation21_spill] sm:$0xff] %v8954_v42  ;;  %v3332_v42 = vadd.f32 %v3331_v41, %v8903_v2  ;;  %v3361_v41 = vadd.f32 %v8896_v44, %v8851_v26 }
 0x88d   : > { %v3615_v11 = vpop.f32.mrf.mxu0 }
 0x88e   : > { %v8956_v16 = vpop.f32.mrf.mxu3 }
 0x88f   : > { %10583 = vst [vmem:[#allocation16_spill] sm:$0xff] %v8956_v16 }
 0x890   : > { %v8958_v1 = vpop.f32.mrf.mxu2 }
 0x891   : > { %10584 = vst [vmem:[#allocation24_spill] sm:$0xff] %v8958_v1  ;;  %v9000_v1 = vpop.permute.xlu1 %3880 }
 0x892   : > { %10593 = vst [vmem:[#allocation45_spill] sm:$0xff] %v9000_v1 }
 0x895   : > { %v3618_v24 = vpop.f32.mrf.mxu0 }
 0x896   : > { %v3506_v56 = vpop.f32.mrf.mxu3 }
 0x897   : > { %v3527_v3 = vadd.f32 %v3506_v56, %v3373_v51 }
 0x898   : > { %v3465_v32 = vpop.f32.mrf.mxu2 }
 0x899   : > { %v3526_v34 = vadd.f32 %v3465_v32, %v3332_v42  ;;  %v3677_v60 = vadd.f32 %v3656_v38, %v3527_v3  ;;  %v3866_v18 = vpop.permute.xlu1 %3865  ;;  %v9014_v42 = vpop.permute.xlu2 %3860 }
 0x89e   : > { %v3509_v59 = vpop.f32.mrf.mxu3 }
 0x8a0   : > { %v3468_v20 = vpop.f32.mrf.mxu2 }
 0x8a1   : > { %v3528_v2 = vadd.f32 %v3468_v20, %v3335_v45 }
 0x8a6   : > { %v3512_v40 = vpop.f32.mrf.mxu3 }
 0x8a8   : > { %v8970_v27 = vpop.f32.mrf.mxu2 }
 0x8ae   : > { %v8974_v28 = vpop.f32.mrf.mxu3 }
 0x8b0   : > { %v8978_v36 = vpop.f32.mrf.mxu2 }
 0x8b1   : > { %10585 = vst [vmem:[#allocation14_spill] sm:$0xff] %v8978_v36 }
 0x8b6   : > { %v8980_v9 = vpop.f32.mrf.mxu3 }
 0x8b8   : > { %v8984_v52 = vpop.f32.mrf.mxu2 }
 0x8be   : > { %v8988_v4 = vpop.f32.mrf.mxu3 }
 0x8c0   : > { %v8990_v7 = vpop.f32.mrf.mxu2 }
 0x8c1   : > { %10588 = vst [vmem:[#allocation40_spill] sm:$0xff] %v8990_v7  ;;  %v3676_v7 = vadd.f32 %v3615_v11, %v3526_v34  ;;  %v3320_v11 = vadd.f32 %v8901_v49, %v8853_v37  ;;  %v3519_v34 = vadd.f32 %v8944_v12, %v3361_v41  ;;  %v3338_v37 = vadd.f32 %v8960_v0, %v8927_v29  ;;  %v3621_v49 = vpop.f32.mrf.mxu0  ;;  %v3851_v41 = vpop.permute.xlu1 %3850 }
 0x8c6   : > { %v8996_v62 = vpop.f32.mrf.mxu3 }
 0x8c7   : > { %10591 = vst [vmem:[#allocation43_spill] sm:$0xff] %v8996_v62  ;;  %v3659_v62 = vpop.f32.mrf.mxu1 }
 0x8c8   : > { %v8998_v19 = vpop.f32.mrf.mxu2 }
 0x8c9   : > { %10592 = vst [vmem:[#allocation44_spill] sm:$0xff] %v8998_v19  ;;  %v3376_v19 = vadd.f32 %v3375_v8, %v8912_v21  ;;  %v3678_v21 = vadd.f32 %v3618_v24, %v3528_v2  ;;  %v3323_v24 = vadd.f32 %v8919_v14, %v8866_v57  ;;  %v3669_v8 = vadd.f32 %v8966_v5, %v3519_v34  ;;  %v3846_v5 = vpop.permute.xlu2 %3845 }
 0x8ca   : > { %v3341_v57 = vadd.f32 %v8964_v39, %v8938_v31  ;;  %v3382_v14 = vadd.f32 %v8962_v63, %v8936_v25  ;;  %v3367_v63 = vadd.f32 %v8925_v55, %v8875_v15  ;;  %v10603_v55 = vld [vmem:[#allocation21_spill] sm:$0xff] }
 0x8cb   : > { %v3529_v13 = vadd.f32 %v3509_v59, %v3376_v19  ;;  %v3871_v19 = vpop.permute.xlu0 %3870  ;;  %v3520_v29 = vadd.f32 %v8950_v47, %v3323_v24 }
 0x8cd   : > { %v3679_v38 = vadd.f32 %v3659_v62, %v3529_v13  ;;  %v3518_v62 = vadd.f32 %v8946_v61, %v3320_v11  ;;  %v10596_v13 = vld [vmem:[#allocation14_spill] sm:$0xff]  ;;  %v3624_v11 = vpop.f32.mrf.mxu0 }
 0x8ce   : > { %v9002_v30 = vpop.f32.mrf.mxu3  ;;  %v3532_v2 = vadd.f32 %v10596_v13, %v3341_v57 }
 0x8cf   : > { %10594 = vst [vmem:[#allocation46_spill] sm:$0xff] %v9002_v30 }
 0x8d0   : > { %v9005_v16 = vpop.f32.mrf.mxu2 }
 0x8d1   : > { %10595 = vst [vmem:[#allocation47_spill] sm:$0xff] %v9005_v16 }
 0x8d6   : > { %v3806_v23 = vpop.f32.mrf.mxu3 }
 0x8d7   : > { %v3827_v1 = vadd.f32 %v3806_v23, %v3677_v60  ;;  %v3379_v60 = vadd.f32 %v3378_v53, %v8923_v10 }
 0x8d8   : > { %v3765_v30 = vpop.f32.mrf.mxu2 }
 0x8d9   : > { %v3892_v16 = vadd.f32 %v3866_v18, %v3827_v1  ;;  %v3826_v36 = vadd.f32 %v3765_v30, %v3676_v7  ;;  %v3531_v26 = vadd.f32 %v3512_v40, %v3379_v60  ;;  %v3819_v1 = vadd.f32 %v8980_v9, %v3669_v8  ;;  %v10599_v60 = vld [vmem:[#allocation40_spill] sm:$0xff] }
 0x8da   : > { %v3670_v9 = vadd.f32 %v8976_v22, %v3520_v29 }
 0x8db   : > { %v3891_v51 = vadd.f32 %v3866_v18, %v3826_v36  ;;  %v3908_v3 = vsub.f32 0.0, %v3892_v16  ;;  %v3364_v36 = vadd.f32 %v8910_v46, %v8862_v50  ;;  %v3662_v18 = vpop.f32.mrf.mxu1  ;;  %v3530_v50 = vadd.f32 %v8970_v27, %v3338_v37 }
 0x8dc   : > { %v3668_v16 = vadd.f32 %v8968_v33, %v3518_v62  ;;  %v3681_v53 = vadd.f32 %v3662_v18, %v3531_v26  ;;  %v3533_v33 = vadd.f32 %v8974_v28, %v3382_v14  ;;  %v3884_v39 = vadd.f32 %v3846_v5, %v3819_v1  ;;  %v10608_v14 = vld [vmem:[#allocation15_spill] sm:$0xff] }
 0x8dd   : > { %v3907_v7 = vsub.f32 0.0, %v3891_v51  ;;  %v3917_v17 = vmul.f32 1.442695, %v3908_v3  ;;  %v3521_v58 = vadd.f32 %v8948_v48, %v3364_v36  ;;  %v3680_v59 = vadd.f32 %v3621_v49, %v3530_v50  ;;  %v10604_v49 = vld [vmem:[#allocation16_spill] sm:$0xff] }
 0x8de   : > { %v3809_v23 = vpop.f32.mrf.mxu3  ;;  %v3818_v48 = vadd.f32 %v8984_v52, %v3668_v16  ;;  %v3326_v52 = vadd.f32 %v8932_v6, %v8877_v54  ;;  %v3820_v34 = vadd.f32 %v10599_v60, %v3670_v9  ;;  %v10601_v54 = vld [vmem:[#allocation23_spill] sm:$0xff] }
 0x8df   : > { %v3829_v30 = vadd.f32 %v3809_v23, %v3679_v38  ;;  %v3915_v46 = vmul.f32 1.442695, %v3907_v7  ;;  %6722 = vpow2.f32 %v3917_v17  ;;  %v3671_v27 = vadd.f32 %v8972_v43, %v3521_v58  ;;  %v10598_v38 = vld [vmem:[#allocation39_spill] sm:$0xff]  ;;  %v10602_v7 = vld [vmem:[#allocation20_spill] sm:$0xff] }
 0x8e0   : > { %v3768_v44 = vpop.f32.mrf.mxu2  ;;  %v3883_v51 = vadd.f32 %v3846_v5, %v3818_v48  ;;  %v3523_v15 = vadd.f32 %v10602_v7, %v3367_v63  ;;  %v3885_v8 = vadd.f32 %v3851_v41, %v3820_v34  ;;  %v10609_v48 = vld [vmem:[#allocation41_spill] sm:$0xff]  ;;  %v10613_v63 = vld [vmem:[#allocation46_spill] sm:$0xff] }
 0x8e1   : > { %v3894_v10 = vadd.f32 %v3871_v19, %v3829_v30  ;;  %v3828_v12 = vadd.f32 %v3768_v44, %v3678_v21  ;;  %6724 = vpow2.f32 %v3915_v46  ;;  %v3821_v45 = vadd.f32 %v8988_v4, %v3671_v27  ;;  %v10597_v4 = vld [vmem:[#allocation36_spill] sm:$0xff]  ;;  %v10600_v21 = vld [vmem:[#allocation38_spill] sm:$0xff]  ;;  %v10605_v46 = vld [vmem:[#allocation13_spill] sm:$0xff] }
 0x8e2   : > { %v3370_v3 = vadd.f32 %v10598_v38, %v10597_v4  ;;  %v3329_v6 = vadd.f32 %v10601_v54, %v10600_v21  ;;  %v3522_v30 = vadd.f32 %v10603_v55, %v3326_v52 }
 0x8e3   : > { %v3910_v40 = vsub.f32 0.0, %v3894_v10  ;;  %v3893_v61 = vadd.f32 %v3871_v19, %v3828_v12  ;;  %v3665_v22 = vpop.f32.mrf.mxu1  ;;  %v3886_v36 = vadd.f32 %v3851_v41, %v3821_v45  ;;  %v3682_v10 = vadd.f32 %v3624_v11, %v3532_v2  ;;  %v10614_v41 = vld [vmem:[#allocation47_spill] sm:$0xff] }
 0x8e4   : > { %v3683_v26 = vadd.f32 %v3665_v22, %v3533_v33  ;;  %v3525_v17 = vadd.f32 %v10604_v49, %v3370_v3  ;;  %v3672_v27 = vadd.f32 %v10608_v14, %v3522_v30 }
 0x8e5   : > { %v3921_v0 = vmul.f32 1.442695, %v3910_v40  ;;  %v3909_v56 = vsub.f32 0.0, %v3893_v61  ;;  %v6723_v28 = vpop.eup %6722  ;;  %v3673_v40 = vadd.f32 %v10605_v46, %v3523_v15  ;;  %v10606_v61 = vld [vmem:[#allocation24_spill] sm:$0xff] }
 0x8e6   : > { %v3812_v32 = vpop.f32.mrf.mxu3  ;;  %v9057_v12 = vadd.f32 1.0, %v6723_v28  ;;  %v3524_v16 = vadd.f32 %v10606_v61, %v3329_v6  ;;  %v3856_v28 = vpop.permute.xlu0 %3855 }
 0x8e7   : > { %v3919_v47 = vmul.f32 1.442695, %v3909_v56  ;;  %v3831_v20 = vadd.f32 %v3812_v32, %v3681_v53  ;;  %6726 = vpow2.f32 %v3921_v0  ;;  %v6725_v62 = vpop.eup %6724  ;;  %v10607_v0 = vld [vmem:[#allocation45_spill] sm:$0xff]  ;;  %v3675_v32 = vadd.f32 %v10609_v48, %v3525_v17 }
 0x8e8   : > { %v3771_v31 = vpop.f32.mrf.mxu2  ;;  %v9061_v29 = vadd.f32 1.0, %v6725_v62  ;;  %v3965_v62 = vand.u32 2147483648, %v9057_v12  ;;  %vm3959_vm10 = vweird.f32 %v9057_v12 }
 0x8e9   : > { %6728 = vpow2.f32 %v3919_v47  ;;  %v3896_v43 = vadd.f32 %v9008_v35, %v3831_v20  ;;  %v3830_v25 = vadd.f32 %v3771_v31, %v3680_v59  ;;  %v10610_v20 = vld [vmem:[#allocation43_spill] sm:$0xff]  ;;  %v10611_v31 = vld [vmem:[#allocation42_spill] sm:$0xff]  ;;  %v3825_v13 = vadd.f32 %v10613_v63, %v3675_v32 }
 0x8ea   : > { %6730 = vtanh.f32 %v3884_v39  ;;  %v3823_v5 = vadd.f32 %v10610_v20, %v3673_v40  ;;  %v3674_v39 = vadd.f32 %v10611_v31, %v3524_v16  ;;  %v9132_v16 = vor.u32 1.1754944e-38, %v3965_v62 }
 0x8eb   : > { %v3912_v23 = vsub.f32 0.0, %v3896_v43  ;;  %v3895_v19 = vadd.f32 %v9008_v35, %v3830_v25  ;;  %6732 = vtanh.f32 %v3883_v51  ;;  %v10612_v43 = vld [vmem:[#allocation44_spill] sm:$0xff]  ;;  %v3890_v54 = vadd.f32 %v9014_v42, %v3825_v13 }
 0x8ec   : > { %v3822_v25 = vadd.f32 %v10612_v43, %v3672_v27  ;;  %v3824_v4 = vadd.f32 %v10614_v41, %v3674_v39  ;;  %v3888_v11 = vadd.f32 %v3856_v28, %v3823_v5 }
 0x8ed   : > { %v3925_v18 = vmul.f32 1.442695, %v3912_v23  ;;  %v3911_v44 = vsub.f32 0.0, %v3895_v19  ;;  %v6727_v37 = vpop.eup %6726 }
 0x8ee   : > { %v3815_v35 = vpop.f32.mrf.mxu3  ;;  %v9063_v1 = vadd.f32 1.0, %v6727_v37  ;;  %v3887_v23 = vadd.f32 %v3856_v28, %v3822_v25  ;;  %v3889_v7 = vadd.f32 %v9014_v42, %v3824_v4 }
 0x8ef   : > { %v6729_v24 = vpop.eup %6728  ;;  %6734 = vpow2.f32 %v3925_v18  ;;  %v3923_v58 = vmul.f32 1.442695, %v3911_v44  ;;  %v3833_v50 = vadd.f32 %v3815_v35, %v3683_v26  ;;  %v3963_v44 = vand.u32 2147483647, %v9057_v12 }
 0x8f0   : > { %6736 = vtanh.f32 %v3886_v36  ;;  %v3774_v53 = vpop.f32.mrf.mxu2  ;;  %v9069_v59 = vadd.f32 1.0, %v6729_v24  ;;  %v9071_v47 = vpop.eup %6730  ;;  %v3995_v17 = vand.u32 2147483648, %v9063_v1  ;;  %v3948_v35 = vand.u32 2147483647, %v9061_v29 }
 0x8f1   : > { %6738 = vpow2.f32 %v3923_v58  ;;  %v3898_v56 = vadd.f32 %v10607_v0, %v3833_v50  ;;  %v3832_v57 = vadd.f32 %v3774_v53, %v3682_v10  ;;  %v9075_v45 = vpop.eup %6732  ;;  %v3950_v53 = vand.u32 2147483648, %v9061_v29 }
 0x8f2   : > { %6740 = vrcp.f32 %v9057_v12  ;;  %vm3989_vm9 = vweird.f32 %v9063_v1  ;;  %v3978_v14 = vand.u32 2147483647, %v9069_v59  ;;  %v9145_v5 = vor.u32 1.1754944e-38, %v3995_v17 }
 0x8f3   : > { %6742 = vtanh.f32 %v3885_v8  ;;  %v3914_v9 = vsub.f32 0.0, %v3898_v56  ;;  %v3897_v33 = vadd.f32 %v10607_v0, %v3832_v57  ;;  %v3993_v57 = vand.u32 2147483647, %v9063_v1 }
 0x8f4   : > { %6744 = vrcp.f32 %v9061_v29  ;;  %v3980_v63 = vand.u32 2147483648, %v9069_v59  ;;  %vm9206_vm8 = vcmp.eq.f32.partialorder %v3963_v44, 8.507059e+37 }
 0x8f5   : > { %v6735_v52 = vpop.eup %6734  ;;  %6746 = vrcp.f32 %v9063_v1  ;;  %v3929_v2 = vmul.f32 1.442695, %v3914_v9  ;;  %v3913_v22 = vsub.f32 0.0, %v3897_v33  ;;  %vm9178_vm15 = vcmp.eq.f32.partialorder %v3993_v57, 8.507059e+37 }
 0x8f6   : > { %v9082_v51 = vpop.eup %6736  ;;  %6748 = vrcp.f32 %v9069_v59  ;;  %v9086_v38 = vadd.f32 1.0, %v6735_v52 }
 0x8f7   : > { %v6739_v3 = vpop.eup %6738  ;;  %6750 = vpow2.f32 %v3929_v2  ;;  %v3927_v60 = vmul.f32 1.442695, %v3913_v22 }
 0x8f8   : > { %v9088_v34 = vpop.eup %6740  ;;  %6752 = vrcp.f32 %v9086_v38  ;;  %v9091_v19 = vadd.f32 1.0, %v6739_v3  ;;  %v4023_v48 = vand.u32 2147483647, %v9086_v38  ;;  %v4025_v32 = vand.u32 2147483648, %v9086_v38 }
 0x8f9   : > { %v9093_v21 = vpop.eup %6742  ;;  %6754 = vpow2.f32 %v3927_v60  ;;  %v3955_v55 = vmul.f32 %v9088_v34, %v9057_v12  ;;  %vm3960_vm3 = vweird.f32 %v9088_v34  ;;  %vm4019_vm4 = vweird.f32 %v9086_v38 }
 0x8fa   : > { %v9096_v6 = vpop.eup %6744  ;;  %6756 = vrcp.f32 %v9091_v19  ;;  %v4010_v33 = vand.u32 2147483648, %v9091_v19  ;;  %v4008_v52 = vand.u32 2147483647, %v9091_v19  ;;  %vm4004_vm12 = vweird.f32 %v9091_v19  ;;  %vm9191_vm0 = vmor %vm3959_vm10, %vm3960_vm3 }
 0x8fb   : > { %v9100_v15 = vpop.eup %6746  ;;  %6758 = vtanh.f32 %v3888_v11  ;;  %v3956_v10 = vsub.f32 1.0, %v3955_v55  ;;  %v3940_v50 = vmul.f32 %v9096_v6, %v9061_v29  ;;  %vm9161_vm14 = vcmp.eq.f32.partialorder %v4023_v48, 8.507059e+37 }
 0x8fc   : > { %v9104_v30 = vpop.eup %6748  ;;  %6760 = vtanh.f32 %v3887_v23  ;;  %v3985_v42 = vmul.f32 %v9100_v15, %v9063_v1  ;;  %vm3990_vm1 = vweird.f32 %v9100_v15  ;;  %v4026_v41 = vor.u32 1.1754944e-38, %v4025_v32 }
 0x8fd   : > { %v6751_v36 = vpop.eup %6750  ;;  %6762 = vtanh.f32 %v3890_v54  ;;  %v3970_v58 = vmul.f32 %v9104_v30, %v9069_v59  ;;  %v3957_v39 = vmul.f32 %v9088_v34, %v3956_v10  ;;  %v3941_v43 = vsub.f32 1.0, %v3940_v50  ;;  %vm9200_vm7 = vmor %vm3989_vm9, %vm3990_vm1 }
 0x8fe   : > { %v9107_v26 = vpop.eup %6752  ;;  %6764 = vtanh.f32 %v3889_v7  ;;  %v9109_v18 = vadd.f32 1.0, %v6751_v36  ;;  %v3986_v56 = vsub.f32 1.0, %v3985_v42  ;;  %vm3975_vm6 = vweird.f32 %v9104_v30 }
 0x8ff   : > { %v6755_v37 = vpop.eup %6754  ;;  %v4015_v49 = vmul.f32 %v9107_v26, %v9086_v38  ;;  %v3971_v31 = vsub.f32 1.0, %v3970_v58  ;;  %v4011_v11 = vor.u32 1.1754944e-38, %v4010_v33  ;;  %v3958_v23 = vadd.f32 %v9088_v34, %v3957_v39 }
 0x900   : > { %v9118_v24 = vpop.eup %6756  ;;  %6766 = vrcp.f32 %v9109_v18  ;;  %v9121_v8 = vadd.f32 1.0, %v6755_v37  ;;  %v3987_v2 = vmul.f32 %v9100_v15, %v3986_v56  ;;  %v3942_v54 = vmul.f32 %v9096_v6, %v3941_v43 }
 0x901   : > { %v9127_v46 = vpop.eup %6758  ;;  %v4016_v40 = vsub.f32 1.0, %v4015_v49  ;;  %v4000_v61 = vmul.f32 %v9118_v24, %v9091_v19  ;;  %v3972_v60 = vmul.f32 %v9104_v30, %v3971_v31  ;;  %vm4020_vm2 = vweird.f32 %v9107_v26 }
 0x902   : > { %v9135_v0 = vpop.eup %6760  ;;  %6768 = vrcp.f32 %v9121_v8  ;;  %vm9174_vm5 = vcmp.eq.f32.partialorder %v4008_v52, 8.507059e+37  ;;  %v4053_v37 = vand.u32 2147483647, %v9109_v18  ;;  %v4055_v49 = vand.u32 2147483648, %v9109_v18  ;;  %vm9217_vm9 = vmor %vm4019_vm4, %vm4020_vm2 }
 0x903   : > { %v9141_v27 = vpop.eup %6762  ;;  %v4001_v20 = vsub.f32 1.0, %v4000_v61  ;;  %v4017_v25 = vmul.f32 %v9107_v26, %v4016_v40  ;;  %vm4005_vm11 = vweird.f32 %v9118_v24  ;;  %v3988_v17 = vadd.f32 %v9100_v15, %v3987_v2  ;;  %v10648_v61 = vld [vmem:[#allocation5_spill] sm:$0xff] }
 0x904   : > { %v9147_v9 = vpop.eup %6764  ;;  %vm4049_vm10 = vweird.f32 %v9109_v18  ;;  %v4038_v57 = vand.u32 2147483647, %v9121_v8  ;;  %v4040_v48 = vand.u32 2147483648, %v9121_v8  ;;  %v3973_v12 = vadd.f32 %v9104_v30, %v3972_v60  ;;  %vm9229_vm1 = vmor %vm4004_vm12, %vm4005_vm11 }
 0x905   : > { %v4002_v4 = vmul.f32 %v9118_v24, %v4001_v20  ;;  %v4018_v36 = vadd.f32 %v9107_v26, %v4017_v25  ;;  %vm4054_vm2 = vcmp.eq.f32.partialorder %v4053_v37, 8.507059e+37  ;;  %v4056_v38 = vor.u32 1.1754944e-38, %v4055_v49  ;;  %v4103_v37 = vpop.permute.xlu0 %4102  ;;  %v10650_v20 = vld [vmem:[#allocation32_spill] sm:$0xff] }
 0x906   : > { %v6767_v13 = vpop.eup %6766  ;;  %v3992_v33 = vsel %vm9200_vm7, %v9100_v15, %v3988_v17  ;;  %v3943_v31 = vadd.f32 %v9096_v6, %v3942_v54  ;;  %vm10631_vm12 = vweird.f32 %v9069_v59  ;;  %v4041_v15 = vor.u32 1.1754944e-38, %v4040_v48  ;;  %v10646_v17 = vld [vmem:[#allocation28_spill] sm:$0xff] }
 0x907   : > { %v4045_v22 = vmul.f32 %v6767_v13, %v9109_v18  ;;  %vm4050_vm13 = vweird.f32 %v6767_v13  ;;  %v4003_v40 = vadd.f32 %v9118_v24, %v4002_v4  ;;  %v4022_v18 = vsel %vm9217_vm9, %v9107_v26, %v4018_v36  ;;  %v4098_v36 = vpop.permute.xlu1 %4097 }
 0x908   : > { %v6769_v3 = vpop.eup %6768  ;;  %vm4051_vm4 = vmor %vm4049_vm10, %vm4050_vm13  ;;  %vm4034_vm9 = vweird.f32 %v9121_v8  ;;  %v4027_v52 = vsel %vm9161_vm14, %v4026_v41, %v4022_v18  ;;  %vm4039_vm11 = vcmp.eq.f32.partialorder %v4038_v57, 8.507059e+37  ;;  %v3997_v28 = vsel %vm9178_vm15, %v9145_v5, %v3992_v33 }
 0x909   : > { %v4030_v7 = vmul.f32 %v6769_v3, %v9121_v8  ;;  %v4046_v55 = vsub.f32 1.0, %v4045_v22  ;;  %vm4035_vm3 = vweird.f32 %v6769_v3  ;;  %v4007_v19 = vsel %vm9229_vm1, %v9118_v24, %v4003_v40  ;;  %vm9246_vm13 = vmor %vm10631_vm12, %vm3975_vm6 }
 0x90a   : > { %vm4036_vm7 = vmor %vm4034_vm9, %vm4035_vm3  ;;  %v3962_v8 = vsel %vm9191_vm0, %v9088_v34, %v3958_v23  ;;  %v3977_v2 = vsel %vm9246_vm13, %v9104_v30, %v3973_v12  ;;  %v4012_v4 = vsel %vm9174_vm5, %v4011_v11, %v4007_v19  ;;  %v3981_v41 = vor.u32 1.1754944e-38, %v3980_v63  ;;  %v10644_v23 = vld [vmem:[#allocation4_spill] sm:$0xff] }
 0x90b   : > { %v4047_v58 = vmul.f32 %v6767_v13, %v4046_v55  ;;  %v4031_v50 = vsub.f32 1.0, %v4030_v7  ;;  %vm10634_vm14 = vweird.f32 %v9096_v6  ;;  %vm10635_vm6 = vweird.f32 %v9061_v29  ;;  %v6057_v29 = vld [vmem:[%s10092_s7 + $0x88] sm:$0xff] }
 0x90c   : > { %vm3946_vm0 = vmor %vm10635_vm6, %vm10634_vm14  ;;  %v4064_v30 = vmul.f32 %v9127_v46, %v4027_v52  ;;  %vm3979_vm5 = vcmp.eq.f32.partialorder %v3978_v14, 8.507059e+37  ;;  %v3967_v5 = vsel %vm9206_vm8, %v9132_v16, %v3962_v8  ;;  %v3951_v63 = vor.u32 1.1754944e-38, %v3950_v53  ;;  %v6056_v16 = vld [vmem:[%s10092_s7 + $0x80] sm:$0xff]  ;;  %v10645_v7 = vld [vmem:[#allocation3_spill] sm:$0xff] }
 0x90d   : > { %v4048_v44 = vadd.f32 %v6767_v13, %v4047_v58  ;;  %v4032_v32 = vmul.f32 %v6769_v3, %v4031_v50  ;;  %v4063_v11 = vmul.f32 %v9135_v0, %v4012_v4  ;;  %vm3949_vm15 = vcmp.eq.f32.partialorder %v3948_v35, 8.507059e+37  ;;  %v4093_v0 = vpop.permute.xlu2 %4092  ;;  %v10647_v50 = vld [vmem:[#allocation31_spill] sm:$0xff]  ;;  %v10652_v8 = vld [vmem:[#allocation8_spill] sm:$0xff] }
 0x90e   : > { %v4060_v46 = vmul.f32 %v9071_v47, %v3967_v5  ;;  %vm10636_vm8 = vcmask 261120   ;;  %v6058_v47 = vld [vmem:[%s10092_s7 + $0x90] sm:$0xff]  ;;  %vm10654_vm13 = vcmask 1047568   ;;  %vm10657_vm14 = vcmask 146432  }
 0x90f   : > { %v4052_v39 = vsel %vm4051_vm4, %v6767_v13, %v4048_v44  ;;  %v4033_v26 = vadd.f32 %v6769_v3, %v4032_v32  ;;  %vm10637_vm10 = vmmov %vm10636_vm8  ;;  %v10649_v32 = vld [vmem:[#allocation9_spill] sm:$0xff] }
 0x910   : > { %v4057_v25 = vsel %vm4054_vm2, %v4056_v38, %v4052_v39  ;;  %vm10638_vm3 = vmmov %vm10636_vm8 }
 0x911   : > { %v4066_v24 = vmul.f32 %v9141_v27, %v4057_v25  ;;  %v4037_v13 = vsel %vm4036_vm7, %v6769_v3, %v4033_v26  ;;  %v3947_v27 = vsel %vm3946_vm0, %v9096_v6, %v3943_v31  ;;  %v3982_v3 = vsel %vm3979_vm5, %v3981_v41, %v3977_v2  ;;  %vm10639_vm1 = vmmov %vm10638_vm3  ;;  %v4088_v31 = vpop.permute.xlu0 %4087  ;;  %v10651_v26 = vld [vmem:[#allocation30_spill] sm:$0xff] }
 0x912   : > { %v4042_v22 = vsel %vm4039_vm11, %v4041_v15, %v4037_v13  ;;  %v3952_v59 = vsel %vm3949_vm15, %v3951_v63, %v3947_v27  ;;  %v4061_v6 = vmul.f32 %v9093_v21, %v3982_v3  ;;  %vm10640_vm4 = vmmov %vm10639_vm1  ;;  %v10653_v13 = vld [vmem:[#allocation7_spill] sm:$0xff]  ;;  %vm10655_vm7 = vcmask 15360  }
 0x913   : > { %4202 = vmatpush.msrb.mxu1 %v4066_v24  ;;  %v4065_v34 = vmul.f32 %v9147_v9, %v4042_v22  ;;  %v4062_v9 = vmul.f32 %v9082_v51, %v3997_v28  ;;  %v4059_v53 = vmul.f32 %v9075_v45, %v3952_v59  ;;  %vm10641_vm2 = vmmov %vm10639_vm1  ;;  %v6059_v45 = vld [vmem:[%s10092_s7 + $0x98] sm:$0xff] }
 0x914   : > { %vm10642_vm9 = vmmov %vm10639_vm1 }
 0x915   : > { %4161 = vmatpush.msrb.mxu0 %v4065_v34  ;;  %4203 = vmatpush.msrb.mxu1 %v4064_v30  ;;  %vm10643_vm12 = vmmov %vm10639_vm1 }
 0x916   : > { %vm10656_vm11 = vmmov %vm10654_vm13 }
 0x917   : > { %4162 = vmatpush.msrb.mxu0 %v4063_v11  ;;  %4204 = vmatpush.msrb.mxu1 %v4062_v9  ;;  %vm10658_vm6 = vmmov %vm10655_vm7 }
 0x918   : > { %vm10659_vm0 = vmmov %vm10656_vm11 }
 0x919   : > { %4163 = vmatpush.msrb.mxu0 %v4061_v6  ;;  %4205 = vmatpush.msrb.mxu1 %v4060_v46  ;;  %vm10660_vm5 = vmmov %vm10658_vm6  ;;  %v6060_v46 = vld [vmem:[%s10092_s7 + $0xa0] sm:$0xff] }
 0x91a   : > { %6080 = vmatmul.msk.f32.vlgmr.msrb.gmra.mxu1 %vm10636_vm8, %v6056_v16  ;;  %vm10661_vm15 = vmmov %vm10657_vm14 }
 0x91b   : > { %4164 = vmatpush.msrb.mxu0 %v4059_v53  ;;  %vm10662_vm8 = vmmov %vm10657_vm14 }
 0x91c   : > { %6072 = vmatmul.msk.f32.vlgmr.msrb.gmra.mxu0 %vm10637_vm10, %v6056_v16  ;;  %vm10663_vm10 = vmmov %vm10639_vm1 }
 0x922   : > { %6081 = vmatmul.msk.f32.gmra.mxu1 %vm10638_vm3, %v6057_v29  ;;  %vm10664_vm3 = vmmov %vm10639_vm1 }
 0x924   : > { %6073 = vmatmul.msk.f32.gmra.mxu0 %vm10639_vm1, %v6057_v29  ;;  %vm10665_vm1 = vmmov %vm10660_vm5 }
 0x92a   : > { %6082 = vmatmul.msk.f32.gmra.mxu1 %vm10640_vm4, %v6058_v47  ;;  %vm10666_vm4 = vmmov %vm10659_vm0 }
 0x92c   : > { %6074 = vmatmul.msk.f32.gmra.mxu0 %vm10641_vm2, %v6058_v47  ;;  %vm10667_vm2 = vmmov %vm10662_vm8 }
 0x932   : > { %6083 = vmatmul.msk.f32.gmra.mxu1 %vm10642_vm9, %v6059_v45  ;;  %vm10668_vm9 = vmmov %vm10664_vm3 }
 0x934   : > { %6075 = vmatmul.msk.f32.gmra.mxu0 %vm10643_vm12, %v6059_v45  ;;  %vm10669_vm12 = vmmov %vm10664_vm3 }
 0x93a   : > { %6084 = vmatmul.msk.f32.gmra.mxu1 %vm10664_vm3, %v6060_v46 }
 0x93c   : > { %6076 = vmatmul.msk.f32.gmra.mxu0 %vm10663_vm10, %v6060_v46 }
 0x997   : > { %v4207_v51 = vpop.f32.mrf.mxu1 }
 0x998   : > { %v4208_v39 = vadd.f32 %v4207_v51, %v4088_v31 }
 0x999   : > { %v4166_v21 = vpop.f32.mrf.mxu0 }
 0x99a   : > { %v4167_v25 = vadd.f32 %v4166_v21, %v4088_v31  ;;  %v4232_v24 = vadd.f32 %v4208_v39, %v10652_v8  ;;  %v6068_v31 = vld [vmem:[%s10093_s8 + $0xa0] sm:$0xff]  ;;  %v6230_v39 = vld [vmem:[%s10093_s8 + $0xf0] sm:$0xff] }
 0x99b   : > { %v5448_v8 = vld [vmem:[%s10095_s10] sm:$0xf] }
 0x99c   : > { %v4231_v2 = vadd.f32 %v4167_v25, %v10653_v13  ;;  %v4240_v22 = vmul.f32 %v4232_v24, %v10648_v61  ;;  %v6228_v25 = vld [vmem:[%s10093_s8 + $0xe0] sm:$0xff] }
 0x99e   : > { %v4239_v4 = vmul.f32 %v4231_v2, %v10645_v7 }
 0x99f   : > { %v4210_v35 = vpop.f32.mrf.mxu1 }
 0x9a0   : > { %v4211_v57 = vadd.f32 %v4210_v35, %v4093_v0 }
 0x9a1   : > { %v4169_v14 = vpop.f32.mrf.mxu0 }
 0x9a2   : > { %v4170_v60 = vadd.f32 %v4169_v14, %v4093_v0  ;;  %v4234_v18 = vadd.f32 %v4211_v57, %v10649_v32  ;;  %v6061_v14 = vld [vmem:[%s10092_s7 + $0xa8] sm:$0xff]  ;;  %v1659_v57 = vld [vmem:[%s10093_s8 + $0x30] sm:$0xff] }
 0x9a3   : > { %6077 = vmatmul.msk.f32.gmra.mxu0 %vm10668_vm9, %v6061_v14  ;;  %6085 = vmatmul.msk.f32.gmra.mxu1 %vm10669_vm12, %v6061_v14  ;;  %v5909_v32 = vld [vmem:[%s10093_s8 + $0x68] sm:$0xff] }
 0x9a4   : > { %v4233_v54 = vadd.f32 %v4170_v60, %v10644_v23  ;;  %v4242_v52 = vmul.f32 %v4234_v18, %v10648_v61  ;;  %v6231_v18 = vld [vmem:[%s10093_s8 + $0xf8] sm:$0xff] }
 0x9a6   : > { %v4241_v55 = vmul.f32 %v4233_v54, %v10645_v7 }
 0x9a7   : > { %v4213_v62 = vpop.f32.mrf.mxu1 }
 0x9a8   : > { %v4214_v42 = vadd.f32 %v4213_v62, %v4098_v36  ;;  %4267 = vrot.lane.b32.xlu2 %v4241_v55, %s10442_s30  ;;  %v6062_v55 = vld [vmem:[%s10092_s7 + $0xb0] sm:$0xff]  ;;  %v6215_v62 = vld [vmem:[%s10091_s6 + $0xf8] sm:$0xff] }
 0x9a9   : > { %v4172_v49 = vpop.f32.mrf.mxu0 }
 0x9aa   : > { %v4236_v10 = vadd.f32 %v4214_v42, %v10646_v17  ;;  %v4173_v58 = vadd.f32 %v4172_v49, %v4098_v36  ;;  %v6063_v36 = vld [vmem:[%s10092_s7 + $0xb8] sm:$0xff]  ;;  %v6214_v42 = vld [vmem:[%s10091_s6 + $0xf0] sm:$0xff]  ;;  %v6213_v49 = vld [vmem:[%s10091_s6 + $0xe8] sm:$0xff] }
 0x9ab   : > { %v6211_v17 = vld [vmem:[%s10091_s6 + $0xd8] sm:$0xff] }
 0x9ac   : > { %v4235_v40 = vadd.f32 %v4173_v58, %v10647_v50  ;;  %v4244_v56 = vmul.f32 %v4236_v10, %v10648_v61  ;;  %v6209_v10 = vld [vmem:[%s10091_s6 + $0xc8] sm:$0xff]  ;;  %v6210_v58 = vld [vmem:[%s10091_s6 + $0xd0] sm:$0xff]  ;;  %v6208_v50 = vld [vmem:[%s10091_s6 + $0xc0] sm:$0xff] }
 0x9ae   : > { %4273 = vrot.lane.b32.xlu1 %v4244_v56, %s10442_s30  ;;  %v4243_v48 = vmul.f32 %v4235_v40, %v10645_v7  ;;  %v5911_v40 = vld [vmem:[%s10093_s8 + $0x78] sm:$0xff] }
 0x9af   : > { %v4216_v1 = vpop.f32.mrf.mxu1  ;;  %v1660_v56 = vld [vmem:[%s10093_s8 + $0x38] sm:$0xff] }
 0x9b0   : > { %v4217_v12 = vadd.f32 %v4216_v1, %v4103_v37  ;;  %4271 = vrot.lane.b32.xlu0 %v4243_v48, %s10442_s30  ;;  %v6071_v48 = vld [vmem:[%s10093_s8 + $0xb8] sm:$0xff]  ;;  %v5910_v1 = vld [vmem:[%s10093_s8 + $0x70] sm:$0xff] }
 0x9b1   : > { %v4175_v44 = vpop.f32.mrf.mxu0 }
 0x9b2   : > { %v4238_v38 = vadd.f32 %v4217_v12, %v10650_v20  ;;  %v4176_v33 = vadd.f32 %v4175_v44, %v4103_v37  ;;  %v6212_v37 = vld [vmem:[%s10091_s6 + $0xe0] sm:$0xff]  ;;  %v1658_v12 = vld [vmem:[%s10093_s8 + $0x28] sm:$0xff]  ;;  %v6070_v44 = vld [vmem:[%s10093_s8 + $0xb0] sm:$0xff] }
 0x9b3   : > { %v5908_v20 = vld [vmem:[%s10093_s8 + $0x60] sm:$0xff] }
 0x9b4   : > { %v4237_v19 = vadd.f32 %v4176_v33, %v10651_v26  ;;  %v4246_v43 = vmul.f32 %v4238_v38, %v10648_v61  ;;  %v1657_v38 = vld [vmem:[%s10093_s8 + $0x20] sm:$0xff]  ;;  %v6069_v33 = vld [vmem:[%s10093_s8 + $0xa8] sm:$0xff] }
 0x9b5   : > { %v6229_v26 = vld [vmem:[%s10093_s8 + $0xe8] sm:$0xff] }
 0x9b6   : > { %4277 = vrot.lane.b32.xlu2 %v4246_v43, %s10442_s30  ;;  %v4245_v15 = vmul.f32 %v4237_v19, %v10645_v7  ;;  %v6088_v43 = vld [vmem:[%s10090_s5 + $0x3c0] sm:$0xff] }
 0x9b8   : > { %4275 = vrot.lane.b32.xlu1 %v4245_v15, %s10442_s30  ;;  %4269 = vrot.lane.b32.xlu0 %v4242_v52, %s10442_s30  ;;  %v6089_v52 = vld [vmem:[%s10090_s5 + $0x3c8] sm:$0xff] }
 0x9be   : > { %4265 = vrot.lane.b32.xlu2 %v4240_v22, %s10442_s30 }
 0x9c0   : > { %4263 = vrot.lane.b32.xlu1 %v4239_v4, %s10442_s30 }
 0xa02   : > { %v4268_v28 = vpop.permute.xlu2 %4267 }
 0xa03   : > { %4293 = vst.msk [vmem:[#allocation2 + $0x10] sm:$0xff] %vm10654_vm13, %v4268_v28  ;;  %vm10670_vm13 = vmmov %vm10664_vm3 }
 0xa04   : > { %6078 = vmatmul.msk.f32.gmra.mxu0 %vm10670_vm13, %v6062_v55 }
 0xa0a   : > { %v4342_v51 = vld [vmem:[#allocation2 + $0x10] sm:$0xff] }
 0xa10   : > { %v4278_v27 = vpop.permute.xlu2 %4277 }
 0xa18   : > { %v4266_v16 = vpop.permute.xlu2 %4265 }
 0xa20   : > { %v4274_v41 = vpop.permute.xlu1 %4273 }
 0xa22   : > { %v4272_v34 = vpop.permute.xlu0 %4271 }
 0xa23   : > { %v4281_v30 = vsel %vm10655_vm7, %v4272_v34, %v4274_v41  ;;  %4295 = vst.msk [vmem:[#allocation2 + $0x20] sm:$0xff] %vm10656_vm11, %v4272_v34  ;;  %vm10671_vm7 = vmmov %vm10664_vm3  ;;  %v6090_v34 = vld [vmem:[%s10090_s5 + $0x3d0] sm:$0xff] }
 0xa24   : > { %4296 = vst.msk [vmem:[#allocation2 + $0x28] sm:$0xff] %vm10657_vm14, %v4281_v30  ;;  %6086 = vmatmul.msk.f32.gmra.mxu1 %vm10671_vm7, %v6062_v55  ;;  %vm10672_vm11 = vmmov %vm10664_vm3  ;;  %vm10687_vm7 = vcmask 1031168  }
 0xa25   : > { %6079 = vmatmul.msk.f32.gmra.mxu0 %vm10672_vm11, %v6063_v36  ;;  %vm10673_vm14 = vmmov %vm10664_vm3 }
 0xa2a   : > { %v4276_v3 = vpop.permute.xlu1 %4275  ;;  %v4270_v5 = vpop.permute.xlu0 %4269  ;;  %v4344_v63 = vld [vmem:[#allocation2 + $0x20] sm:$0xff] }
 0xa2b   : > { %v4282_v11 = vsel %vm10658_vm6, %v4276_v3, %v4278_v27  ;;  %4297 = vst.msk [vmem:[#allocation2 + $0x30] sm:$0xff] %vm10659_vm0, %v4276_v3  ;;  %v4280_v9 = vsel %vm10660_vm5, %v4268_v28, %v4270_v5  ;;  %v4345_v59 = vld [vmem:[#allocation2 + $0x28] sm:$0xff]  ;;  %vm10674_vm6 = vmmov %vm10664_vm3 }
 0xa2c   : > { %4298 = vst.msk [vmem:[#allocation2 + $0x38] sm:$0xff] %vm10661_vm15, %v4282_v11  ;;  %v6546_v6 = vpack.i.bf16 %v4345_v59, %v4344_v63  ;;  %6087 = vmatmul.msk.f32.gmra.mxu1 %vm10673_vm14, %v6063_v36  ;;  %vm10675_vm0 = vmmov %vm10664_vm3  ;;  %v6097_v36 = vld [vmem:[%s10090_s5 + $0x408] sm:$0xff] }
 0xa2d   : > { %4294 = vst.msk [vmem:[#allocation2 + $0x18] sm:$0xff] %vm10662_vm8, %v4280_v9  ;;  %vm10676_vm5 = vmmov %vm10675_vm0  ;;  %vm10678_vm8 = vcmask 1039360  }
 0xa2e   : > { %6547 = vrot.lane.b32.xlu1 %v6546_v6, %s10467_s28  ;;  %vm10677_vm15 = vmmov %vm10675_vm0 }
 0xa2f   : > { %vm10679_vm10 = vmmov %vm10675_vm0 }
 0xa30   : > { %vm10680_vm3 = vmmov %vm10675_vm0 }
 0xa31   : > { %vm10684_vm9 = vmmov %vm10675_vm0 }
 0xa32   : > { %v4264_v53 = vpop.permute.xlu1 %4263  ;;  %v4346_v29 = vld [vmem:[#allocation2 + $0x30] sm:$0xff]  ;;  %vm10685_vm12 = vmmov %vm10675_vm0 }
 0xa33   : > { %v4279_v47 = vsel %vm10665_vm1, %v4264_v53, %v4266_v16  ;;  %4291 = vst.msk [vmem:[#allocation2] sm:$0xff] %vm10666_vm4, %v4264_v53  ;;  %4526 = vmatpush.msra.mxu0 %v4346_v29  ;;  %v4347_v45 = vld [vmem:[#allocation2 + $0x38] sm:$0xff]  ;;  %vm10681_vm1 = vmmov %vm10678_vm8 }
 0xa34   : > { %4292 = vst.msk [vmem:[#allocation2 + $0x8] sm:$0xff] %vm10667_vm2, %v4279_v47  ;;  %4567 = vmatpush.msra.mxu1 %v4347_v45  ;;  %v4343_v21 = vld [vmem:[#allocation2 + $0x18] sm:$0xff]  ;;  %v6556_v35 = vpack.i.bf16 %v4347_v45, %v4346_v29  ;;  %vm10682_vm4 = vmmov %vm10681_vm1  ;;  %v6091_v47 = vld [vmem:[%s10090_s5 + $0x3d8] sm:$0xff] }
 0xa35   : > { %4527 = vmatpush.msra.mxu0 %v4344_v63  ;;  %v6551_v0 = vpack.i.bf16 %v4343_v21, %v4342_v51  ;;  %v6096_v29 = vld [vmem:[%s10090_s5 + $0x400] sm:$0xff]  ;;  %vm10683_vm2 = vmmov %vm10681_vm1 }
 0xa36   : > { %6557 = vrot.lane.b32.xlu0 %v6556_v35, %s10467_s28  ;;  %4568 = vmatpush.msra.mxu1 %v4345_v59  ;;  %vm10686_vm13 = vmmov %vm10675_vm0 }
 0xa37   : > { %6552 = vrot.lane.b32.xlu2 %v6551_v0, %s10467_s28  ;;  %6577 = vrot.lane.b32.xlu1 %v6556_v35, %s10263_s15  ;;  %vm10688_vm11 = vmmov %vm10675_vm0 }
 0xa38   : > { %4528 = vmatpush.msra.mxu0 %v4342_v51  ;;  %4569 = vmatpush.msra.mxu1 %v4343_v21  ;;  %vm10689_vm14 = vmmov %vm10687_vm7 }
 0xa3a   : > { %v4340_v60 = vld [vmem:[#allocation2] sm:$0xff] }
 0xa3b   : > { %4529 = vmatpush.msra.mxu0 %v4340_v60  ;;  %v4341_v23 = vld [vmem:[#allocation2 + $0x8] sm:$0xff] }
 0xa3c   : > { %4570 = vmatpush.msra.mxu1 %v4341_v23  ;;  %v6581_v54 = vpack.i.bf16 %v4341_v23, %v4340_v60  ;;  %6144 = vmatmul.msk.f32.vlgmr.msra.gmra.mxu0 %vm10675_vm0, %v6088_v43 }
 0xa3d   : > { %6152 = vmatmul.msk.f32.vlgmr.msra.gmra.mxu1 %vm10674_vm6, %v6088_v43  ;;  %vm10690_vm6 = vmmov %vm10687_vm7 }
 0xa3e   : > { %6562 = vrot.lane.b32.xlu0 %v6581_v54, %s10467_s28  ;;  %s5656_s28 = sshll.u32 %s10826_s18, 1 }
 0xa3f   : > { %6567 = vrot.lane.b32.xlu2 %v6546_v6, %s10263_s15  ;;  %6582 = vrot.lane.b32.xlu1 %v6581_v54, %s10263_s15 }
 0xa44   : > { %6145 = vmatmul.msk.f32.gmra.mxu0 %vm10677_vm15, %v6089_v52  ;;  %vm10692_vm15 = vcmask 1022976  }
 0xa45   : > { %6153 = vmatmul.msk.f32.gmra.mxu1 %vm10676_vm5, %v6089_v52  ;;  %vm10691_vm5 = vmmov %vm10675_vm0 }
 0xa46   : > { %6572 = vrot.lane.b32.xlu0 %v6551_v0, %s10263_s15 }
 0xa47   : > { %6592 = vrot.lane.b32.xlu2 %v6551_v0, %s10264_s16  ;;  %6607 = vrot.lane.b32.xlu1 %v6556_v35, %s10265_s24 }
 0xa4c   : > { %6146 = vmatmul.msk.f32.gmra.mxu0 %vm10680_vm3, %v6090_v34  ;;  %vm10695_vm3 = vcmask 1014784  }
 0xa4d   : > { %6154 = vmatmul.msk.f32.gmra.mxu1 %vm10679_vm10, %v6090_v34  ;;  %vm10694_vm10 = vmmov %vm10690_vm6 }
 0xa4e   : > { %6587 = vrot.lane.b32.xlu0 %v6546_v6, %s10264_s16 }
 0xa4f   : > { %6602 = vrot.lane.b32.xlu2 %v6556_v35, %s10264_s16  ;;  %6612 = vrot.lane.b32.xlu1 %v6581_v54, %s10264_s16 }
 0xa54   : > { %6147 = vmatmul.msk.f32.gmra.mxu0 %vm10688_vm11, %v6091_v47  ;;  %vm10703_vm11 = vmmov %vm10675_vm0 }
 0xa55   : > { %6155 = vmatmul.msk.f32.gmra.mxu1 %vm10684_vm9, %v6091_v47  ;;  %vm10699_vm9 = vmmov %vm10675_vm0  ;;  %v9586_v47 = vpop.f32.mrf.mxu1 }
 0xa56   : > { %6597 = vrot.lane.b32.xlu0 %v6546_v6, %s10265_s24 }
 0xa57   : > { %6617 = vrot.lane.b32.xlu2 %v6551_v0, %s10265_s24  ;;  %5092 = vperm.xlu1 %6304, %v6215_v62  }
 0xa5e   : > { %6622 = vrot.lane.b32.xlu0 %v6581_v54, %s10265_s24  ;;  %s10001_s24 = sadd.s32 %s5656_s28, %s10828_s17  ;;  %s6866_s17 = smov 8  }
 0xa5f   : > { %5087 = vperm.xlu2 %6385, %v6214_v42   ;;  %5077 = vperm.xlu1 %6304, %v6212_v37   ;;  %s5657_s0 = sshll.u32 %s10001_s24, 2 }
 0xa60   : > { %s466_s2 = scalar_lea.vmem %s10086_s1, %s5657_s0  ;;  %s482_s29 = scalar_lea.vmem %s10096_s11, %s5657_s0 }
 0xa66   : > { %5082 = vperm.xlu0 %6303, %v6213_v49  }
 0xa67   : > { %5072 = vperm.xlu2 %6385, %v6211_v17   ;;  %5062 = vperm.xlu1 %6304, %v6209_v10   ;;  %v6092_v17 = vld [vmem:[%s10090_s5 + $0x3e0] sm:$0xff] }
 0xa68   : > { %6156 = vmatmul.msk.f32.gmra.mxu1 %vm10675_vm0, %v6092_v17 }
 0xa6e   : > { %5067 = vperm.xlu0 %6303, %v6210_v58  }
 0xa6f   : > { %5057 = vperm.xlu2 %6385, %v6208_v50   ;;  %2910 = vperm.xlu1 %6304, %v5911_v40  }
 0xa76   : > { %1698 = vperm.xlu0 %6303, %v1660_v56  }
 0xa77   : > { %1693 = vperm.xlu2 %6385, %v1659_v57   ;;  %4122 = vperm.xlu1 %6304, %v6071_v48  }
 0xa7e   : > { %2905 = vperm.xlu0 %6303, %v5910_v1  }
 0xa7f   : > { %1688 = vperm.xlu2 %6385, %v1658_v12   ;;  %4117 = vperm.xlu1 %6304, %v6070_v44  }
 0xa86   : > { %2900 = vperm.xlu0 %6303, %v5909_v32   ;;  %v6098_v32 = vld [vmem:[%s10090_s5 + $0x410] sm:$0xff] }
 0xa87   : > { %5330 = vperm.xlu2 %6385, %v6231_v18   ;;  %2895 = vperm.xlu1 %6304, %v5908_v20  }
 0xa8e   : > { %1683 = vperm.xlu0 %6303, %v1657_v38   ;;  %v6093_v38 = vld [vmem:[%s10090_s5 + $0x3e8] sm:$0xff] }
 0xa8f   : > { %4112 = vperm.xlu2 %6385, %v6069_v33   ;;  %4107 = vperm.xlu1 %6304, %v6068_v31  }
 0xa91   : > { %v6553_v19 = vpop.permute.xlu2 %6552 }
 0xa92   : > { %v6555_v30 = vunpack.i.h.bf16 %v6553_v19  ;;  %v6554_v27 = vunpack.i.l.bf16 %v6553_v19 }
 0xa94   : > { %v4373_v11 = vsel %vm10682_vm4, %v6554_v27, %v6555_v30  ;;  %vm10697_vm4 = vmmov %vm10695_vm3 }
 0xa96   : > { %5325 = vperm.xlu0 %6303, %v6230_v39  }
 0xa97   : > { %5320 = vperm.xlu2 %6385, %v6229_v26   ;;  %5500 = vrot.lane.b32.xlu1 %v10645_v7, %s6865_s13 }
 0xa99   : > { %v6568_v24 = vpop.permute.xlu2 %6567 }
 0xa9a   : > { %v6570_v45 = vunpack.i.h.bf16 %v6568_v24  ;;  %v6569_v51 = vunpack.i.l.bf16 %v6568_v24 }
 0xa9c   : > { %v4614_v0 = vsel %vm10689_vm14, %v6569_v51, %v6570_v45  ;;  %vm10704_vm14 = vmmov %vm10692_vm15  ;;  %v6106_v51 = vld [vmem:[%s10090_s5 + $0x450] sm:$0xff] }
 0xa9e   : > { %5315 = vperm.xlu0 %6303, %v6228_v25  }
 0xa9f   : > { %5502 = vrot.lane.b32.xlu2 %v10648_v61, %s6865_s13 }
 0xaa0   : > { %v6548_v15 = vpop.permute.xlu1 %6547 }
 0xaa1   : > { %v6550_v2 = vunpack.i.h.bf16 %v6548_v15  ;;  %v6549_v22 = vunpack.i.l.bf16 %v6548_v15  ;;  %v9471_v63 = vpop.permute.xlu2 %6592 }
 0xaa2   : > { %v6595_v18 = vunpack.i.h.bf16 %v9471_v63  ;;  %v6594_v20 = vunpack.i.l.bf16 %v9471_v63  ;;  %v6112_v63 = vld [vmem:[%s10090_s5 + $0x480] sm:$0xff] }
 0xaa3   : > { %v4374_v5 = vsel %vm10681_vm1, %v6549_v22, %v6550_v2  ;;  %vm10696_vm1 = vmmov %vm10675_vm0 }
 0xaa4   : > { %6148 = vmatmul.msk.f32.gmra.mxu0 %vm10696_vm1, %v6092_v17 }
 0xaa6   : > { %5451 = vperm.xlu0 %6303, %v5448_v8  }
 0xaa8   : > { %v6558_v13 = vpop.permute.xlu0 %6557 }
 0xaa9   : > { %v6560_v4 = vunpack.i.h.bf16 %v6558_v13  ;;  %v6559_v28 = vunpack.i.l.bf16 %v6558_v13  ;;  %v6578_v41 = vpop.permute.xlu1 %6577  ;;  %v6603_v14 = vpop.permute.xlu2 %6602  ;;  %v6099_v13 = vld [vmem:[%s10090_s5 + $0x418] sm:$0xff] }
 0xaaa   : > { %v6580_v59 = vunpack.i.h.bf16 %v6578_v41  ;;  %v6579_v6 = vunpack.i.l.bf16 %v6578_v41  ;;  %v6605_v10 = vunpack.i.h.bf16 %v6603_v14  ;;  %v6604_v58 = vunpack.i.l.bf16 %v6603_v14  ;;  %v6107_v14 = vld [vmem:[%s10090_s5 + $0x458] sm:$0xff] }
 0xaab   : > { %4461 = vmatpush.msra.mxu3 %v6560_v4  ;;  %v4375_v3 = vsel %vm10678_vm8, %v6559_v28, %v6560_v4  ;;  %vm10693_vm8 = vmmov %vm10675_vm0  ;;  %v6094_v4 = vld [vmem:[%s10090_s5 + $0x3f0] sm:$0xff] }
 0xaac   : > { %4420 = vmatpush.msra.mxu2 %v4375_v3  ;;  %v4615_v35 = vsel %vm10687_vm7, %v6579_v6, %v6580_v59  ;;  %v4915_v57 = vsel %vm10695_vm3, %v6604_v58, %v6605_v10  ;;  %vm10702_vm7 = vmmov %vm10695_vm3  ;;  %6149 = vmatmul.msk.f32.gmra.mxu0 %vm10703_vm11, %v6093_v38  ;;  %v6095_v3 = vld [vmem:[%s10090_s5 + $0x3f8] sm:$0xff]  ;;  %v6114_v6 = vld [vmem:[%s10090_s5 + $0x490] sm:$0xff] }
 0xaad   : > { %4462 = vmatpush.msra.mxu3 %v6550_v2  ;;  %vm10718_vm11 = vmmov %vm10696_vm1  ;;  %v6111_v58 = vld [vmem:[%s10090_s5 + $0x478] sm:$0xff] }
 0xaae   : > { %4421 = vmatpush.msra.mxu2 %v4374_v5  ;;  %v6101_v5 = vld [vmem:[%s10090_s5 + $0x428] sm:$0xff] }
 0xaaf   : > { %4463 = vmatpush.msra.mxu3 %v6555_v30  ;;  %v6100_v30 = vld [vmem:[%s10090_s5 + $0x420] sm:$0xff] }
 0xab0   : > { %v6563_v9 = vpop.permute.xlu0 %6562  ;;  %4422 = vmatpush.msra.mxu2 %v4373_v11  ;;  %v6102_v11 = vld [vmem:[%s10090_s5 + $0x430] sm:$0xff] }
 0xab1   : > { %v6565_v46 = vunpack.i.h.bf16 %v6563_v9  ;;  %v6564_v16 = vunpack.i.l.bf16 %v6563_v9  ;;  %v6583_v53 = vpop.permute.xlu1 %6582  ;;  %v6618_v26 = vpop.permute.xlu2 %6617  ;;  %v6113_v9 = vld [vmem:[%s10090_s5 + $0x488] sm:$0xff] }
 0xab2   : > { %v6585_v62 = vunpack.i.h.bf16 %v6583_v53  ;;  %v6584_v42 = vunpack.i.l.bf16 %v6583_v53  ;;  %v6620_v15 = vunpack.i.h.bf16 %v6618_v26  ;;  %v6619_v52 = vunpack.i.l.bf16 %v6618_v26  ;;  %v6105_v53 = vld [vmem:[%s10090_s5 + $0x448] sm:$0xff] }
 0xab3   : > { %4464 = vmatpush.msra.mxu3 %v6565_v46  ;;  %v4372_v21 = vsel %vm10683_vm2, %v6564_v16, %v6565_v46  ;;  %vm10698_vm2 = vmmov %vm10675_vm0  ;;  %v6104_v46 = vld [vmem:[%s10090_s5 + $0x440] sm:$0xff]  ;;  %v6115_v16 = vld [vmem:[%s10090_s5 + $0x498] sm:$0xff] }
 0xab4   : > { %4423 = vmatpush.msra.mxu2 %v4372_v21  ;;  %6136 = vmatmul.msk.f32.vlgmr.msra.gmra.mxu3 %vm10685_vm12, %v6096_v29  ;;  %v4612_v56 = vsel %vm10694_vm10, %v6584_v42, %v6585_v62  ;;  %vm10700_vm12 = vmmov %vm10675_vm0  ;;  %v6117_v21 = vld [vmem:[%s10090_s5 + $0x4a8] sm:$0xff] }
 0xab5   : > { %4701 = vmatpush.msrb.mxu3 %v6580_v59  ;;  %6128 = vmatmul.msk.f32.vlgmr.msra.gmra.mxu2 %vm10686_vm13, %v6096_v29  ;;  %vm10701_vm13 = vmmov %vm10695_vm3  ;;  %v6103_v59 = vld [vmem:[%s10090_s5 + $0x438] sm:$0xff]  ;;  %v6116_v29 = vld [vmem:[%s10090_s5 + $0x4a0] sm:$0xff] }
 0xab6   : > { %4660 = vmatpush.msrb.mxu2 %v4615_v35  ;;  %6157 = vmatmul.msk.f32.gmra.mxu1 %vm10698_vm2, %v6093_v38  ;;  %v4913_v19 = vsel %vm10701_vm13, %v6594_v20, %v6595_v18  ;;  %vm10711_vm3 = vmmov %vm10696_vm1  ;;  %v9602_v35 = vpop.f32.mrf.mxu1  ;;  %v6122_v38 = vld [vmem:[%s10090_s5 + $0x4d0] sm:$0xff] }
 0xab7   : > { %4702 = vmatpush.msrb.mxu3 %v6570_v45  ;;  %vm10713_vm2 = vmmov %vm10696_vm1  ;;  %v9589_v45 = vpop.f32.mrf.mxu0 }
 0xab8   : > { %4661 = vmatpush.msrb.mxu2 %v4614_v0  ;;  %v6573_v60 = vpop.permute.xlu0 %6572  ;;  %vm10716_vm13 = vmmov %vm10696_vm1 }
 0xab9   : > { %v6575_v23 = vunpack.i.h.bf16 %v6573_v60  ;;  %v6574_v54 = vunpack.i.l.bf16 %v6573_v60  ;;  %v6608_v55 = vpop.permute.xlu1 %6607  ;;  %v6118_v60 = vld [vmem:[%s10090_s5 + $0x4b0] sm:$0xff] }
 0xaba   : > { %v6610_v37 = vunpack.i.h.bf16 %v6608_v55  ;;  %v6609_v49 = vunpack.i.l.bf16 %v6608_v55 }
 0xabb   : > { %4703 = vmatpush.msrb.mxu3 %v6575_v23  ;;  %v4613_v50 = vsel %vm10690_vm6, %v6574_v54, %v6575_v23  ;;  %vm10705_vm6 = vmmov %vm10675_vm0  ;;  %v6108_v23 = vld [vmem:[%s10090_s5 + $0x460] sm:$0xff] }
 0xabc   : > { %4851 = vmatpush.msrb.mxu1 %v6610_v37  ;;  %6137 = vmatmul.msk.f32.gmra.mxu3 %vm10691_vm5, %v6097_v36  ;;  %v4765_v40 = vsel %vm10692_vm15, %v6609_v49, %v6610_v37  ;;  %vm10706_vm0 = vmmov %vm10704_vm14  ;;  %v6110_v49 = vld [vmem:[%s10090_s5 + $0x470] sm:$0xff] }
 0xabd   : > { %4662 = vmatpush.msrb.mxu2 %v4613_v50  ;;  %4810 = vmatpush.msrb.mxu0 %v4765_v40  ;;  %v4763_v22 = vsel %vm10706_vm0, %v6619_v52, %v6620_v15  ;;  %vm10707_vm5 = vmmov %vm10696_vm1 }
 0xabe   : > { %6129 = vmatmul.msk.f32.gmra.mxu2 %vm10693_vm8, %v6097_v36  ;;  %4704 = vmatpush.msrb.mxu3 %v6585_v62  ;;  %vm10708_vm15 = vmmov %vm10696_vm1  ;;  %v9620_v54 = vpop.f32.mrf.mxu1  ;;  %v6119_v36 = vld [vmem:[%s10090_s5 + $0x4b8] sm:$0xff]  ;;  %v6109_v62 = vld [vmem:[%s10090_s5 + $0x468] sm:$0xff] }
 0xabf   : > { %4663 = vmatpush.msrb.mxu2 %v4612_v56  ;;  %6158 = vmatmul.msk.f32.gmra.mxu1 %vm10708_vm15, %v6094_v4  ;;  %vm10709_vm8 = vmmov %vm10696_vm1  ;;  %v9605_v0 = vpop.f32.mrf.mxu0  ;;  %v6120_v56 = vld [vmem:[%s10090_s5 + $0x4c0] sm:$0xff] }
 0xac0   : > { %5001 = vmatpush.msra.mxu3 %v6605_v10  ;;  %v6588_v48 = vpop.permute.xlu0 %6587  ;;  %6150 = vmatmul.msk.f32.gmra.mxu0 %vm10709_vm8, %v6094_v4  ;;  %vm10710_vm10 = vmmov %vm10706_vm0 }
 0xac1   : > { %4960 = vmatpush.msra.mxu2 %v4915_v57  ;;  %v6590_v1 = vunpack.i.h.bf16 %v6588_v48  ;;  %v6589_v12 = vunpack.i.l.bf16 %v6588_v48  ;;  %v6613_v44 = vpop.permute.xlu1 %6612  ;;  %vm10721_vm0 = vmmov %vm10696_vm1 }
 0xac2   : > { %v6615_v31 = vunpack.i.h.bf16 %v6613_v44  ;;  %v6614_v39 = vunpack.i.l.bf16 %v6613_v44  ;;  %vm10723_vm15 = vmmov %vm10721_vm0 }
 0xac3   : > { %5002 = vmatpush.msra.mxu3 %v6590_v1  ;;  %v4914_v33 = vsel %vm10697_vm4, %v6589_v12, %v6590_v1  ;;  %vm10712_vm4 = vmmov %vm10696_vm1  ;;  %v6121_v12 = vld [vmem:[%s10090_s5 + $0x4c8] sm:$0xff] }
 0xac4   : > { %6138 = vmatmul.msk.f32.gmra.mxu3 %vm10699_vm9, %v6098_v32  ;;  %4961 = vmatpush.msra.mxu2 %v4914_v33  ;;  %v4912_v25 = vsel %vm10702_vm7, %v6614_v39, %v6615_v31  ;;  %vm10714_vm9 = vmmov %vm10696_vm1 }
 0xac5   : > { %5003 = vmatpush.msra.mxu3 %v6595_v18  ;;  %vm10717_vm7 = vmmov %vm10696_vm1 }
 0xac6   : > { %6130 = vmatmul.msk.f32.gmra.mxu2 %vm10700_vm12, %v6098_v32  ;;  %vm10715_vm12 = vmmov %vm10696_vm1  ;;  %v9634_v42 = vpop.f32.mrf.mxu1 }
 0xac7   : > { %4962 = vmatpush.msra.mxu2 %v4913_v19  ;;  %5004 = vmatpush.msra.mxu3 %v6615_v31  ;;  %vm10724_vm8 = vmmov %vm10721_vm0  ;;  %v9622_v55 = vpop.f32.mrf.mxu0 }
 0xac8   : > { %v6598_v43 = vpop.permute.xlu0 %6597  ;;  %6159 = vmatmul.msk.f32.gmra.mxu1 %vm10712_vm4, %v6095_v3  ;;  %6151 = vmatmul.msk.f32.gmra.mxu0 %vm10713_vm2, %v6095_v3  ;;  %vm10728_vm4 = vmmov %vm10721_vm0  ;;  %v6125_v3 = vld [vmem:[%s10090_s5 + $0x4e8] sm:$0xff] }
 0xac9   : > { %v6600_v8 = vunpack.i.h.bf16 %v6598_v43  ;;  %v6599_v24 = vunpack.i.l.bf16 %v6598_v43  ;;  %4963 = vmatpush.msra.mxu2 %v4912_v25  ;;  %vm10729_vm2 = vmmov %vm10721_vm0  ;;  %v6123_v25 = vld [vmem:[%s10090_s5 + $0x4d8] sm:$0xff] }
 0xacb   : > { %4852 = vmatpush.msrb.mxu1 %v6600_v8  ;;  %v4764_v2 = vsel %vm10704_vm14, %v6599_v24, %v6600_v8  ;;  %vm10719_vm14 = vmmov %vm10696_vm1 }
 0xacc   : > { %6139 = vmatmul.msk.f32.gmra.mxu3 %vm10705_vm6, %v6099_v13  ;;  %4811 = vmatpush.msrb.mxu0 %v4764_v2  ;;  %vm10720_vm6 = vmmov %vm10696_vm1 }
 0xacd   : > { %4853 = vmatpush.msrb.mxu1 %v6620_v15 }
 0xace   : > { %6131 = vmatmul.msk.f32.gmra.mxu2 %vm10707_vm5, %v6099_v13  ;;  %4812 = vmatpush.msrb.mxu0 %v4763_v22  ;;  %vm10722_vm5 = vmmov %vm10721_vm0  ;;  %v9644_v17 = vpop.f32.mrf.mxu1  ;;  %v6124_v22 = vld [vmem:[%s10090_s5 + $0x4e0] sm:$0xff] }
 0xacf   : > { %v9637_v37 = vpop.f32.mrf.mxu0 }
 0xad0   : > { %v6623_v28 = vpop.permute.xlu0 %6622 }
 0xad1   : > { %v6625_v41 = vunpack.i.h.bf16 %v6623_v28  ;;  %v6624_v34 = vunpack.i.l.bf16 %v6623_v28 }
 0xad3   : > { %4854 = vmatpush.msrb.mxu1 %v6625_v41  ;;  %v4762_v27 = vsel %vm10710_vm10, %v6624_v34, %v6625_v41  ;;  %vm10725_vm10 = vmmov %vm10721_vm0 }
 0xad4   : > { %6140 = vmatmul.msk.f32.gmra.mxu3 %vm10711_vm3, %v6100_v30  ;;  %4813 = vmatpush.msrb.mxu0 %v4762_v27  ;;  %vm10726_vm3 = vmmov %vm10721_vm0 }
 0xad5   : > { %6184 = vmatmul.msk.f32.vlgmr.msrb.gmra.mxu1 %vm10716_vm13, %v6112_v63  ;;  %6176 = vmatmul.msk.f32.vlgmr.msrb.gmra.mxu0 %vm10717_vm7, %v6112_v63  ;;  %vm10732_vm13 = vmmov %vm10721_vm0 }
 0xad6   : > { %6132 = vmatmul.msk.f32.gmra.mxu2 %vm10696_vm1, %v6100_v30  ;;  %vm10727_vm1 = vmmov %vm10721_vm0  ;;  %v4575_v50 = vpop.f32.mrf.mxu1 }
 0xad7   : > { %vm10733_vm7 = vmmov %vm10721_vm0  ;;  %v9646_v10 = vpop.f32.mrf.mxu0 }
 0xadc   : > { %6141 = vmatmul.msk.f32.gmra.mxu3 %vm10714_vm9, %v6101_v5  ;;  %vm10730_vm9 = vmmov %vm10721_vm0 }
 0xadd   : > { %6185 = vmatmul.msk.f32.gmra.mxu1 %vm10720_vm6, %v6113_v9  ;;  %6177 = vmatmul.msk.f32.gmra.mxu0 %vm10721_vm0, %v6113_v9  ;;  %vm10736_vm6 = vmmov %vm10721_vm0 }
 0xade   : > { %6133 = vmatmul.msk.f32.gmra.mxu2 %vm10715_vm12, %v6101_v5  ;;  %vm10731_vm12 = vmmov %vm10721_vm0  ;;  %v4578_v1 = vpop.f32.mrf.mxu1 }
 0xadf   : > { %v4534_v40 = vpop.f32.mrf.mxu0 }
 0xae4   : > { %6142 = vmatmul.msk.f32.gmra.mxu3 %vm10718_vm11, %v6102_v11  ;;  %vm10734_vm11 = vmmov %vm10721_vm0 }
 0xae5   : > { %6186 = vmatmul.msk.f32.gmra.mxu1 %vm10724_vm8, %v6114_v6  ;;  %6178 = vmatmul.msk.f32.gmra.mxu0 %vm10725_vm10, %v6114_v6  ;;  %vm10739_vm8 = vmmov %vm10721_vm0  ;;  %v6126_v6 = vld [vmem:[%s10090_s5 + $0x4f0] sm:$0xff] }
 0xae6   : > { %6134 = vmatmul.msk.f32.gmra.mxu2 %vm10719_vm14, %v6102_v11  ;;  %vm10735_vm14 = vmmov %vm10721_vm0  ;;  %v4581_v31 = vpop.f32.mrf.mxu1 }
 0xae7   : > { %vm10740_vm10 = vmmov %vm10721_vm0  ;;  %v4537_v44 = vpop.f32.mrf.mxu0 }
 0xaec   : > { %6143 = vmatmul.msk.f32.gmra.mxu3 %vm10722_vm5, %v6103_v59  ;;  %vm10737_vm5 = vmmov %vm10721_vm0 }
 0xaed   : > { %6187 = vmatmul.msk.f32.gmra.mxu1 %vm10728_vm4, %v6115_v16  ;;  %6179 = vmatmul.msk.f32.gmra.mxu0 %vm10729_vm2, %v6115_v16  ;;  %vm10743_vm4 = vmmov %vm10721_vm0 }
 0xaee   : > { %6135 = vmatmul.msk.f32.gmra.mxu2 %vm10723_vm15, %v6103_v59  ;;  %vm10738_vm15 = vmmov %vm10721_vm0  ;;  %v4584_v52 = vpop.f32.mrf.mxu1 }
 0xaef   : > { %vm10744_vm2 = vmmov %vm10721_vm0  ;;  %v4540_v39 = vpop.f32.mrf.mxu0 }
 0xaf4   : > { %6168 = vmatmul.msk.f32.vlgmr.msrb.gmra.mxu3 %vm10726_vm3, %v6104_v46  ;;  %vm10741_vm3 = vmmov %vm10721_vm0 }
 0xaf5   : > { %6188 = vmatmul.msk.f32.gmra.mxu1 %vm10732_vm13, %v6116_v29  ;;  %6180 = vmatmul.msk.f32.gmra.mxu0 %vm10733_vm7, %v6116_v29  ;;  %vm10747_vm13 = vmmov %vm10721_vm0 }
 0xaf6   : > { %6160 = vmatmul.msk.f32.vlgmr.msrb.gmra.mxu2 %vm10727_vm1, %v6104_v46  ;;  %vm10742_vm1 = vmmov %vm10721_vm0 }
 0xaf7   : > { %vm10748_vm7 = vmmov %vm10721_vm0 }
 0xafc   : > { %6169 = vmatmul.msk.f32.gmra.mxu3 %vm10730_vm9, %v6105_v53  ;;  %vm10745_vm9 = vmmov %vm10721_vm0 }
 0xafd   : > { %6189 = vmatmul.msk.f32.gmra.mxu1 %vm10736_vm6, %v6117_v21  ;;  %6181 = vmatmul.msk.f32.gmra.mxu0 %vm10721_vm0, %v6117_v21  ;;  %vm10751_vm6 = vmmov %vm10721_vm0  ;;  %v6127_v21 = vld [vmem:[%s10090_s5 + $0x4f8] sm:$0xff] }
 0xafe   : > { %6161 = vmatmul.msk.f32.gmra.mxu2 %vm10731_vm12, %v6105_v53  ;;  %vm10746_vm12 = vmmov %vm10721_vm0 }
 0xb04   : > { %6170 = vmatmul.msk.f32.gmra.mxu3 %vm10734_vm11, %v6106_v51  ;;  %vm10749_vm11 = vmmov %vm10721_vm0 }
 0xb05   : > { %6190 = vmatmul.msk.f32.gmra.mxu1 %vm10739_vm8, %v6118_v60  ;;  %6182 = vmatmul.msk.f32.gmra.mxu0 %vm10740_vm10, %v6118_v60  ;;  %vm10754_vm8 = vmmov %vm10721_vm0 }
 0xb06   : > { %6162 = vmatmul.msk.f32.gmra.mxu2 %vm10735_vm14, %v6106_v51  ;;  %vm10750_vm14 = vmmov %vm10721_vm0 }
 0xb07   : > { %vm10755_vm10 = vmmov %vm10721_vm0 }
 0xb0c   : > { %6171 = vmatmul.msk.f32.gmra.mxu3 %vm10737_vm5, %v6107_v14  ;;  %vm10752_vm5 = vmmov %vm10721_vm0 }
 0xb0d   : > { %6191 = vmatmul.msk.f32.gmra.mxu1 %vm10743_vm4, %v6119_v36  ;;  %6183 = vmatmul.msk.f32.gmra.mxu0 %vm10744_vm2, %v6119_v36  ;;  %vm10758_vm4 = vmmov %vm10721_vm0 }
 0xb0e   : > { %6163 = vmatmul.msk.f32.gmra.mxu2 %vm10738_vm15, %v6107_v14  ;;  %vm10753_vm15 = vmmov %vm10721_vm0 }
 0xb0f   : > { %vm10759_vm2 = vmmov %vm10721_vm0 }
 0xb14   : > { %6172 = vmatmul.msk.f32.gmra.mxu3 %vm10741_vm3, %v6108_v23  ;;  %vm10756_vm3 = vmmov %vm10721_vm0 }
 0xb16   : > { %6164 = vmatmul.msk.f32.gmra.mxu2 %vm10742_vm1, %v6108_v23  ;;  %vm10757_vm1 = vmmov %vm10721_vm0 }
 0xb1c   : > { %6173 = vmatmul.msk.f32.gmra.mxu3 %vm10745_vm9, %v6109_v62  ;;  %vm10760_vm9 = vmmov %vm10721_vm0 }
 0xb1e   : > { %6165 = vmatmul.msk.f32.gmra.mxu2 %vm10746_vm12, %v6109_v62  ;;  %vm10761_vm12 = vmmov %vm10721_vm0 }
 0xb21   : > { %v4543_v8 = vpop.f32.mrf.mxu0 }
 0xb24   : > { %6174 = vmatmul.msk.f32.gmra.mxu3 %vm10747_vm13, %v6110_v49  ;;  %vm10762_vm13 = vmmov %vm10721_vm0 }
 0xb26   : > { %6166 = vmatmul.msk.f32.gmra.mxu2 %vm10748_vm7, %v6110_v49  ;;  %vm10763_vm7 = vmmov %vm10721_vm0 }
 0xb29   : > { %v4546_v34 = vpop.f32.mrf.mxu0 }
 0xb2c   : > { %6175 = vmatmul.msk.f32.gmra.mxu3 %vm10749_vm11, %v6111_v58  ;;  %vm10764_vm11 = vmmov %vm10721_vm0 }
 0xb2e   : > { %6167 = vmatmul.msk.f32.gmra.mxu2 %vm10750_vm14, %v6111_v58  ;;  %vm10765_vm14 = vmmov %vm10721_vm0 }
 0xb33   : > { %v4587_v28 = vpop.f32.mrf.mxu1 }
 0xb34   : > { %6200 = vmatmul.msk.f32.vlgmr.msra.gmra.mxu3 %vm10751_vm6, %v6120_v56 }
 0xb36   : > { %6192 = vmatmul.msk.f32.vlgmr.msra.gmra.mxu2 %vm10721_vm0, %v6120_v56 }
 0xb37   : > { %v9659_v57 = vpop.f32.mrf.mxu3 }
 0xb38   : > { %v9661_v48 = vpop.f32.mrf.mxu2 }
 0xb39   : > { %v4532_v56 = vadd.f32 %v9646_v10, %v9661_v48 }
 0xb3c   : > { %6201 = vmatmul.msk.f32.gmra.mxu3 %vm10752_vm5, %v6121_v12  ;;  %v4590_v9 = vpop.f32.mrf.mxu1 }
 0xb3d   : > { %v4549_v46 = vpop.f32.mrf.mxu0 }
 0xb3e   : > { %6193 = vmatmul.msk.f32.gmra.mxu2 %vm10753_vm15, %v6121_v12 }
 0xb3f   : > { %v4469_v32 = vpop.f32.mrf.mxu3 }
 0xb40   : > { %v9668_v18 = vadd.f32 %v4575_v50, %v4469_v32  ;;  %v4573_v50 = vadd.f32 %v9644_v17, %v9659_v57 }
 0xb41   : > { %v4428_v20 = vpop.f32.mrf.mxu2 }
 0xb42   : > { %v9673_v33 = vadd.f32 %v4534_v40, %v4428_v20 }
 0xb44   : > { %6202 = vmatmul.msk.f32.gmra.mxu3 %vm10754_vm8, %v6122_v38 }
 0xb45   : > { %v9704_v60 = vpop.f32.mrf.mxu1  ;;  %v9706_v23 = vpop.f32.mrf.mxu0 }
 0xb46   : > { %6194 = vmatmul.msk.f32.gmra.mxu2 %vm10755_vm10, %v6122_v38 }
 0xb47   : > { %v4472_v26 = vpop.f32.mrf.mxu3 }
 0xb48   : > { %v9677_v19 = vadd.f32 %v4578_v1, %v4472_v26 }
 0xb49   : > { %v4431_v43 = vpop.f32.mrf.mxu2 }
 0xb4a   : > { %v9682_v15 = vadd.f32 %v4537_v44, %v4431_v43 }
 0xb4c   : > { %6203 = vmatmul.msk.f32.gmra.mxu3 %vm10756_vm3, %v6123_v25 }
 0xb4e   : > { %6195 = vmatmul.msk.f32.gmra.mxu2 %vm10757_vm1, %v6123_v25 }
 0xb4f   : > { %v4475_v24 = vpop.f32.mrf.mxu3 }
 0xb50   : > { %v4582_v13 = vadd.f32 %v4581_v31, %v4475_v24 }
 0xb51   : > { %v4434_v2 = vpop.f32.mrf.mxu2 }
 0xb52   : > { %v4541_v4 = vadd.f32 %v4540_v39, %v4434_v2  ;;  %v4856_v49 = vpop.f32.mrf.mxu1  ;;  %v4815_v58 = vpop.f32.mrf.mxu0 }
 0xb54   : > { %6204 = vmatmul.msk.f32.gmra.mxu3 %vm10758_vm4, %v6124_v22 }
 0xb56   : > { %6196 = vmatmul.msk.f32.gmra.mxu2 %vm10759_vm2, %v6124_v22 }
 0xb57   : > { %v4478_v41 = vpop.f32.mrf.mxu3 }
 0xb58   : > { %v4585_v30 = vadd.f32 %v4584_v52, %v4478_v41 }
 0xb59   : > { %v4437_v27 = vpop.f32.mrf.mxu2 }
 0xb5a   : > { %v4544_v5 = vadd.f32 %v4543_v8, %v4437_v27  ;;  %v4859_v38 = vpop.f32.mrf.mxu1  ;;  %v4818_v39 = vpop.f32.mrf.mxu0 }
 0xb5c   : > { %6205 = vmatmul.msk.f32.gmra.mxu3 %vm10760_vm9, %v6125_v3 }
 0xb5e   : > { %6197 = vmatmul.msk.f32.gmra.mxu2 %vm10761_vm12, %v6125_v3 }
 0xb5f   : > { %v4481_v63 = vpop.f32.mrf.mxu3 }
 0xb60   : > { %v4588_v11 = vadd.f32 %v4587_v28, %v4481_v63 }
 0xb61   : > { %v4440_v59 = vpop.f32.mrf.mxu2 }
 0xb62   : > { %v4547_v16 = vadd.f32 %v4546_v34, %v4440_v59  ;;  %v4862_v57 = vpop.f32.mrf.mxu1  ;;  %v4821_v48 = vpop.f32.mrf.mxu0 }
 0xb64   : > { %6206 = vmatmul.msk.f32.gmra.mxu3 %vm10762_vm13, %v6126_v6 }
 0xb66   : > { %6198 = vmatmul.msk.f32.gmra.mxu2 %vm10763_vm7, %v6126_v6 }
 0xb67   : > { %v4484_v53 = vpop.f32.mrf.mxu3 }
 0xb68   : > { %v4591_v29 = vadd.f32 %v4590_v9, %v4484_v53 }
 0xb69   : > { %v4443_v51 = vpop.f32.mrf.mxu2 }
 0xb6a   : > { %v4550_v14 = vadd.f32 %v4549_v46, %v4443_v51 }
 0xb6c   : > { %6207 = vmatmul.msk.f32.gmra.mxu3 %vm10764_vm11, %v6127_v21 }
 0xb6e   : > { %6199 = vmatmul.msk.f32.gmra.mxu2 %vm10765_vm14, %v6127_v21 }
 0xb6f   : > { %v9710_v36 = vpop.f32.mrf.mxu3 }
 0xb71   : > { %v9712_v62 = vpop.f32.mrf.mxu2 }
 0xb77   : > { %v4706_v40 = vpop.f32.mrf.mxu3 }
 0xb78   : > { %v4731_v1 = vadd.f32 %v4706_v40, %v4573_v50 }
 0xb79   : > { %v4665_v12 = vpop.f32.mrf.mxu2 }
 0xb7a   : > { %v4730_v44 = vadd.f32 %v4665_v12, %v4532_v56  ;;  %v4881_v32 = vadd.f32 %v4856_v49, %v4731_v1 }
 0xb7c   : > { %v4880_v20 = vadd.f32 %v4815_v58, %v4730_v44 }
 0xb7f   : > { %v4709_v31 = vpop.f32.mrf.mxu3 }
 0xb80   : > { %v4733_v26 = vadd.f32 %v4709_v31, %v9668_v18  ;;  %v9742_v31 = vpop.permute.xlu2 %5087 }
 0xb81   : > { %v4668_v43 = vpop.f32.mrf.mxu2 }
 0xb82   : > { %v4732_v25 = vadd.f32 %v4668_v43, %v9673_v33  ;;  %v4883_v52 = vadd.f32 %v4859_v38, %v4733_v26 }
 0xb84   : > { %v4882_v8 = vadd.f32 %v4818_v39, %v4732_v25 }
 0xb87   : > { %v4712_v17 = vpop.f32.mrf.mxu3 }
 0xb88   : > { %v4735_v24 = vadd.f32 %v4712_v17, %v9677_v19 }
 0xb89   : > { %v4671_v10 = vpop.f32.mrf.mxu2 }
 0xb8a   : > { %v4734_v2 = vadd.f32 %v4671_v10, %v9682_v15  ;;  %v4885_v22 = vadd.f32 %v4862_v57, %v4735_v24 }
 0xb8c   : > { %v4884_v28 = vadd.f32 %v4821_v48, %v4734_v2 }
 0xb8f   : > { %v4715_v41 = vpop.f32.mrf.mxu3 }
 0xb90   : > { %v9722_v34 = vadd.f32 %v4715_v41, %v4582_v13 }
 0xb91   : > { %v4674_v27 = vpop.f32.mrf.mxu2 }
 0xb92   : > { %v9724_v18 = vadd.f32 %v4674_v27, %v4541_v4 }
 0xb97   : > { %v4718_v3 = vpop.f32.mrf.mxu3 }
 0xb98   : > { %v4739_v33 = vadd.f32 %v4718_v3, %v4585_v30 }
 0xb99   : > { %v4677_v63 = vpop.f32.mrf.mxu2 }
 0xb9a   : > { %v4738_v9 = vadd.f32 %v4677_v63, %v4544_v5 }
 0xb9f   : > { %v4721_v59 = vpop.f32.mrf.mxu3 }
 0xba0   : > { %v4741_v6 = vadd.f32 %v4721_v59, %v4588_v11  ;;  %v9734_v11 = vpop.f32.mrf.mxu1  ;;  %v5083_v59 = vpop.permute.xlu0 %5082 }
 0xba1   : > { %v4680_v46 = vpop.f32.mrf.mxu2 }
 0xba2   : > { %v4740_v19 = vadd.f32 %v4680_v46, %v4547_v16  ;;  %v9736_v16 = vpop.f32.mrf.mxu0 }
 0xba7   : > { %v4724_v53 = vpop.f32.mrf.mxu3 }
 0xba8   : > { %v4743_v51 = vadd.f32 %v4724_v53, %v4591_v29  ;;  %v4868_v38 = vpop.f32.mrf.mxu1 }
 0xba9   : > { %v4683_v21 = vpop.f32.mrf.mxu2  ;;  %v4889_v43 = vadd.f32 %v4868_v38, %v4739_v33 }
 0xbaa   : > { %v9726_v15 = vadd.f32 %v4683_v21, %v4550_v14 }
 0xbaf   : > { %v9728_v49 = vpop.f32.mrf.mxu3 }
 0xbb0   : > { %v4871_v25 = vpop.f32.mrf.mxu1 }
 0xbb1   : > { %v9730_v13 = vpop.f32.mrf.mxu2  ;;  %v4891_v27 = vadd.f32 %v4871_v25, %v4741_v6  ;;  %v4594_v6 = vadd.f32 %v9704_v60, %v9710_v36 }
 0xbb3   : > { %v4745_v60 = vadd.f32 %v9728_v49, %v4594_v6 }
 0xbb7   : > { %v5006_v58 = vpop.f32.mrf.mxu3 }
 0xbb8   : > { %v5031_v4 = vadd.f32 %v5006_v58, %v4881_v32  ;;  %v4827_v32 = vpop.f32.mrf.mxu0  ;;  %v4874_v58 = vpop.f32.mrf.mxu1 }
 0xbb9   : > { %v4965_v50 = vpop.f32.mrf.mxu2  ;;  %v4888_v17 = vadd.f32 %v4827_v32, %v4738_v9  ;;  %v4893_v25 = vadd.f32 %v4874_v58, %v4743_v51 }
 0xbba   : > { %v5030_v40 = vadd.f32 %v4965_v50, %v4880_v20  ;;  %v9744_v20 = vpop.permute.xlu1 %5092 }
 0xbbf   : > { %v5009_v30 = vpop.f32.mrf.mxu3 }
 0xbc0   : > { %v5033_v56 = vadd.f32 %v5009_v30, %v4883_v52  ;;  %v4830_v57 = vpop.f32.mrf.mxu0 }
 0xbc1   : > { %v4968_v5 = vpop.f32.mrf.mxu2  ;;  %v4890_v46 = vadd.f32 %v4830_v57, %v4740_v19 }
 0xbc2   : > { %v9732_v1 = vadd.f32 %v4968_v5, %v4882_v8  ;;  %v9754_v8 = vpop.permute.xlu2 %5072  ;;  %v5078_v10 = vpop.permute.xlu1 %5077 }
 0xbc7   : > { %v5012_v29 = vpop.f32.mrf.mxu3 }
 0xbc8   : > { %v9738_v14 = vadd.f32 %v5012_v29, %v4885_v22  ;;  %v4833_v30 = vpop.f32.mrf.mxu0 }
 0xbc9   : > { %v4971_v12 = vpop.f32.mrf.mxu2  ;;  %v4892_v57 = vadd.f32 %v4833_v30, %v9726_v15  ;;  %v5068_v15 = vpop.permute.xlu0 %5067 }
 0xbca   : > { %v9740_v44 = vadd.f32 %v4971_v12, %v4884_v28  ;;  %v5058_v9 = vpop.permute.xlu2 %5057 }
 0xbcb   : > { %v5096_v12 = vadd.f32 %v5058_v9, %v5031_v4 }
 0xbcc   : > { %v5099_v30 = vadd.f32 %v5068_v15, %v9740_v44 }
 0xbcf   : > { %v9746_v39 = vpop.f32.mrf.mxu3 }
 0xbd0   : > { %v4836_v49 = vpop.f32.mrf.mxu0 }
 0xbd1   : > { %v9748_v26 = vpop.f32.mrf.mxu2 }
 0xbd7   : > { %v5018_v52 = vpop.f32.mrf.mxu3 }
 0xbd8   : > { %v5039_v24 = vadd.f32 %v5018_v52, %v4889_v43 }
 0xbd9   : > { %v4977_v48 = vpop.f32.mrf.mxu2 }
 0xbda   : > { %v5104_v2 = vadd.f32 %v5078_v10, %v5039_v24  ;;  %v5038_v22 = vadd.f32 %v4977_v48, %v4888_v17  ;;  %v5063_v17 = vpop.permute.xlu1 %5062  ;;  %v5095_v24 = vadd.f32 %v5058_v9, %v5030_v40 }
 0xbdb   : > { %v5097_v36 = vadd.f32 %v5063_v17, %v9732_v1 }
 0xbdc   : > { %v5120_v28 = vsub.f32 0.0, %v5104_v2  ;;  %v5103_v41 = vadd.f32 %v5078_v10, %v5038_v22  ;;  %v5098_v22 = vadd.f32 %v5063_v17, %v5033_v56 }
 0xbde   : > { %v5129_v3 = vmul.f32 1.442695, %v5120_v28  ;;  %v5119_v33 = vsub.f32 0.0, %v5103_v41  ;;  %v4553_v41 = vadd.f32 %v9706_v23, %v9712_v62  ;;  %v4877_v23 = vpop.f32.mrf.mxu1  ;;  %v5100_v62 = vadd.f32 %v5068_v15, %v9738_v14 }
 0xbdf   : > { %v5021_v63 = vpop.f32.mrf.mxu3  ;;  %v4886_v14 = vadd.f32 %v9736_v16, %v9724_v18 }
 0xbe0   : > { %6770 = vpow2.f32 %v5129_v3  ;;  %v5127_v53 = vmul.f32 1.442695, %v5119_v33  ;;  %v5041_v21 = vadd.f32 %v5021_v63, %v4891_v27  ;;  %v4887_v3 = vadd.f32 %v9734_v11, %v9722_v34 }
 0xbe1   : > { %v4980_v50 = vpop.f32.mrf.mxu2  ;;  %v4744_v33 = vadd.f32 %v9730_v13, %v4553_v41 }
 0xbe2   : > { %6772 = vpow2.f32 %v5127_v53  ;;  %v5106_v5 = vadd.f32 %v5083_v59, %v5041_v21  ;;  %v5040_v29 = vadd.f32 %v4980_v50, %v4890_v46  ;;  %v5037_v46 = vadd.f32 %v9746_v39, %v4887_v3 }
 0xbe3   : > { %6774 = vtanh.f32 %v5096_v12  ;;  %v4895_v21 = vadd.f32 %v4877_v23, %v4745_v60  ;;  %v4894_v58 = vadd.f32 %v4836_v49, %v4744_v33 }
 0xbe4   : > { %v5122_v38 = vsub.f32 0.0, %v5106_v5  ;;  %v5105_v32 = vadd.f32 %v5083_v59, %v5040_v29  ;;  %v5102_v12 = vadd.f32 %v9754_v8, %v5037_v46 }
 0xbe6   : > { %v6771_v43 = vpop.eup %6770  ;;  %v5133_v52 = vmul.f32 1.442695, %v5122_v38  ;;  %v5121_v19 = vsub.f32 0.0, %v5105_v32  ;;  %v5036_v38 = vadd.f32 %v9748_v26, %v4886_v14 }
 0xbe7   : > { %v9759_v10 = vadd.f32 1.0, %v6771_v43  ;;  %v5024_v48 = vpop.f32.mrf.mxu3 }
 0xbe8   : > { %v6773_v2 = vpop.eup %6772  ;;  %6776 = vpow2.f32 %v5133_v52  ;;  %v5131_v4 = vmul.f32 1.442695, %v5121_v19  ;;  %v5043_v28 = vadd.f32 %v5024_v48, %v4893_v25 }
 0xbe9   : > { %6778 = vrcp.f32 %v9759_v10  ;;  %v4983_v51 = vpop.f32.mrf.mxu2  ;;  %v9766_v40 = vadd.f32 1.0, %v6773_v2  ;;  %v9774_v59 = vpop.eup %6774  ;;  %v5177_v17 = vand.u32 2147483648, %v9759_v10  ;;  %vm5171_vm6 = vweird.f32 %v9759_v10 }
 0xbea   : > { %6780 = vpow2.f32 %v5131_v4  ;;  %v5108_v27 = vadd.f32 %v9742_v31, %v5043_v28  ;;  %v5042_v56 = vadd.f32 %v4983_v51, %v4892_v57  ;;  %v5175_v28 = vand.u32 2147483647, %v9759_v10 }
 0xbeb   : > { %6782 = vtanh.f32 %v5095_v24  ;;  %v9807_v24 = vadd.f32 %v9754_v8, %v5036_v38  ;;  %v5162_v8 = vand.u32 2147483648, %v9766_v40  ;;  %vm5156_vm3 = vweird.f32 %v9766_v40 }
 0xbec   : > { %6784 = vtanh.f32 %v5098_v22  ;;  %v5124_v1 = vsub.f32 0.0, %v5108_v27  ;;  %v5107_v63 = vadd.f32 %v9742_v31, %v5042_v56  ;;  %v9821_v56 = vor.u32 1.1754944e-38, %v5177_v17 }
 0xbed   : > { %6786 = vtanh.f32 %v5097_v36  ;;  %v5160_v36 = vand.u32 2147483647, %v9766_v40  ;;  %vm9844_vm5 = vcmp.eq.f32.partialorder %v5175_v28, 8.507059e+37 }
 0xbee   : > { %v6777_v53 = vpop.eup %6776  ;;  %6788 = vrcp.f32 %v9766_v40  ;;  %v5137_v34 = vmul.f32 1.442695, %v5124_v1  ;;  %v5123_v13 = vsub.f32 0.0, %v5107_v63 }
 0xbef   : > { %v9778_v11 = vpop.eup %6778  ;;  %6790 = vtanh.f32 %v5100_v62  ;;  %v9782_v50 = vadd.f32 1.0, %v6777_v53  ;;  %v5027_v31 = vpop.f32.mrf.mxu3  ;;  %vm9878_vm12 = vcmp.eq.f32.partialorder %v5160_v36, 8.507059e+37 }
 0xbf0   : > { %v6781_v9 = vpop.eup %6780  ;;  %6792 = vpow2.f32 %v5137_v34  ;;  %v5135_v39 = vmul.f32 1.442695, %v5123_v13  ;;  %v5045_v5 = vadd.f32 %v5027_v31, %v4895_v21  ;;  %v5167_v6 = vmul.f32 %v9778_v11, %v9759_v10 }
 0xbf1   : > { %v9785_v29 = vpop.eup %6782  ;;  %6794 = vrcp.f32 %v9782_v50  ;;  %v9790_v18 = vadd.f32 1.0, %v6781_v9  ;;  %v4986_v16 = vpop.f32.mrf.mxu2  ;;  %v5205_v23 = vand.u32 2147483647, %v9782_v50  ;;  %v5207_v62 = vand.u32 2147483648, %v9782_v50 }
 0xbf2   : > { %v9792_v32 = vpop.eup %6784  ;;  %6796 = vpow2.f32 %v5135_v39  ;;  %v5110_v43 = vadd.f32 %v9744_v20, %v5045_v5  ;;  %v5044_v44 = vadd.f32 %v4986_v16, %v4894_v58  ;;  %v5168_v4 = vsub.f32 1.0, %v5167_v6 }
 0xbf3   : > { %v9797_v25 = vpop.eup %6786  ;;  %6798 = vrcp.f32 %v9790_v18  ;;  %v5190_v21 = vand.u32 2147483647, %v9790_v18  ;;  %v9839_v13 = vor.u32 1.1754944e-38, %v5162_v8  ;;  %vm5201_vm0 = vweird.f32 %v9782_v50 }
 0xbf4   : > { %v9800_v52 = vpop.eup %6788  ;;  %6800 = vtanh.f32 %v5099_v30  ;;  %v5126_v26 = vsub.f32 0.0, %v5110_v43  ;;  %v5109_v19 = vadd.f32 %v9744_v20, %v5044_v44  ;;  %v5169_v46 = vmul.f32 %v9778_v11, %v5168_v4 }
 0xbf5   : > { %v9804_v57 = vpop.eup %6790  ;;  %6802 = vtanh.f32 %v5102_v12  ;;  %v5152_v20 = vmul.f32 %v9800_v52, %v9766_v40  ;;  %v5192_v31 = vand.u32 2147483648, %v9790_v18  ;;  %vm9848_vm15 = vcmp.eq.f32.partialorder %v5205_v23, 8.507059e+37 }
 0xbf6   : > { %v6793_v48 = vpop.eup %6792  ;;  %v5141_v2 = vmul.f32 1.442695, %v5126_v26  ;;  %v5125_v22 = vsub.f32 0.0, %v5109_v19  ;;  %v5208_v39 = vor.u32 1.1754944e-38, %v5207_v62  ;;  %vm5186_vm8 = vweird.f32 %v9790_v18 }
 0xbf7   : > { %v9810_v41 = vpop.eup %6794  ;;  %v9812_v60 = vadd.f32 1.0, %v6793_v48  ;;  %v5153_v34 = vsub.f32 1.0, %v5152_v20  ;;  %vm5172_vm10 = vweird.f32 %v9778_v11  ;;  %v5170_v16 = vadd.f32 %v9778_v11, %v5169_v46 }
 0xbf8   : > { %v6797_v51 = vpop.eup %6796  ;;  %6804 = vpow2.f32 %v5141_v2  ;;  %v5139_v15 = vmul.f32 1.442695, %v5125_v22  ;;  %v5197_v27 = vmul.f32 %v9810_v41, %v9782_v50  ;;  %vm5202_vm1 = vweird.f32 %v9810_v41  ;;  %vm9873_vm2 = vmor %vm5171_vm6, %vm5172_vm10  ;;  %v6219_v50 = vld [vmem:[%s10092_s7 + $0xd8] sm:$0xff] }
 0xbf9   : > { %v9823_v3 = vpop.eup %6798  ;;  %6806 = vrcp.f32 %v9812_v60  ;;  %v9826_v33 = vadd.f32 1.0, %v6797_v51  ;;  %v5235_v6 = vand.u32 2147483647, %v9812_v60  ;;  %vm9862_vm4 = vcmp.eq.f32.partialorder %v5190_v21, 8.507059e+37  ;;  %vm9889_vm13 = vmor %vm5201_vm0, %vm5202_vm1 }
 0xbfa   : > { %v9830_v49 = vpop.eup %6800  ;;  %6808 = vpow2.f32 %v5139_v15  ;;  %v5198_v1 = vsub.f32 1.0, %v5197_v27  ;;  %v5182_v63 = vmul.f32 %v9823_v3, %v9790_v18  ;;  %v5154_v19 = vmul.f32 %v9800_v52, %v5153_v34 }
 0xbfb   : > { %v9835_v53 = vpop.eup %6802  ;;  %6810 = vrcp.f32 %v9826_v33  ;;  %v5237_v2 = vand.u32 2147483648, %v9812_v60  ;;  %v5193_v22 = vor.u32 1.1754944e-38, %v5192_v31  ;;  %vm5157_vm9 = vweird.f32 %v9800_v52 }
 0xbfc   : > { %v5199_v14 = vmul.f32 %v9810_v41, %v5198_v1  ;;  %v5183_v58 = vsub.f32 1.0, %v5182_v63  ;;  %vm5187_vm7 = vweird.f32 %v9823_v3  ;;  %v5174_v23 = vsel %vm9873_vm2, %v9778_v11, %v5170_v16 }
 0xbfd   : > { %vm5231_vm11 = vweird.f32 %v9812_v60  ;;  %vm9904_vm14 = vcmp.eq.f32.partialorder %v5235_v6, 8.507059e+37  ;;  %v5155_v62 = vadd.f32 %v9800_v52, %v5154_v19  ;;  %v5220_v46 = vand.u32 2147483647, %v9826_v33  ;;  %vm5188_vm0 = vmor %vm5186_vm8, %vm5187_vm7 }
 0xbfe   : > { %v6805_v5 = vpop.eup %6804  ;;  %v5200_v12 = vadd.f32 %v9810_v41, %v5199_v14  ;;  %v5184_v38 = vmul.f32 %v9823_v3, %v5183_v58  ;;  %v5179_v34 = vsel %vm9844_vm5, %v9821_v56, %v5174_v23  ;;  %v5222_v31 = vand.u32 2147483648, %v9826_v33  ;;  %vm9924_vm8 = vmor %vm5156_vm3, %vm5157_vm9  ;;  %v6216_v23 = vld [vmem:[%s10092_s7 + $0xc0] sm:$0xff] }
 0xbff   : > { %v6807_v43 = vpop.eup %6806  ;;  %v9859_v44 = vadd.f32 1.0, %v6805_v5  ;;  %vm5216_vm5 = vweird.f32 %v9826_v33  ;;  %vm5221_vm3 = vcmp.eq.f32.partialorder %v5220_v46, 8.507059e+37  ;;  %v6223_v46 = vld [vmem:[%s10092_s7 + $0xf8] sm:$0xff] }
 0xc00   : > { %v6809_v17 = vpop.eup %6808  ;;  %v5227_v48 = vmul.f32 %v6807_v43, %v9812_v60  ;;  %v5185_v51 = vadd.f32 %v9823_v3, %v5184_v38  ;;  %v5204_v27 = vsel %vm9889_vm13, %v9810_v41, %v5200_v12  ;;  %vm5232_vm6 = vweird.f32 %v6807_v43 }
 0xc01   : > { %v6811_v20 = vpop.eup %6810  ;;  %6812 = vrcp.f32 %v9859_v44  ;;  %v9883_v8 = vadd.f32 1.0, %v6809_v17  ;;  %v5238_v41 = vor.u32 1.1754944e-38, %v5237_v2  ;;  %v5209_v11 = vsel %vm9848_vm15, %v5208_v39, %v5204_v27  ;;  %vm5233_vm15 = vmor %vm5231_vm11, %vm5232_vm6 }
 0xc02   : > { %v5228_v36 = vsub.f32 1.0, %v5227_v48  ;;  %v5212_v15 = vmul.f32 %v6811_v20, %v9826_v33  ;;  %v5189_v21 = vsel %vm5188_vm0, %v9823_v3, %v5185_v51  ;;  %v5274_v5 = vmul.f32 %v9792_v32, %v5209_v11  ;;  %v2911_v11 = vpop.permute.xlu1 %2910 }
 0xc03   : > { %6814 = vrcp.f32 %v9883_v8  ;;  %vm5217_vm10 = vweird.f32 %v6811_v20  ;;  %v5194_v56 = vsel %vm9862_vm4, %v5193_v22, %v5189_v21  ;;  %v5272_v3 = vmul.f32 %v9774_v59, %v5179_v34 }
 0xc04   : > { %v5229_v1 = vmul.f32 %v6807_v43, %v5228_v36  ;;  %v5213_v63 = vsub.f32 1.0, %v5212_v15  ;;  %v5159_v32 = vsel %vm9924_vm8, %v9800_v52, %v5155_v62  ;;  %v5273_v38 = vmul.f32 %v9797_v25, %v5194_v56  ;;  %vm5218_vm1 = vmor %vm5216_vm5, %vm5217_vm10  ;;  %v6220_v62 = vld [vmem:[%s10092_s7 + $0xe0] sm:$0xff] }
 0xc05   : > { %v5164_v59 = vsel %vm9878_vm12, %v9839_v13, %v5159_v32  ;;  %v5265_v33 = vand.u32 2147483647, %v9859_v44  ;;  %v5267_v26 = vand.u32 2147483648, %v9859_v44  ;;  %6816 = vtanh.f32 %v9807_v24 }
 0xc06   : > { %v5230_v14 = vadd.f32 %v6807_v43, %v5229_v1  ;;  %v5214_v58 = vmul.f32 %v6811_v20, %v5213_v63  ;;  %v5271_v17 = vmul.f32 %v9785_v29, %v5164_v59  ;;  %vm5261_vm2 = vweird.f32 %v9859_v44  ;;  %v6221_v1 = vld [vmem:[%s10092_s7 + $0xe8] sm:$0xff]  ;;  %v6222_v63 = vld [vmem:[%s10092_s7 + $0xf0] sm:$0xff] }
 0xc07   : > { %v6813_v30 = vpop.eup %6812  ;;  %v5250_v28 = vand.u32 2147483647, %v9883_v8  ;;  %vm5266_vm13 = vcmp.eq.f32.partialorder %v5265_v33, 8.507059e+37  ;;  %vm5246_vm7 = vweird.f32 %v9883_v8  ;;  %vm10782_vm6 = vcmask 261120  }
 0xc08   : > { %v5257_v40 = vmul.f32 %v6813_v30, %v9859_v44  ;;  %v5234_v9 = vsel %vm5233_vm15, %v6807_v43, %v5230_v14  ;;  %v5215_v39 = vadd.f32 %v6811_v20, %v5214_v58  ;;  %v5223_v43 = vor.u32 1.1754944e-38, %v5222_v31  ;;  %vm10783_vm0 = vmmov %vm10782_vm6  ;;  %v1699_v31 = vpop.permute.xlu0 %1698 }
 0xc09   : > { %v6815_v12 = vpop.eup %6814  ;;  %v5239_v60 = vsel %vm9904_vm14, %v5238_v41, %v5234_v9  ;;  %vm5262_vm4 = vweird.f32 %v6813_v30  ;;  %vm5251_vm14 = vcmp.eq.f32.partialorder %v5250_v28, 8.507059e+37  ;;  %vm10784_vm8 = vmmov %vm10783_vm0  ;;  %v1694_v41 = vpop.permute.xlu2 %1693 }
 0xc0a   : > { %v5258_v16 = vsub.f32 1.0, %v5257_v40  ;;  %v5242_v52 = vmul.f32 %v6815_v12, %v9883_v8  ;;  %v5276_v6 = vmul.f32 %v9804_v57, %v5239_v60  ;;  %v5219_v19 = vsel %vm5218_vm1, %v6811_v20, %v5215_v39  ;;  %vm5263_vm12 = vmor %vm5261_vm2, %vm5262_vm4  ;;  %v4123_v58 = vpop.permute.xlu1 %4122 }
 0xc0b   : > { %v5224_v2 = vsel %vm5221_vm3, %v5223_v43, %v5219_v19  ;;  %v5252_v57 = vand.u32 2147483648, %v9883_v8  ;;  %vm5247_vm9 = vweird.f32 %v6815_v12  ;;  %v5268_v20 = vor.u32 1.1754944e-38, %v5267_v26  ;;  %vm10785_vm15 = vmmov %vm10783_vm0  ;;  %v6218_v8 = vld [vmem:[%s10092_s7 + $0xd0] sm:$0xff]  ;;  %v5499_v19 = vld [vmem:[%s466_s2] sm:$0xf] }
 0xc0c   : > { %v5243_v25 = vsub.f32 1.0, %v5242_v52  ;;  %v5259_v48 = vmul.f32 %v6813_v30, %v5258_v16  ;;  %v5275_v13 = vmul.f32 %v9830_v49, %v5224_v2  ;;  %vm5248_vm11 = vmor %vm5246_vm7, %vm5247_vm9  ;;  %v6817_v49 = vpop.eup %6816 }
 0xc0d   : > { %v5253_v24 = vor.u32 1.1754944e-38, %v5252_v57  ;;  %vm10786_vm10 = vmmov %vm10783_vm0  ;;  %v10798_v57 = vld [vmem:[#allocation26_spill] sm:$0xff] }
 0xc0e   : > { %v5260_v22 = vadd.f32 %v6813_v30, %v5259_v48  ;;  %v5244_v4 = vmul.f32 %v6815_v12, %v5243_v25  ;;  %vm10787_vm5 = vmmov %vm10783_vm0 }
 0xc0f   : > { %vm10788_vm3 = vmmov %vm10783_vm0 }
 0xc10   : > { %v5264_v29 = vsel %vm5263_vm12, %v6813_v30, %v5260_v22  ;;  %v5245_v10 = vadd.f32 %v6815_v12, %v5244_v4  ;;  %vm10789_vm1 = vmmov %vm10783_vm0  ;;  %v2906_v32 = vpop.permute.xlu0 %2905  ;;  %v10799_v22 = vld [vmem:[#allocation25_spill] sm:$0xff] }
 0xc11   : > { %v5269_v51 = vsel %vm5266_vm13, %v5268_v20, %v5264_v29  ;;  %vm10790_vm4 = vmmov %vm10783_vm0  ;;  %v1689_v34 = vpop.permute.xlu2 %1688  ;;  %v1805_v4 = vadd.f32 %v10799_v22, %v1699_v31  ;;  %v10800_v20 = vld [vmem:[#allocation33_spill] sm:$0xff] }
 0xc12   : > { %v5278_v44 = vmul.f32 %v9835_v53, %v5269_v51  ;;  %v5249_v36 = vsel %vm5248_vm11, %v6815_v12, %v5245_v10  ;;  %v6217_v53 = vld [vmem:[%s10092_s7 + $0xc8] sm:$0xff]  ;;  %vm10791_vm2 = vmmov %vm10783_vm0  ;;  %v4118_v56 = vpop.permute.xlu1 %4117  ;;  %v2973_v29 = vadd.f32 %v10800_v20, %v2906_v32  ;;  %v10801_v51 = vld [vmem:[#allocation34_spill] sm:$0xff] }
 0xc13   : > { %v5254_v15 = vsel %vm5251_vm14, %v5253_v24, %v5249_v36  ;;  %vm10792_vm9 = vmmov %vm10783_vm0  ;;  %v2976_v24 = vadd.f32 %v10801_v51, %v2911_v11 }
 0xc14   : > { %5406 = vmatpush.msra.mxu1 %v5278_v44  ;;  %v5277_v27 = vmul.f32 %v6817_v49, %v5254_v15  ;;  %vm10793_vm12 = vmmov %vm10783_vm0  ;;  %v10802_v44 = vld [vmem:[#allocation35_spill] sm:$0xff] }
 0xc15   : > { %vm10794_vm13 = vmmov %vm10783_vm0  ;;  %v3017_v36 = vadd.f32 %v10802_v44, %v2911_v11  ;;  %v10803_v49 = vld [vmem:[#allocation11_spill] sm:$0xff] }
 0xc16   : > { %5369 = vmatpush.msra.mxu0 %v5277_v27  ;;  %5407 = vmatpush.msra.mxu1 %v5276_v6  ;;  %vm10795_vm7 = vmmov %vm10783_vm0  ;;  %v3014_v15 = vadd.f32 %v10803_v49, %v2906_v32  ;;  %v10804_v27 = vld [vmem:[#allocation29_spill] sm:$0xff] }
 0xc17   : > { %vm10796_vm11 = vmmov %vm10783_vm0 }
 0xc18   : > { %5370 = vmatpush.msra.mxu0 %v5275_v13  ;;  %5408 = vmatpush.msra.mxu1 %v5274_v5  ;;  %vm10797_vm14 = vmmov %vm10783_vm0  ;;  %v1764_v13 = vadd.f32 %v10798_v57, %v1699_v31  ;;  %v10812_v57 = vld [vmem:[#allocation17_spill] sm:$0xff] }
 0xc19   : > { %v9997_v30 = vpop.permute.xlu2 %5330 }
 0xc1a   : > { %5371 = vmatpush.msra.mxu0 %v5273_v38  ;;  %5409 = vmatpush.msra.mxu1 %v5272_v3  ;;  %v2896_v39 = vpop.permute.xlu1 %2895  ;;  %v2901_v38 = vpop.permute.xlu0 %2900  ;;  %v3041_v31 = vadd.f32 %v2976_v24, %v1764_v13 }
 0xc1b   : > { %6240 = vmatmul.msk.f32.vlgmr.msra.gmra.mxu1 %vm10782_vm6, %v6216_v23  ;;  %vm5504_vm6 = vcmask 982016  }
 0xc1c   : > { %5372 = vmatpush.msra.mxu0 %v5271_v17 }
 0xc1d   : > { %6232 = vmatmul.msk.f32.vlgmr.msra.gmra.mxu0 %vm10783_vm0, %v6216_v23  ;;  %v1761_v23 = vadd.f32 %v10804_v27, %v1694_v41 }
 0xc21   : > { %v4113_v9 = vpop.permute.xlu2 %4112 }
 0xc22   : > { %v10005_v52 = vpop.permute.xlu1 %4107  ;;  %v1684_v43 = vpop.permute.xlu0 %1683 }
 0xc23   : > { %6241 = vmatmul.msk.f32.gmra.mxu1 %vm10784_vm8, %v6217_v53  ;;  %v1755_v13 = vadd.f32 %v10812_v57, %v1684_v43  ;;  %vm10814_vm8 = vmmov %vm10783_vm0 }
 0xc25   : > { %6233 = vmatmul.msk.f32.gmra.mxu0 %vm10785_vm15, %v6217_v53  ;;  %v10805_v53 = vld [vmem:[#allocation22_spill] sm:$0xff] }
 0xc29   : > { %v10003_v59 = vpop.permute.xlu2 %5320 }
 0xc2a   : > { %v5501_v17 = vpop.permute.xlu1 %5500  ;;  %v5326_v28 = vpop.permute.xlu0 %5325 }
 0xc2b   : > { %6242 = vmatmul.msk.f32.gmra.mxu1 %vm10786_vm10, %v6218_v8 }
 0xc2d   : > { %6234 = vmatmul.msk.f32.gmra.mxu0 %vm10787_vm5, %v6218_v8  ;;  %v1802_v8 = vadd.f32 %v10805_v53, %v1694_v41  ;;  %v4188_v41 = vadd.f32 %v9637_v37, %v4123_v58 }
 0xc31   : > { %v5503_v26 = vpop.permute.xlu2 %5502 }
 0xc32   : > { %v5505_v48 = vsel %vm5504_vm6, %v5501_v17, %v5503_v26  ;;  %v4229_v26 = vadd.f32 %v9634_v42, %v4123_v58  ;;  %v4185_v17 = vadd.f32 %v9622_v55, %v4118_v56  ;;  %v5316_v58 = vpop.permute.xlu0 %5315 }
 0xc33   : > { %6243 = vmatmul.msk.f32.gmra.mxu1 %vm10788_vm3, %v6219_v50  ;;  %v5507_v2 = vmul.f32 %v5505_v48, %v5499_v19  ;;  %v3040_v19 = vadd.f32 %v3014_v15, %v1802_v8 }
 0xc35   : > { %6235 = vmatmul.msk.f32.gmra.mxu0 %vm10789_vm1, %v6219_v50  ;;  %5509 = vrot.lane.b32.xlu1 %v5507_v2, %s6866_s17  ;;  %v10806_v50 = vld [vmem:[#allocation6_spill] sm:$0xff] }
 0xc3b   : > { %6244 = vmatmul.msk.f32.gmra.mxu1 %vm10790_vm4, %v6220_v62 }
 0xc3d   : > { %6236 = vmatmul.msk.f32.gmra.mxu0 %vm10791_vm2, %v6220_v62  ;;  %v3011_v62 = vadd.f32 %v10806_v50, %v2901_v38 }
 0xc43   : > { %6245 = vmatmul.msk.f32.gmra.mxu1 %vm10792_vm9, %v6221_v1 }
 0xc45   : > { %6237 = vmatmul.msk.f32.gmra.mxu0 %vm10793_vm12, %v6221_v1 }
 0xc4b   : > { %6246 = vmatmul.msk.f32.gmra.mxu1 %vm10794_vm13, %v6222_v63 }
 0xc4d   : > { %6238 = vmatmul.msk.f32.gmra.mxu0 %vm10795_vm7, %v6222_v63  ;;  %v10807_v63 = vld [vmem:[#allocation19_spill] sm:$0xff] }
 0xc53   : > { %6247 = vmatmul.msk.f32.gmra.mxu1 %vm10796_vm11, %v6223_v46 }
 0xc55   : > { %6239 = vmatmul.msk.f32.gmra.mxu0 %vm10797_vm14, %v6223_v46  ;;  %v1758_v46 = vadd.f32 %v10807_v63, %v1689_v34 }
 0xc98   : > { %v5411_v21 = vpop.f32.mrf.mxu1 }
 0xc99   : > { %v10808_v21 = vld [vmem:[#allocation18_spill] sm:$0xff] }
 0xc9a   : > { %v5374_v14 = vpop.f32.mrf.mxu0 }
 0xc9b   : > { %v1799_v14 = vadd.f32 %v10808_v21, %v1689_v34  ;;  %v10811_v34 = vld [vmem:[#allocation10_spill] sm:$0xff] }
 0xc9c   : > { %v3008_v2 = vadd.f32 %v10811_v34, %v2896_v39  ;;  %v5447_v21 = vld [vmem:[%s10094_s9] sm:$0xf] }
 0xc9d   : > { %v3038_v48 = vadd.f32 %v3011_v62, %v1799_v14 }
 0xca0   : > { %v5413_v5 = vpop.f32.mrf.mxu1 }
 0xca1   : > { %v3042_v5 = vadd.f32 %v3017_v36, %v1805_v4 }
 0xca2   : > { %v5376_v18 = vpop.f32.mrf.mxu0 }
 0xca3   : > { %v4182_v18 = vadd.f32 %v9605_v0, %v4113_v9  ;;  %v4253_v0 = vadd.f32 %v4188_v41, %v3041_v31  ;;  %v4254_v22 = vadd.f32 %v4229_v26, %v3042_v5  ;;  %v5452_v31 = vpop.permute.xlu0 %5451 }
 0xca8   : > { %v5415_v3 = vpop.f32.mrf.mxu1 }
 0xca9   : > { %v3039_v3 = vadd.f32 %v2973_v29, %v1761_v23  ;;  %v4179_v23 = vadd.f32 %v9589_v45, %v10005_v52 }
 0xcaa   : > { %v5378_v40 = vpop.f32.mrf.mxu0 }
 0xcab   : > { %v10809_v40 = vld [vmem:[#allocation37_spill] sm:$0xff]  ;;  %v4251_v20 = vadd.f32 %v4185_v17, %v3039_v3 }
 0xcac   : > { %v2970_v11 = vadd.f32 %v10809_v40, %v2901_v38  ;;  %v4226_v38 = vadd.f32 %v9620_v54, %v4118_v56  ;;  %v5510_v40 = vpop.permute.xlu1 %5509 }
 0xcae   : > { %v3037_v29 = vadd.f32 %v2970_v11, %v1758_v46  ;;  %v4252_v42 = vadd.f32 %v4226_v38, %v3040_v19 }
 0xcb0   : > { %v5417_v12 = vpop.f32.mrf.mxu1  ;;  %v4249_v53 = vadd.f32 %v4182_v18, %v3037_v29 }
 0xcb1   : > { %v10810_v12 = vld [vmem:[#allocation27_spill] sm:$0xff] }
 0xcb2   : > { %v5380_v60 = vpop.f32.mrf.mxu0  ;;  %v1796_v32 = vadd.f32 %v10810_v12, %v1684_v43  ;;  %v4220_v43 = vadd.f32 %v9586_v47, %v10005_v52 }
 0xcb3   : > { %v4223_v60 = vadd.f32 %v9602_v35, %v4113_v9  ;;  %v10813_v35 = vld [vmem:[#allocation12_spill] sm:$0xff] }
 0xcb4   : > { %v2967_v9 = vadd.f32 %v10813_v35, %v2896_v39  ;;  %v3036_v37 = vadd.f32 %v3008_v2, %v1796_v32 }
 0xcb5   : > { %v4250_v54 = vadd.f32 %v4223_v60, %v3038_v48 }
 0xcb6   : > { %v3035_v36 = vadd.f32 %v2967_v9, %v1755_v13 }
 0xcb8   : > { %v5419_v16 = vpop.f32.mrf.mxu1  ;;  %v4247_v62 = vadd.f32 %v4179_v23, %v3035_v36 }
 0xcb9   : > { %v5420_v49 = vadd.f32 %v5419_v16, %v5316_v58 }
 0xcba   : > { %v10007_v6 = vpop.f32.mrf.mxu0 }
 0xcc0   : > { %v5422_v33 = vpop.f32.mrf.mxu1 }
 0xcc1   : > { %v5423_v55 = vadd.f32 %v5422_v33, %v10003_v59  ;;  %v4248_v33 = vadd.f32 %v4220_v43, %v3036_v37 }
 0xcc2   : > { %v5385_v25 = vpop.f32.mrf.mxu0 }
 0xcc3   : > { %v5434_v8 = vadd.f32 %v5423_v55, %v4250_v54 }
 0xcc5   : > { %v5442_v52 = vmul.f32 %v5434_v8, %v10648_v61 }
 0xcc8   : > { %v5425_v10 = vpop.f32.mrf.mxu1 }
 0xcc9   : > { %v5426_v4 = vadd.f32 %v5425_v10, %v5326_v28  ;;  %v5386_v10 = vadd.f32 %v5385_v25, %v10003_v59 }
 0xcca   : > { %v5388_v1 = vpop.f32.mrf.mxu0 }
 0xccb   : > { %v5389_v24 = vadd.f32 %v5388_v1, %v5326_v28  ;;  %v5436_v15 = vadd.f32 %v5426_v4, %v4252_v42  ;;  %v5383_v28 = vadd.f32 %v10007_v6, %v5316_v58  ;;  %v5432_v1 = vadd.f32 %v5420_v49, %v4248_v33 }
 0xccc   : > { %v5433_v63 = vadd.f32 %v5386_v10, %v4249_v53 }
 0xccd   : > { %v5435_v50 = vadd.f32 %v5389_v24, %v4251_v20  ;;  %v5431_v25 = vadd.f32 %v5383_v28, %v4247_v62  ;;  %v5440_v46 = vmul.f32 %v5432_v1, %v10648_v61 }
 0xcce   : > { %v5441_v6 = vmul.f32 %v5433_v63, %v10645_v7 }
 0xccf   : > { %v5443_v45 = vmul.f32 %v5435_v50, %v10645_v7  ;;  %v5439_v14 = vmul.f32 %v5431_v25, %v10645_v7 }
 0xcd0   : > { %v5428_v51 = vpop.f32.mrf.mxu1 }
 0xcd1   : > { %v5429_v44 = vadd.f32 %v5428_v51, %v9997_v30 }
 0xcd2   : > { %v5391_v56 = vpop.f32.mrf.mxu0 }
 0xcd3   : > { %v5438_v39 = vadd.f32 %v5429_v44, %v4254_v22  ;;  %v5392_v27 = vadd.f32 %v5391_v56, %v9997_v30  ;;  %v5444_v30 = vmul.f32 %v5436_v15, %v10648_v61 }
 0xcd5   : > { %v5446_v47 = vmul.f32 %v5438_v39, %v10648_v61  ;;  %v5437_v16 = vadd.f32 %v5392_v27, %v4253_v0 }
 0xcd7   : > { %v5445_v59 = vmul.f32 %v5437_v16, %v10645_v7  ;;  %5489 = vmatpush.msrb.mxu3 %v5446_v47 }
 0xcd9   : > { %5469 = vmatpush.msrb.mxu2 %v5445_v59  ;;  %5490 = vmatpush.msrb.mxu3 %v5444_v30 }
 0xcdb   : > { %5470 = vmatpush.msrb.mxu2 %v5443_v45  ;;  %5491 = vmatpush.msrb.mxu3 %v5442_v52 }
 0xcdd   : > { %5471 = vmatpush.msrb.mxu2 %v5441_v6  ;;  %5492 = vmatpush.msrb.mxu3 %v5440_v46 }
 0xcde   : > { %6249 = vmatmul.msk.f32.vlgmr.msrb.gmra.mxu3 %vm10783_vm0, %v5447_v21 }
 0xcdf   : > { %5472 = vmatpush.msrb.mxu2 %v5439_v14 }
 0xce0   : > { %6248 = vmatmul.msk.f32.vlgmr.msrb.gmra.mxu2 %vm10814_vm8, %v5447_v21 }
 0xd61   : > { %v5494_v5 = vpop.f32.mrf.mxu3 }
 0xd62   : > { %v5495_v18 = vadd.f32 %v5494_v5, %v5452_v31 }
 0xd63   : > { %v5474_v3 = vpop.f32.mrf.mxu2 }
 0xd64   : > { %v5475_v11 = vadd.f32 %v5474_v3, %v5452_v31  ;;  %v5498_v12 = vmul.f32 %v5495_v18, %v10648_v61 }
 0xd66   : > { %v5497_v32 = vmul.f32 %v5475_v11, %v10645_v7  ;;  %v5513_v60 = vadd.f32 %v5510_v40, %v5498_v12 }
 0xd68   : > { %v5512_v41 = vadd.f32 %v5510_v40, %v5497_v32  ;;  %5518 = vrot.lane.b32.xlu0 %v5513_v60, %s6865_s13 }
 0xd6a   : > { %5516 = vrot.lane.b32.xlu2 %v5512_v41, %s6865_s13 }
 0xdc4   : > { %v5517_v26 = vpop.permute.xlu2 %5516 }
 0xdda   : > { %v5519_v19 = vpop.permute.xlu0 %5518 }
 0xddb   : > { %v5520_v17 = vsel %vm5504_vm6, %v5517_v26, %v5519_v19 }
 0xddc   : > { %5522 = vst [vmem:[%s482_s29] sm:$0xf] %v5520_v17 }
 0xddd PF: > { %s21_s21 = sadd.s32 1, %s6856_s21   ;;  %s10815_s17 = smov %s6848_s19 }
 0xdde   : > { %p18_p7 = scmp.ge.s32.totalorder %s21_s21, 6   ;;  %s10816_s18 = smov %s6852_s20 }
 0xddf   : > { %s10817_s19 = smov %s10820_s22  ;;  %s10818_s20 = smov %s10824_s23 }
 0xde0   :  { %20 = sbr.rel (!%p18_p7) target bundleno = 4 (0x4), region = 112 }

</bundles_post_ra>
